<compile_context>
chip_gen: v7x
topology: tpu7x:2x2x1
jax: 0.10.0
libtpu: 0.0.40
codegen_flags: <defaults>
</compile_context>

<pallas_src>
import jax
import jax.numpy as jnp
from jax.experimental import pallas as pl
from jax.experimental.pallas import tpu as pltpu

CP = 256          # all channel widths zero-padded once to this lane-dense width
HEAD_OUT = 18     # true head output channels (sliced from the padded slab)

# (cin, cout) of every 1x1 conv and its index into the stacked weight tensor.
_CHANNEL_PLAN = [
    (3, 80),      # 0  ext0   (stride-2 stage 1)
    (80, 112),    # 1  ext1   (stride-2 stage 2)
    (112, 160),   # 2  ext2   (stride-2 stage 3)
    (80, 51),     # 3  td0    lateral, level 3
    (112, 51),    # 4  td1    lateral, level 4
    (160, 51),    # 5  td2    lateral, level 5
    (51, 51),     # 6  bu0
    (51, 51),     # 7  bu1
    (51, 51),     # 8  bu2
    (51, 18),     # 9  hd0
    (51, 18),     # 10 hd1
    (51, 18),     # 11 hd2
]
(EXT0, EXT1, EXT2, TD0, TD1, TD2, BU0, BU1, BU2, HD0, HD1, HD2) = range(12)


# ---------------------------------------------------------------------------
# Fused Pallas kernel: the entire network, VMEM-resident
# ---------------------------------------------------------------------------
def _fused_model_kernel(x_ref, s43_ref, s54_ref, u34_ref, u45_ref,
                        w_ref, b_ref, o3_ref, o4_ref, o5_ref):
    """extractor -> TopDown -> BottomUp -> head in one VMEM-resident pass.

    x_ref : (M3, CP) bf16    stride-2-subsampled, channel-padded input slab
    s43   : (M4, M3) bf16    level3 -> level4 stride-2 row-selection matrix
    s54   : (M5, M4) bf16    level4 -> level5 stride-2 row-selection matrix
    u34   : (M3, M4) bf16    level4 -> level3 nearest-2x row-replication matrix
    u45   : (M4, M5) bf16    level5 -> level4 nearest-2x row-replication matrix
    w_ref : (12, CP, CP) bf16 stacked, zero-padded 1x1-conv weights
    b_ref : (12, 1, CP) f32   stacked, zero-padded biases
    o*_ref: (M*, CP) f32      padded per-level head outputs
    """

    def mm(a, b):  # bf16 MXU matmul, f32 accumulate
        return jnp.dot(a.astype(jnp.bfloat16), b.astype(jnp.bfloat16),
                       preferred_element_type=jnp.float32)

    def conv(a, idx, residual=None, relu=True):
        acc = mm(a, w_ref[idx]) + b_ref[idx]          # f32 epilogue
        if residual is not None:                      # specialized: no zeros add
            acc = acc + residual
        if relu:
            acc = jnp.maximum(acc, 0.0)
        return acc

    s43 = s43_ref[...]
    s54 = s54_ref[...]
    u34 = u34_ref[...]
    u45 = u45_ref[...]

    # --- CustomExtractor: three stride-2 pointwise stages --------------------
    c3 = conv(x_ref[...], EXT0)                 # (M3, CP)
    c4 = conv(mm(s43, c3), EXT1)                # (M4, CP)  stride-2 == row select
    c5 = conv(mm(s54, c4), EXT2)                # (M5, CP)
    # DropBlock (DBLinearSheduler) is the identity at inference (epoch=None).

    # --- TopDownAgg (use_concat=False -> residual add) ------------------------
    p5 = conv(c5, TD2)
    p4 = conv(c4, TD1, residual=mm(u45, p5))    # + nearest-2x upsample of p5
    p3 = conv(c3, TD0, residual=mm(u34, p4))    # + nearest-2x upsample of p4

    # --- BottomUpAgg (use_concat=False -> residual add) -----------------------
    n3 = conv(p3, BU0)
    n4 = conv(p4, BU1, residual=mm(s43, n3))    # + stride-2 downsample of n3
    n5 = conv(p5, BU2, residual=mm(s54, n4))    # + stride-2 downsample of n4

    # --- CustomHead: per-level prediction conv (no activation) ----------------
    o3_ref[...] = conv(n3, HD0, relu=False).astype(o3_ref.dtype)
    o4_ref[...] = conv(n4, HD1, relu=False).astype(o4_ref.dtype)
    o5_ref[...] = conv(n5, HD2, relu=False).astype(o5_ref.dtype)


# ---------------------------------------------------------------------------
# Wrapper-side constants: resampling-as-matmul matrices
# ---------------------------------------------------------------------------
def _resample_mats(n, hf, wf, dtype=jnp.bfloat16):
    """0/1 matrices realizing stride-2 downsample / nearest-2x upsample as
    matmuls on row-major (N*H*W, C) slabs."""
    hc, wc = hf // 2, wf // 2
    mf, mc = n * hf * wf, n * hc * wc
    nb = jnp.arange(n)[:, None, None]
    # coarse row (n, i, j)  selects  fine row (n, 2i, 2j)
    fine_src = ((nb * hf + 2 * jnp.arange(hc)[None, :, None]) * wf
                + 2 * jnp.arange(wc)[None, None, :]).reshape(mc)
    s_down = jax.nn.one_hot(fine_src, mf, dtype=dtype)            # (mc, mf)
    # fine row (n, h, w)  replicates  coarse row (n, h//2, w//2)
    coarse_src = ((nb * hc + (jnp.arange(hf) // 2)[None, :, None]) * wc
                  + (jnp.arange(wf) // 2)[None, None, :]).reshape(mf)
    u_up = jax.nn.one_hot(coarse_src, mc, dtype=dtype)            # (mf, mc)
    return s_down, u_up


# ---------------------------------------------------------------------------
# Parameters (deterministic, in-script), padded once to lane-dense CP
# ---------------------------------------------------------------------------
def init_params(key):
    n = len(_CHANNEL_PLAN)
    keys = jax.random.split(key, n)
    w = jnp.zeros((n, CP, CP), jnp.float32)
    for i, (cin, cout) in enumerate(_CHANNEL_PLAN):
        wi = jax.random.normal(keys[i], (cin, cout), jnp.float32) / jnp.sqrt(float(cin))
        w = w.at[i, :cin, :cout].set(wi)
    b = jnp.zeros((n, 1, CP), jnp.float32)   # biases zero-init (as before)
    return {"w": w.astype(jnp.bfloat16), "b": b}


# ---------------------------------------------------------------------------
# Forward (mirrors Model.forward)
# ---------------------------------------------------------------------------
def _forward(params, x_nchw):
    n, cin, h, w = x_nchw.shape
    h3, w3 = h // 2, w // 2
    h4, w4 = h3 // 2, w3 // 2
    h5, w5 = h4 // 2, w4 // 2
    m3, m4, m5 = n * h3 * w3, n * h4 * w4, n * h5 * w5

    # NCHW -> NHWC once; the first stride-2 is a plain spatial subsample of the
    # tiny raw input, done here; channels padded to CP exactly once.
    x_nhwc = jnp.transpose(x_nchw, (0, 2, 3, 1))[:, ::2, ::2, :]
    x_slab = jnp.zeros((m3, CP), jnp.bfloat16).at[:, :cin].set(
        x_nhwc.reshape(m3, cin).astype(jnp.bfloat16))

    s43, u34 = _resample_mats(n, h3, w3)
    s54, u45 = _resample_mats(n, h4, w4)

    vmem = pl.BlockSpec(memory_space=pltpu.MemorySpace.VMEM)
    o3, o4, o5 = pl.pallas_call(
        _fused_model_kernel,
        out_shape=(
            jax.ShapeDtypeStruct((m3, CP), jnp.float32),
            jax.ShapeDtypeStruct((m4, CP), jnp.float32),
            jax.ShapeDtypeStruct((m5, CP), jnp.float32),
        ),
        in_specs=[vmem] * 7,
        out_specs=(vmem, vmem, vmem),
        compiler_params=pltpu.CompilerParams(
            vmem_limit_bytes=32 * 1024 * 1024),
    )(x_slab, s43, s54, u34, u45, params["w"], params["b"])

    return [
        o3[:, :HEAD_OUT].reshape(n, h3, w3, HEAD_OUT),
        o4[:, :HEAD_OUT].reshape(n, h4, w4, HEAD_OUT),
        o5[:, :HEAD_OUT].reshape(n, h5, w5, HEAD_OUT),
    ]


_forward_jit = jax.jit(_forward)


def forward(params, x_nchw, epoch=None):
    # TODO(synk): DropBlock (DBLinearSheduler(5, 50)) stochastic masking for the
    # training path (epoch is not None) is not implemented; at inference it is
    # the identity, matching the reference forward with epoch=None.
    del epoch
    return _forward_jit(params, x_nchw)


if __name__ == "__main__":
    key = jax.random.PRNGKey(0)
    kx, kp = jax.random.split(key)
    # small NCHW input, like the PyTorch module would receive
    x = jax.random.normal(kx, (2, 3, 32, 32), jnp.float32)
    params = init_params(kp)

    outs = forward(params, x, epoch=None)
    outs = jax.block_until_ready(outs)

    expected = [(2, 16, 16, 18), (2, 8, 8, 18), (2, 4, 4, 18)]
    assert [tuple(o.shape) for o in outs] == expected, [o.shape for o in outs]
    assert all(bool(jnp.isfinite(o).all()) for o in outs)
    print("KERNEL_OK")
</pallas_src>

<mosaic_0001>
module attributes {stable_mosaic.version = 11 : i64} {
  func.func @_fused_model_kernel(%arg0: memref<512x256xbf16, #tpu.memory_space<vmem>>, %arg1: memref<128x512xbf16, #tpu.memory_space<vmem>>, %arg2: memref<32x128xbf16, #tpu.memory_space<vmem>>, %arg3: memref<512x128xbf16, #tpu.memory_space<vmem>>, %arg4: memref<128x32xbf16, #tpu.memory_space<vmem>>, %arg5: memref<12x256x256xbf16, #tpu.memory_space<vmem>>, %arg6: memref<12x1x256xf32, #tpu.memory_space<vmem>>, %arg7: memref<512x256xf32, #tpu.memory_space<vmem>>, %arg8: memref<128x256xf32, #tpu.memory_space<vmem>>, %arg9: memref<32x256xf32, #tpu.memory_space<vmem>>) attributes {dimension_semantics = [], scalar_prefetch = 0 : i64, scratch_operands = 0 : i64, tpu.core_type = #tpu.core_type<tc>} {
    %c0 = arith.constant 0 : index
    %c0_0 = arith.constant 0 : index
    %0 = vector.load %arg1[%c0, %c0_0] : memref<128x512xbf16, #tpu.memory_space<vmem>>, vector<128x512xbf16>
    %c0_1 = arith.constant 0 : index
    %c0_2 = arith.constant 0 : index
    %1 = vector.load %arg2[%c0_1, %c0_2] : memref<32x128xbf16, #tpu.memory_space<vmem>>, vector<32x128xbf16>
    %c0_3 = arith.constant 0 : index
    %c0_4 = arith.constant 0 : index
    %2 = vector.load %arg3[%c0_3, %c0_4] : memref<512x128xbf16, #tpu.memory_space<vmem>>, vector<512x128xbf16>
    %c0_5 = arith.constant 0 : index
    %c0_6 = arith.constant 0 : index
    %3 = vector.load %arg4[%c0_5, %c0_6] : memref<128x32xbf16, #tpu.memory_space<vmem>>, vector<128x32xbf16>
    %c0_7 = arith.constant 0 : index
    %c0_8 = arith.constant 0 : index
    %4 = vector.load %arg0[%c0_7, %c0_8] : memref<512x256xbf16, #tpu.memory_space<vmem>>, vector<512x256xbf16>
    %c0_9 = arith.constant 0 : index
    %c0_10 = arith.constant 0 : index
    %c0_11 = arith.constant 0 : index
    %5 = vector.load %arg5[%c0_9, %c0_10, %c0_11] : memref<12x256x256xbf16, #tpu.memory_space<vmem>>, vector<1x256x256xbf16>
    %6 = vector.shape_cast %5 : vector<1x256x256xbf16> to vector<256x256xbf16>
    %cst = arith.constant dense<0.000000e+00> : vector<512x256xf32>
    %7 = tpu.matmul %4, %6, %cst {dimension_numbers = #tpu.dot_dimension_numbers<[1], [0], [0], [1], [0, 0, 1, 1], [], []>} : vector<512x256xbf16>, vector<256x256xbf16>, vector<512x256xf32> -> vector<512x256xf32>
    %c0_12 = arith.constant 0 : index
    %c0_13 = arith.constant 0 : index
    %c0_14 = arith.constant 0 : index
    %8 = vector.load %arg6[%c0_12, %c0_13, %c0_14] : memref<12x1x256xf32, #tpu.memory_space<vmem>>, vector<1x1x256xf32>
    %9 = vector.shape_cast %8 : vector<1x1x256xf32> to vector<1x256xf32>
    %10 = vector.broadcast %9 : vector<1x256xf32> to vector<512x256xf32>
    %11 = arith.addf %7, %10 : vector<512x256xf32>
    %cst_15 = arith.constant 0.000000e+00 : f32
    %12 = vector.broadcast %cst_15 : f32 to vector<512x256xf32>
    %13 = arith.maximumf %11, %12 : vector<512x256xf32>
    %14 = arith.truncf %13 : vector<512x256xf32> to vector<512x256xbf16>
    %cst_16 = arith.constant dense<0.000000e+00> : vector<128x256xf32>
    %15 = tpu.matmul %0, %14, %cst_16 {dimension_numbers = #tpu.dot_dimension_numbers<[1], [0], [0], [1], [0, 0, 1, 1], [], []>} : vector<128x512xbf16>, vector<512x256xbf16>, vector<128x256xf32> -> vector<128x256xf32>
    %c1 = arith.constant 1 : index
    %c0_17 = arith.constant 0 : index
    %c0_18 = arith.constant 0 : index
    %16 = vector.load %arg5[%c1, %c0_17, %c0_18] : memref<12x256x256xbf16, #tpu.memory_space<vmem>>, vector<1x256x256xbf16>
    %17 = vector.shape_cast %16 : vector<1x256x256xbf16> to vector<256x256xbf16>
    %18 = arith.truncf %15 : vector<128x256xf32> to vector<128x256xbf16>
    %cst_19 = arith.constant dense<0.000000e+00> : vector<128x256xf32>
    %19 = tpu.matmul %18, %17, %cst_19 {dimension_numbers = #tpu.dot_dimension_numbers<[1], [0], [0], [1], [0, 0, 1, 1], [], []>} : vector<128x256xbf16>, vector<256x256xbf16>, vector<128x256xf32> -> vector<128x256xf32>
    %c1_20 = arith.constant 1 : index
    %c0_21 = arith.constant 0 : index
    %c0_22 = arith.constant 0 : index
    %20 = vector.load %arg6[%c1_20, %c0_21, %c0_22] : memref<12x1x256xf32, #tpu.memory_space<vmem>>, vector<1x1x256xf32>
    %21 = vector.shape_cast %20 : vector<1x1x256xf32> to vector<1x256xf32>
    %22 = vector.broadcast %21 : vector<1x256xf32> to vector<128x256xf32>
    %23 = arith.addf %19, %22 : vector<128x256xf32>
    %cst_23 = arith.constant 0.000000e+00 : f32
    %24 = vector.broadcast %cst_23 : f32 to vector<128x256xf32>
    %25 = arith.maximumf %23, %24 : vector<128x256xf32>
    %26 = arith.truncf %25 : vector<128x256xf32> to vector<128x256xbf16>
    %cst_24 = arith.constant dense<0.000000e+00> : vector<32x256xf32>
    %27 = tpu.matmul %1, %26, %cst_24 {dimension_numbers = #tpu.dot_dimension_numbers<[1], [0], [0], [1], [0, 0, 1, 1], [], []>} : vector<32x128xbf16>, vector<128x256xbf16>, vector<32x256xf32> -> vector<32x256xf32>
    %c2 = arith.constant 2 : index
    %c0_25 = arith.constant 0 : index
    %c0_26 = arith.constant 0 : index
    %28 = vector.load %arg5[%c2, %c0_25, %c0_26] : memref<12x256x256xbf16, #tpu.memory_space<vmem>>, vector<1x256x256xbf16>
    %29 = vector.shape_cast %28 : vector<1x256x256xbf16> to vector<256x256xbf16>
    %30 = arith.truncf %27 : vector<32x256xf32> to vector<32x256xbf16>
    %cst_27 = arith.constant dense<0.000000e+00> : vector<32x256xf32>
    %31 = tpu.matmul %30, %29, %cst_27 {dimension_numbers = #tpu.dot_dimension_numbers<[1], [0], [0], [1], [0, 0, 1, 1], [], []>} : vector<32x256xbf16>, vector<256x256xbf16>, vector<32x256xf32> -> vector<32x256xf32>
    %c2_28 = arith.constant 2 : index
    %c0_29 = arith.constant 0 : index
    %c0_30 = arith.constant 0 : index
    %32 = vector.load %arg6[%c2_28, %c0_29, %c0_30] : memref<12x1x256xf32, #tpu.memory_space<vmem>>, vector<1x1x256xf32>
    %33 = vector.shape_cast %32 : vector<1x1x256xf32> to vector<1x256xf32>
    %34 = vector.broadcast %33 : vector<1x256xf32> to vector<32x256xf32>
    %35 = arith.addf %31, %34 : vector<32x256xf32>
    %cst_31 = arith.constant 0.000000e+00 : f32
    %36 = vector.broadcast %cst_31 : f32 to vector<32x256xf32>
    %37 = arith.maximumf %35, %36 : vector<32x256xf32>
    %c5 = arith.constant 5 : index
    %c0_32 = arith.constant 0 : index
    %c0_33 = arith.constant 0 : index
    %38 = vector.load %arg5[%c5, %c0_32, %c0_33] : memref<12x256x256xbf16, #tpu.memory_space<vmem>>, vector<1x256x256xbf16>
    %39 = vector.shape_cast %38 : vector<1x256x256xbf16> to vector<256x256xbf16>
    %40 = arith.truncf %37 : vector<32x256xf32> to vector<32x256xbf16>
    %cst_34 = arith.constant dense<0.000000e+00> : vector<32x256xf32>
    %41 = tpu.matmul %40, %39, %cst_34 {dimension_numbers = #tpu.dot_dimension_numbers<[1], [0], [0], [1], [0, 0, 1, 1], [], []>} : vector<32x256xbf16>, vector<256x256xbf16>, vector<32x256xf32> -> vector<32x256xf32>
    %c5_35 = arith.constant 5 : index
    %c0_36 = arith.constant 0 : index
    %c0_37 = arith.constant 0 : index
    %42 = vector.load %arg6[%c5_35, %c0_36, %c0_37] : memref<12x1x256xf32, #tpu.memory_space<vmem>>, vector<1x1x256xf32>
    %43 = vector.shape_cast %42 : vector<1x1x256xf32> to vector<1x256xf32>
    %44 = vector.broadcast %43 : vector<1x256xf32> to vector<32x256xf32>
    %45 = arith.addf %41, %44 : vector<32x256xf32>
    %cst_38 = arith.constant 0.000000e+00 : f32
    %46 = vector.broadcast %cst_38 : f32 to vector<32x256xf32>
    %47 = arith.maximumf %45, %46 : vector<32x256xf32>
    %48 = arith.truncf %47 : vector<32x256xf32> to vector<32x256xbf16>
    %cst_39 = arith.constant dense<0.000000e+00> : vector<128x256xf32>
    %49 = tpu.matmul %3, %48, %cst_39 {dimension_numbers = #tpu.dot_dimension_numbers<[1], [0], [0], [1], [0, 0, 1, 1], [], []>} : vector<128x32xbf16>, vector<32x256xbf16>, vector<128x256xf32> -> vector<128x256xf32>
    %c4 = arith.constant 4 : index
    %c0_40 = arith.constant 0 : index
    %c0_41 = arith.constant 0 : index
    %50 = vector.load %arg5[%c4, %c0_40, %c0_41] : memref<12x256x256xbf16, #tpu.memory_space<vmem>>, vector<1x256x256xbf16>
    %51 = vector.shape_cast %50 : vector<1x256x256xbf16> to vector<256x256xbf16>
    %52 = arith.truncf %25 : vector<128x256xf32> to vector<128x256xbf16>
    %cst_42 = arith.constant dense<0.000000e+00> : vector<128x256xf32>
    %53 = tpu.matmul %52, %51, %cst_42 {dimension_numbers = #tpu.dot_dimension_numbers<[1], [0], [0], [1], [0, 0, 1, 1], [], []>} : vector<128x256xbf16>, vector<256x256xbf16>, vector<128x256xf32> -> vector<128x256xf32>
    %c4_43 = arith.constant 4 : index
    %c0_44 = arith.constant 0 : index
    %c0_45 = arith.constant 0 : index
    %54 = vector.load %arg6[%c4_43, %c0_44, %c0_45] : memref<12x1x256xf32, #tpu.memory_space<vmem>>, vector<1x1x256xf32>
    %55 = vector.shape_cast %54 : vector<1x1x256xf32> to vector<1x256xf32>
    %56 = vector.broadcast %55 : vector<1x256xf32> to vector<128x256xf32>
    %57 = arith.addf %53, %56 : vector<128x256xf32>
    %58 = arith.addf %57, %49 : vector<128x256xf32>
    %cst_46 = arith.constant 0.000000e+00 : f32
    %59 = vector.broadcast %cst_46 : f32 to vector<128x256xf32>
    %60 = arith.maximumf %58, %59 : vector<128x256xf32>
    %61 = arith.truncf %60 : vector<128x256xf32> to vector<128x256xbf16>
    %cst_47 = arith.constant dense<0.000000e+00> : vector<512x256xf32>
    %62 = tpu.matmul %2, %61, %cst_47 {dimension_numbers = #tpu.dot_dimension_numbers<[1], [0], [0], [1], [0, 0, 1, 1], [], []>} : vector<512x128xbf16>, vector<128x256xbf16>, vector<512x256xf32> -> vector<512x256xf32>
    %c3 = arith.constant 3 : index
    %c0_48 = arith.constant 0 : index
    %c0_49 = arith.constant 0 : index
    %63 = vector.load %arg5[%c3, %c0_48, %c0_49] : memref<12x256x256xbf16, #tpu.memory_space<vmem>>, vector<1x256x256xbf16>
    %64 = vector.shape_cast %63 : vector<1x256x256xbf16> to vector<256x256xbf16>
    %65 = arith.truncf %13 : vector<512x256xf32> to vector<512x256xbf16>
    %cst_50 = arith.constant dense<0.000000e+00> : vector<512x256xf32>
    %66 = tpu.matmul %65, %64, %cst_50 {dimension_numbers = #tpu.dot_dimension_numbers<[1], [0], [0], [1], [0, 0, 1, 1], [], []>} : vector<512x256xbf16>, vector<256x256xbf16>, vector<512x256xf32> -> vector<512x256xf32>
    %c3_51 = arith.constant 3 : index
    %c0_52 = arith.constant 0 : index
    %c0_53 = arith.constant 0 : index
    %67 = vector.load %arg6[%c3_51, %c0_52, %c0_53] : memref<12x1x256xf32, #tpu.memory_space<vmem>>, vector<1x1x256xf32>
    %68 = vector.shape_cast %67 : vector<1x1x256xf32> to vector<1x256xf32>
    %69 = vector.broadcast %68 : vector<1x256xf32> to vector<512x256xf32>
    %70 = arith.addf %66, %69 : vector<512x256xf32>
    %71 = arith.addf %70, %62 : vector<512x256xf32>
    %cst_54 = arith.constant 0.000000e+00 : f32
    %72 = vector.broadcast %cst_54 : f32 to vector<512x256xf32>
    %73 = arith.maximumf %71, %72 : vector<512x256xf32>
    %c6 = arith.constant 6 : index
    %c0_55 = arith.constant 0 : index
    %c0_56 = arith.constant 0 : index
    %74 = vector.load %arg5[%c6, %c0_55, %c0_56] : memref<12x256x256xbf16, #tpu.memory_space<vmem>>, vector<1x256x256xbf16>
    %75 = vector.shape_cast %74 : vector<1x256x256xbf16> to vector<256x256xbf16>
    %76 = arith.truncf %73 : vector<512x256xf32> to vector<512x256xbf16>
    %cst_57 = arith.constant dense<0.000000e+00> : vector<512x256xf32>
    %77 = tpu.matmul %76, %75, %cst_57 {dimension_numbers = #tpu.dot_dimension_numbers<[1], [0], [0], [1], [0, 0, 1, 1], [], []>} : vector<512x256xbf16>, vector<256x256xbf16>, vector<512x256xf32> -> vector<512x256xf32>
    %c6_58 = arith.constant 6 : index
    %c0_59 = arith.constant 0 : index
    %c0_60 = arith.constant 0 : index
    %78 = vector.load %arg6[%c6_58, %c0_59, %c0_60] : memref<12x1x256xf32, #tpu.memory_space<vmem>>, vector<1x1x256xf32>
    %79 = vector.shape_cast %78 : vector<1x1x256xf32> to vector<1x256xf32>
    %80 = vector.broadcast %79 : vector<1x256xf32> to vector<512x256xf32>
    %81 = arith.addf %77, %80 : vector<512x256xf32>
    %cst_61 = arith.constant 0.000000e+00 : f32
    %82 = vector.broadcast %cst_61 : f32 to vector<512x256xf32>
    %83 = arith.maximumf %81, %82 : vector<512x256xf32>
    %84 = arith.truncf %83 : vector<512x256xf32> to vector<512x256xbf16>
    %cst_62 = arith.constant dense<0.000000e+00> : vector<128x256xf32>
    %85 = tpu.matmul %0, %84, %cst_62 {dimension_numbers = #tpu.dot_dimension_numbers<[1], [0], [0], [1], [0, 0, 1, 1], [], []>} : vector<128x512xbf16>, vector<512x256xbf16>, vector<128x256xf32> -> vector<128x256xf32>
    %c7 = arith.constant 7 : index
    %c0_63 = arith.constant 0 : index
    %c0_64 = arith.constant 0 : index
    %86 = vector.load %arg5[%c7, %c0_63, %c0_64] : memref<12x256x256xbf16, #tpu.memory_space<vmem>>, vector<1x256x256xbf16>
    %87 = vector.shape_cast %86 : vector<1x256x256xbf16> to vector<256x256xbf16>
    %88 = arith.truncf %60 : vector<128x256xf32> to vector<128x256xbf16>
    %cst_65 = arith.constant dense<0.000000e+00> : vector<128x256xf32>
    %89 = tpu.matmul %88, %87, %cst_65 {dimension_numbers = #tpu.dot_dimension_numbers<[1], [0], [0], [1], [0, 0, 1, 1], [], []>} : vector<128x256xbf16>, vector<256x256xbf16>, vector<128x256xf32> -> vector<128x256xf32>
    %c7_66 = arith.constant 7 : index
    %c0_67 = arith.constant 0 : index
    %c0_68 = arith.constant 0 : index
    %90 = vector.load %arg6[%c7_66, %c0_67, %c0_68] : memref<12x1x256xf32, #tpu.memory_space<vmem>>, vector<1x1x256xf32>
    %91 = vector.shape_cast %90 : vector<1x1x256xf32> to vector<1x256xf32>
    %92 = vector.broadcast %91 : vector<1x256xf32> to vector<128x256xf32>
    %93 = arith.addf %89, %92 : vector<128x256xf32>
    %94 = arith.addf %93, %85 : vector<128x256xf32>
    %cst_69 = arith.constant 0.000000e+00 : f32
    %95 = vector.broadcast %cst_69 : f32 to vector<128x256xf32>
    %96 = arith.maximumf %94, %95 : vector<128x256xf32>
    %97 = arith.truncf %96 : vector<128x256xf32> to vector<128x256xbf16>
    %cst_70 = arith.constant dense<0.000000e+00> : vector<32x256xf32>
    %98 = tpu.matmul %1, %97, %cst_70 {dimension_numbers = #tpu.dot_dimension_numbers<[1], [0], [0], [1], [0, 0, 1, 1], [], []>} : vector<32x128xbf16>, vector<128x256xbf16>, vector<32x256xf32> -> vector<32x256xf32>
    %c8 = arith.constant 8 : index
    %c0_71 = arith.constant 0 : index
    %c0_72 = arith.constant 0 : index
    %99 = vector.load %arg5[%c8, %c0_71, %c0_72] : memref<12x256x256xbf16, #tpu.memory_space<vmem>>, vector<1x256x256xbf16>
    %100 = vector.shape_cast %99 : vector<1x256x256xbf16> to vector<256x256xbf16>
    %101 = arith.truncf %47 : vector<32x256xf32> to vector<32x256xbf16>
    %cst_73 = arith.constant dense<0.000000e+00> : vector<32x256xf32>
    %102 = tpu.matmul %101, %100, %cst_73 {dimension_numbers = #tpu.dot_dimension_numbers<[1], [0], [0], [1], [0, 0, 1, 1], [], []>} : vector<32x256xbf16>, vector<256x256xbf16>, vector<32x256xf32> -> vector<32x256xf32>
    %c8_74 = arith.constant 8 : index
    %c0_75 = arith.constant 0 : index
    %c0_76 = arith.constant 0 : index
    %103 = vector.load %arg6[%c8_74, %c0_75, %c0_76] : memref<12x1x256xf32, #tpu.memory_space<vmem>>, vector<1x1x256xf32>
    %104 = vector.shape_cast %103 : vector<1x1x256xf32> to vector<1x256xf32>
    %105 = vector.broadcast %104 : vector<1x256xf32> to vector<32x256xf32>
    %106 = arith.addf %102, %105 : vector<32x256xf32>
    %107 = arith.addf %106, %98 : vector<32x256xf32>
    %cst_77 = arith.constant 0.000000e+00 : f32
    %108 = vector.broadcast %cst_77 : f32 to vector<32x256xf32>
    %109 = arith.maximumf %107, %108 : vector<32x256xf32>
    %c9 = arith.constant 9 : index
    %c0_78 = arith.constant 0 : index
    %c0_79 = arith.constant 0 : index
    %110 = vector.load %arg5[%c9, %c0_78, %c0_79] : memref<12x256x256xbf16, #tpu.memory_space<vmem>>, vector<1x256x256xbf16>
    %111 = vector.shape_cast %110 : vector<1x256x256xbf16> to vector<256x256xbf16>
    %112 = arith.truncf %83 : vector<512x256xf32> to vector<512x256xbf16>
    %cst_80 = arith.constant dense<0.000000e+00> : vector<512x256xf32>
    %113 = tpu.matmul %112, %111, %cst_80 {dimension_numbers = #tpu.dot_dimension_numbers<[1], [0], [0], [1], [0, 0, 1, 1], [], []>} : vector<512x256xbf16>, vector<256x256xbf16>, vector<512x256xf32> -> vector<512x256xf32>
    %c9_81 = arith.constant 9 : index
    %c0_82 = arith.constant 0 : index
    %c0_83 = arith.constant 0 : index
    %114 = vector.load %arg6[%c9_81, %c0_82, %c0_83] : memref<12x1x256xf32, #tpu.memory_space<vmem>>, vector<1x1x256xf32>
    %115 = vector.shape_cast %114 : vector<1x1x256xf32> to vector<1x256xf32>
    %116 = vector.broadcast %115 : vector<1x256xf32> to vector<512x256xf32>
    %117 = arith.addf %113, %116 : vector<512x256xf32>
    %c0_84 = arith.constant 0 : index
    %c0_85 = arith.constant 0 : index
    %118 = vector.load %arg7[%c0_84, %c0_85] : memref<512x256xf32, #tpu.memory_space<vmem>>, vector<512x256xf32>
    tpu.vector_store %arg7[%c0_84, %c0_85], %117 {strides = array<i32>} : memref<512x256xf32, #tpu.memory_space<vmem>>, vector<512x256xf32>,
    %c10 = arith.constant 10 : index
    %c0_86 = arith.constant 0 : index
    %c0_87 = arith.constant 0 : index
    %119 = vector.load %arg5[%c10, %c0_86, %c0_87] : memref<12x256x256xbf16, #tpu.memory_space<vmem>>, vector<1x256x256xbf16>
    %120 = vector.shape_cast %119 : vector<1x256x256xbf16> to vector<256x256xbf16>
    %121 = arith.truncf %96 : vector<128x256xf32> to vector<128x256xbf16>
    %cst_88 = arith.constant dense<0.000000e+00> : vector<128x256xf32>
    %122 = tpu.matmul %121, %120, %cst_88 {dimension_numbers = #tpu.dot_dimension_numbers<[1], [0], [0], [1], [0, 0, 1, 1], [], []>} : vector<128x256xbf16>, vector<256x256xbf16>, vector<128x256xf32> -> vector<128x256xf32>
    %c10_89 = arith.constant 10 : index
    %c0_90 = arith.constant 0 : index
    %c0_91 = arith.constant 0 : index
    %123 = vector.load %arg6[%c10_89, %c0_90, %c0_91] : memref<12x1x256xf32, #tpu.memory_space<vmem>>, vector<1x1x256xf32>
    %124 = vector.shape_cast %123 : vector<1x1x256xf32> to vector<1x256xf32>
    %125 = vector.broadcast %124 : vector<1x256xf32> to vector<128x256xf32>
    %126 = arith.addf %122, %125 : vector<128x256xf32>
    %c0_92 = arith.constant 0 : index
    %c0_93 = arith.constant 0 : index
    %127 = vector.load %arg8[%c0_92, %c0_93] : memref<128x256xf32, #tpu.memory_space<vmem>>, vector<128x256xf32>
    tpu.vector_store %arg8[%c0_92, %c0_93], %126 {strides = array<i32>} : memref<128x256xf32, #tpu.memory_space<vmem>>, vector<128x256xf32>,
    %c11 = arith.constant 11 : index
    %c0_94 = arith.constant 0 : index
    %c0_95 = arith.constant 0 : index
    %128 = vector.load %arg5[%c11, %c0_94, %c0_95] : memref<12x256x256xbf16, #tpu.memory_space<vmem>>, vector<1x256x256xbf16>
    %129 = vector.shape_cast %128 : vector<1x256x256xbf16> to vector<256x256xbf16>
    %130 = arith.truncf %109 : vector<32x256xf32> to vector<32x256xbf16>
    %cst_96 = arith.constant dense<0.000000e+00> : vector<32x256xf32>
    %131 = tpu.matmul %130, %129, %cst_96 {dimension_numbers = #tpu.dot_dimension_numbers<[1], [0], [0], [1], [0, 0, 1, 1], [], []>} : vector<32x256xbf16>, vector<256x256xbf16>, vector<32x256xf32> -> vector<32x256xf32>
    %c11_97 = arith.constant 11 : index
    %c0_98 = arith.constant 0 : index
    %c0_99 = arith.constant 0 : index
    %132 = vector.load %arg6[%c11_97, %c0_98, %c0_99] : memref<12x1x256xf32, #tpu.memory_space<vmem>>, vector<1x1x256xf32>
    %133 = vector.shape_cast %132 : vector<1x1x256xf32> to vector<1x256xf32>
    %134 = vector.broadcast %133 : vector<1x256xf32> to vector<32x256xf32>
    %135 = arith.addf %131, %134 : vector<32x256xf32>
    %c0_100 = arith.constant 0 : index
    %c0_101 = arith.constant 0 : index
    %136 = vector.load %arg9[%c0_100, %c0_101] : memref<32x256xf32, #tpu.memory_space<vmem>>, vector<32x256xf32>
    tpu.vector_store %arg9[%c0_100, %c0_101], %135 {strides = array<i32>} : memref<32x256xf32, #tpu.memory_space<vmem>>, vector<32x256xf32>,
    return
  }
}

</mosaic_0001>

<bundles_post_ra>
// kernel: _forward.1
= control target key start
LH: loop header
LB: loop body
LE: loop exit
PB: predicated region body
PF: predicated region fallthrough
CT: control target
= control target key end

     0   :  { %15 = vsyncpa [#allocation3], 0  ;;  %s12165_s0 = inlined_call_operand.vmem [shape: bf16[512,256], index: 0, kind: input, shape index: {}]   ;;  %s12166_s1 = inlined_call_operand.vmem [shape: bf16[128,512], index: 1, kind: input, shape index: {}]   ;;  %s12167_s2 = inlined_call_operand.vmem [shape: bf16[32,128], index: 2, kind: input, shape index: {}]   ;;  %s12168_s3 = inlined_call_operand.vmem [shape: bf16[512,128], index: 3, kind: input, shape index: {}]   ;;  %s12169_s4 = inlined_call_operand.vmem [shape: bf16[128,32], index: 4, kind: input, shape index: {}]   ;;  %s12170_s5 = inlined_call_operand.hbm [shape: bf16[12,256,256], index: 5, kind: input, shape index: {}]   ;;  %s12171_s6 = inlined_call_operand.hbm [shape: f32[12,1,256], index: 6, kind: input, shape index: {}]   ;;  %s12172_s7 = inlined_call_operand.vmem [shape: f32[512,256], index: 7, kind: output, shape index: {0}]   ;;  %s12173_s8 = inlined_call_operand.vmem [shape: f32[128,256], index: 8, kind: output, shape index: {1}]   ;;  %s12174_s9 = inlined_call_operand.vmem [shape: f32[32,256], index: 9, kind: output, shape index: {2}]  }
   0x1   :  { %16 = vsyncpa [#allocation5], 0  ;;  %s9592_s30 = smov [#allocation2]   ;;  %s9544_s13 = scalar_lea.hbm %s12170_s5, 49152 }
   0x2   :  { %s32_s10 = sshll.u32 %s9592_s30, 4  ;;  %p9545_p0 = scmp.ne.s32.totalorder %s12170_s5, %s9544_s13  ;;  %s33_s10 = int_to_ptr.vmem [resolvable:$true] %s32_s10 }
   0x3   :  { %p9548_p1 = scmp.lt.u32.totalorder %s9544_s13, %s12170_s5 }
   0x5   :  { %p9550_p2 = pnand %p9548_p1, %p9545_p0 }
   0x7   :  { %9553 = shalt.err (!%p9550_p2)
}
   0x8   :  { %s9554_s18 = scalar_lea.vmem %s33_s10, 49152  ;;  %p9559_p4 = scmp.lt.s32.totalorder %s33_s10, %s33_s10 }
   0x9   :  { %p9555_p3 = scmp.ne.s32.totalorder %s33_s10, %s9554_s18  ;;  %p9560_p5 = scmp.lt.s32.totalorder %s9554_s18, %s9554_s18 }
   0xb   :  { %p9561_p6 = por %p9560_p5, %p9559_p4 }
   0xd   :  { %p9562_p7 = pnand %p9561_p6, %p9555_p3 }
   0xf   :  { %9565 = shalt.err (!%p9562_p7)
}
  0x10   :  { %s9593_s19 = smov 128   ;;  %s9594_s20 = smov 8  }
  0x11   :  { %38 = dma.hbm_to_vmem [thread:$0]  %s12170_s5, 49152, %s33_s10, [#allocation3], %s9593_s19, %s9593_s19, %s9594_s20  }
  0x12   :  { %s9595_s23 = smov [#allocation4]   ;;  %s9566_s27 = scalar_lea.hbm %s12171_s6, 384 }
  0x13   :  { %s44_s24 = sshll.u32 %s9595_s23, 4  ;;  %p9567_p8 = scmp.ne.s32.totalorder %s12171_s6, %s9566_s27  ;;  %s45_s24 = int_to_ptr.vmem [resolvable:$true] %s44_s24 }
  0x14   :  { %p9570_p9 = scmp.lt.u32.totalorder %s9566_s27, %s12171_s6 }
  0x16   :  { %p9572_p10 = pnand %p9570_p9, %p9567_p8 }
  0x18   :  { %9575 = shalt.err (!%p9572_p10)
}
  0x19   :  { %s9576_s12 = scalar_lea.vmem %s45_s24, 384  ;;  %p9581_p12 = scmp.lt.s32.totalorder %s45_s24, %s45_s24 }
  0x1a   :  { %p9577_p11 = scmp.ne.s32.totalorder %s45_s24, %s9576_s12  ;;  %p9582_p13 = scmp.lt.s32.totalorder %s9576_s12, %s9576_s12 }
  0x1c   :  { %p9583_p0 = por %p9582_p13, %p9581_p12 }
  0x1e   :  { %p9584_p1 = pnand %p9583_p0, %p9577_p11 }
  0x20   :  { %9587 = shalt.err (!%p9584_p1)
}
  0x21   :  { %s9596_s5 = smov 32   ;;  %s9597_s10 = smov 2  }
  0x22   :  { %50 = dma.hbm_to_vmem [thread:$0]  %s12171_s6, 384, %s45_s24, [#allocation5], %s9596_s5, %s9596_s5, %s9597_s10  }
  0x23   :  { %9588 = dma.done.wait [#allocation3], 49152  }
  0x24   :  { %9589 = vsyncadd [#allocation3], 4294918144 }
  0x25   :  { %9590 = dma.done.wait [#allocation5], 384  }
  0x26   :  { %9591 = vsyncadd [#allocation5], 4294966912  ;;  %v8748_v0 = vld [vmem:[#allocation2 + $0x4] ss:$8 sps:$4 sm:$0xff]   ;;  %v8750_v1 = vld [vmem:[#allocation2] ss:$8 sps:$4 sm:$0xff]  }
  0x27   :  { %762 = vmatprep.subr.bf16.mxu0 %v8748_v0  ;;  %v8751_v2 = vld [vmem:[#allocation2 + $0x14] ss:$8 sps:$4 sm:$0xff]   ;;  %v8753_v3 = vld [vmem:[#allocation2 + $0x10] ss:$8 sps:$4 sm:$0xff]   ;;  %v8754_v4 = vld [vmem:[#allocation2 + $0x24] ss:$8 sps:$4 sm:$0xff]  }
  0x28   :  { %763 = vmatpush1.bf16.msra.mxu0 %v8750_v1  ;;  %v8756_v5 = vld [vmem:[#allocation2 + $0x20] ss:$8 sps:$4 sm:$0xff]   ;;  %v8757_v6 = vld [vmem:[#allocation2 + $0x34] ss:$8 sps:$4 sm:$0xff]   ;;  %v8759_v7 = vld [vmem:[#allocation2 + $0x30] ss:$8 sps:$4 sm:$0xff]  }
  0x29   :  { %764 = vmatprep.subr.bf16.mxu0 %v8751_v2  ;;  %v8760_v8 = vld [vmem:[#allocation2 + $0x44] ss:$8 sps:$4 sm:$0xff]   ;;  %v8762_v9 = vld [vmem:[#allocation2 + $0x40] ss:$8 sps:$4 sm:$0xff]   ;;  %v8763_v10 = vld [vmem:[#allocation2 + $0x54] ss:$8 sps:$4 sm:$0xff]  }
  0x2a   :  { %v8765_v11 = vld [vmem:[#allocation2 + $0x50] ss:$8 sps:$4 sm:$0xff]   ;;  %v8766_v12 = vld [vmem:[#allocation2 + $0x64] ss:$8 sps:$4 sm:$0xff]   ;;  %v8768_v14 = vld [vmem:[#allocation2 + $0x60] ss:$8 sps:$4 sm:$0xff]  }
  0x2b   :  { %v8798_v13 = vld [vmem:[%s12165_s0 + $0x4] ss:$8 sps:$4 sm:$0xff]   ;;  %v8769_v15 = vld [vmem:[#allocation2 + $0x74] ss:$8 sps:$4 sm:$0xff]   ;;  %v8771_v16 = vld [vmem:[#allocation2 + $0x70] ss:$8 sps:$4 sm:$0xff]  }
  0x2c   :  { %765 = vmatpush1.bf16.msra.mxu0 %v8753_v3  ;;  %794 = vmatprep.mubr.bf16.mxu0 %v8798_v13  ;;  %v8772_v17 = vld [vmem:[#allocation2 + $0x84] ss:$8 sps:$4 sm:$0xff]   ;;  %v8774_v18 = vld [vmem:[#allocation2 + $0x80] ss:$8 sps:$4 sm:$0xff]   ;;  %v8775_v19 = vld [vmem:[#allocation2 + $0x94] ss:$8 sps:$4 sm:$0xff]  }
  0x2d   :  { %766 = vmatprep.subr.bf16.mxu0 %v8754_v4  ;;  %v8777_v20 = vld [vmem:[#allocation2 + $0x90] ss:$8 sps:$4 sm:$0xff]   ;;  %v8778_v21 = vld [vmem:[#allocation2 + $0xa4] ss:$8 sps:$4 sm:$0xff]   ;;  %v8780_v22 = vld [vmem:[#allocation2 + $0xa0] ss:$8 sps:$4 sm:$0xff]  }
  0x2e   :  { %v8781_v23 = vld [vmem:[#allocation2 + $0xb4] ss:$8 sps:$4 sm:$0xff]   ;;  %v8783_v24 = vld [vmem:[#allocation2 + $0xb0] ss:$8 sps:$4 sm:$0xff]   ;;  %v8784_v25 = vld [vmem:[#allocation2 + $0xc4] ss:$8 sps:$4 sm:$0xff]  }
  0x2f   :  { %v8786_v26 = vld [vmem:[#allocation2 + $0xc0] ss:$8 sps:$4 sm:$0xff]   ;;  %v8787_v27 = vld [vmem:[#allocation2 + $0xd4] ss:$8 sps:$4 sm:$0xff]   ;;  %v8789_v28 = vld [vmem:[#allocation2 + $0xd0] ss:$8 sps:$4 sm:$0xff]  }
  0x30   :  { %767 = vmatpush1.bf16.msra.mxu0 %v8756_v5  ;;  %v8790_v29 = vld [vmem:[#allocation2 + $0xe4] ss:$8 sps:$4 sm:$0xff]   ;;  %v8792_v30 = vld [vmem:[#allocation2 + $0xe0] ss:$8 sps:$4 sm:$0xff]   ;;  %v8793_v31 = vld [vmem:[#allocation2 + $0xf4] ss:$8 sps:$4 sm:$0xff]  }
  0x31   :  { %768 = vmatprep.subr.bf16.mxu0 %v8757_v6  ;;  %v8795_v32 = vld [vmem:[#allocation2 + $0xf0] ss:$8 sps:$4 sm:$0xff]   ;;  %v8796_v33 = vld [vmem:[%s12165_s0] ss:$8 sps:$4 sm:$0xff]   ;;  %v8799_v34 = vld [vmem:[%s12165_s0 + $0x14] ss:$8 sps:$4 sm:$0xff]  }
  0x32   :  { %v8801_v35 = vld [vmem:[%s12165_s0 + $0x10] ss:$8 sps:$4 sm:$0xff]   ;;  %v8802_v36 = vld [vmem:[%s12165_s0 + $0x24] ss:$8 sps:$4 sm:$0xff]   ;;  %v8804_v37 = vld [vmem:[%s12165_s0 + $0x20] ss:$8 sps:$4 sm:$0xff]  }
  0x33   :  { %v8805_v38 = vld [vmem:[%s12165_s0 + $0x34] ss:$8 sps:$4 sm:$0xff]   ;;  %v8807_v39 = vld [vmem:[%s12165_s0 + $0x30] ss:$8 sps:$4 sm:$0xff]   ;;  %v8808_v40 = vld [vmem:[%s12165_s0 + $0x44] ss:$8 sps:$4 sm:$0xff]  }
  0x34   :  { %769 = vmatpush1.bf16.msra.mxu0 %v8759_v7  ;;  %v8810_v41 = vld [vmem:[%s12165_s0 + $0x40] ss:$8 sps:$4 sm:$0xff]   ;;  %v8811_v42 = vld [vmem:[%s12165_s0 + $0x54] ss:$8 sps:$4 sm:$0xff]   ;;  %v8813_v43 = vld [vmem:[%s12165_s0 + $0x50] ss:$8 sps:$4 sm:$0xff]  }
  0x35   :  { %770 = vmatprep.subr.bf16.mxu0 %v8760_v8  ;;  %v8814_v44 = vld [vmem:[%s12165_s0 + $0x64] ss:$8 sps:$4 sm:$0xff]   ;;  %v8816_v45 = vld [vmem:[%s12165_s0 + $0x60] ss:$8 sps:$4 sm:$0xff]   ;;  %v8817_v46 = vld [vmem:[%s12165_s0 + $0x74] ss:$8 sps:$4 sm:$0xff]  }
  0x36   :  { %v8819_v47 = vld [vmem:[%s12165_s0 + $0x70] ss:$8 sps:$4 sm:$0xff]   ;;  %v8820_v48 = vld [vmem:[%s12165_s0 + $0x84] ss:$8 sps:$4 sm:$0xff]   ;;  %v8822_v49 = vld [vmem:[%s12165_s0 + $0x80] ss:$8 sps:$4 sm:$0xff]  }
  0x37   :  { %v8823_v50 = vld [vmem:[%s12165_s0 + $0x94] ss:$8 sps:$4 sm:$0xff]   ;;  %v8825_v51 = vld [vmem:[%s12165_s0 + $0x90] ss:$8 sps:$4 sm:$0xff]   ;;  %v8826_v52 = vld [vmem:[%s12165_s0 + $0xa4] ss:$8 sps:$4 sm:$0xff]  }
  0x38   :  { %771 = vmatpush1.bf16.msra.mxu0 %v8762_v9  ;;  %v8828_v53 = vld [vmem:[%s12165_s0 + $0xa0] ss:$8 sps:$4 sm:$0xff]   ;;  %v8829_v54 = vld [vmem:[%s12165_s0 + $0xb4] ss:$8 sps:$4 sm:$0xff]   ;;  %v8831_v55 = vld [vmem:[%s12165_s0 + $0xb0] ss:$8 sps:$4 sm:$0xff]  }
  0x39   :  { %772 = vmatprep.subr.bf16.mxu0 %v8763_v10  ;;  %v8832_v56 = vld [vmem:[%s12165_s0 + $0xc4] ss:$8 sps:$4 sm:$0xff]   ;;  %v8834_v57 = vld [vmem:[%s12165_s0 + $0xc0] ss:$8 sps:$4 sm:$0xff]   ;;  %v8835_v58 = vld [vmem:[%s12165_s0 + $0xd4] ss:$8 sps:$4 sm:$0xff]  }
  0x3a   :  { %v8837_v59 = vld [vmem:[%s12165_s0 + $0xd0] ss:$8 sps:$4 sm:$0xff]   ;;  %v8838_v60 = vld [vmem:[%s12165_s0 + $0xe4] ss:$8 sps:$4 sm:$0xff]   ;;  %v8840_v61 = vld [vmem:[%s12165_s0 + $0xe0] ss:$8 sps:$4 sm:$0xff]  }
  0x3b   :  { %v8841_v62 = vld [vmem:[%s12165_s0 + $0xf4] ss:$8 sps:$4 sm:$0xff]   ;;  %v8843_v63 = vld [vmem:[%s12165_s0 + $0xf0] ss:$8 sps:$4 sm:$0xff]   ;;  %v8844_v0 = vld [vmem:[%s12165_s0 + $0x104] ss:$8 sps:$4 sm:$0xff]  }
  0x3c   :  { %773 = vmatpush1.bf16.msra.mxu0 %v8765_v11  ;;  %v8846_v1 = vld [vmem:[%s12165_s0 + $0x100] ss:$8 sps:$4 sm:$0xff]   ;;  %v8847_v2 = vld [vmem:[%s12165_s0 + $0x114] ss:$8 sps:$4 sm:$0xff]   ;;  %v8849_v3 = vld [vmem:[%s12165_s0 + $0x110] ss:$8 sps:$4 sm:$0xff]  }
  0x3d   :  { %774 = vmatprep.subr.bf16.mxu0 %v8766_v12  ;;  %v8850_v4 = vld [vmem:[%s12165_s0 + $0x124] ss:$8 sps:$4 sm:$0xff]   ;;  %v8852_v5 = vld [vmem:[%s12165_s0 + $0x120] ss:$8 sps:$4 sm:$0xff]   ;;  %v8853_v6 = vld [vmem:[%s12165_s0 + $0x134] ss:$8 sps:$4 sm:$0xff]  }
  0x3e   :  { %v8855_v7 = vld [vmem:[%s12165_s0 + $0x130] ss:$8 sps:$4 sm:$0xff]   ;;  %v8856_v8 = vld [vmem:[%s12165_s0 + $0x144] ss:$8 sps:$4 sm:$0xff]   ;;  %v8858_v9 = vld [vmem:[%s12165_s0 + $0x140] ss:$8 sps:$4 sm:$0xff]  }
  0x3f   :  { %v8859_v10 = vld [vmem:[%s12165_s0 + $0x154] ss:$8 sps:$4 sm:$0xff]   ;;  %v8861_v11 = vld [vmem:[%s12165_s0 + $0x150] ss:$8 sps:$4 sm:$0xff]   ;;  %v8862_v12 = vld [vmem:[%s12165_s0 + $0x164] ss:$8 sps:$4 sm:$0xff]  }
  0x40   :  { %775 = vmatpush1.bf16.msra.mxu0 %v8768_v14  ;;  %v8864_v13 = vld [vmem:[%s12165_s0 + $0x160] ss:$8 sps:$4 sm:$0xff]   ;;  %v8865_v14 = vld [vmem:[%s12165_s0 + $0x174] ss:$8 sps:$4 sm:$0xff]   ;;  %vm2727_vm0 = vcmask 261120  }
  0x41   :  { %776 = vmatprep.subr.bf16.mxu0 %v8769_v15  ;;  %v8867_v15 = vld [vmem:[%s12165_s0 + $0x170] ss:$8 sps:$4 sm:$0xff]  }
  0x44   :  { %777 = vmatpush1.bf16.msra.mxu0 %v8771_v16  ;;  %v8868_v16 = vld [vmem:[%s12165_s0 + $0x184] ss:$8 sps:$4 sm:$0xff]  }
  0x45   :  { %778 = vmatprep.subr.bf16.mxu0 %v8772_v17  ;;  %v8870_v17 = vld [vmem:[%s12165_s0 + $0x180] ss:$8 sps:$4 sm:$0xff]  }
  0x48   :  { %779 = vmatpush1.bf16.msra.mxu0 %v8774_v18  ;;  %v8871_v18 = vld [vmem:[%s12165_s0 + $0x194] ss:$8 sps:$4 sm:$0xff]  }
  0x49   :  { %780 = vmatprep.subr.bf16.mxu0 %v8775_v19  ;;  %v8873_v19 = vld [vmem:[%s12165_s0 + $0x190] ss:$8 sps:$4 sm:$0xff]  }
  0x4c   :  { %781 = vmatpush1.bf16.msra.mxu0 %v8777_v20  ;;  %v272_v20 = vlaneseq }
  0x4d   :  { %782 = vmatprep.subr.bf16.mxu0 %v8778_v21  ;;  %v8874_v21 = vld [vmem:[%s12165_s0 + $0x1a4] ss:$8 sps:$4 sm:$0xff]  }
  0x50   :  { %783 = vmatpush1.bf16.msra.mxu0 %v8780_v22  ;;  %v273_v22 = vshrl.u32 %v272_v20, 7 }
  0x51   :  { %784 = vmatprep.subr.bf16.mxu0 %v8781_v23  ;;  %v8876_v23 = vld [vmem:[%s12165_s0 + $0x1a0] ss:$8 sps:$4 sm:$0xff]  }
  0x54   :  { %785 = vmatpush1.bf16.msra.mxu0 %v8783_v24  ;;  %v9835_v24 = vsub.s32 0, %v273_v22 }
  0x55   :  { %786 = vmatprep.subr.bf16.mxu0 %v8784_v25  ;;  %v270_v25 = vld [vmem:[#allocation4] sm:$0x3] }
  0x56   :  { %12260 = vst [vmem:[#allocation8_spill] sm:$0xff] %v9835_v24 }
  0x58   :  { %787 = vmatpush1.bf16.msra.mxu0 %v8786_v26  ;;  %v9837_v26 = vsub.s32 1, %v273_v22 }
  0x59   :  { %788 = vmatprep.subr.bf16.mxu0 %v8787_v27  ;;  %v8877_v27 = vld [vmem:[%s12165_s0 + $0x1b4] ss:$8 sps:$4 sm:$0xff]  }
  0x5a   :  { %12261 = vst [vmem:[#allocation9_spill] sm:$0xff] %v9837_v26 }
  0x5c   :  { %789 = vmatpush1.bf16.msra.mxu0 %v8789_v28  ;;  %v9843_v28 = vrot.slane %v270_v25, %v9835_v24 }
  0x5d   :  { %790 = vmatprep.subr.bf16.mxu0 %v8790_v29  ;;  %v9846_v29 = vrot.slane %v270_v25, %v9837_v26 }
  0x60   :  { %791 = vmatpush1.bf16.msra.mxu0 %v8792_v30 }
  0x61   :  { %792 = vmatprep.subr.bf16.mxu0 %v8793_v31 }
  0x64   :  { %793 = vmatpush1.bf16.msra.mxu0 %v8795_v32 }
  0x67   :  { %795 = vmatmul.mubr.bf16.vlgmr.msra.gmra.mrb[0].mxu0 %v8796_v33  ;;  %v8879_v33 = vld [vmem:[%s12165_s0 + $0x1b0] ss:$8 sps:$4 sm:$0xff]  }
  0x68   :  { %804 = vmatprep.mubr.bf16.mxu0 %v8799_v34 }
  0x6f   :  { %805 = vmatmul.mubr.bf16.gmra.mrb[4].mxu0 %v8801_v35 }
  0x70   :  { %814 = vmatprep.mubr.bf16.mxu0 %v8802_v36  ;;  %v8880_v36 = vld [vmem:[%s12165_s0 + $0x1c4] ss:$8 sps:$4 sm:$0xff]  }
  0x77   :  { %815 = vmatmul.mubr.bf16.gmra.mrb[8].mxu0 %v8804_v37 }
  0x78   :  { %824 = vmatprep.mubr.bf16.mxu0 %v8805_v38 }
  0x7f   :  { %825 = vmatmul.mubr.bf16.gmra.mrb[12].mxu0 %v8807_v39 }
  0x80   :  { %834 = vmatprep.mubr.bf16.mxu0 %v8808_v40 }
  0x87   :  { %835 = vmatmul.mubr.bf16.gmra.mrb[16].mxu0 %v8810_v41 }
  0x88   :  { %844 = vmatprep.mubr.bf16.mxu0 %v8811_v42 }
  0x8f   :  { %845 = vmatmul.mubr.bf16.gmra.mrb[20].mxu0 %v8813_v43 }
  0x90   :  { %854 = vmatprep.mubr.bf16.mxu0 %v8814_v44 }
  0x97   :  { %855 = vmatmul.mubr.bf16.gmra.mrb[24].mxu0 %v8816_v45 }
  0x98   :  { %864 = vmatprep.mubr.bf16.mxu0 %v8817_v46 }
  0x9f   :  { %865 = vmatmul.mubr.bf16.gmra.mrb[28].mxu0 %v8819_v47  ;;  %v8894_v47 = vld [vmem:[%s12166_s1 + $0x4] ss:$16 sps:$4 sm:$0xff]  }
  0xa0   :  { %874 = vmatprep.mubr.bf16.mxu0 %v8820_v48  ;;  %1499 = vmatprep.mubr.bf16.mxu1 %v8894_v47 }
  0xa7   :  { %875 = vmatmul.mubr.bf16.gmra.mrb[32].mxu0 %v8822_v49 }
  0xa8   :  { %884 = vmatprep.mubr.bf16.mxu0 %v8823_v50  ;;  %v8882_v50 = vld [vmem:[%s12165_s0 + $0x1c0] ss:$8 sps:$4 sm:$0xff]  }
  0xaf   :  { %885 = vmatmul.mubr.bf16.gmra.mrb[36].mxu0 %v8825_v51 }
  0xb0   :  { %894 = vmatprep.mubr.bf16.mxu0 %v8826_v52 }
  0xb7   :  { %895 = vmatmul.mubr.bf16.gmra.mrb[40].mxu0 %v8828_v53  ;;  %v8883_v53 = vld [vmem:[%s12165_s0 + $0x1d4] ss:$8 sps:$4 sm:$0xff]  }
  0xb8   :  { %904 = vmatprep.mubr.bf16.mxu0 %v8829_v54 }
  0xbf   :  { %905 = vmatmul.mubr.bf16.gmra.mrb[44].mxu0 %v8831_v55 }
  0xc0   :  { %914 = vmatprep.mubr.bf16.mxu0 %v8832_v56 }
  0xc7   :  { %915 = vmatmul.mubr.bf16.gmra.mrb[48].mxu0 %v8834_v57 }
  0xc8   :  { %924 = vmatprep.mubr.bf16.mxu0 %v8835_v58 }
  0xcf   :  { %925 = vmatmul.mubr.bf16.gmra.mrb[52].mxu0 %v8837_v59 }
  0xd0   :  { %934 = vmatprep.mubr.bf16.mxu0 %v8838_v60 }
  0xd7   :  { %935 = vmatmul.mubr.bf16.gmra.mrb[56].mxu0 %v8840_v61 }
  0xd8   :  { %944 = vmatprep.mubr.bf16.mxu0 %v8841_v62 }
  0xdf   :  { %945 = vmatmul.mubr.bf16.gmra.mrb[60].mxu0 %v8843_v63 }
  0xe0   :  { %954 = vmatprep.mubr.bf16.mxu0 %v8844_v0 }
  0xe7   :  { %955 = vmatmul.mubr.bf16.gmra.mrb[64].mxu0 %v8846_v1 }
  0xe8   :  { %964 = vmatprep.mubr.bf16.mxu0 %v8847_v2  ;;  %v8885_v2 = vld [vmem:[%s12165_s0 + $0x1d0] ss:$8 sps:$4 sm:$0xff]  }
  0xef   :  { %965 = vmatmul.mubr.bf16.gmra.mrb[68].mxu0 %v8849_v3 }
  0xf0   :  { %974 = vmatprep.mubr.bf16.mxu0 %v8850_v4 }
  0xf7   :  { %975 = vmatmul.mubr.bf16.gmra.mrb[72].mxu0 %v8852_v5  ;;  %v8886_v5 = vld [vmem:[%s12165_s0 + $0x1e4] ss:$8 sps:$4 sm:$0xff]  }
  0xf8   :  { %984 = vmatprep.mubr.bf16.mxu0 %v8853_v6 }
  0xff   :  { %985 = vmatmul.mubr.bf16.gmra.mrb[76].mxu0 %v8855_v7 }
 0x100   :  { %994 = vmatprep.mubr.bf16.mxu0 %v8856_v8 }
 0x107   :  { %995 = vmatmul.mubr.bf16.gmra.mrb[80].mxu0 %v8858_v9 }
 0x108   :  { %1004 = vmatprep.mubr.bf16.mxu0 %v8859_v10 }
 0x10f   :  { %1005 = vmatmul.mubr.bf16.gmra.mrb[84].mxu0 %v8861_v11 }
 0x110   :  { %1014 = vmatprep.mubr.bf16.mxu0 %v8862_v12 }
 0x117   :  { %1015 = vmatmul.mubr.bf16.gmra.mrb[88].mxu0 %v8864_v13 }
 0x118   :  { %1024 = vmatprep.mubr.bf16.mxu0 %v8865_v14 }
 0x11f   :  { %1025 = vmatmul.mubr.bf16.gmra.mrb[92].mxu0 %v8867_v15 }
 0x120   :  { %1034 = vmatprep.mubr.bf16.mxu0 %v8868_v16 }
 0x127   :  { %1035 = vmatmul.mubr.bf16.gmra.mrb[96].mxu0 %v8870_v17 }
 0x128   :  { %1044 = vmatprep.mubr.bf16.mxu0 %v8871_v18  ;;  %v8888_v18 = vld [vmem:[%s12165_s0 + $0x1e0] ss:$8 sps:$4 sm:$0xff]  }
 0x12f   :  { %1045 = vmatmul.mubr.bf16.gmra.mrb[100].mxu0 %v8873_v19 }
 0x130   :  { %1054 = vmatprep.mubr.bf16.mxu0 %v8874_v21  ;;  %v8889_v21 = vld [vmem:[%s12165_s0 + $0x1f4] ss:$8 sps:$4 sm:$0xff]  }
 0x137   :  { %1055 = vmatmul.mubr.bf16.gmra.mrb[104].mxu0 %v8876_v23 }
 0x138   :  { %1064 = vmatprep.mubr.bf16.mxu0 %v8877_v27 }
 0x13a   :  { %v796_v30 = vpop.f32.mrb[0].mxu0 }
 0x13b   :  { %v797_v31 = vadd.f32 %v796_v30, %v9843_v28  ;;  %v798_v32 = vpop.f32.mrb[1].mxu0 }
 0x13c   :  { %v799_v34 = vadd.f32 %v798_v32, %v9846_v29  ;;  %v800_v35 = vpop.f32.mrb[2].mxu0 }
 0x13d   :  { %v801_v37 = vadd.f32 %v800_v35, %v9843_v28  ;;  %v802_v38 = vpop.f32.mrb[3].mxu0  ;;  %v1115_v40 = vmax.f32 %v797_v31, 0.0 }
 0x13e   :  { %v803_v39 = vadd.f32 %v802_v38, %v9846_v29  ;;  %v1116_v42 = vmax.f32 %v799_v34, 0.0 }
 0x13f   :  { %1065 = vmatmul.mubr.bf16.gmra.mrb[108].mxu0 %v8879_v33  ;;  %v1117_v41 = vmax.f32 %v801_v37, 0.0  ;;  %v8891_v37 = vld [vmem:[%s12165_s0 + $0x1f0] ss:$8 sps:$4 sm:$0xff]  }
 0x140   :  { %v1118_v43 = vmax.f32 %v803_v39, 0.0  ;;  %1074 = vmatprep.mubr.bf16.mxu0 %v8880_v36 }
 0x141   :  { %v9858_v44 = vpack.c.bf16 %v1117_v41, %v1115_v40 }
 0x142   :  { %v806_v45 = vpop.f32.mrb[4].mxu0  ;;  %v9860_v46 = vpack.c.bf16 %v1118_v43, %v1116_v42 }
 0x143   :  { %v807_v48 = vadd.f32 %v806_v45, %v9843_v28  ;;  %v808_v49 = vpop.f32.mrb[5].mxu0 }
 0x144   :  { %v809_v51 = vadd.f32 %v808_v49, %v9846_v29  ;;  %v810_v52 = vpop.f32.mrb[6].mxu0  ;;  %1467 = vmatprep.subr.bf16.mxu1 %v9860_v46 }
 0x145   :  { %v811_v54 = vadd.f32 %v810_v52, %v9843_v28  ;;  %v812_v55 = vpop.f32.mrb[7].mxu0  ;;  %1468 = vmatpush1.bf16.msra.mxu1 %v9858_v44  ;;  %v1119_v57 = vmax.f32 %v807_v48, 0.0 }
 0x146   :  { %v813_v56 = vadd.f32 %v812_v55, %v9846_v29  ;;  %v1120_v59 = vmax.f32 %v809_v51, 0.0 }
 0x147   :  { %v1121_v58 = vmax.f32 %v811_v54, 0.0  ;;  %1075 = vmatmul.mubr.bf16.gmra.mrb[112].mxu0 %v8882_v50 }
 0x148   :  { %v1122_v60 = vmax.f32 %v813_v56, 0.0  ;;  %1084 = vmatprep.mubr.bf16.mxu0 %v8883_v53 }
 0x149   :  { %v9877_v61 = vpack.c.bf16 %v1121_v58, %v1119_v57 }
 0x14a   :  { %v816_v62 = vpop.f32.mrb[8].mxu0  ;;  %v9879_v63 = vpack.c.bf16 %v1122_v60, %v1120_v59 }
 0x14b   :  { %v817_v0 = vadd.f32 %v816_v62, %v9843_v28  ;;  %v818_v1 = vpop.f32.mrb[9].mxu0 }
 0x14c   :  { %v819_v3 = vadd.f32 %v818_v1, %v9846_v29  ;;  %v820_v4 = vpop.f32.mrb[10].mxu0  ;;  %1469 = vmatprep.subr.bf16.mxu1 %v9879_v63 }
 0x14d   :  { %v821_v6 = vadd.f32 %v820_v4, %v9843_v28  ;;  %v822_v7 = vpop.f32.mrb[11].mxu0  ;;  %1470 = vmatpush1.bf16.msra.mxu1 %v9877_v61  ;;  %v1123_v9 = vmax.f32 %v817_v0, 0.0 }
 0x14e   :  { %v823_v8 = vadd.f32 %v822_v7, %v9846_v29  ;;  %v1124_v11 = vmax.f32 %v819_v3, 0.0 }
 0x14f   :  { %v1125_v10 = vmax.f32 %v821_v6, 0.0  ;;  %1085 = vmatmul.mubr.bf16.gmra.mrb[116].mxu0 %v8885_v2 }
 0x150   :  { %v1126_v12 = vmax.f32 %v823_v8, 0.0  ;;  %1094 = vmatprep.mubr.bf16.mxu0 %v8886_v5 }
 0x151   :  { %v9893_v13 = vpack.c.bf16 %v1125_v10, %v1123_v9 }
 0x152   :  { %v826_v14 = vpop.f32.mrb[12].mxu0  ;;  %v9895_v15 = vpack.c.bf16 %v1126_v12, %v1124_v11 }
 0x153   :  { %v827_v16 = vadd.f32 %v826_v14, %v9843_v28  ;;  %v828_v17 = vpop.f32.mrb[13].mxu0 }
 0x154   :  { %v829_v19 = vadd.f32 %v828_v17, %v9846_v29  ;;  %v830_v20 = vpop.f32.mrb[14].mxu0  ;;  %1471 = vmatprep.subr.bf16.mxu1 %v9895_v15 }
 0x155   :  { %v831_v22 = vadd.f32 %v830_v20, %v9843_v28  ;;  %v832_v23 = vpop.f32.mrb[15].mxu0  ;;  %1472 = vmatpush1.bf16.msra.mxu1 %v9893_v13  ;;  %v1127_v27 = vmax.f32 %v827_v16, 0.0 }
 0x156   :  { %v833_v25 = vadd.f32 %v832_v23, %v9846_v29  ;;  %v1128_v31 = vmax.f32 %v829_v19, 0.0 }
 0x157   :  { %v1129_v30 = vmax.f32 %v831_v22, 0.0  ;;  %1095 = vmatmul.mubr.bf16.gmra.mrb[120].mxu0 %v8888_v18 }
 0x158   :  { %v1130_v32 = vmax.f32 %v833_v25, 0.0  ;;  %1104 = vmatprep.mubr.bf16.mxu0 %v8889_v21 }
 0x159   :  { %v9909_v33 = vpack.c.bf16 %v1129_v30, %v1127_v27 }
 0x15a   :  { %v836_v34 = vpop.f32.mrb[16].mxu0  ;;  %v9911_v35 = vpack.c.bf16 %v1130_v32, %v1128_v31 }
 0x15b   :  { %v838_v36 = vpop.f32.mrb[17].mxu0  ;;  %v837_v38 = vadd.f32 %v836_v34, %v9843_v28 }
 0x15c   :  { %v840_v39 = vpop.f32.mrb[18].mxu0  ;;  %1473 = vmatprep.subr.bf16.mxu1 %v9911_v35  ;;  %v839_v40 = vadd.f32 %v838_v36, %v9846_v29 }
 0x15d   :  { %v842_v41 = vpop.f32.mrb[19].mxu0  ;;  %1474 = vmatpush1.bf16.msra.mxu1 %v9909_v33  ;;  %v841_v42 = vadd.f32 %v840_v39, %v9843_v28  ;;  %v1131_v45 = vmax.f32 %v837_v38, 0.0 }
 0x15e   :  { %v843_v43 = vadd.f32 %v842_v41, %v9846_v29  ;;  %v1132_v48 = vmax.f32 %v839_v40, 0.0 }
 0x15f   :  { %1105 = vmatmul.mubr.bf16.gmra.mrb[124].mxu0 %v8891_v37  ;;  %v1133_v47 = vmax.f32 %v841_v42, 0.0 }
 0x160   :  { %v1134_v49 = vmax.f32 %v843_v43, 0.0 }
 0x161   :  { %v9922_v50 = vpack.c.bf16 %v1133_v47, %v1131_v45 }
 0x162   :  { %v846_v51 = vpop.f32.mrb[20].mxu0  ;;  %v9924_v52 = vpack.c.bf16 %v1134_v49, %v1132_v48 }
 0x163   :  { %v848_v53 = vpop.f32.mrb[21].mxu0  ;;  %v847_v54 = vadd.f32 %v846_v51, %v9843_v28 }
 0x164   :  { %v850_v55 = vpop.f32.mrb[22].mxu0  ;;  %1475 = vmatprep.subr.bf16.mxu1 %v9924_v52  ;;  %v849_v56 = vadd.f32 %v848_v53, %v9846_v29 }
 0x165   :  { %v852_v57 = vpop.f32.mrb[23].mxu0  ;;  %1476 = vmatpush1.bf16.msra.mxu1 %v9922_v50  ;;  %v851_v58 = vadd.f32 %v850_v55, %v9843_v28  ;;  %v1135_v60 = vmax.f32 %v847_v54, 0.0 }
 0x166   :  { %v853_v59 = vadd.f32 %v852_v57, %v9846_v29  ;;  %v1136_v0 = vmax.f32 %v849_v56, 0.0 }
 0x167   :  { %v1137_v62 = vmax.f32 %v851_v58, 0.0 }
 0x168   :  { %v1138_v1 = vmax.f32 %v853_v59, 0.0 }
 0x169   :  { %v9932_v2 = vpack.c.bf16 %v1137_v62, %v1135_v60 }
 0x16a   :  { %v856_v3 = vpop.f32.mrb[24].mxu0  ;;  %v9934_v4 = vpack.c.bf16 %v1138_v1, %v1136_v0 }
 0x16b   :  { %v858_v5 = vpop.f32.mrb[25].mxu0  ;;  %v857_v6 = vadd.f32 %v856_v3, %v9843_v28 }
 0x16c   :  { %v860_v7 = vpop.f32.mrb[26].mxu0  ;;  %1477 = vmatprep.subr.bf16.mxu1 %v9934_v4  ;;  %v859_v8 = vadd.f32 %v858_v5, %v9846_v29 }
 0x16d   :  { %v862_v9 = vpop.f32.mrb[27].mxu0  ;;  %1478 = vmatpush1.bf16.msra.mxu1 %v9932_v2  ;;  %v861_v10 = vadd.f32 %v860_v7, %v9843_v28  ;;  %v1139_v12 = vmax.f32 %v857_v6, 0.0 }
 0x16e   :  { %v863_v11 = vadd.f32 %v862_v9, %v9846_v29  ;;  %v1140_v16 = vmax.f32 %v859_v8, 0.0 }
 0x16f   :  { %v1141_v14 = vmax.f32 %v861_v10, 0.0 }
 0x170   :  { %v1142_v17 = vmax.f32 %v863_v11, 0.0 }
 0x171   :  { %v9942_v18 = vpack.c.bf16 %v1141_v14, %v1139_v12 }
 0x172   :  { %v866_v19 = vpop.f32.mrb[28].mxu0  ;;  %v9944_v20 = vpack.c.bf16 %v1142_v17, %v1140_v16 }
 0x173   :  { %v868_v21 = vpop.f32.mrb[29].mxu0  ;;  %v867_v22 = vadd.f32 %v866_v19, %v9843_v28 }
 0x174   :  { %v870_v23 = vpop.f32.mrb[30].mxu0  ;;  %1479 = vmatprep.subr.bf16.mxu1 %v9944_v20  ;;  %v869_v25 = vadd.f32 %v868_v21, %v9846_v29 }
 0x175   :  { %v872_v27 = vpop.f32.mrb[31].mxu0  ;;  %1480 = vmatpush1.bf16.msra.mxu1 %v9942_v18  ;;  %v871_v30 = vadd.f32 %v870_v23, %v9843_v28  ;;  %v1143_v32 = vmax.f32 %v867_v22, 0.0 }
 0x176   :  { %v873_v31 = vadd.f32 %v872_v27, %v9846_v29  ;;  %v1144_v36 = vmax.f32 %v869_v25, 0.0 }
 0x177   :  { %v1145_v34 = vmax.f32 %v871_v30, 0.0 }
 0x178   :  { %v1146_v37 = vmax.f32 %v873_v31, 0.0 }
 0x179   :  { %v9952_v38 = vpack.c.bf16 %v1145_v34, %v1143_v32 }
 0x17a   :  { %v876_v39 = vpop.f32.mrb[32].mxu0  ;;  %v9954_v40 = vpack.c.bf16 %v1146_v37, %v1144_v36 }
 0x17b   :  { %v878_v41 = vpop.f32.mrb[33].mxu0  ;;  %v877_v42 = vadd.f32 %v876_v39, %v9843_v28 }
 0x17c   :  { %v880_v43 = vpop.f32.mrb[34].mxu0  ;;  %1481 = vmatprep.subr.bf16.mxu1 %v9954_v40  ;;  %v879_v45 = vadd.f32 %v878_v41, %v9846_v29 }
 0x17d   :  { %v882_v47 = vpop.f32.mrb[35].mxu0  ;;  %1482 = vmatpush1.bf16.msra.mxu1 %v9952_v38  ;;  %v881_v48 = vadd.f32 %v880_v43, %v9843_v28  ;;  %v1147_v51 = vmax.f32 %v877_v42, 0.0 }
 0x17e   :  { %v883_v49 = vadd.f32 %v882_v47, %v9846_v29  ;;  %v1148_v54 = vmax.f32 %v879_v45, 0.0 }
 0x17f   :  { %v1149_v53 = vmax.f32 %v881_v48, 0.0 }
 0x180   :  { %v1150_v55 = vmax.f32 %v883_v49, 0.0 }
 0x181   :  { %v9962_v56 = vpack.c.bf16 %v1149_v53, %v1147_v51 }
 0x182   :  { %v886_v57 = vpop.f32.mrb[36].mxu0  ;;  %v9964_v58 = vpack.c.bf16 %v1150_v55, %v1148_v54 }
 0x183   :  { %v888_v59 = vpop.f32.mrb[37].mxu0  ;;  %v887_v60 = vadd.f32 %v886_v57, %v9843_v28 }
 0x184   :  { %v890_v62 = vpop.f32.mrb[38].mxu0  ;;  %1483 = vmatprep.subr.bf16.mxu1 %v9964_v58  ;;  %v889_v0 = vadd.f32 %v888_v59, %v9846_v29 }
 0x185   :  { %v892_v1 = vpop.f32.mrb[39].mxu0  ;;  %1484 = vmatpush1.bf16.msra.mxu1 %v9962_v56  ;;  %v891_v3 = vadd.f32 %v890_v62, %v9843_v28  ;;  %v1151_v6 = vmax.f32 %v887_v60, 0.0 }
 0x186   :  { %v893_v5 = vadd.f32 %v892_v1, %v9846_v29  ;;  %v1152_v8 = vmax.f32 %v889_v0, 0.0 }
 0x187   :  { %v1153_v7 = vmax.f32 %v891_v3, 0.0 }
 0x188   :  { %v1154_v9 = vmax.f32 %v893_v5, 0.0 }
 0x189   :  { %v9972_v10 = vpack.c.bf16 %v1153_v7, %v1151_v6 }
 0x18a   :  { %v896_v11 = vpop.f32.mrb[40].mxu0  ;;  %v9974_v12 = vpack.c.bf16 %v1154_v9, %v1152_v8 }
 0x18b   :  { %v898_v14 = vpop.f32.mrb[41].mxu0  ;;  %v897_v16 = vadd.f32 %v896_v11, %v9843_v28 }
 0x18c   :  { %v900_v17 = vpop.f32.mrb[42].mxu0  ;;  %1485 = vmatprep.subr.bf16.mxu1 %v9974_v12  ;;  %v899_v19 = vadd.f32 %v898_v14, %v9846_v29 }
 0x18d   :  { %v902_v21 = vpop.f32.mrb[43].mxu0  ;;  %1486 = vmatpush1.bf16.msra.mxu1 %v9972_v10  ;;  %v901_v22 = vadd.f32 %v900_v17, %v9843_v28  ;;  %v1155_v25 = vmax.f32 %v897_v16, 0.0 }
 0x18e   :  { %v903_v23 = vadd.f32 %v902_v21, %v9846_v29  ;;  %v1156_v30 = vmax.f32 %v899_v19, 0.0 }
 0x18f   :  { %v1157_v27 = vmax.f32 %v901_v22, 0.0 }
 0x190   :  { %v1158_v31 = vmax.f32 %v903_v23, 0.0 }
 0x191   :  { %v9982_v32 = vpack.c.bf16 %v1157_v27, %v1155_v25 }
 0x192   :  { %v906_v34 = vpop.f32.mrb[44].mxu0  ;;  %v9984_v36 = vpack.c.bf16 %v1158_v31, %v1156_v30 }
 0x193   :  { %12262 = vst [vmem:[#allocation10_spill] sm:$0xff] %v9982_v32  ;;  %v908_v37 = vpop.f32.mrb[45].mxu0  ;;  %v907_v39 = vadd.f32 %v906_v34, %v9843_v28 }
 0x194   :  { %v910_v41 = vpop.f32.mrb[46].mxu0  ;;  %1487 = vmatprep.subr.bf16.mxu1 %v9984_v36  ;;  %v909_v42 = vadd.f32 %v908_v37, %v9846_v29 }
 0x195   :  { %v912_v43 = vpop.f32.mrb[47].mxu0  ;;  %1488 = vmatpush1.bf16.msra.mxu1 %v9982_v32  ;;  %v911_v45 = vadd.f32 %v910_v41, %v9843_v28  ;;  %v1159_v48 = vmax.f32 %v907_v39, 0.0 }
 0x196   :  { %v913_v47 = vadd.f32 %v912_v43, %v9846_v29  ;;  %v1160_v51 = vmax.f32 %v909_v42, 0.0 }
 0x197   :  { %v1161_v49 = vmax.f32 %v911_v45, 0.0 }
 0x198   :  { %v1162_v53 = vmax.f32 %v913_v47, 0.0 }
 0x199   :  { %v9992_v54 = vpack.c.bf16 %v1161_v49, %v1159_v48 }
 0x19a   :  { %v916_v55 = vpop.f32.mrb[48].mxu0  ;;  %v9994_v57 = vpack.c.bf16 %v1162_v53, %v1160_v51 }
 0x19b   :  { %12263 = vst [vmem:[#allocation11_spill] sm:$0xff] %v9992_v54  ;;  %v917_v59 = vadd.f32 %v916_v55, %v9843_v28  ;;  %v918_v60 = vpop.f32.mrb[49].mxu0 }
 0x19c   :  { %12264 = vst [vmem:[#allocation12_spill] sm:$0xff] %v9994_v57  ;;  %v919_v62 = vadd.f32 %v918_v60, %v9846_v29  ;;  %v920_v0 = vpop.f32.mrb[50].mxu0  ;;  %1489 = vmatprep.subr.bf16.mxu1 %v9994_v57 }
 0x19d   :  { %v921_v1 = vadd.f32 %v920_v0, %v9843_v28  ;;  %v922_v3 = vpop.f32.mrb[51].mxu0  ;;  %1490 = vmatpush1.bf16.msra.mxu1 %v9992_v54  ;;  %v1163_v6 = vmax.f32 %v917_v59, 0.0 }
 0x19e   :  { %v923_v5 = vadd.f32 %v922_v3, %v9846_v29  ;;  %v1164_v8 = vmax.f32 %v919_v62, 0.0 }
 0x19f   :  { %v1165_v7 = vmax.f32 %v921_v1, 0.0 }
 0x1a0   :  { %v1166_v9 = vmax.f32 %v923_v5, 0.0 }
 0x1a1   :  { %v10002_v11 = vpack.c.bf16 %v1165_v7, %v1163_v6 }
 0x1a2   :  { %v926_v14 = vpop.f32.mrb[52].mxu0  ;;  %v10004_v16 = vpack.c.bf16 %v1166_v9, %v1164_v8 }
 0x1a3   :  { %12265 = vst [vmem:[#allocation13_spill] sm:$0xff] %v10002_v11  ;;  %v927_v17 = vadd.f32 %v926_v14, %v9843_v28  ;;  %v928_v19 = vpop.f32.mrb[53].mxu0 }
 0x1a4   :  { %12266 = vst [vmem:[#allocation14_spill] sm:$0xff] %v10004_v16  ;;  %v929_v21 = vadd.f32 %v928_v19, %v9846_v29  ;;  %v930_v22 = vpop.f32.mrb[54].mxu0  ;;  %1491 = vmatprep.subr.bf16.mxu1 %v10004_v16 }
 0x1a5   :  { %v931_v23 = vadd.f32 %v930_v22, %v9843_v28  ;;  %v932_v25 = vpop.f32.mrb[55].mxu0  ;;  %1492 = vmatpush1.bf16.msra.mxu1 %v10002_v11  ;;  %v1167_v30 = vmax.f32 %v927_v17, 0.0 }
 0x1a6   :  { %v933_v27 = vadd.f32 %v932_v25, %v9846_v29  ;;  %v1168_v34 = vmax.f32 %v929_v21, 0.0 }
 0x1a7   :  { %v1169_v31 = vmax.f32 %v931_v23, 0.0 }
 0x1a8   :  { %v1170_v37 = vmax.f32 %v933_v27, 0.0 }
 0x1a9   :  { %v10012_v39 = vpack.c.bf16 %v1169_v31, %v1167_v30 }
 0x1aa   :  { %v936_v41 = vpop.f32.mrb[56].mxu0  ;;  %v10014_v42 = vpack.c.bf16 %v1170_v37, %v1168_v34 }
 0x1ab   :  { %12267 = vst [vmem:[#allocation15_spill] sm:$0xff] %v10012_v39  ;;  %v937_v43 = vadd.f32 %v936_v41, %v9843_v28  ;;  %v938_v45 = vpop.f32.mrb[57].mxu0 }
 0x1ac   :  { %12268 = vst [vmem:[#allocation16_spill] sm:$0xff] %v10014_v42  ;;  %v939_v47 = vadd.f32 %v938_v45, %v9846_v29  ;;  %v940_v48 = vpop.f32.mrb[58].mxu0  ;;  %1493 = vmatprep.subr.bf16.mxu1 %v10014_v42 }
 0x1ad   :  { %v941_v49 = vadd.f32 %v940_v48, %v9843_v28  ;;  %v942_v51 = vpop.f32.mrb[59].mxu0  ;;  %1494 = vmatpush1.bf16.msra.mxu1 %v10012_v39  ;;  %v1171_v55 = vmax.f32 %v937_v43, 0.0  ;;  %v8892_v43 = vld [vmem:[%s12166_s1] ss:$16 sps:$4 sm:$0xff]   ;;  %v8895_v48 = vld [vmem:[%s12166_s1 + $0x24] ss:$16 sps:$4 sm:$0xff]  }
 0x1ae   :  { %v943_v53 = vadd.f32 %v942_v51, %v9846_v29  ;;  %v1172_v60 = vmax.f32 %v939_v47, 0.0 }
 0x1af   :  { %v1173_v59 = vmax.f32 %v941_v49, 0.0 }
 0x1b0   :  { %v1174_v62 = vmax.f32 %v943_v53, 0.0 }
 0x1b1   :  { %v10022_v0 = vpack.c.bf16 %v1173_v59, %v1171_v55 }
 0x1b2   :  { %v946_v1 = vpop.f32.mrb[60].mxu0  ;;  %v10024_v3 = vpack.c.bf16 %v1174_v62, %v1172_v60 }
 0x1b3   :  { %12269 = vst [vmem:[#allocation17_spill] sm:$0xff] %v10022_v0  ;;  %v947_v5 = vadd.f32 %v946_v1, %v9843_v28  ;;  %v948_v6 = vpop.f32.mrb[61].mxu0 }
 0x1b4   :  { %12270 = vst [vmem:[#allocation18_spill] sm:$0xff] %v10024_v3  ;;  %v949_v7 = vadd.f32 %v948_v6, %v9846_v29  ;;  %v950_v8 = vpop.f32.mrb[62].mxu0  ;;  %1495 = vmatprep.subr.bf16.mxu1 %v10024_v3 }
 0x1b5   :  { %v951_v9 = vadd.f32 %v950_v8, %v9843_v28  ;;  %v952_v14 = vpop.f32.mrb[63].mxu0  ;;  %1496 = vmatpush1.bf16.msra.mxu1 %v10022_v0  ;;  %v1175_v19 = vmax.f32 %v947_v5, 0.0 }
 0x1b6   :  { %v953_v17 = vadd.f32 %v952_v14, %v9846_v29  ;;  %v1176_v22 = vmax.f32 %v949_v7, 0.0 }
 0x1b7   :  { %v1177_v21 = vmax.f32 %v951_v9, 0.0  ;;  %v8897_v9 = vld [vmem:[%s12166_s1 + $0x20] ss:$16 sps:$4 sm:$0xff]  }
 0x1b8   :  { %v1178_v23 = vmax.f32 %v953_v17, 0.0 }
 0x1b9   :  { %v10032_v25 = vpack.c.bf16 %v1177_v21, %v1175_v19  ;;  %v8898_v19 = vld [vmem:[%s12166_s1 + $0x44] ss:$16 sps:$4 sm:$0xff]  }
 0x1ba   :  { %v956_v27 = vpop.f32.mrb[64].mxu0  ;;  %v10034_v30 = vpack.c.bf16 %v1178_v23, %v1176_v22 }
 0x1bb   :  { %12271 = vst [vmem:[#allocation19_spill] sm:$0xff] %v10032_v25  ;;  %v957_v31 = vadd.f32 %v956_v27, %v9843_v28  ;;  %v958_v34 = vpop.f32.mrb[65].mxu0 }
 0x1bc   :  { %12272 = vst [vmem:[#allocation20_spill] sm:$0xff] %v10034_v30  ;;  %v959_v37 = vadd.f32 %v958_v34, %v9846_v29  ;;  %v960_v41 = vpop.f32.mrb[66].mxu0  ;;  %1497 = vmatprep.subr.bf16.mxu1 %v10034_v30 }
 0x1bd   :  { %v961_v45 = vadd.f32 %v960_v41, %v9843_v28  ;;  %v962_v47 = vpop.f32.mrb[67].mxu0  ;;  %1498 = vmatpush1.bf16.msra.mxu1 %v10032_v25  ;;  %v1179_v51 = vmax.f32 %v957_v31, 0.0 }
 0x1be   :  { %v963_v49 = vadd.f32 %v962_v47, %v9846_v29  ;;  %v1180_v55 = vmax.f32 %v959_v37, 0.0 }
 0x1bf   :  { %v1181_v53 = vmax.f32 %v961_v45, 0.0 }
 0x1c0   :  { %v1182_v59 = vmax.f32 %v963_v49, 0.0  ;;  %1500 = vmatmul.mubr.bf16.vlgmr.msra.gmra.mrb[0].mxu1 %v8892_v43  ;;  %v8900_v49 = vld [vmem:[%s12166_s1 + $0x40] ss:$16 sps:$4 sm:$0xff]  }
 0x1c1   :  { %v10048_v60 = vpack.c.bf16 %v1181_v53, %v1179_v51  ;;  %1509 = vmatprep.mubr.bf16.mxu1 %v8895_v48 }
 0x1c2   :  { %v966_v62 = vpop.f32.mrb[68].mxu0  ;;  %v10050_v1 = vpack.c.bf16 %v1182_v59, %v1180_v55  ;;  %v8901_v55 = vld [vmem:[%s12166_s1 + $0x64] ss:$16 sps:$4 sm:$0xff]  }
 0x1c3   :  { %12273 = vst [vmem:[#allocation21_spill] sm:$0xff] %v10048_v60  ;;  %v967_v5 = vadd.f32 %v966_v62, %v9843_v28  ;;  %v968_v6 = vpop.f32.mrb[69].mxu0 }
 0x1c4   :  { %12274 = vst [vmem:[#allocation22_spill] sm:$0xff] %v10050_v1  ;;  %v969_v7 = vadd.f32 %v968_v6, %v9846_v29  ;;  %v970_v8 = vpop.f32.mrb[70].mxu0  ;;  %1580 = vmatprep.subr.bf16.mxu1 %v10050_v1 }
 0x1c5   :  { %v971_v14 = vadd.f32 %v970_v8, %v9843_v28  ;;  %v972_v17 = vpop.f32.mrb[71].mxu0  ;;  %1581 = vmatpush1.bf16.msra.mxu1 %v10048_v60  ;;  %v1183_v22 = vmax.f32 %v967_v5, 0.0 }
 0x1c6   :  { %v973_v21 = vadd.f32 %v972_v17, %v9846_v29  ;;  %v1184_v27 = vmax.f32 %v969_v7, 0.0 }
 0x1c7   :  { %v1185_v23 = vmax.f32 %v971_v14, 0.0 }
 0x1c8   :  { %v1186_v31 = vmax.f32 %v973_v21, 0.0  ;;  %1510 = vmatmul.mubr.bf16.gmra.mrb[4].mxu1 %v8897_v9 }
 0x1c9   :  { %v10064_v34 = vpack.c.bf16 %v1185_v23, %v1183_v22  ;;  %1519 = vmatprep.mubr.bf16.mxu1 %v8898_v19  ;;  %v8903_v23 = vld [vmem:[%s12166_s1 + $0x60] ss:$16 sps:$4 sm:$0xff]  }
 0x1ca   :  { %v976_v37 = vpop.f32.mrb[72].mxu0  ;;  %v10066_v41 = vpack.c.bf16 %v1186_v31, %v1184_v27 }
 0x1cb   :  { %12275 = vst [vmem:[#allocation23_spill] sm:$0xff] %v10064_v34  ;;  %v977_v43 = vadd.f32 %v976_v37, %v9843_v28  ;;  %v978_v45 = vpop.f32.mrb[73].mxu0  ;;  %v8904_v37 = vld [vmem:[%s12166_s1 + $0x84] ss:$16 sps:$4 sm:$0xff]  }
 0x1cc   :  { %12276 = vst [vmem:[#allocation24_spill] sm:$0xff] %v10066_v41  ;;  %v979_v47 = vadd.f32 %v978_v45, %v9846_v29  ;;  %v980_v48 = vpop.f32.mrb[74].mxu0  ;;  %1582 = vmatprep.subr.bf16.mxu1 %v10066_v41 }
 0x1cd   :  { %v981_v51 = vadd.f32 %v980_v48, %v9843_v28  ;;  %v982_v53 = vpop.f32.mrb[75].mxu0  ;;  %1583 = vmatpush1.bf16.msra.mxu1 %v10064_v34  ;;  %v1187_v62 = vmax.f32 %v977_v43, 0.0 }
 0x1ce   :  { %v983_v59 = vadd.f32 %v982_v53, %v9846_v29  ;;  %v1188_v6 = vmax.f32 %v979_v47, 0.0 }
 0x1cf   :  { %v1189_v5 = vmax.f32 %v981_v51, 0.0 }
 0x1d0   :  { %v1190_v7 = vmax.f32 %v983_v59, 0.0  ;;  %1520 = vmatmul.mubr.bf16.gmra.mrb[8].mxu1 %v8900_v49 }
 0x1d1   :  { %v10080_v8 = vpack.c.bf16 %v1189_v5, %v1187_v62  ;;  %1529 = vmatprep.mubr.bf16.mxu1 %v8901_v55 }
 0x1d2   :  { %v986_v9 = vpop.f32.mrb[76].mxu0  ;;  %v10082_v14 = vpack.c.bf16 %v1190_v7, %v1188_v6  ;;  %v8906_v7 = vld [vmem:[%s12166_s1 + $0x80] ss:$16 sps:$4 sm:$0xff]  }
 0x1d3   :  { %12277 = vst [vmem:[#allocation25_spill] sm:$0xff] %v10080_v8  ;;  %v987_v17 = vadd.f32 %v986_v9, %v9843_v28  ;;  %v988_v19 = vpop.f32.mrb[77].mxu0 }
 0x1d4   :  { %12278 = vst [vmem:[#allocation26_spill] sm:$0xff] %v10082_v14  ;;  %v989_v21 = vadd.f32 %v988_v19, %v9846_v29  ;;  %v990_v22 = vpop.f32.mrb[78].mxu0  ;;  %1584 = vmatprep.subr.bf16.mxu1 %v10082_v14  ;;  %v8907_v19 = vld [vmem:[%s12166_s1 + $0xa4] ss:$16 sps:$4 sm:$0xff]  }
 0x1d5   :  { %v991_v27 = vadd.f32 %v990_v22, %v9843_v28  ;;  %v992_v31 = vpop.f32.mrb[79].mxu0  ;;  %1585 = vmatpush1.bf16.msra.mxu1 %v10080_v8  ;;  %v1191_v45 = vmax.f32 %v987_v17, 0.0 }
 0x1d6   :  { %v993_v43 = vadd.f32 %v992_v31, %v9846_v29  ;;  %v1192_v48 = vmax.f32 %v989_v21, 0.0 }
 0x1d7   :  { %v1193_v47 = vmax.f32 %v991_v27, 0.0 }
 0x1d8   :  { %v1194_v49 = vmax.f32 %v993_v43, 0.0  ;;  %1530 = vmatmul.mubr.bf16.gmra.mrb[12].mxu1 %v8903_v23 }
 0x1d9   :  { %v10096_v51 = vpack.c.bf16 %v1193_v47, %v1191_v45  ;;  %1539 = vmatprep.mubr.bf16.mxu1 %v8904_v37 }
 0x1da   :  { %v996_v53 = vpop.f32.mrb[80].mxu0  ;;  %v10098_v55 = vpack.c.bf16 %v1194_v49, %v1192_v48 }
 0x1db   :  { %12279 = vst [vmem:[#allocation27_spill] sm:$0xff] %v10096_v51  ;;  %v997_v59 = vadd.f32 %v996_v53, %v9843_v28  ;;  %v998_v62 = vpop.f32.mrb[81].mxu0 }
 0x1dc   :  { %12280 = vst [vmem:[#allocation28_spill] sm:$0xff] %v10098_v55  ;;  %v999_v5 = vadd.f32 %v998_v62, %v9846_v29  ;;  %v1000_v6 = vpop.f32.mrb[82].mxu0  ;;  %1586 = vmatprep.subr.bf16.mxu1 %v10098_v55 }
 0x1dd   :  { %v1001_v9 = vadd.f32 %v1000_v6, %v9843_v28  ;;  %v1002_v17 = vpop.f32.mrb[83].mxu0  ;;  %1587 = vmatpush1.bf16.msra.mxu1 %v10096_v51  ;;  %v1195_v22 = vmax.f32 %v997_v59, 0.0  ;;  %v8909_v59 = vld [vmem:[%s12166_s1 + $0xa0] ss:$16 sps:$4 sm:$0xff]   ;;  %v8910_v6 = vld [vmem:[%s12166_s1 + $0xc4] ss:$16 sps:$4 sm:$0xff]  }
 0x1de   :  { %v1003_v21 = vadd.f32 %v1002_v17, %v9846_v29  ;;  %v1196_v27 = vmax.f32 %v999_v5, 0.0 }
 0x1df   :  { %v1197_v23 = vmax.f32 %v1001_v9, 0.0 }
 0x1e0   :  { %v1198_v31 = vmax.f32 %v1003_v21, 0.0  ;;  %1540 = vmatmul.mubr.bf16.gmra.mrb[16].mxu1 %v8906_v7 }
 0x1e1   :  { %v10112_v37 = vpack.c.bf16 %v1197_v23, %v1195_v22  ;;  %1549 = vmatprep.mubr.bf16.mxu1 %v8907_v19 }
 0x1e2   :  { %v1006_v43 = vpop.f32.mrb[84].mxu0  ;;  %v10114_v45 = vpack.c.bf16 %v1198_v31, %v1196_v27 }
 0x1e3   :  { %12281 = vst [vmem:[#allocation29_spill] sm:$0xff] %v10112_v37  ;;  %v1007_v47 = vadd.f32 %v1006_v43, %v9843_v28  ;;  %v1008_v48 = vpop.f32.mrb[85].mxu0 }
 0x1e4   :  { %12282 = vst [vmem:[#allocation30_spill] sm:$0xff] %v10114_v45  ;;  %v1009_v49 = vadd.f32 %v1008_v48, %v9846_v29  ;;  %v1010_v53 = vpop.f32.mrb[86].mxu0  ;;  %1588 = vmatprep.subr.bf16.mxu1 %v10114_v45 }
 0x1e5   :  { %v1011_v62 = vadd.f32 %v1010_v53, %v9843_v28  ;;  %v1012_v5 = vpop.f32.mrb[87].mxu0  ;;  %1589 = vmatpush1.bf16.msra.mxu1 %v10112_v37  ;;  %v1199_v9 = vmax.f32 %v1007_v47, 0.0  ;;  %v8912_v47 = vld [vmem:[%s12166_s1 + $0xc0] ss:$16 sps:$4 sm:$0xff]  }
 0x1e6   :  { %v1013_v7 = vadd.f32 %v1012_v5, %v9846_v29  ;;  %v1200_v19 = vmax.f32 %v1009_v49, 0.0 }
 0x1e7   :  { %v1201_v17 = vmax.f32 %v1011_v62, 0.0  ;;  %v8913_v62 = vld [vmem:[%s12166_s1 + $0xe4] ss:$16 sps:$4 sm:$0xff]  }
 0x1e8   :  { %v1202_v21 = vmax.f32 %v1013_v7, 0.0  ;;  %1550 = vmatmul.mubr.bf16.gmra.mrb[20].mxu1 %v8909_v59 }
 0x1e9   :  { %v10128_v22 = vpack.c.bf16 %v1201_v17, %v1199_v9  ;;  %1559 = vmatprep.mubr.bf16.mxu1 %v8910_v6 }
 0x1ea   :  { %v1016_v23 = vpop.f32.mrb[88].mxu0  ;;  %v10130_v27 = vpack.c.bf16 %v1202_v21, %v1200_v19 }
 0x1eb   :  { %12283 = vst [vmem:[#allocation31_spill] sm:$0xff] %v10128_v22  ;;  %v1017_v31 = vadd.f32 %v1016_v23, %v9843_v28  ;;  %v1018_v43 = vpop.f32.mrb[89].mxu0 }
 0x1ec   :  { %12284 = vst [vmem:[#allocation32_spill] sm:$0xff] %v10130_v27  ;;  %v1019_v48 = vadd.f32 %v1018_v43, %v9846_v29  ;;  %v1020_v53 = vpop.f32.mrb[90].mxu0  ;;  %1590 = vmatprep.subr.bf16.mxu1 %v10130_v27 }
 0x1ed   :  { %v1021_v49 = vadd.f32 %v1020_v53, %v9843_v28  ;;  %v1022_v59 = vpop.f32.mrb[91].mxu0  ;;  %1591 = vmatpush1.bf16.msra.mxu1 %v10128_v22  ;;  %v1203_v6 = vmax.f32 %v1017_v31, 0.0  ;;  %v8915_v31 = vld [vmem:[%s12166_s1 + $0xe0] ss:$16 sps:$4 sm:$0xff]  }
 0x1ee   :  { %v1023_v5 = vadd.f32 %v1022_v59, %v9846_v29  ;;  %v1204_v9 = vmax.f32 %v1019_v48, 0.0 }
 0x1ef   :  { %v1205_v7 = vmax.f32 %v1021_v49, 0.0  ;;  %v8918_v49 = vld [vmem:[%s12166_s1 + $0xc] ss:$16 sps:$4 sm:$0xff]  }
 0x1f0   :  { %v1206_v17 = vmax.f32 %v1023_v5, 0.0  ;;  %1560 = vmatmul.mubr.bf16.gmra.mrb[24].mxu1 %v8912_v47 }
 0x1f1   :  { %v10144_v19 = vpack.c.bf16 %v1205_v7, %v1203_v6  ;;  %1569 = vmatprep.mubr.bf16.mxu1 %v8913_v62 }
 0x1f2   :  { %v1026_v21 = vpop.f32.mrb[92].mxu0  ;;  %v10146_v23 = vpack.c.bf16 %v1206_v17, %v1204_v9 }
 0x1f3   :  { %12285 = vst [vmem:[#allocation33_spill] sm:$0xff] %v10144_v19  ;;  %v1027_v43 = vadd.f32 %v1026_v21, %v9843_v28  ;;  %v1028_v53 = vpop.f32.mrb[93].mxu0 }
 0x1f4   :  { %12286 = vst [vmem:[#allocation34_spill] sm:$0xff] %v10146_v23  ;;  %v1029_v22 = vadd.f32 %v1028_v53, %v9846_v29  ;;  %v1030_v27 = vpop.f32.mrb[94].mxu0  ;;  %1592 = vmatprep.subr.bf16.mxu1 %v10146_v23 }
 0x1f5   :  { %v1031_v48 = vadd.f32 %v1030_v27, %v9843_v28  ;;  %v1032_v47 = vpop.f32.mrb[95].mxu0  ;;  %1593 = vmatpush1.bf16.msra.mxu1 %v10144_v19  ;;  %v1207_v62 = vmax.f32 %v1027_v43, 0.0 }
 0x1f6   :  { %v1033_v59 = vadd.f32 %v1032_v47, %v9846_v29  ;;  %v1208_v6 = vmax.f32 %v1029_v22, 0.0 }
 0x1f7   :  { %v1209_v5 = vmax.f32 %v1031_v48, 0.0 }
 0x1f8   :  { %v1210_v7 = vmax.f32 %v1033_v59, 0.0  ;;  %1570 = vmatmul.mubr.bf16.gmra.mrb[28].mxu1 %v8915_v31 }
 0x1f9   :  { %v10160_v9 = vpack.c.bf16 %v1209_v5, %v1207_v62  ;;  %1612 = vmatprep.mubr.bf16.mxu1 %v8918_v49 }
 0x1fa   :  { %v1036_v17 = vpop.f32.mrb[96].mxu0  ;;  %v10162_v21 = vpack.c.bf16 %v1210_v7, %v1208_v6 }
 0x1fb   :  { %12287 = vst [vmem:[#allocation35_spill] sm:$0xff] %v10160_v9  ;;  %v1037_v27 = vadd.f32 %v1036_v17, %v9843_v28  ;;  %v1038_v53 = vpop.f32.mrb[97].mxu0 }
 0x1fc   :  { %12288 = vst [vmem:[#allocation36_spill] sm:$0xff] %v10162_v21  ;;  %v1039_v19 = vadd.f32 %v1038_v53, %v9846_v29  ;;  %v1040_v23 = vpop.f32.mrb[98].mxu0  ;;  %1594 = vmatprep.subr.bf16.mxu1 %v10162_v21 }
 0x1fd   :  { %v1041_v43 = vadd.f32 %v1040_v23, %v9843_v28  ;;  %v1042_v48 = vpop.f32.mrb[99].mxu0  ;;  %1595 = vmatpush1.bf16.msra.mxu1 %v10160_v9  ;;  %v1211_v31 = vmax.f32 %v1037_v27, 0.0 }
 0x1fe   :  { %v1043_v22 = vadd.f32 %v1042_v48, %v9846_v29  ;;  %v1212_v49 = vmax.f32 %v1039_v19, 0.0 }
 0x1ff   :  { %v1213_v47 = vmax.f32 %v1041_v43, 0.0 }
 0x200   :  { %v1214_v59 = vmax.f32 %v1043_v22, 0.0 }
 0x201   :  { %v10170_v62 = vpack.c.bf16 %v1213_v47, %v1211_v31 }
 0x202   :  { %v1046_v5 = vpop.f32.mrb[100].mxu0  ;;  %v10172_v6 = vpack.c.bf16 %v1214_v59, %v1212_v49 }
 0x203   :  { %12289 = vst [vmem:[#allocation37_spill] sm:$0xff] %v10170_v62  ;;  %v1047_v7 = vadd.f32 %v1046_v5, %v9843_v28  ;;  %v1048_v17 = vpop.f32.mrb[101].mxu0 }
 0x204   :  { %12290 = vst [vmem:[#allocation38_spill] sm:$0xff] %v10172_v6  ;;  %v1049_v53 = vadd.f32 %v1048_v17, %v9846_v29  ;;  %v1050_v23 = vpop.f32.mrb[102].mxu0  ;;  %1596 = vmatprep.subr.bf16.mxu1 %v10172_v6 }
 0x205   :  { %v1051_v9 = vadd.f32 %v1050_v23, %v9843_v28  ;;  %v1052_v48 = vpop.f32.mrb[103].mxu0  ;;  %1597 = vmatpush1.bf16.msra.mxu1 %v10170_v62  ;;  %v1215_v27 = vmax.f32 %v1047_v7, 0.0 }
 0x206   :  { %v1053_v19 = vadd.f32 %v1052_v48, %v9846_v29  ;;  %v1216_v22 = vmax.f32 %v1049_v53, 0.0 }
 0x207   :  { %v1217_v43 = vmax.f32 %v1051_v9, 0.0 }
 0x208   :  { %v1218_v31 = vmax.f32 %v1053_v19, 0.0 }
 0x209   :  { %v10180_v47 = vpack.c.bf16 %v1217_v43, %v1215_v27 }
 0x20a   :  { %v1056_v49 = vpop.f32.mrb[104].mxu0  ;;  %v10182_v59 = vpack.c.bf16 %v1218_v31, %v1216_v22 }
 0x20b   :  { %12291 = vst [vmem:[#allocation39_spill] sm:$0xff] %v10180_v47  ;;  %v1057_v5 = vadd.f32 %v1056_v49, %v9843_v28  ;;  %v1058_v17 = vpop.f32.mrb[105].mxu0 }
 0x20c   :  { %12292 = vst [vmem:[#allocation40_spill] sm:$0xff] %v10182_v59  ;;  %v1059_v6 = vadd.f32 %v1058_v17, %v9846_v29  ;;  %v1060_v23 = vpop.f32.mrb[106].mxu0  ;;  %1598 = vmatprep.subr.bf16.mxu1 %v10182_v59 }
 0x20d   :  { %v1061_v62 = vadd.f32 %v1060_v23, %v9843_v28  ;;  %v1062_v48 = vpop.f32.mrb[107].mxu0  ;;  %1599 = vmatpush1.bf16.msra.mxu1 %v10180_v47  ;;  %v1219_v7 = vmax.f32 %v1057_v5, 0.0 }
 0x20e   :  { %v1063_v9 = vadd.f32 %v1062_v48, %v9846_v29  ;;  %v1220_v19 = vmax.f32 %v1059_v6, 0.0 }
 0x20f   :  { %v1221_v53 = vmax.f32 %v1061_v62, 0.0 }
 0x210   :  { %v1222_v27 = vmax.f32 %v1063_v9, 0.0 }
 0x211   :  { %v10190_v43 = vpack.c.bf16 %v1221_v53, %v1219_v7 }
 0x212   :  { %v1066_v22 = vpop.f32.mrb[108].mxu0  ;;  %v10192_v31 = vpack.c.bf16 %v1222_v27, %v1220_v19 }
 0x213   :  { %12293 = vst [vmem:[#allocation41_spill] sm:$0xff] %v10190_v43  ;;  %v1067_v49 = vadd.f32 %v1066_v22, %v9843_v28  ;;  %v1068_v17 = vpop.f32.mrb[109].mxu0 }
 0x214   :  { %12294 = vst [vmem:[#allocation42_spill] sm:$0xff] %v10192_v31  ;;  %v1069_v59 = vadd.f32 %v1068_v17, %v9846_v29  ;;  %v1070_v23 = vpop.f32.mrb[110].mxu0  ;;  %1600 = vmatprep.subr.bf16.mxu1 %v10192_v31 }
 0x215   :  { %v1071_v47 = vadd.f32 %v1070_v23, %v9843_v28  ;;  %v1072_v48 = vpop.f32.mrb[111].mxu0  ;;  %1601 = vmatpush1.bf16.msra.mxu1 %v10190_v43  ;;  %v1223_v6 = vmax.f32 %v1067_v49, 0.0 }
 0x216   :  { %v1073_v62 = vadd.f32 %v1072_v48, %v9846_v29  ;;  %v1224_v9 = vmax.f32 %v1069_v59, 0.0 }
 0x217   :  { %v1225_v5 = vmax.f32 %v1071_v47, 0.0 }
 0x218   :  { %v1226_v7 = vmax.f32 %v1073_v62, 0.0 }
 0x219   :  { %v10200_v53 = vpack.c.bf16 %v1225_v5, %v1223_v6 }
 0x21a   :  { %v1076_v19 = vpop.f32.mrb[112].mxu0  ;;  %v10202_v27 = vpack.c.bf16 %v1226_v7, %v1224_v9 }
 0x21b   :  { %12295 = vst [vmem:[#allocation43_spill] sm:$0xff] %v10200_v53  ;;  %v1077_v22 = vadd.f32 %v1076_v19, %v9843_v28  ;;  %v1078_v17 = vpop.f32.mrb[113].mxu0 }
 0x21c   :  { %12296 = vst [vmem:[#allocation44_spill] sm:$0xff] %v10202_v27  ;;  %v1079_v31 = vadd.f32 %v1078_v17, %v9846_v29  ;;  %v1080_v23 = vpop.f32.mrb[114].mxu0  ;;  %1602 = vmatprep.subr.bf16.mxu1 %v10202_v27 }
 0x21d   :  { %v1081_v43 = vadd.f32 %v1080_v23, %v9843_v28  ;;  %v1082_v48 = vpop.f32.mrb[115].mxu0  ;;  %1603 = vmatpush1.bf16.msra.mxu1 %v10200_v53  ;;  %v1227_v59 = vmax.f32 %v1077_v22, 0.0 }
 0x21e   :  { %v1083_v47 = vadd.f32 %v1082_v48, %v9846_v29  ;;  %v1228_v62 = vmax.f32 %v1079_v31, 0.0 }
 0x21f   :  { %v1229_v49 = vmax.f32 %v1081_v43, 0.0 }
 0x220   :  { %v1230_v6 = vmax.f32 %v1083_v47, 0.0 }
 0x221   :  { %v10210_v5 = vpack.c.bf16 %v1229_v49, %v1227_v59 }
 0x222   :  { %v1086_v9 = vpop.f32.mrb[116].mxu0  ;;  %v10212_v7 = vpack.c.bf16 %v1230_v6, %v1228_v62 }
 0x223   :  { %12297 = vst [vmem:[#allocation45_spill] sm:$0xff] %v10210_v5  ;;  %v1087_v19 = vadd.f32 %v1086_v9, %v9843_v28  ;;  %v1088_v17 = vpop.f32.mrb[117].mxu0 }
 0x224   :  { %12298 = vst [vmem:[#allocation46_spill] sm:$0xff] %v10212_v7  ;;  %v1089_v27 = vadd.f32 %v1088_v17, %v9846_v29  ;;  %v1090_v23 = vpop.f32.mrb[118].mxu0  ;;  %1604 = vmatprep.subr.bf16.mxu1 %v10212_v7 }
 0x225   :  { %v1091_v53 = vadd.f32 %v1090_v23, %v9843_v28  ;;  %v1092_v48 = vpop.f32.mrb[119].mxu0  ;;  %1605 = vmatpush1.bf16.msra.mxu1 %v10210_v5  ;;  %v1231_v31 = vmax.f32 %v1087_v19, 0.0 }
 0x226   :  { %v1093_v43 = vadd.f32 %v1092_v48, %v9846_v29  ;;  %v1232_v47 = vmax.f32 %v1089_v27, 0.0 }
 0x227   :  { %v1233_v22 = vmax.f32 %v1091_v53, 0.0 }
 0x228   :  { %v1234_v59 = vmax.f32 %v1093_v43, 0.0 }
 0x229   :  { %v10220_v49 = vpack.c.bf16 %v1233_v22, %v1231_v31 }
 0x22a   :  { %v1096_v62 = vpop.f32.mrb[120].mxu0  ;;  %v10222_v6 = vpack.c.bf16 %v1234_v59, %v1232_v47 }
 0x22b   :  { %12299 = vst [vmem:[#allocation47_spill] sm:$0xff] %v10220_v49  ;;  %v1097_v9 = vadd.f32 %v1096_v62, %v9843_v28  ;;  %v1098_v17 = vpop.f32.mrb[121].mxu0 }
 0x22c   :  { %12300 = vst [vmem:[#allocation48_spill] sm:$0xff] %v10222_v6  ;;  %v1099_v7 = vadd.f32 %v1098_v17, %v9846_v29  ;;  %v1100_v23 = vpop.f32.mrb[122].mxu0  ;;  %1606 = vmatprep.subr.bf16.mxu1 %v10222_v6 }
 0x22d   :  { %v1101_v5 = vadd.f32 %v1100_v23, %v9843_v28  ;;  %v1102_v48 = vpop.f32.mrb[123].mxu0  ;;  %1607 = vmatpush1.bf16.msra.mxu1 %v10220_v49  ;;  %v1235_v27 = vmax.f32 %v1097_v9, 0.0 }
 0x22e   :  { %v1103_v53 = vadd.f32 %v1102_v48, %v9846_v29  ;;  %v1236_v43 = vmax.f32 %v1099_v7, 0.0 }
 0x22f   :  { %v1237_v19 = vmax.f32 %v1101_v5, 0.0 }
 0x230   :  { %v1238_v31 = vmax.f32 %v1103_v53, 0.0 }
 0x231   :  { %v10230_v22 = vpack.c.bf16 %v1237_v19, %v1235_v27 }
 0x232   :  { %v1106_v47 = vpop.f32.mrb[124].mxu0  ;;  %v10232_v59 = vpack.c.bf16 %v1238_v31, %v1236_v43  ;;  %v8942_v31 = vld [vmem:[#allocation2 + $0x104] ss:$8 sps:$4 sm:$0xff]  }
 0x233   :  { %12301 = vst [vmem:[#allocation49_spill] sm:$0xff] %v10230_v22  ;;  %v1107_v62 = vadd.f32 %v1106_v47, %v9843_v28  ;;  %v1108_v17 = vpop.f32.mrb[125].mxu0  ;;  %v8943_v47 = vld [vmem:[#allocation2 + $0x110] ss:$8 sps:$4 sm:$0xff]  }
 0x234   :  { %12302 = vst [vmem:[#allocation50_spill] sm:$0xff] %v10232_v59  ;;  %v1109_v6 = vadd.f32 %v1108_v17, %v9846_v29  ;;  %v1110_v23 = vpop.f32.mrb[126].mxu0  ;;  %1608 = vmatprep.subr.bf16.mxu1 %v10232_v59  ;;  %v8921_v17 = vld [vmem:[%s12166_s1 + $0x28] ss:$16 sps:$4 sm:$0xff]  }
 0x235   :  { %v1111_v49 = vadd.f32 %v1110_v23, %v9843_v28  ;;  %v1112_v48 = vpop.f32.mrb[127].mxu0  ;;  %1609 = vmatpush1.bf16.msra.mxu1 %v10230_v22  ;;  %v1239_v7 = vmax.f32 %v1107_v62, 0.0  ;;  %v8916_v28 = vld [vmem:[%s12166_s1 + $0x8] ss:$16 sps:$4 sm:$0xff]   ;;  %v8948_v62 = vld [vmem:[#allocation2 + $0x124] ss:$8 sps:$4 sm:$0xff]  }
 0x236   :  { %v1113_v5 = vadd.f32 %v1112_v48, %v9846_v29  ;;  %v1240_v53 = vmax.f32 %v1109_v6, 0.0  ;;  %v8919_v29 = vld [vmem:[%s12166_s1 + $0x2c] ss:$16 sps:$4 sm:$0xff]   ;;  %v8946_v48 = vld [vmem:[#allocation2 + $0x120] ss:$8 sps:$4 sm:$0xff]  }
 0x237   :  { %v1241_v9 = vmax.f32 %v1111_v49, 0.0  ;;  %v8940_v49 = vld [vmem:[#allocation2 + $0x100] ss:$8 sps:$4 sm:$0xff]   ;;  %v8945_v6 = vld [vmem:[#allocation2 + $0x114] ss:$8 sps:$4 sm:$0xff]  }
 0x238   :  { %v1242_v27 = vmax.f32 %v1113_v5, 0.0  ;;  %v8922_v23 = vld [vmem:[%s12166_s1 + $0x4c] ss:$16 sps:$4 sm:$0xff]  }
 0x239   :  { %v10240_v19 = vpack.c.bf16 %v1241_v9, %v1239_v7  ;;  %v8951_v5 = vld [vmem:[#allocation2 + $0x134] ss:$8 sps:$4 sm:$0xff]   ;;  %v8949_v7 = vld [vmem:[#allocation2 + $0x130] ss:$8 sps:$4 sm:$0xff]   ;;  %v8954_v9 = vld [vmem:[#allocation2 + $0x144] ss:$8 sps:$4 sm:$0xff]  }
 0x23a   :  { %v10242_v43 = vpack.c.bf16 %v1242_v27, %v1240_v53  ;;  %v8924_v53 = vld [vmem:[%s12166_s1 + $0x48] ss:$16 sps:$4 sm:$0xff]   ;;  %v8925_v27 = vld [vmem:[%s12166_s1 + $0x6c] ss:$16 sps:$4 sm:$0xff]  }
 0x23b   :  { %12303 = vst [vmem:[#allocation51_spill] sm:$0xff] %v10240_v19 }
 0x23c   :  { %12304 = vst [vmem:[#allocation52_spill] sm:$0xff] %v10242_v43  ;;  %1610 = vmatprep.subr.bf16.mxu1 %v10242_v43 }
 0x23d   :  { %1611 = vmatpush1.bf16.msra.mxu1 %v10240_v19 }
 0x23e   :  { %1915 = vmatprep.subr.bf16.mxu1 %v8942_v31  ;;  %v8952_v31 = vld [vmem:[#allocation2 + $0x140] ss:$8 sps:$4 sm:$0xff]  }
 0x240   :  { %1613 = vmatmul.mubr.bf16.vlgmr.msra.gmra.mrb[0].mxu1 %v8916_v28  ;;  %v8957_v28 = vld [vmem:[#allocation2 + $0x154] ss:$8 sps:$4 sm:$0xff]  }
 0x241   :  { %1622 = vmatprep.mubr.bf16.mxu1 %v8919_v29  ;;  %1916 = vmatpush1.bf16.msra.mxu1 %v8940_v49  ;;  %v8955_v29 = vld [vmem:[#allocation2 + $0x150] ss:$8 sps:$4 sm:$0xff]   ;;  %v8960_v49 = vld [vmem:[#allocation2 + $0x164] ss:$8 sps:$4 sm:$0xff]  }
 0x242   :  { %1917 = vmatprep.subr.bf16.mxu1 %v8945_v6  ;;  %v8927_v6 = vld [vmem:[%s12166_s1 + $0x68] ss:$16 sps:$4 sm:$0xff]  }
 0x245   :  { %1918 = vmatpush1.bf16.msra.mxu1 %v8943_v47  ;;  %v8928_v47 = vld [vmem:[%s12166_s1 + $0x8c] ss:$16 sps:$4 sm:$0xff]  }
 0x246   :  { %1919 = vmatprep.subr.bf16.mxu1 %v8948_v62  ;;  %v8958_v62 = vld [vmem:[#allocation2 + $0x160] ss:$8 sps:$4 sm:$0xff]  }
 0x248   :  { %1623 = vmatmul.mubr.bf16.gmra.mrb[4].mxu1 %v8921_v17  ;;  %v8963_v17 = vld [vmem:[#allocation2 + $0x174] ss:$8 sps:$4 sm:$0xff]  }
 0x249   :  { %1632 = vmatprep.mubr.bf16.mxu1 %v8922_v23  ;;  %1920 = vmatpush1.bf16.msra.mxu1 %v8946_v48  ;;  %v8961_v23 = vld [vmem:[#allocation2 + $0x170] ss:$8 sps:$4 sm:$0xff]   ;;  %v8966_v48 = vld [vmem:[#allocation2 + $0x184] ss:$8 sps:$4 sm:$0xff]  }
 0x24a   :  { %1921 = vmatprep.subr.bf16.mxu1 %v8951_v5  ;;  %v8930_v5 = vld [vmem:[%s12166_s1 + $0x88] ss:$16 sps:$4 sm:$0xff]  }
 0x24d   :  { %1922 = vmatpush1.bf16.msra.mxu1 %v8949_v7  ;;  %v8931_v7 = vld [vmem:[%s12166_s1 + $0xac] ss:$16 sps:$4 sm:$0xff]  }
 0x24e   :  { %1923 = vmatprep.subr.bf16.mxu1 %v8954_v9  ;;  %v8964_v9 = vld [vmem:[#allocation2 + $0x180] ss:$8 sps:$4 sm:$0xff]  }
 0x250   :  { %1633 = vmatmul.mubr.bf16.gmra.mrb[8].mxu1 %v8924_v53  ;;  %v8969_v53 = vld [vmem:[#allocation2 + $0x194] ss:$8 sps:$4 sm:$0xff]  }
 0x251   :  { %1642 = vmatprep.mubr.bf16.mxu1 %v8925_v27  ;;  %1924 = vmatpush1.bf16.msra.mxu1 %v8952_v31  ;;  %v8967_v27 = vld [vmem:[#allocation2 + $0x190] ss:$8 sps:$4 sm:$0xff]   ;;  %v8972_v31 = vld [vmem:[#allocation2 + $0x1a4] ss:$8 sps:$4 sm:$0xff]  }
 0x252   :  { %1925 = vmatprep.subr.bf16.mxu1 %v8957_v28  ;;  %v8933_v28 = vld [vmem:[%s12166_s1 + $0xa8] ss:$16 sps:$4 sm:$0xff]  }
 0x255   :  { %1926 = vmatpush1.bf16.msra.mxu1 %v8955_v29  ;;  %v8934_v29 = vld [vmem:[%s12166_s1 + $0xcc] ss:$16 sps:$4 sm:$0xff]  }
 0x256   :  { %1927 = vmatprep.subr.bf16.mxu1 %v8960_v49  ;;  %v8970_v49 = vld [vmem:[#allocation2 + $0x1a0] ss:$8 sps:$4 sm:$0xff]  }
 0x258   :  { %1643 = vmatmul.mubr.bf16.gmra.mrb[12].mxu1 %v8927_v6  ;;  %v8975_v6 = vld [vmem:[#allocation2 + $0x1b4] ss:$8 sps:$4 sm:$0xff]  }
 0x259   :  { %1652 = vmatprep.mubr.bf16.mxu1 %v8928_v47  ;;  %1928 = vmatpush1.bf16.msra.mxu1 %v8958_v62  ;;  %v8973_v47 = vld [vmem:[#allocation2 + $0x1b0] ss:$8 sps:$4 sm:$0xff]   ;;  %v8978_v62 = vld [vmem:[#allocation2 + $0x1c4] ss:$8 sps:$4 sm:$0xff]  }
 0x25a   :  { %1929 = vmatprep.subr.bf16.mxu1 %v8963_v17  ;;  %v8936_v17 = vld [vmem:[%s12166_s1 + $0xc8] ss:$16 sps:$4 sm:$0xff]  }
 0x25d   :  { %1930 = vmatpush1.bf16.msra.mxu1 %v8961_v23  ;;  %v8937_v23 = vld [vmem:[%s12166_s1 + $0xec] ss:$16 sps:$4 sm:$0xff]  }
 0x25e   :  { %1931 = vmatprep.subr.bf16.mxu1 %v8966_v48  ;;  %v8976_v48 = vld [vmem:[#allocation2 + $0x1c0] ss:$8 sps:$4 sm:$0xff]  }
 0x260   :  { %1653 = vmatmul.mubr.bf16.gmra.mrb[16].mxu1 %v8930_v5  ;;  %v8981_v5 = vld [vmem:[#allocation2 + $0x1d4] ss:$8 sps:$4 sm:$0xff]  }
 0x261   :  { %1662 = vmatprep.mubr.bf16.mxu1 %v8931_v7  ;;  %1932 = vmatpush1.bf16.msra.mxu1 %v8964_v9  ;;  %v8979_v7 = vld [vmem:[#allocation2 + $0x1d0] ss:$8 sps:$4 sm:$0xff]   ;;  %v8984_v9 = vld [vmem:[#allocation2 + $0x1e4] ss:$8 sps:$4 sm:$0xff]  }
 0x262   :  { %1933 = vmatprep.subr.bf16.mxu1 %v8969_v53  ;;  %v8939_v53 = vld [vmem:[%s12166_s1 + $0xe8] ss:$16 sps:$4 sm:$0xff]  }
 0x265   :  { %1934 = vmatpush1.bf16.msra.mxu1 %v8967_v27  ;;  %v8982_v27 = vld [vmem:[#allocation2 + $0x1e0] ss:$8 sps:$4 sm:$0xff]  }
 0x266   :  { %1935 = vmatprep.subr.bf16.mxu1 %v8972_v31  ;;  %v8987_v31 = vld [vmem:[#allocation2 + $0x1f4] ss:$8 sps:$4 sm:$0xff]  }
 0x268   :  { %1663 = vmatmul.mubr.bf16.gmra.mrb[20].mxu1 %v8933_v28  ;;  %v8985_v28 = vld [vmem:[#allocation2 + $0x1f0] ss:$8 sps:$4 sm:$0xff]  }
 0x269   :  { %1672 = vmatprep.mubr.bf16.mxu1 %v8934_v29  ;;  %1936 = vmatpush1.bf16.msra.mxu1 %v8970_v49 }
 0x26a   :  { %1937 = vmatprep.subr.bf16.mxu1 %v8975_v6 }
 0x26d   :  { %1938 = vmatpush1.bf16.msra.mxu1 %v8973_v47 }
 0x26e   :  { %1939 = vmatprep.subr.bf16.mxu1 %v8978_v62 }
 0x270   :  { %1673 = vmatmul.mubr.bf16.gmra.mrb[24].mxu1 %v8936_v17 }
 0x271   :  { %1682 = vmatprep.mubr.bf16.mxu1 %v8937_v23  ;;  %1940 = vmatpush1.bf16.msra.mxu1 %v8976_v48 }
 0x272   :  { %1941 = vmatprep.subr.bf16.mxu1 %v8981_v5 }
 0x275   :  { %1942 = vmatpush1.bf16.msra.mxu1 %v8979_v7 }
 0x276   :  { %1943 = vmatprep.subr.bf16.mxu1 %v8984_v9 }
 0x278   :  { %1683 = vmatmul.mubr.bf16.gmra.mrb[28].mxu1 %v8939_v53 }
 0x279   :  { %1944 = vmatpush1.bf16.msra.mxu1 %v8982_v27 }
 0x27a   :  { %1945 = vmatprep.subr.bf16.mxu1 %v8987_v31 }
 0x27d   :  { %1946 = vmatpush1.bf16.msra.mxu1 %v8985_v28 }
 0x313   :  { %v1614_v29 = vpop.f32.mrb[0].mxu1 }
 0x314   :  { %v1616_v49 = vpop.f32.mrb[1].mxu1 }
 0x315   :  { %v1618_v6 = vpop.f32.mrb[2].mxu1 }
 0x316   :  { %v1726_v47 = vpack.c.bf16 %v1618_v6, %v1614_v29  ;;  %v1620_v62 = vpop.f32.mrb[3].mxu1 }
 0x317   :  { %v1727_v17 = vpack.c.bf16 %v1620_v62, %v1616_v49 }
 0x319   :  { %1947 = vmatprep.mubr.bf16.mxu1 %v1727_v17 }
 0x31a   :  { %1948 = vmatmul.mubr.bf16.vlgmr.msra.gmra.mrb[32].mxu1 %v1726_v47 }
 0x31b   :  { %v1624_v23 = vpop.f32.mrb[4].mxu1 }
 0x31c   :  { %v1626_v48 = vpop.f32.mrb[5].mxu1 }
 0x31d   :  { %v1628_v5 = vpop.f32.mrb[6].mxu1 }
 0x31e   :  { %v1728_v7 = vpack.c.bf16 %v1628_v5, %v1624_v23  ;;  %v1630_v19 = vpop.f32.mrb[7].mxu1 }
 0x31f   :  { %v1729_v9 = vpack.c.bf16 %v1630_v19, %v1626_v48 }
 0x321   :  { %1957 = vmatprep.mubr.bf16.mxu1 %v1729_v9 }
 0x322   :  { %1958 = vmatmul.mubr.bf16.gmra.mrb[36].mxu1 %v1728_v7 }
 0x323   :  { %v1634_v53 = vpop.f32.mrb[8].mxu1 }
 0x324   :  { %v1636_v27 = vpop.f32.mrb[9].mxu1 }
 0x325   :  { %v1638_v31 = vpop.f32.mrb[10].mxu1 }
 0x326   :  { %v1730_v28 = vpack.c.bf16 %v1638_v31, %v1634_v53  ;;  %v1640_v43 = vpop.f32.mrb[11].mxu1 }
 0x327   :  { %v1731_v22 = vpack.c.bf16 %v1640_v43, %v1636_v27 }
 0x329   :  { %1967 = vmatprep.mubr.bf16.mxu1 %v1731_v22 }
 0x32a   :  { %1968 = vmatmul.mubr.bf16.gmra.mrb[40].mxu1 %v1730_v28 }
 0x32b   :  { %v1644_v29 = vpop.f32.mrb[12].mxu1 }
 0x32c   :  { %v1646_v49 = vpop.f32.mrb[13].mxu1 }
 0x32d   :  { %v1648_v6 = vpop.f32.mrb[14].mxu1 }
 0x32e   :  { %v1732_v47 = vpack.c.bf16 %v1648_v6, %v1644_v29  ;;  %v1650_v62 = vpop.f32.mrb[15].mxu1 }
 0x32f   :  { %v1733_v17 = vpack.c.bf16 %v1650_v62, %v1646_v49 }
 0x331   :  { %1977 = vmatprep.mubr.bf16.mxu1 %v1733_v17 }
 0x332   :  { %1978 = vmatmul.mubr.bf16.gmra.mrb[44].mxu1 %v1732_v47 }
 0x333   :  { %v1654_v23 = vpop.f32.mrb[16].mxu1 }
 0x334   :  { %v1656_v19 = vpop.f32.mrb[17].mxu1 }
 0x335   :  { %v1658_v48 = vpop.f32.mrb[18].mxu1 }
 0x336   :  { %v1734_v5 = vpack.c.bf16 %v1658_v48, %v1654_v23  ;;  %v1660_v7 = vpop.f32.mrb[19].mxu1 }
 0x337   :  { %v1735_v9 = vpack.c.bf16 %v1660_v7, %v1656_v19 }
 0x339   :  { %1987 = vmatprep.mubr.bf16.mxu1 %v1735_v9 }
 0x33a   :  { %1988 = vmatmul.mubr.bf16.gmra.mrb[48].mxu1 %v1734_v5 }
 0x33b   :  { %v1664_v53 = vpop.f32.mrb[20].mxu1 }
 0x33c   :  { %v1666_v43 = vpop.f32.mrb[21].mxu1 }
 0x33d   :  { %v1668_v22 = vpop.f32.mrb[22].mxu1 }
 0x33e   :  { %v1736_v27 = vpack.c.bf16 %v1668_v22, %v1664_v53  ;;  %v1670_v31 = vpop.f32.mrb[23].mxu1  ;;  %v8988_v53 = vld [vmem:[#allocation2 + $0x200] ss:$8 sps:$4 sm:$0xff]   ;;  %v8991_v22 = vld [vmem:[#allocation2 + $0x210] ss:$8 sps:$4 sm:$0xff]  }
 0x33f   :  { %v1737_v28 = vpack.c.bf16 %v1670_v31, %v1666_v43  ;;  %v8990_v43 = vld [vmem:[#allocation2 + $0x204] ss:$8 sps:$4 sm:$0xff]   ;;  %v12195_v31 = vmov 0  }
 0x340   :  { %2351 = vmatprep.subr.bf16.mxu0 %v8990_v43  ;;  %v9019_v43 = vld [vmem:[#allocation2 + $0x294] ss:$8 sps:$4 sm:$0xff]  }
 0x341   :  { %1997 = vmatprep.mubr.bf16.mxu1 %v1737_v28  ;;  %2352 = vmatpush1.bf16.msra.mxu0 %v8988_v53  ;;  %v8996_v28 = vld [vmem:[#allocation2 + $0x220] ss:$8 sps:$4 sm:$0xff]  }
 0x342   :  { %1998 = vmatmul.mubr.bf16.gmra.mrb[52].mxu1 %v1736_v27  ;;  %v8993_v27 = vld [vmem:[#allocation2 + $0x214] ss:$8 sps:$4 sm:$0xff]   ;;  %v9014_v53 = vld [vmem:[#allocation2 + $0x280] ss:$8 sps:$4 sm:$0xff]  }
 0x343   :  { %v1674_v29 = vpop.f32.mrb[24].mxu1  ;;  %2353 = vmatprep.subr.bf16.mxu0 %v8993_v27  ;;  %v9022_v27 = vld [vmem:[#allocation2 + $0x2a4] ss:$8 sps:$4 sm:$0xff]  }
 0x344   :  { %v1676_v49 = vpop.f32.mrb[25].mxu1 }
 0x345   :  { %v1678_v6 = vpop.f32.mrb[26].mxu1  ;;  %2354 = vmatpush1.bf16.msra.mxu0 %v8991_v22  ;;  %v9017_v22 = vld [vmem:[#allocation2 + $0x290] ss:$8 sps:$4 sm:$0xff]  }
 0x346   :  { %v1738_v47 = vpack.c.bf16 %v1678_v6, %v1674_v29  ;;  %v1680_v62 = vpop.f32.mrb[27].mxu1  ;;  %v8998_v29 = vld [vmem:[#allocation2 + $0x224] ss:$8 sps:$4 sm:$0xff]   ;;  %v8999_v6 = vld [vmem:[#allocation2 + $0x230] ss:$8 sps:$4 sm:$0xff]  }
 0x347   :  { %v1739_v17 = vpack.c.bf16 %v1680_v62, %v1676_v49  ;;  %v9001_v49 = vld [vmem:[#allocation2 + $0x234] ss:$8 sps:$4 sm:$0xff]   ;;  %2355 = vmatprep.subr.bf16.mxu0 %v8998_v29  ;;  %v9002_v62 = vld [vmem:[#allocation2 + $0x240] ss:$8 sps:$4 sm:$0xff]  }
 0x348   :  { %v9025_v29 = vld [vmem:[#allocation2 + $0x2b4] ss:$8 sps:$4 sm:$0xff]  }
 0x349   :  { %2007 = vmatprep.mubr.bf16.mxu1 %v1739_v17  ;;  %2356 = vmatpush1.bf16.msra.mxu0 %v8996_v28  ;;  %v9007_v17 = vld [vmem:[#allocation2 + $0x254] ss:$8 sps:$4 sm:$0xff]   ;;  %v9020_v28 = vld [vmem:[#allocation2 + $0x2a0] ss:$8 sps:$4 sm:$0xff]  }
 0x34a   :  { %2008 = vmatmul.mubr.bf16.gmra.mrb[56].mxu1 %v1738_v47  ;;  %2357 = vmatprep.subr.bf16.mxu0 %v9001_v49  ;;  %v9004_v47 = vld [vmem:[#allocation2 + $0x244] ss:$8 sps:$4 sm:$0xff]   ;;  %v9023_v49 = vld [vmem:[#allocation2 + $0x2b0] ss:$8 sps:$4 sm:$0xff]  }
 0x34b   :  { %v1684_v23 = vpop.f32.mrb[28].mxu1 }
 0x34c   :  { %v1686_v19 = vpop.f32.mrb[29].mxu1 }
 0x34d   :  { %v1688_v48 = vpop.f32.mrb[30].mxu1  ;;  %2358 = vmatpush1.bf16.msra.mxu0 %v8999_v6  ;;  %v9028_v6 = vld [vmem:[#allocation2 + $0x2c4] ss:$8 sps:$4 sm:$0xff]  }
 0x34e   :  { %v1740_v5 = vpack.c.bf16 %v1688_v48, %v1684_v23  ;;  %v1690_v7 = vpop.f32.mrb[31].mxu1  ;;  %2359 = vmatprep.subr.bf16.mxu0 %v9004_v47  ;;  %v9005_v23 = vld [vmem:[#allocation2 + $0x250] ss:$8 sps:$4 sm:$0xff]   ;;  %v9008_v48 = vld [vmem:[#allocation2 + $0x260] ss:$8 sps:$4 sm:$0xff]  }
 0x34f   :  { %v1741_v9 = vpack.c.bf16 %v1690_v7, %v1686_v19  ;;  %v9010_v19 = vld [vmem:[#allocation2 + $0x264] ss:$8 sps:$4 sm:$0xff]   ;;  %v9011_v7 = vld [vmem:[#allocation2 + $0x270] ss:$8 sps:$4 sm:$0xff]   ;;  %v9026_v47 = vld [vmem:[#allocation2 + $0x2c0] ss:$8 sps:$4 sm:$0xff]  }
 0x351   :  { %2017 = vmatprep.mubr.bf16.mxu1 %v1741_v9  ;;  %2360 = vmatpush1.bf16.msra.mxu0 %v9002_v62  ;;  %v9016_v9 = vld [vmem:[#allocation2 + $0x284] ss:$8 sps:$4 sm:$0xff]   ;;  %v9031_v62 = vld [vmem:[#allocation2 + $0x2d4] ss:$8 sps:$4 sm:$0xff]  }
 0x352   :  { %2018 = vmatmul.mubr.bf16.gmra.mrb[60].mxu1 %v1740_v5  ;;  %2361 = vmatprep.subr.bf16.mxu0 %v9007_v17  ;;  %v9013_v5 = vld [vmem:[#allocation2 + $0x274] ss:$8 sps:$4 sm:$0xff]   ;;  %v9029_v17 = vld [vmem:[#allocation2 + $0x2d0] ss:$8 sps:$4 sm:$0xff]  }
 0x353   :  { %2120 = vmatprep.mubr.bf16.mxu1 %v12195_v31 }
 0x355   :  { %2362 = vmatpush1.bf16.msra.mxu0 %v9005_v23  ;;  %v1743_v23 = vld [vmem:[#allocation4 + $0x2] sm:$0x3] }
 0x356   :  { %2363 = vmatprep.subr.bf16.mxu0 %v9010_v19  ;;  %v9034_v19 = vld [vmem:[#allocation2 + $0x2e4] ss:$8 sps:$4 sm:$0xff]  }
 0x359   :  { %2364 = vmatpush1.bf16.msra.mxu0 %v9008_v48  ;;  %v10293_v48 = vrot.slane %v1743_v23, %v9835_v24 }
 0x35a   :  { %2365 = vmatprep.subr.bf16.mxu0 %v9013_v5  ;;  %v9032_v5 = vld [vmem:[#allocation2 + $0x2e0] ss:$8 sps:$4 sm:$0xff]  }
 0x35d   :  { %2366 = vmatpush1.bf16.msra.mxu0 %v9011_v7  ;;  %v10296_v7 = vrot.slane %v1743_v23, %v9837_v26 }
 0x35e   :  { %2367 = vmatprep.subr.bf16.mxu0 %v9016_v9 }
 0x361   :  { %2368 = vmatpush1.bf16.msra.mxu0 %v9014_v53 }
 0x362   :  { %2369 = vmatprep.subr.bf16.mxu0 %v9019_v43 }
 0x365   :  { %2370 = vmatpush1.bf16.msra.mxu0 %v9017_v22 }
 0x366   :  { %2371 = vmatprep.subr.bf16.mxu0 %v9022_v27 }
 0x369   :  { %2372 = vmatpush1.bf16.msra.mxu0 %v9020_v28 }
 0x36a   :  { %2373 = vmatprep.subr.bf16.mxu0 %v9025_v29 }
 0x36d   :  { %2374 = vmatpush1.bf16.msra.mxu0 %v9023_v49 }
 0x36e   :  { %2375 = vmatprep.subr.bf16.mxu0 %v9028_v6 }
 0x371   :  { %2376 = vmatpush1.bf16.msra.mxu0 %v9026_v47 }
 0x372   :  { %2377 = vmatprep.subr.bf16.mxu0 %v9031_v62 }
 0x375   :  { %2378 = vmatpush1.bf16.msra.mxu0 %v9029_v17 }
 0x376   :  { %2379 = vmatprep.subr.bf16.mxu0 %v9034_v19 }
 0x379   :  { %2380 = vmatpush1.bf16.msra.mxu0 %v9032_v5 }
 0x3ed   :  { %v1949_v9 = vpop.f32.mrb[32].mxu1 }
 0x3ee   :  { %v1950_v53 = vadd.f32 %v1949_v9, %v10293_v48  ;;  %v1951_v43 = vpop.f32.mrb[33].mxu1 }
 0x3ef   :  { %v1952_v22 = vadd.f32 %v1951_v43, %v10296_v7  ;;  %v1953_v27 = vpop.f32.mrb[34].mxu1 }
 0x3f0   :  { %v1954_v28 = vadd.f32 %v1953_v27, %v10293_v48  ;;  %v1955_v29 = vpop.f32.mrb[35].mxu1  ;;  %v2028_v6 = vmax.f32 %v1950_v53, 0.0 }
 0x3f1   :  { %v1956_v49 = vadd.f32 %v1955_v29, %v10296_v7  ;;  %v2029_v62 = vmax.f32 %v1952_v22, 0.0 }
 0x3f2   :  { %v2030_v47 = vmax.f32 %v1954_v28, 0.0 }
 0x3f3   :  { %v2031_v17 = vmax.f32 %v1956_v49, 0.0 }
 0x3f4   :  { %v10302_v23 = vpack.c.bf16 %v2030_v47, %v2028_v6 }
 0x3f5   :  { %v10304_v19 = vpack.c.bf16 %v2031_v17, %v2029_v62  ;;  %v1959_v31 = vpop.f32.mrb[36].mxu1 }
 0x3f6   :  { %v1960_v9 = vadd.f32 %v1959_v31, %v10293_v48  ;;  %v1961_v5 = vpop.f32.mrb[37].mxu1 }
 0x3f7   :  { %v1962_v43 = vadd.f32 %v1961_v5, %v10296_v7  ;;  %v1963_v59 = vpop.f32.mrb[38].mxu1  ;;  %2088 = vmatprep.subr.bf16.mxu1 %v10304_v19 }
 0x3f8   :  { %v1964_v27 = vadd.f32 %v1963_v59, %v10293_v48  ;;  %v1965_v29 = vpop.f32.mrb[39].mxu1  ;;  %2089 = vmatpush1.bf16.msra.mxu1 %v10302_v23  ;;  %v2032_v22 = vmax.f32 %v1960_v9, 0.0 }
 0x3f9   :  { %v1966_v53 = vadd.f32 %v1965_v29, %v10296_v7  ;;  %v2033_v49 = vmax.f32 %v1962_v43, 0.0 }
 0x3fa   :  { %v2034_v28 = vmax.f32 %v1964_v27, 0.0 }
 0x3fb   :  { %v2035_v6 = vmax.f32 %v1966_v53, 0.0 }
 0x3fc   :  { %v10312_v47 = vpack.c.bf16 %v2034_v28, %v2032_v22 }
 0x3fd   :  { %v10314_v31 = vpack.c.bf16 %v2035_v6, %v2033_v49  ;;  %v1969_v62 = vpop.f32.mrb[40].mxu1 }
 0x3fe   :  { %v1970_v17 = vadd.f32 %v1969_v62, %v10293_v48  ;;  %v1971_v5 = vpop.f32.mrb[41].mxu1 }
 0x3ff   :  { %v1972_v21 = vadd.f32 %v1971_v5, %v10296_v7  ;;  %v1973_v59 = vpop.f32.mrb[42].mxu1  ;;  %2090 = vmatprep.subr.bf16.mxu1 %v10314_v31 }
 0x400   :  { %v1974_v37 = vadd.f32 %v1973_v59, %v10293_v48  ;;  %v1975_v29 = vpop.f32.mrb[43].mxu1  ;;  %2091 = vmatpush1.bf16.msra.mxu1 %v10312_v47  ;;  %v2036_v43 = vmax.f32 %v1970_v17, 0.0 }
 0x401   :  { %v1976_v9 = vadd.f32 %v1975_v29, %v10296_v7  ;;  %v2037_v53 = vmax.f32 %v1972_v21, 0.0 }
 0x402   :  { %v2038_v27 = vmax.f32 %v1974_v37, 0.0 }
 0x403   :  { %v2039_v22 = vmax.f32 %v1976_v9, 0.0 }
 0x404   :  { %v10322_v28 = vpack.c.bf16 %v2038_v27, %v2036_v43 }
 0x405   :  { %v10324_v49 = vpack.c.bf16 %v2039_v22, %v2037_v53  ;;  %v1979_v6 = vpop.f32.mrb[44].mxu1 }
 0x406   :  { %v1980_v62 = vadd.f32 %v1979_v6, %v10293_v48  ;;  %v1981_v5 = vpop.f32.mrb[45].mxu1 }
 0x407   :  { %v1982_v45 = vadd.f32 %v1981_v5, %v10296_v7  ;;  %v1983_v59 = vpop.f32.mrb[46].mxu1  ;;  %2092 = vmatprep.subr.bf16.mxu1 %v10324_v49 }
 0x408   :  { %v1984_v51 = vadd.f32 %v1983_v59, %v10293_v48  ;;  %v1985_v29 = vpop.f32.mrb[47].mxu1  ;;  %2093 = vmatpush1.bf16.msra.mxu1 %v10322_v28  ;;  %v2040_v21 = vmax.f32 %v1980_v62, 0.0 }
 0x409   :  { %v1986_v37 = vadd.f32 %v1985_v29, %v10296_v7  ;;  %v2041_v9 = vmax.f32 %v1982_v45, 0.0 }
 0x40a   :  { %v2042_v17 = vmax.f32 %v1984_v51, 0.0 }
 0x40b   :  { %v2043_v43 = vmax.f32 %v1986_v37, 0.0 }
 0x40c   :  { %v10332_v27 = vpack.c.bf16 %v2042_v17, %v2040_v21 }
 0x40d   :  { %v10334_v53 = vpack.c.bf16 %v2043_v43, %v2041_v9  ;;  %v1989_v22 = vpop.f32.mrb[48].mxu1 }
 0x40e   :  { %v1990_v6 = vadd.f32 %v1989_v22, %v10293_v48  ;;  %v1991_v5 = vpop.f32.mrb[49].mxu1 }
 0x40f   :  { %v1992_v55 = vadd.f32 %v1991_v5, %v10296_v7  ;;  %v1993_v59 = vpop.f32.mrb[50].mxu1  ;;  %2094 = vmatprep.subr.bf16.mxu1 %v10334_v53 }
 0x410   :  { %v1994_v8 = vadd.f32 %v1993_v59, %v10293_v48  ;;  %v1995_v29 = vpop.f32.mrb[51].mxu1  ;;  %2095 = vmatpush1.bf16.msra.mxu1 %v10332_v27  ;;  %v2044_v45 = vmax.f32 %v1990_v6, 0.0 }
 0x411   :  { %v1996_v51 = vadd.f32 %v1995_v29, %v10296_v7  ;;  %v2045_v37 = vmax.f32 %v1992_v55, 0.0 }
 0x412   :  { %v2046_v62 = vmax.f32 %v1994_v8, 0.0 }
 0x413   :  { %v2047_v21 = vmax.f32 %v1996_v51, 0.0 }
 0x414   :  { %v10342_v17 = vpack.c.bf16 %v2046_v62, %v2044_v45 }
 0x415   :  { %v10344_v9 = vpack.c.bf16 %v2047_v21, %v2045_v37  ;;  %v1999_v43 = vpop.f32.mrb[52].mxu1 }
 0x416   :  { %v2000_v22 = vadd.f32 %v1999_v43, %v10293_v48  ;;  %v2001_v5 = vpop.f32.mrb[53].mxu1 }
 0x417   :  { %v2002_v14 = vadd.f32 %v2001_v5, %v10296_v7  ;;  %v2003_v59 = vpop.f32.mrb[54].mxu1  ;;  %2096 = vmatprep.subr.bf16.mxu1 %v10344_v9 }
 0x418   :  { %v2004_v34 = vadd.f32 %v2003_v59, %v10293_v48  ;;  %v2005_v29 = vpop.f32.mrb[55].mxu1  ;;  %2097 = vmatpush1.bf16.msra.mxu1 %v10342_v17  ;;  %v2048_v55 = vmax.f32 %v2000_v22, 0.0 }
 0x419   :  { %v2006_v8 = vadd.f32 %v2005_v29, %v10296_v7  ;;  %v2049_v51 = vmax.f32 %v2002_v14, 0.0 }
 0x41a   :  { %v2050_v6 = vmax.f32 %v2004_v34, 0.0 }
 0x41b   :  { %v2051_v45 = vmax.f32 %v2006_v8, 0.0 }
 0x41c   :  { %v10352_v62 = vpack.c.bf16 %v2050_v6, %v2048_v55 }
 0x41d   :  { %v10354_v37 = vpack.c.bf16 %v2051_v45, %v2049_v51  ;;  %v2009_v21 = vpop.f32.mrb[56].mxu1 }
 0x41e   :  { %v2010_v43 = vadd.f32 %v2009_v21, %v10293_v48  ;;  %v2011_v5 = vpop.f32.mrb[57].mxu1 }
 0x41f   :  { %v2012_v41 = vadd.f32 %v2011_v5, %v10296_v7  ;;  %v2013_v59 = vpop.f32.mrb[58].mxu1  ;;  %2098 = vmatprep.subr.bf16.mxu1 %v10354_v37 }
 0x420   :  { %v2014_v60 = vadd.f32 %v2013_v59, %v10293_v48  ;;  %v2015_v29 = vpop.f32.mrb[59].mxu1  ;;  %2099 = vmatpush1.bf16.msra.mxu1 %v10352_v62  ;;  %v2052_v14 = vmax.f32 %v2010_v43, 0.0 }
 0x421   :  { %v2016_v34 = vadd.f32 %v2015_v29, %v10296_v7  ;;  %v2053_v8 = vmax.f32 %v2012_v41, 0.0 }
 0x422   :  { %v2054_v22 = vmax.f32 %v2014_v60, 0.0 }
 0x423   :  { %v2055_v55 = vmax.f32 %v2016_v34, 0.0 }
 0x424   :  { %v10362_v6 = vpack.c.bf16 %v2054_v22, %v2052_v14 }
 0x425   :  { %v10364_v51 = vpack.c.bf16 %v2055_v55, %v2053_v8  ;;  %v2019_v45 = vpop.f32.mrb[60].mxu1  ;;  %v8994_v55 = vld [vmem:[%s12167_s2] sm:$0xff]  }
 0x426   :  { %v2020_v21 = vadd.f32 %v2019_v45, %v10293_v48  ;;  %v2021_v5 = vpop.f32.mrb[61].mxu1  ;;  %v9038_v45 = vld [vmem:[#allocation2 + $0x500] ss:$8 sps:$4 sm:$0xff]  }
 0x427   :  { %v2022_v1 = vadd.f32 %v2021_v5, %v10296_v7  ;;  %v2023_v59 = vpop.f32.mrb[62].mxu1  ;;  %2100 = vmatprep.subr.bf16.mxu1 %v10364_v51  ;;  %v9043_v5 = vld [vmem:[#allocation2 + $0x514] ss:$8 sps:$4 sm:$0xff]  }
 0x428   :  { %v2024_v25 = vadd.f32 %v2023_v59, %v10293_v48  ;;  %v2025_v29 = vpop.f32.mrb[63].mxu1  ;;  %2101 = vmatpush1.bf16.msra.mxu1 %v10362_v6  ;;  %v2056_v41 = vmax.f32 %v2020_v21, 0.0  ;;  %v12305_v48 = vmov 0   ;;  %v9040_v21 = vld [vmem:[#allocation2 + $0x504] ss:$8 sps:$4 sm:$0xff]  }
 0x429   :  { %v2026_v60 = vadd.f32 %v2025_v29, %v10296_v7  ;;  %v2057_v34 = vmax.f32 %v2022_v1, 0.0  ;;  %v9037_v1 = vld [vmem:[#allocation2 + $0x2f4] ss:$8 sps:$4 sm:$0xff]   ;;  %v9035_v7 = vld [vmem:[#allocation2 + $0x2f0] ss:$8 sps:$4 sm:$0xff]  }
 0x42a   :  { %v2058_v43 = vmax.f32 %v2024_v25, 0.0  ;;  %v8995_v25 = vld [vmem:[%s12167_s2 + $0x8] sm:$0xff]   ;;  %2381 = vmatprep.subr.bf16.mxu0 %v9037_v1  ;;  %v9041_v59 = vld [vmem:[#allocation2 + $0x510] ss:$8 sps:$4 sm:$0xff]  }
 0x42b   :  { %v2059_v14 = vmax.f32 %v2026_v60, 0.0  ;;  %2382 = vmatpush1.bf16.msra.mxu0 %v9035_v7  ;;  %v9046_v29 = vld [vmem:[#allocation2 + $0x524] ss:$8 sps:$4 sm:$0xff]   ;;  %v9044_v60 = vld [vmem:[#allocation2 + $0x520] ss:$8 sps:$4 sm:$0xff]  }
 0x42c   :  { %v10372_v22 = vpack.c.bf16 %v2058_v43, %v2056_v41  ;;  %v9049_v41 = vld [vmem:[#allocation2 + $0x534] ss:$8 sps:$4 sm:$0xff]   ;;  %v9047_v43 = vld [vmem:[#allocation2 + $0x530] ss:$8 sps:$4 sm:$0xff]   ;;  %v9058_v1 = vld [vmem:[#allocation2 + $0x564] ss:$8 sps:$4 sm:$0xff]  }
 0x42d   :  { %v10374_v8 = vpack.c.bf16 %v2059_v14, %v2057_v34  ;;  %v9052_v34 = vld [vmem:[#allocation2 + $0x544] ss:$8 sps:$4 sm:$0xff]   ;;  %v9050_v14 = vld [vmem:[#allocation2 + $0x540] ss:$8 sps:$4 sm:$0xff]  }
 0x42e   :  { %v9056_v7 = vld [vmem:[#allocation2 + $0x560] ss:$8 sps:$4 sm:$0xff]  }
 0x42f   :  { %2102 = vmatprep.subr.bf16.mxu1 %v10374_v8 }
 0x430   :  { %2103 = vmatpush1.bf16.msra.mxu1 %v10372_v22 }
 0x431   :  { %2622 = vmatprep.subr.bf16.mxu1 %v9040_v21  ;;  %v9059_v21 = vld [vmem:[#allocation2 + $0x570] ss:$8 sps:$4 sm:$0xff]  }
 0x433   :  { %2121 = vmatmul.mubr.bf16.vlgmr.msra.gmra.mrb[64].mxu1 %v8994_v55  ;;  %v9055_v55 = vld [vmem:[#allocation2 + $0x554] ss:$8 sps:$4 sm:$0xff]  }
 0x434   :  { %2130 = vmatprep.mubr.bf16.mxu1 %v12305_v48  ;;  %2623 = vmatpush1.bf16.msra.mxu1 %v9038_v45  ;;  %v9061_v45 = vld [vmem:[#allocation2 + $0x574] ss:$8 sps:$4 sm:$0xff]  }
 0x435   :  { %2624 = vmatprep.subr.bf16.mxu1 %v9043_v5  ;;  %v9064_v5 = vld [vmem:[#allocation2 + $0x584] ss:$8 sps:$4 sm:$0xff]  }
 0x438   :  { %2625 = vmatpush1.bf16.msra.mxu1 %v9041_v59  ;;  %v9062_v59 = vld [vmem:[#allocation2 + $0x580] ss:$8 sps:$4 sm:$0xff]  }
 0x439   :  { %2626 = vmatprep.subr.bf16.mxu1 %v9046_v29  ;;  %v9067_v29 = vld [vmem:[#allocation2 + $0x594] ss:$8 sps:$4 sm:$0xff]  }
 0x43b   :  { %2131 = vmatmul.mubr.bf16.gmra.mrb[68].mxu1 %v8995_v25  ;;  %v9053_v25 = vld [vmem:[#allocation2 + $0x550] ss:$8 sps:$4 sm:$0xff]  }
 0x43c   :  { %2627 = vmatpush1.bf16.msra.mxu1 %v9044_v60  ;;  %v9065_v60 = vld [vmem:[#allocation2 + $0x590] ss:$8 sps:$4 sm:$0xff]  }
 0x43d   :  { %2628 = vmatprep.subr.bf16.mxu1 %v9049_v41  ;;  %v9070_v41 = vld [vmem:[#allocation2 + $0x5a4] ss:$8 sps:$4 sm:$0xff]  }
 0x440   :  { %2629 = vmatpush1.bf16.msra.mxu1 %v9047_v43  ;;  %v9068_v43 = vld [vmem:[#allocation2 + $0x5a0] ss:$8 sps:$4 sm:$0xff]  }
 0x441   :  { %2630 = vmatprep.subr.bf16.mxu1 %v9052_v34  ;;  %v9073_v34 = vld [vmem:[#allocation2 + $0x5b4] ss:$8 sps:$4 sm:$0xff]  }
 0x444   :  { %2631 = vmatpush1.bf16.msra.mxu1 %v9050_v14  ;;  %v9071_v14 = vld [vmem:[#allocation2 + $0x5b0] ss:$8 sps:$4 sm:$0xff]  }
 0x445   :  { %2632 = vmatprep.subr.bf16.mxu1 %v9055_v55  ;;  %v9076_v55 = vld [vmem:[#allocation2 + $0x5c4] ss:$8 sps:$4 sm:$0xff]  }
 0x448   :  { %2633 = vmatpush1.bf16.msra.mxu1 %v9053_v25  ;;  %v9074_v25 = vld [vmem:[#allocation2 + $0x5c0] ss:$8 sps:$4 sm:$0xff]  }
 0x449   :  { %2634 = vmatprep.subr.bf16.mxu1 %v9058_v1  ;;  %v9079_v1 = vld [vmem:[#allocation2 + $0x5d4] ss:$8 sps:$4 sm:$0xff]  }
 0x44c   :  { %2635 = vmatpush1.bf16.msra.mxu1 %v9056_v7  ;;  %v9077_v7 = vld [vmem:[#allocation2 + $0x5d0] ss:$8 sps:$4 sm:$0xff]  }
 0x44d   :  { %2636 = vmatprep.subr.bf16.mxu1 %v9061_v45 }
 0x450   :  { %2637 = vmatpush1.bf16.msra.mxu1 %v9059_v21 }
 0x451   :  { %2638 = vmatprep.subr.bf16.mxu1 %v9064_v5 }
 0x454   :  { %2639 = vmatpush1.bf16.msra.mxu1 %v9062_v59 }
 0x455   :  { %2640 = vmatprep.subr.bf16.mxu1 %v9067_v29 }
 0x458   :  { %2641 = vmatpush1.bf16.msra.mxu1 %v9065_v60 }
 0x459   :  { %2642 = vmatprep.subr.bf16.mxu1 %v9070_v41 }
 0x45c   :  { %2643 = vmatpush1.bf16.msra.mxu1 %v9068_v43 }
 0x45d   :  { %2644 = vmatprep.subr.bf16.mxu1 %v9073_v34 }
 0x460   :  { %2645 = vmatpush1.bf16.msra.mxu1 %v9071_v14 }
 0x461   :  { %2646 = vmatprep.subr.bf16.mxu1 %v9076_v55  ;;  %v9082_v55 = vld [vmem:[#allocation2 + $0x5e4] ss:$8 sps:$4 sm:$0xff]  }
 0x464   :  { %2647 = vmatpush1.bf16.msra.mxu1 %v9074_v25  ;;  %v9080_v25 = vld [vmem:[#allocation2 + $0x5e0] ss:$8 sps:$4 sm:$0xff]  }
 0x465   :  { %2648 = vmatprep.subr.bf16.mxu1 %v9079_v1  ;;  %v9085_v1 = vld [vmem:[#allocation2 + $0x5f4] ss:$8 sps:$4 sm:$0xff]  }
 0x468   :  { %2649 = vmatpush1.bf16.msra.mxu1 %v9077_v7  ;;  %v9083_v7 = vld [vmem:[#allocation2 + $0x5f0] ss:$8 sps:$4 sm:$0xff]  }
 0x469   :  { %2650 = vmatprep.subr.bf16.mxu1 %v9082_v55 }
 0x46c   :  { %2651 = vmatpush1.bf16.msra.mxu1 %v9080_v25 }
 0x46d   :  { %2652 = vmatprep.subr.bf16.mxu1 %v9085_v1 }
 0x470   :  { %2653 = vmatpush1.bf16.msra.mxu1 %v9083_v7 }
 0x506   :  { %v2122_v45 = vpop.f32.mrb[64].mxu1 }
 0x507   :  { %v2124_v21 = vpop.f32.mrb[65].mxu1 }
 0x508   :  { %v2126_v5 = vpop.f32.mrb[66].mxu1 }
 0x509   :  { %v2174_v59 = vpack.c.bf16 %v2126_v5, %v2122_v45  ;;  %v2128_v29 = vpop.f32.mrb[67].mxu1  ;;  %v2179_v45 = vld [vmem:[#allocation4 + $0x4] sm:$0x3] }
 0x50a   :  { %v2175_v60 = vpack.c.bf16 %v2128_v29, %v2124_v21  ;;  %v2184_v21 = vrot.slane %v2179_v45, %v9835_v24  ;;  %v2188_v5 = vrot.slane %v2179_v45, %v9837_v26 }
 0x50c   :  { %2383 = vmatprep.mubr.bf16.mxu0 %v2175_v60 }
 0x50d   :  { %2384 = vmatmul.mubr.bf16.vlgmr.msra.gmra.mrb[128].mxu0 %v2174_v59 }
 0x50e   :  { %v2132_v41 = vpop.f32.mrb[68].mxu1 }
 0x50f   :  { %v2134_v43 = vpop.f32.mrb[69].mxu1 }
 0x510   :  { %v2136_v34 = vpop.f32.mrb[70].mxu1 }
 0x511   :  { %v2176_v30 = vpack.c.bf16 %v2136_v34, %v2132_v41  ;;  %v2138_v14 = vpop.f32.mrb[71].mxu1 }
 0x512   :  { %v2177_v0 = vpack.c.bf16 %v2138_v14, %v2134_v43 }
 0x514   :  { %2393 = vmatprep.mubr.bf16.mxu0 %v2177_v0 }
 0x515   :  { %2394 = vmatmul.mubr.bf16.gmra.mrb[132].mxu0 %v2176_v30 }
 0x516   :  { %2784 = vmatprep.mubr.bf16.mxu0 %v12305_v48 }
 0x5e0   :  { %v2385_v59 = vpop.f32.mrb[128].mxu0 }
 0x5e1   :  { %v2386_v29 = vadd.f32 %v2385_v59, %v2184_v21  ;;  %v2387_v60 = vpop.f32.mrb[129].mxu0 }
 0x5e2   :  { %v2388_v0 = vadd.f32 %v2387_v60, %v2188_v5  ;;  %v2389_v30 = vpop.f32.mrb[130].mxu0 }
 0x5e3   :  { %v2390_v41 = vadd.f32 %v2389_v30, %v2184_v21  ;;  %v2391_v43 = vpop.f32.mrb[131].mxu0  ;;  %v2404_v14 = vmax.f32 %v2386_v29, 0.0 }
 0x5e4   :  { %v2392_v34 = vadd.f32 %v2391_v43, %v2188_v5  ;;  %v2405_v25 = vmax.f32 %v2388_v0, 0.0 }
 0x5e5   :  { %v2406_v55 = vmax.f32 %v2390_v41, 0.0 }
 0x5e6   :  { %v2407_v3 = vmax.f32 %v2392_v34, 0.0 }
 0x5e7   :  { %v2445_v39 = vpack.c.bf16 %v2406_v55, %v2404_v14 }
 0x5e8   :  { %v2395_v1 = vpop.f32.mrb[132].mxu0  ;;  %v2446_v7 = vpack.c.bf16 %v2407_v3, %v2405_v25  ;;  %v2450_v3 = vld [vmem:[#allocation4 + $0xa] sm:$0x3] }
 0x5e9   :  { %v2396_v42 = vadd.f32 %v2395_v1, %v2184_v21  ;;  %v2397_v11 = vpop.f32.mrb[133].mxu0  ;;  %v2455_v0 = vrot.slane %v2450_v3, %v9835_v24 }
 0x5ea   :  { %v2398_v16 = vadd.f32 %v2397_v11, %v2188_v5  ;;  %v2399_v54 = vpop.f32.mrb[134].mxu0  ;;  %2654 = vmatprep.mubr.bf16.mxu1 %v2446_v7  ;;  %v2459_v11 = vrot.slane %v2450_v3, %v9837_v26 }
 0x5eb   :  { %v2400_v45 = vadd.f32 %v2399_v54, %v2184_v21  ;;  %v2401_v59 = vpop.f32.mrb[135].mxu0  ;;  %2655 = vmatmul.mubr.bf16.vlgmr.msra.gmra.mrb[72].mxu1 %v2445_v39  ;;  %v2408_v57 = vmax.f32 %v2396_v42, 0.0 }
 0x5ec   :  { %v2402_v60 = vadd.f32 %v2401_v59, %v2188_v5  ;;  %v2409_v32 = vmax.f32 %v2398_v16, 0.0 }
 0x5ed   :  { %v2410_v30 = vmax.f32 %v2400_v45, 0.0 }
 0x5ee   :  { %v2411_v43 = vmax.f32 %v2402_v60, 0.0 }
 0x5ef   :  { %v2447_v29 = vpack.c.bf16 %v2410_v30, %v2408_v57 }
 0x5f0   :  { %v2448_v41 = vpack.c.bf16 %v2411_v43, %v2409_v32 }
 0x5f2   :  { %2664 = vmatprep.mubr.bf16.mxu1 %v2448_v41 }
 0x5f3   :  { %2665 = vmatmul.mubr.bf16.gmra.mrb[76].mxu1 %v2447_v29 }
 0x5f4   :  { %3488 = vmatprep.mubr.bf16.mxu1 %v12305_v48 }
 0x6be   :  { %v2656_v34 = vpop.f32.mrb[72].mxu1 }
 0x6bf   :  { %v2657_v54 = vadd.f32 %v2656_v34, %v2455_v0  ;;  %v2658_v21 = vpop.f32.mrb[73].mxu1 }
 0x6c0   :  { %v2659_v39 = vadd.f32 %v2658_v21, %v2459_v11  ;;  %v2660_v5 = vpop.f32.mrb[74].mxu1 }
 0x6c1   :  { %v2661_v42 = vadd.f32 %v2660_v5, %v2455_v0  ;;  %v2662_v14 = vpop.f32.mrb[75].mxu1  ;;  %v2675_v55 = vmax.f32 %v2657_v54, 0.0 }
 0x6c2   :  { %v2663_v16 = vadd.f32 %v2662_v14, %v2459_v11  ;;  %v2676_v32 = vmax.f32 %v2659_v39, 0.0  ;;  %v9089_v14 = vld [vmem:[#allocation2 + $0x404] ss:$8 sps:$4 sm:$0xff]  }
 0x6c3   :  { %v2677_v57 = vmax.f32 %v2661_v42, 0.0 }
 0x6c4   :  { %v2678_v25 = vmax.f32 %v2663_v16, 0.0  ;;  %v9086_v16 = vld [vmem:[%s12169_s4] sm:$0xff]  }
 0x6c5   :  { %v10391_v1 = vpack.c.bf16 %v2677_v57, %v2675_v55  ;;  %v9090_v55 = vld [vmem:[#allocation2 + $0x410] ss:$8 sps:$4 sm:$0xff]   ;;  %v9096_v57 = vld [vmem:[#allocation2 + $0x424] ss:$8 sps:$4 sm:$0xff]  }
 0x6c6   :  { %v10393_v7 = vpack.c.bf16 %v2678_v25, %v2676_v32  ;;  %v2666_v45 = vpop.f32.mrb[76].mxu1  ;;  %v9093_v32 = vld [vmem:[%s12169_s4 + $0x8] sm:$0xff]  }
 0x6c7   :  { %12306 = vst [vmem:[#allocation53_spill] sm:$0xff] %v10391_v1  ;;  %v2667_v59 = vadd.f32 %v2666_v45, %v2455_v0  ;;  %v2668_v60 = vpop.f32.mrb[77].mxu1  ;;  %v9094_v25 = vld [vmem:[#allocation2 + $0x420] ss:$8 sps:$4 sm:$0xff]   ;;  %v9099_v45 = vld [vmem:[#allocation2 + $0x434] ss:$8 sps:$4 sm:$0xff]  }
 0x6c8   :  { %12307 = vst [vmem:[#allocation54_spill] sm:$0xff] %v10393_v7  ;;  %v2669_v30 = vadd.f32 %v2668_v60, %v2459_v11  ;;  %v2670_v43 = vpop.f32.mrb[78].mxu1  ;;  %2752 = vmatprep.subr.bf16.mxu0 %v10393_v7  ;;  %v9103_v60 = vld [vmem:[#allocation2 + $0x444] ss:$8 sps:$4 sm:$0xff]  }
 0x6c9   :  { %v2671_v29 = vadd.f32 %v2670_v43, %v2455_v0  ;;  %v2672_v41 = vpop.f32.mrb[79].mxu1  ;;  %2753 = vmatpush1.bf16.msra.mxu0 %v10391_v1  ;;  %v2679_v34 = vmax.f32 %v2667_v59, 0.0  ;;  %v9087_v0 = vld [vmem:[#allocation2 + $0x400] ss:$8 sps:$4 sm:$0xff]   ;;  %v9097_v59 = vld [vmem:[#allocation2 + $0x430] ss:$8 sps:$4 sm:$0xff]  }
 0x6ca   :  { %v2673_v3 = vadd.f32 %v2672_v41, %v2459_v11  ;;  %v2680_v21 = vmax.f32 %v2669_v30, 0.0  ;;  %v9092_v11 = vld [vmem:[#allocation2 + $0x414] ss:$8 sps:$4 sm:$0xff]   ;;  %v9101_v43 = vld [vmem:[#allocation2 + $0x440] ss:$8 sps:$4 sm:$0xff]  }
 0x6cb   :  { %v2681_v54 = vmax.f32 %v2671_v29, 0.0  ;;  %v9100_v30 = vld [vmem:[%s12169_s4 + $0x10] sm:$0xff]  }
 0x6cc   :  { %v2682_v39 = vmax.f32 %v2673_v3, 0.0  ;;  %v9106_v29 = vld [vmem:[#allocation2 + $0x454] ss:$8 sps:$4 sm:$0xff]   ;;  %v9104_v41 = vld [vmem:[#allocation2 + $0x450] ss:$8 sps:$4 sm:$0xff]  }
 0x6cd   :  { %v10397_v5 = vpack.c.bf16 %v2681_v54, %v2679_v34  ;;  %v9110_v3 = vld [vmem:[#allocation2 + $0x464] ss:$8 sps:$4 sm:$0xff]   ;;  %v9107_v34 = vld [vmem:[%s12169_s4 + $0x18] sm:$0xff]   ;;  %v9108_v54 = vld [vmem:[#allocation2 + $0x460] ss:$8 sps:$4 sm:$0xff]  }
 0x6ce   :  { %v10399_v42 = vpack.c.bf16 %v2682_v39, %v2680_v21  ;;  %v9113_v21 = vld [vmem:[#allocation2 + $0x474] ss:$8 sps:$4 sm:$0xff]   ;;  %v9111_v39 = vld [vmem:[#allocation2 + $0x470] ss:$8 sps:$4 sm:$0xff]  }
 0x6cf   :  { %12308 = vst [vmem:[#allocation55_spill] sm:$0xff] %v10397_v5 }
 0x6d0   :  { %12309 = vst [vmem:[#allocation56_spill] sm:$0xff] %v10399_v42  ;;  %2754 = vmatprep.subr.bf16.mxu0 %v10399_v42 }
 0x6d1   :  { %2755 = vmatpush1.bf16.msra.mxu0 %v10397_v5 }
 0x6d2   :  { %3071 = vmatprep.subr.bf16.mxu0 %v9089_v14  ;;  %v9117_v14 = vld [vmem:[#allocation2 + $0x484] ss:$8 sps:$4 sm:$0xff]  }
 0x6d4   :  { %7949 = vmatmul.mubr.msk.bf16.vlgmr.msra.gmra.mrb[136].mxu0 %vm2727_vm0, %v9086_v16  ;;  %v9114_v16 = vld [vmem:[%s12169_s4 + $0x20] sm:$0xff]  }
 0x6d5   :  { %3072 = vmatpush1.bf16.msra.mxu0 %v9087_v0  ;;  %2794 = vmatprep.mubr.bf16.mxu0 %v12305_v48  ;;  %v9115_v0 = vld [vmem:[#allocation2 + $0x480] ss:$8 sps:$4 sm:$0xff]  }
 0x6d6   :  { %3073 = vmatprep.subr.bf16.mxu0 %v9092_v11  ;;  %v9120_v11 = vld [vmem:[#allocation2 + $0x494] ss:$8 sps:$4 sm:$0xff]  }
 0x6d9   :  { %3074 = vmatpush1.bf16.msra.mxu0 %v9090_v55  ;;  %v9118_v55 = vld [vmem:[#allocation2 + $0x490] ss:$8 sps:$4 sm:$0xff]  }
 0x6da   :  { %3075 = vmatprep.subr.bf16.mxu0 %v9096_v57  ;;  %v9124_v57 = vld [vmem:[#allocation2 + $0x4a4] ss:$8 sps:$4 sm:$0xff]  }
 0x6dc   :  { %7950 = vmatmul.mubr.msk.bf16.gmra.mrb[140].mxu0 %vm2727_vm0, %v9093_v32  ;;  %v9121_v32 = vld [vmem:[%s12169_s4 + $0x28] sm:$0xff]  }
 0x6dd   :  { %3076 = vmatpush1.bf16.msra.mxu0 %v9094_v25  ;;  %2804 = vmatprep.mubr.bf16.mxu0 %v12305_v48  ;;  %v9122_v25 = vld [vmem:[#allocation2 + $0x4a0] ss:$8 sps:$4 sm:$0xff]  }
 0x6de   :  { %3077 = vmatprep.subr.bf16.mxu0 %v9099_v45  ;;  %v9127_v45 = vld [vmem:[#allocation2 + $0x4b4] ss:$8 sps:$4 sm:$0xff]  }
 0x6e1   :  { %3078 = vmatpush1.bf16.msra.mxu0 %v9097_v59  ;;  %v9125_v59 = vld [vmem:[#allocation2 + $0x4b0] ss:$8 sps:$4 sm:$0xff]  }
 0x6e2   :  { %3079 = vmatprep.subr.bf16.mxu0 %v9103_v60  ;;  %v9131_v60 = vld [vmem:[#allocation2 + $0x4c4] ss:$8 sps:$4 sm:$0xff]  }
 0x6e4   :  { %7951 = vmatmul.mubr.msk.bf16.gmra.mrb[144].mxu0 %vm2727_vm0, %v9100_v30  ;;  %v9128_v30 = vld [vmem:[%s12169_s4 + $0x30] sm:$0xff]  }
 0x6e5   :  { %3080 = vmatpush1.bf16.msra.mxu0 %v9101_v43  ;;  %2814 = vmatprep.mubr.bf16.mxu0 %v12305_v48  ;;  %v9129_v43 = vld [vmem:[#allocation2 + $0x4c0] ss:$8 sps:$4 sm:$0xff]  }
 0x6e6   :  { %3081 = vmatprep.subr.bf16.mxu0 %v9106_v29  ;;  %v9134_v29 = vld [vmem:[#allocation2 + $0x4d4] ss:$8 sps:$4 sm:$0xff]  }
 0x6e9   :  { %3082 = vmatpush1.bf16.msra.mxu0 %v9104_v41  ;;  %v9132_v41 = vld [vmem:[#allocation2 + $0x4d0] ss:$8 sps:$4 sm:$0xff]  }
 0x6ea   :  { %3083 = vmatprep.subr.bf16.mxu0 %v9110_v3  ;;  %v9138_v3 = vld [vmem:[#allocation2 + $0x4e4] ss:$8 sps:$4 sm:$0xff]  }
 0x6ec   :  { %7952 = vmatmul.mubr.msk.bf16.gmra.mrb[148].mxu0 %vm2727_vm0, %v9107_v34  ;;  %v9135_v34 = vld [vmem:[%s12169_s4 + $0x38] sm:$0xff]  }
 0x6ed   :  { %3084 = vmatpush1.bf16.msra.mxu0 %v9108_v54  ;;  %2824 = vmatprep.mubr.bf16.mxu0 %v12305_v48  ;;  %v9136_v54 = vld [vmem:[#allocation2 + $0x4e0] ss:$8 sps:$4 sm:$0xff]  }
 0x6ee   :  { %3085 = vmatprep.subr.bf16.mxu0 %v9113_v21  ;;  %v9141_v21 = vld [vmem:[#allocation2 + $0x4f4] ss:$8 sps:$4 sm:$0xff]  }
 0x6f1   :  { %3086 = vmatpush1.bf16.msra.mxu0 %v9111_v39  ;;  %v9139_v39 = vld [vmem:[#allocation2 + $0x4f0] ss:$8 sps:$4 sm:$0xff]  }
 0x6f2   :  { %3087 = vmatprep.subr.bf16.mxu0 %v9117_v14 }
 0x6f4   :  { %7953 = vmatmul.mubr.msk.bf16.gmra.mrb[152].mxu0 %vm2727_vm0, %v9114_v16 }
 0x6f5   :  { %3088 = vmatpush1.bf16.msra.mxu0 %v9115_v0  ;;  %2834 = vmatprep.mubr.bf16.mxu0 %v12305_v48 }
 0x6f6   :  { %3089 = vmatprep.subr.bf16.mxu0 %v9120_v11 }
 0x6f9   :  { %3090 = vmatpush1.bf16.msra.mxu0 %v9118_v55 }
 0x6fa   :  { %3091 = vmatprep.subr.bf16.mxu0 %v9124_v57 }
 0x6fc   :  { %7954 = vmatmul.mubr.msk.bf16.gmra.mrb[156].mxu0 %vm2727_vm0, %v9121_v32 }
 0x6fd   :  { %3092 = vmatpush1.bf16.msra.mxu0 %v9122_v25  ;;  %2844 = vmatprep.mubr.bf16.mxu0 %v12305_v48 }
 0x6fe   :  { %3093 = vmatprep.subr.bf16.mxu0 %v9127_v45 }
 0x701   :  { %3094 = vmatpush1.bf16.msra.mxu0 %v9125_v59 }
 0x702   :  { %3095 = vmatprep.subr.bf16.mxu0 %v9131_v60 }
 0x704   :  { %7955 = vmatmul.mubr.msk.bf16.gmra.mrb[160].mxu0 %vm2727_vm0, %v9128_v30 }
 0x705   :  { %3096 = vmatpush1.bf16.msra.mxu0 %v9129_v43  ;;  %2854 = vmatprep.mubr.bf16.mxu0 %v12305_v48 }
 0x706   :  { %3097 = vmatprep.subr.bf16.mxu0 %v9134_v29 }
 0x709   :  { %3098 = vmatpush1.bf16.msra.mxu0 %v9132_v41 }
 0x70a   :  { %3099 = vmatprep.subr.bf16.mxu0 %v9138_v3 }
 0x70c   :  { %7956 = vmatmul.mubr.msk.bf16.gmra.mrb[164].mxu0 %vm2727_vm0, %v9135_v34 }
 0x70d   :  { %3100 = vmatpush1.bf16.msra.mxu0 %v9136_v54  ;;  %3103 = vmatprep.mubr.bf16.mxu0 %v10304_v19 }
 0x70e   :  { %3101 = vmatprep.subr.bf16.mxu0 %v9141_v21 }
 0x711   :  { %3102 = vmatpush1.bf16.msra.mxu0 %v9139_v39 }
 0x714   :  { %3104 = vmatmul.mubr.bf16.vlgmr.msra.gmra.mrb[136].mxu0 %v10302_v23  ;;  %v2899_v23 = vld [vmem:[#allocation4 + $0x8] sm:$0x3] }
 0x715   :  { %3113 = vmatprep.mubr.bf16.mxu0 %v10314_v31  ;;  %v10459_v19 = vrot.slane %v2899_v23, %v9835_v24 }
 0x71c   :  { %3114 = vmatmul.mubr.bf16.gmra.mrb[140].mxu0 %v10312_v47  ;;  %v10462_v47 = vrot.slane %v2899_v23, %v9837_v26 }
 0x71d   :  { %3123 = vmatprep.mubr.bf16.mxu0 %v10324_v49 }
 0x724   :  { %3124 = vmatmul.mubr.bf16.gmra.mrb[144].mxu0 %v10322_v28 }
 0x725   :  { %3133 = vmatprep.mubr.bf16.mxu0 %v10334_v53 }
 0x72c   :  { %3134 = vmatmul.mubr.bf16.gmra.mrb[148].mxu0 %v10332_v27 }
 0x72d   :  { %3143 = vmatprep.mubr.bf16.mxu0 %v10344_v9 }
 0x734   :  { %3144 = vmatmul.mubr.bf16.gmra.mrb[152].mxu0 %v10342_v17 }
 0x735   :  { %3153 = vmatprep.mubr.bf16.mxu0 %v10354_v37 }
 0x73c   :  { %3154 = vmatmul.mubr.bf16.gmra.mrb[156].mxu0 %v10352_v62 }
 0x73d   :  { %3163 = vmatprep.mubr.bf16.mxu0 %v10364_v51 }
 0x744   :  { %3164 = vmatmul.mubr.bf16.gmra.mrb[160].mxu0 %v10362_v6 }
 0x745   :  { %3173 = vmatprep.mubr.bf16.mxu0 %v10374_v8 }
 0x74c   :  { %3174 = vmatmul.mubr.bf16.gmra.mrb[164].mxu0 %v10372_v22 }
 0x7e7   :  { %v3105_v31 = vpop.f32.mrb[136].mxu0 }
 0x7e8   :  { %v3106_v28 = vadd.f32 %v3105_v31, %v10459_v19  ;;  %v3107_v49 = vpop.f32.mrb[137].mxu0 }
 0x7e9   :  { %v3108_v27 = vadd.f32 %v3107_v49, %v10462_v47  ;;  %v3109_v53 = vpop.f32.mrb[138].mxu0 }
 0x7ea   :  { %v3110_v17 = vadd.f32 %v3109_v53, %v10459_v19  ;;  %v3111_v9 = vpop.f32.mrb[139].mxu0  ;;  %v3216_v37 = vmax.f32 %v3106_v28, 0.0 }
 0x7eb   :  { %v3112_v62 = vadd.f32 %v3111_v9, %v10462_v47  ;;  %v3217_v51 = vmax.f32 %v3108_v27, 0.0 }
 0x7ec   :  { %v3218_v6 = vmax.f32 %v3110_v17, 0.0 }
 0x7ed   :  { %v3219_v22 = vmax.f32 %v3112_v62, 0.0 }
 0x7ee   :  { %v10468_v8 = vpack.c.bf16 %v3218_v6, %v3216_v37 }
 0x7ef   :  { %v3115_v14 = vpop.f32.mrb[140].mxu0  ;;  %v10470_v16 = vpack.c.bf16 %v3219_v22, %v3217_v51 }
 0x7f0   :  { %v3116_v0 = vadd.f32 %v3115_v14, %v10459_v19  ;;  %v3117_v11 = vpop.f32.mrb[141].mxu0 }
 0x7f1   :  { %v3118_v55 = vadd.f32 %v3117_v11, %v10462_v47  ;;  %v3119_v57 = vpop.f32.mrb[142].mxu0  ;;  %3456 = vmatprep.subr.bf16.mxu1 %v10470_v16 }
 0x7f2   :  { %v3120_v32 = vadd.f32 %v3119_v57, %v10459_v19  ;;  %v3121_v25 = vpop.f32.mrb[143].mxu0  ;;  %3457 = vmatpush1.bf16.msra.mxu1 %v10468_v8  ;;  %v3220_v59 = vmax.f32 %v3116_v0, 0.0 }
 0x7f3   :  { %v3122_v45 = vadd.f32 %v3121_v25, %v10462_v47  ;;  %v3221_v30 = vmax.f32 %v3118_v55, 0.0 }
 0x7f4   :  { %v3222_v60 = vmax.f32 %v3120_v32, 0.0 }
 0x7f5   :  { %v3223_v43 = vmax.f32 %v3122_v45, 0.0 }
 0x7f6   :  { %v10478_v29 = vpack.c.bf16 %v3222_v60, %v3220_v59 }
 0x7f7   :  { %v3125_v41 = vpop.f32.mrb[144].mxu0  ;;  %v10480_v3 = vpack.c.bf16 %v3223_v43, %v3221_v30 }
 0x7f8   :  { %v3126_v34 = vadd.f32 %v3125_v41, %v10459_v19  ;;  %v3127_v54 = vpop.f32.mrb[145].mxu0 }
 0x7f9   :  { %v3128_v21 = vadd.f32 %v3127_v54, %v10462_v47  ;;  %v3129_v39 = vpop.f32.mrb[146].mxu0  ;;  %3458 = vmatprep.subr.bf16.mxu1 %v10480_v3 }
 0x7fa   :  { %v3130_v23 = vadd.f32 %v3129_v39, %v10459_v19  ;;  %v3131_v31 = vpop.f32.mrb[147].mxu0  ;;  %3459 = vmatpush1.bf16.msra.mxu1 %v10478_v29  ;;  %v3224_v49 = vmax.f32 %v3126_v34, 0.0 }
 0x7fb   :  { %v3132_v28 = vadd.f32 %v3131_v31, %v10462_v47  ;;  %v3225_v53 = vmax.f32 %v3128_v21, 0.0 }
 0x7fc   :  { %v3226_v27 = vmax.f32 %v3130_v23, 0.0 }
 0x7fd   :  { %v3227_v17 = vmax.f32 %v3132_v28, 0.0 }
 0x7fe   :  { %v10488_v9 = vpack.c.bf16 %v3226_v27, %v3224_v49 }
 0x7ff   :  { %v3135_v62 = vpop.f32.mrb[148].mxu0  ;;  %v10490_v37 = vpack.c.bf16 %v3227_v17, %v3225_v53 }
 0x800   :  { %v3136_v6 = vadd.f32 %v3135_v62, %v10459_v19  ;;  %v3137_v51 = vpop.f32.mrb[149].mxu0 }
 0x801   :  { %v3138_v22 = vadd.f32 %v3137_v51, %v10462_v47  ;;  %v3139_v14 = vpop.f32.mrb[150].mxu0  ;;  %3460 = vmatprep.subr.bf16.mxu1 %v10490_v37 }
 0x802   :  { %v3140_v0 = vadd.f32 %v3139_v14, %v10459_v19  ;;  %v3141_v11 = vpop.f32.mrb[151].mxu0  ;;  %3461 = vmatpush1.bf16.msra.mxu1 %v10488_v9  ;;  %v3228_v57 = vmax.f32 %v3136_v6, 0.0 }
 0x803   :  { %v3142_v55 = vadd.f32 %v3141_v11, %v10462_v47  ;;  %v3229_v25 = vmax.f32 %v3138_v22, 0.0 }
 0x804   :  { %v3230_v32 = vmax.f32 %v3140_v0, 0.0 }
 0x805   :  { %v3231_v45 = vmax.f32 %v3142_v55, 0.0 }
 0x806   :  { %v10498_v59 = vpack.c.bf16 %v3230_v32, %v3228_v57 }
 0x807   :  { %v3145_v60 = vpop.f32.mrb[152].mxu0  ;;  %v10500_v30 = vpack.c.bf16 %v3231_v45, %v3229_v25 }
 0x808   :  { %v3146_v43 = vadd.f32 %v3145_v60, %v10459_v19  ;;  %v3147_v41 = vpop.f32.mrb[153].mxu0 }
 0x809   :  { %v3148_v34 = vadd.f32 %v3147_v41, %v10462_v47  ;;  %v3149_v54 = vpop.f32.mrb[154].mxu0  ;;  %3462 = vmatprep.subr.bf16.mxu1 %v10500_v30 }
 0x80a   :  { %v3150_v21 = vadd.f32 %v3149_v54, %v10459_v19  ;;  %v3151_v39 = vpop.f32.mrb[155].mxu0  ;;  %3463 = vmatpush1.bf16.msra.mxu1 %v10498_v59  ;;  %v3232_v31 = vmax.f32 %v3146_v43, 0.0 }
 0x80b   :  { %v3152_v23 = vadd.f32 %v3151_v39, %v10462_v47  ;;  %v3233_v49 = vmax.f32 %v3148_v34, 0.0 }
 0x80c   :  { %v3234_v28 = vmax.f32 %v3150_v21, 0.0 }
 0x80d   :  { %v3235_v27 = vmax.f32 %v3152_v23, 0.0 }
 0x80e   :  { %v10508_v53 = vpack.c.bf16 %v3234_v28, %v3232_v31 }
 0x80f   :  { %v3155_v17 = vpop.f32.mrb[156].mxu0  ;;  %v10510_v62 = vpack.c.bf16 %v3235_v27, %v3233_v49 }
 0x810   :  { %v3156_v6 = vadd.f32 %v3155_v17, %v10459_v19  ;;  %v3157_v51 = vpop.f32.mrb[157].mxu0 }
 0x811   :  { %v3158_v22 = vadd.f32 %v3157_v51, %v10462_v47  ;;  %v3159_v14 = vpop.f32.mrb[158].mxu0  ;;  %3464 = vmatprep.subr.bf16.mxu1 %v10510_v62 }
 0x812   :  { %v3160_v0 = vadd.f32 %v3159_v14, %v10459_v19  ;;  %v3161_v11 = vpop.f32.mrb[159].mxu0  ;;  %3465 = vmatpush1.bf16.msra.mxu1 %v10508_v53  ;;  %v3236_v57 = vmax.f32 %v3156_v6, 0.0 }
 0x813   :  { %v3162_v55 = vadd.f32 %v3161_v11, %v10462_v47  ;;  %v3237_v25 = vmax.f32 %v3158_v22, 0.0 }
 0x814   :  { %v3238_v32 = vmax.f32 %v3160_v0, 0.0 }
 0x815   :  { %v3239_v45 = vmax.f32 %v3162_v55, 0.0 }
 0x816   :  { %v10518_v60 = vpack.c.bf16 %v3238_v32, %v3236_v57 }
 0x817   :  { %v3165_v43 = vpop.f32.mrb[160].mxu0  ;;  %v10520_v41 = vpack.c.bf16 %v3239_v45, %v3237_v25 }
 0x818   :  { %v3166_v34 = vadd.f32 %v3165_v43, %v10459_v19  ;;  %v3167_v54 = vpop.f32.mrb[161].mxu0 }
 0x819   :  { %v3168_v21 = vadd.f32 %v3167_v54, %v10462_v47  ;;  %v3169_v39 = vpop.f32.mrb[162].mxu0  ;;  %3466 = vmatprep.subr.bf16.mxu1 %v10520_v41 }
 0x81a   :  { %v3170_v23 = vadd.f32 %v3169_v39, %v10459_v19  ;;  %v3171_v31 = vpop.f32.mrb[163].mxu0  ;;  %3467 = vmatpush1.bf16.msra.mxu1 %v10518_v60  ;;  %v3240_v49 = vmax.f32 %v3166_v34, 0.0 }
 0x81b   :  { %v3172_v28 = vadd.f32 %v3171_v31, %v10462_v47  ;;  %v3241_v17 = vmax.f32 %v3168_v21, 0.0  ;;  %v9147_v31 = vld [vmem:[#allocation2 + $0x304] ss:$8 sps:$4 sm:$0xff]  }
 0x81c   :  { %v3242_v27 = vmax.f32 %v3170_v23, 0.0 }
 0x81d   :  { %v3243_v6 = vmax.f32 %v3172_v28, 0.0  ;;  %v9145_v28 = vld [vmem:[#allocation2 + $0x300] ss:$8 sps:$4 sm:$0xff]  }
 0x81e   :  { %v10528_v51 = vpack.c.bf16 %v3242_v27, %v3240_v49  ;;  %v9150_v49 = vld [vmem:[#allocation2 + $0x310] ss:$8 sps:$4 sm:$0xff]   ;;  %v9157_v27 = vld [vmem:[#allocation2 + $0x324] ss:$8 sps:$4 sm:$0xff]  }
 0x81f   :  { %v3175_v22 = vpop.f32.mrb[164].mxu0  ;;  %v10530_v14 = vpack.c.bf16 %v3243_v6, %v3241_v17  ;;  %v9143_v17 = vld [vmem:[%s12168_s3 + $0x8] sm:$0xff]  }
 0x820   :  { %v3176_v0 = vadd.f32 %v3175_v22, %v10459_v19  ;;  %v3177_v11 = vpop.f32.mrb[165].mxu0  ;;  %v9155_v6 = vld [vmem:[#allocation2 + $0x320] ss:$8 sps:$4 sm:$0xff]   ;;  %v9162_v22 = vld [vmem:[#allocation2 + $0x334] ss:$8 sps:$4 sm:$0xff]  }
 0x821   :  { %v3178_v55 = vadd.f32 %v3177_v11, %v10462_v47  ;;  %v3179_v57 = vpop.f32.mrb[166].mxu0  ;;  %3468 = vmatprep.subr.bf16.mxu1 %v10530_v14  ;;  %v9167_v11 = vld [vmem:[#allocation2 + $0x344] ss:$8 sps:$4 sm:$0xff]  }
 0x822   :  { %v3180_v32 = vadd.f32 %v3179_v57, %v10459_v19  ;;  %v3181_v25 = vpop.f32.mrb[167].mxu0  ;;  %3469 = vmatpush1.bf16.msra.mxu1 %v10528_v51  ;;  %v3244_v43 = vmax.f32 %v3176_v0, 0.0  ;;  %v9142_v19 = vld [vmem:[%s12168_s3] sm:$0xff]   ;;  %v9160_v0 = vld [vmem:[#allocation2 + $0x330] ss:$8 sps:$4 sm:$0xff]  }
 0x823   :  { %v3182_v45 = vadd.f32 %v3181_v25, %v10462_v47  ;;  %v3245_v54 = vmax.f32 %v3178_v55, 0.0  ;;  %v9152_v47 = vld [vmem:[#allocation2 + $0x314] ss:$8 sps:$4 sm:$0xff]   ;;  %v9165_v57 = vld [vmem:[#allocation2 + $0x340] ss:$8 sps:$4 sm:$0xff]  }
 0x824   :  { %v3246_v34 = vmax.f32 %v3180_v32, 0.0  ;;  %v9144_v55 = vld [vmem:[%s12168_s3 + $0x10] sm:$0xff]  }
 0x825   :  { %v3247_v21 = vmax.f32 %v3182_v45, 0.0  ;;  %v9172_v32 = vld [vmem:[#allocation2 + $0x354] ss:$8 sps:$4 sm:$0xff]   ;;  %v9170_v25 = vld [vmem:[#allocation2 + $0x350] ss:$8 sps:$4 sm:$0xff]  }
 0x826   :  { %v10538_v39 = vpack.c.bf16 %v3246_v34, %v3244_v43  ;;  %v9177_v45 = vld [vmem:[#allocation2 + $0x364] ss:$8 sps:$4 sm:$0xff]   ;;  %v9148_v43 = vld [vmem:[%s12168_s3 + $0x18] sm:$0xff]   ;;  %v9175_v34 = vld [vmem:[#allocation2 + $0x360] ss:$8 sps:$4 sm:$0xff]  }
 0x827   :  { %v10540_v23 = vpack.c.bf16 %v3247_v21, %v3245_v54  ;;  %v9182_v54 = vld [vmem:[#allocation2 + $0x374] ss:$8 sps:$4 sm:$0xff]   ;;  %v9180_v21 = vld [vmem:[#allocation2 + $0x370] ss:$8 sps:$4 sm:$0xff]  }
 0x829   :  { %3470 = vmatprep.subr.bf16.mxu1 %v10540_v23 }
 0x82a   :  { %3471 = vmatpush1.bf16.msra.mxu1 %v10538_v39 }
 0x82b   :  { %4015 = vmatprep.subr.bf16.mxu1 %v9147_v31  ;;  %v9187_v31 = vld [vmem:[#allocation2 + $0x384] ss:$8 sps:$4 sm:$0xff]  }
 0x82d   :  { %3489 = vmatmul.mubr.bf16.vlgmr.msra.gmra.mrb[80].mxu1 %v9142_v19  ;;  %v9149_v19 = vld [vmem:[%s12168_s3 + $0x20] sm:$0xff]  }
 0x82e   :  { %3498 = vmatprep.mubr.bf16.mxu1 %v12305_v48  ;;  %4016 = vmatpush1.bf16.msra.mxu1 %v9145_v28  ;;  %v9185_v28 = vld [vmem:[#allocation2 + $0x380] ss:$8 sps:$4 sm:$0xff]  }
 0x82f   :  { %4017 = vmatprep.subr.bf16.mxu1 %v9152_v47  ;;  %v9192_v47 = vld [vmem:[#allocation2 + $0x394] ss:$8 sps:$4 sm:$0xff]  }
 0x832   :  { %4018 = vmatpush1.bf16.msra.mxu1 %v9150_v49  ;;  %v9190_v49 = vld [vmem:[#allocation2 + $0x390] ss:$8 sps:$4 sm:$0xff]  }
 0x833   :  { %4019 = vmatprep.subr.bf16.mxu1 %v9157_v27  ;;  %v9153_v27 = vld [vmem:[%s12168_s3 + $0x28] sm:$0xff]  }
 0x835   :  { %3499 = vmatmul.mubr.bf16.gmra.mrb[84].mxu1 %v9143_v17  ;;  %v9154_v17 = vld [vmem:[%s12168_s3 + $0x30] sm:$0xff]  }
 0x836   :  { %3508 = vmatprep.mubr.bf16.mxu1 %v12305_v48  ;;  %4020 = vmatpush1.bf16.msra.mxu1 %v9155_v6  ;;  %v9195_v6 = vld [vmem:[#allocation2 + $0x3a0] ss:$8 sps:$4 sm:$0xff]  }
 0x837   :  { %4021 = vmatprep.subr.bf16.mxu1 %v9162_v22  ;;  %v9197_v22 = vld [vmem:[#allocation2 + $0x3a4] ss:$8 sps:$4 sm:$0xff]  }
 0x83a   :  { %4022 = vmatpush1.bf16.msra.mxu1 %v9160_v0  ;;  %v9158_v0 = vld [vmem:[%s12168_s3 + $0x38] sm:$0xff]  }
 0x83b   :  { %4023 = vmatprep.subr.bf16.mxu1 %v9167_v11  ;;  %v9159_v11 = vld [vmem:[%s12168_s3 + $0x40] sm:$0xff]  }
 0x83d   :  { %3509 = vmatmul.mubr.bf16.gmra.mrb[88].mxu1 %v9144_v55  ;;  %v9200_v55 = vld [vmem:[#allocation2 + $0x3b0] ss:$8 sps:$4 sm:$0xff]  }
 0x83e   :  { %3518 = vmatprep.mubr.bf16.mxu1 %v12305_v48  ;;  %4024 = vmatpush1.bf16.msra.mxu1 %v9165_v57  ;;  %v9202_v57 = vld [vmem:[#allocation2 + $0x3b4] ss:$8 sps:$4 sm:$0xff]  }
 0x83f   :  { %4025 = vmatprep.subr.bf16.mxu1 %v9172_v32  ;;  %v9163_v32 = vld [vmem:[%s12168_s3 + $0x48] sm:$0xff]  }
 0x842   :  { %4026 = vmatpush1.bf16.msra.mxu1 %v9170_v25  ;;  %v9164_v25 = vld [vmem:[%s12168_s3 + $0x50] sm:$0xff]  }
 0x843   :  { %4027 = vmatprep.subr.bf16.mxu1 %v9177_v45  ;;  %v9205_v45 = vld [vmem:[#allocation2 + $0x3c0] ss:$8 sps:$4 sm:$0xff]  }
 0x845   :  { %3519 = vmatmul.mubr.bf16.gmra.mrb[92].mxu1 %v9148_v43  ;;  %v9207_v43 = vld [vmem:[#allocation2 + $0x3c4] ss:$8 sps:$4 sm:$0xff]  }
 0x846   :  { %3528 = vmatprep.mubr.bf16.mxu1 %v12305_v48  ;;  %4028 = vmatpush1.bf16.msra.mxu1 %v9175_v34  ;;  %v9168_v34 = vld [vmem:[%s12168_s3 + $0x58] sm:$0xff]  }
 0x847   :  { %4029 = vmatprep.subr.bf16.mxu1 %v9182_v54  ;;  %v9169_v54 = vld [vmem:[%s12168_s3 + $0x60] sm:$0xff]  }
 0x84a   :  { %4030 = vmatpush1.bf16.msra.mxu1 %v9180_v21  ;;  %v9210_v21 = vld [vmem:[#allocation2 + $0x3d0] ss:$8 sps:$4 sm:$0xff]  }
 0x84b   :  { %4031 = vmatprep.subr.bf16.mxu1 %v9187_v31  ;;  %v9212_v31 = vld [vmem:[#allocation2 + $0x3d4] ss:$8 sps:$4 sm:$0xff]  }
 0x84d   :  { %3529 = vmatmul.mubr.bf16.gmra.mrb[96].mxu1 %v9149_v19  ;;  %v9173_v19 = vld [vmem:[%s12168_s3 + $0x68] sm:$0xff]  }
 0x84e   :  { %3538 = vmatprep.mubr.bf16.mxu1 %v12305_v48  ;;  %4032 = vmatpush1.bf16.msra.mxu1 %v9185_v28  ;;  %v9174_v28 = vld [vmem:[%s12168_s3 + $0x70] sm:$0xff]  }
 0x84f   :  { %4033 = vmatprep.subr.bf16.mxu1 %v9192_v47  ;;  %v9215_v47 = vld [vmem:[#allocation2 + $0x3e0] ss:$8 sps:$4 sm:$0xff]  }
 0x852   :  { %4034 = vmatpush1.bf16.msra.mxu1 %v9190_v49  ;;  %v9217_v49 = vld [vmem:[#allocation2 + $0x3e4] ss:$8 sps:$4 sm:$0xff]  }
 0x853   :  { %4035 = vmatprep.subr.bf16.mxu1 %v9197_v22  ;;  %v9179_v22 = vld [vmem:[%s12168_s3 + $0x80] sm:$0xff]  }
 0x855   :  { %3539 = vmatmul.mubr.bf16.gmra.mrb[100].mxu1 %v9153_v27  ;;  %v9178_v27 = vld [vmem:[%s12168_s3 + $0x78] sm:$0xff]  }
 0x856   :  { %3548 = vmatprep.mubr.bf16.mxu1 %v12305_v48  ;;  %4036 = vmatpush1.bf16.msra.mxu1 %v9195_v6  ;;  %v9221_v6 = vld [vmem:[#allocation2 + $0x3f4] ss:$8 sps:$4 sm:$0xff]  }
 0x857   :  { %4037 = vmatprep.subr.bf16.mxu1 %v9202_v57  ;;  %v9189_v57 = vld [vmem:[%s12168_s3 + $0xa0] sm:$0xff]  }
 0x85a   :  { %4038 = vmatpush1.bf16.msra.mxu1 %v9200_v55  ;;  %v9188_v55 = vld [vmem:[%s12168_s3 + $0x98] sm:$0xff]  }
 0x85b   :  { %4039 = vmatprep.subr.bf16.mxu1 %v9207_v43  ;;  %v9199_v43 = vld [vmem:[%s12168_s3 + $0xc0] sm:$0xff]  }
 0x85d   :  { %3549 = vmatmul.mubr.bf16.gmra.mrb[104].mxu1 %v9154_v17  ;;  %v9219_v17 = vld [vmem:[#allocation2 + $0x3f0] ss:$8 sps:$4 sm:$0xff]  }
 0x85e   :  { %3558 = vmatprep.mubr.bf16.mxu1 %v12305_v48  ;;  %4040 = vmatpush1.bf16.msra.mxu1 %v9205_v45  ;;  %v9198_v45 = vld [vmem:[%s12168_s3 + $0xb8] sm:$0xff]  }
 0x85f   :  { %4041 = vmatprep.subr.bf16.mxu1 %v9212_v31  ;;  %v9209_v31 = vld [vmem:[%s12168_s3 + $0xe0] sm:$0xff]  }
 0x862   :  { %4042 = vmatpush1.bf16.msra.mxu1 %v9210_v21  ;;  %v9208_v21 = vld [vmem:[%s12168_s3 + $0xd8] sm:$0xff]  }
 0x863   :  { %4043 = vmatprep.subr.bf16.mxu1 %v9217_v49  ;;  %v9222_v49 = vld [vmem:[#allocation2 + $0x600] ss:$8 sps:$4 sm:$0xff]  }
 0x865   :  { %3559 = vmatmul.mubr.bf16.gmra.mrb[108].mxu1 %v9158_v0  ;;  %v9183_v0 = vld [vmem:[%s12168_s3 + $0x88] sm:$0xff]  }
 0x866   :  { %3568 = vmatprep.mubr.bf16.mxu1 %v12305_v48  ;;  %4044 = vmatpush1.bf16.msra.mxu1 %v9215_v47  ;;  %v9218_v47 = vld [vmem:[%s12168_s3 + $0xf8] sm:$0xff]  }
 0x867   :  { %4045 = vmatprep.subr.bf16.mxu1 %v9221_v6  ;;  %v9251_v6 = vld [vmem:[#allocation2 + $0x694] ss:$8 sps:$4 sm:$0xff]  }
 0x86a   :  { %4046 = vmatpush1.bf16.msra.mxu1 %v9219_v17  ;;  %v9248_v17 = vld [vmem:[#allocation2 + $0x684] ss:$8 sps:$4 sm:$0xff]  }
 0x86d   :  { %3569 = vmatmul.mubr.bf16.gmra.mrb[112].mxu1 %v9159_v11  ;;  %v9184_v11 = vld [vmem:[%s12168_s3 + $0x90] sm:$0xff]  }
 0x86e   :  { %3578 = vmatprep.mubr.bf16.mxu1 %v12305_v48 }
 0x875   :  { %3579 = vmatmul.mubr.bf16.gmra.mrb[116].mxu1 %v9163_v32  ;;  %v9193_v32 = vld [vmem:[%s12168_s3 + $0xa8] sm:$0xff]  }
 0x876   :  { %3588 = vmatprep.mubr.bf16.mxu1 %v12305_v48 }
 0x87d   :  { %3589 = vmatmul.mubr.bf16.gmra.mrb[120].mxu1 %v9164_v25  ;;  %v9194_v25 = vld [vmem:[%s12168_s3 + $0xb0] sm:$0xff]  }
 0x87e   :  { %3598 = vmatprep.mubr.bf16.mxu1 %v12305_v48 }
 0x885   :  { %3599 = vmatmul.mubr.bf16.gmra.mrb[124].mxu1 %v9168_v34  ;;  %v9203_v34 = vld [vmem:[%s12168_s3 + $0xc8] sm:$0xff]  }
 0x886   :  { %3608 = vmatprep.mubr.bf16.mxu1 %v12305_v48 }
 0x88d   :  { %3609 = vmatmul.mubr.bf16.gmra.mrb[128].mxu1 %v9169_v54  ;;  %v9204_v54 = vld [vmem:[%s12168_s3 + $0xd0] sm:$0xff]  }
 0x88e   :  { %3618 = vmatprep.mubr.bf16.mxu1 %v12305_v48 }
 0x895   :  { %3619 = vmatmul.mubr.bf16.gmra.mrb[132].mxu1 %v9173_v19  ;;  %v9213_v19 = vld [vmem:[%s12168_s3 + $0xe8] sm:$0xff]  }
 0x896   :  { %3628 = vmatprep.mubr.bf16.mxu1 %v12305_v48 }
 0x89d   :  { %3629 = vmatmul.mubr.bf16.gmra.mrb[136].mxu1 %v9174_v28  ;;  %v9214_v28 = vld [vmem:[%s12168_s3 + $0xf0] sm:$0xff]  }
 0x89e   :  { %3638 = vmatprep.mubr.bf16.mxu1 %v12305_v48 }
 0x8a5   :  { %3639 = vmatmul.mubr.bf16.gmra.mrb[140].mxu1 %v9178_v27  ;;  %v9224_v27 = vld [vmem:[#allocation2 + $0x604] ss:$8 sps:$4 sm:$0xff]  }
 0x8a6   :  { %3648 = vmatprep.mubr.bf16.mxu1 %v12305_v48  ;;  %4894 = vmatprep.subr.bf16.mxu0 %v9224_v27 }
 0x8a7   :  { %8245 = vmatprep.subr.bf16.mxu1 %v9224_v27  ;;  %4895 = vmatpush1.bf16.msra.mxu0 %v9222_v49  ;;  %v12320_v27 = vld [vmem:[#allocation19_spill] sm:$0xff] }
 0x8ad   :  { %3649 = vmatmul.mubr.bf16.gmra.mrb[144].mxu1 %v9179_v22  ;;  %v9254_v22 = vld [vmem:[#allocation2 + $0x6a4] ss:$8 sps:$4 sm:$0xff]  }
 0x8ae   :  { %3658 = vmatprep.mubr.bf16.mxu1 %v12305_v48 }
 0x8b5   :  { %3659 = vmatmul.mubr.bf16.gmra.mrb[148].mxu1 %v9183_v0  ;;  %v9257_v0 = vld [vmem:[#allocation2 + $0x6b4] ss:$8 sps:$4 sm:$0xff]  }
 0x8b6   :  { %3668 = vmatprep.mubr.bf16.mxu1 %v12305_v48 }
 0x8bd   :  { %3669 = vmatmul.mubr.bf16.gmra.mrb[152].mxu1 %v9184_v11  ;;  %v9260_v11 = vld [vmem:[#allocation2 + $0x6c4] ss:$8 sps:$4 sm:$0xff]  }
 0x8be   :  { %3678 = vmatprep.mubr.bf16.mxu1 %v12305_v48 }
 0x8c5   :  { %3679 = vmatmul.mubr.bf16.gmra.mrb[156].mxu1 %v9188_v55  ;;  %v12310_v55 = vld [vmem:[#allocation10_spill] sm:$0xff] }
 0x8c6   :  { %3688 = vmatprep.mubr.bf16.mxu1 %v12305_v48 }
 0x8cd   :  { %3689 = vmatmul.mubr.bf16.gmra.mrb[160].mxu1 %v9189_v57  ;;  %v9263_v57 = vld [vmem:[#allocation2 + $0x6d4] ss:$8 sps:$4 sm:$0xff]  }
 0x8ce   :  { %3698 = vmatprep.mubr.bf16.mxu1 %v12305_v48 }
 0x8d5   :  { %3699 = vmatmul.mubr.bf16.gmra.mrb[164].mxu1 %v9193_v32  ;;  %v12311_v32 = vld [vmem:[#allocation12_spill] sm:$0xff] }
 0x8d6   :  { %3708 = vmatprep.mubr.bf16.mxu1 %v12305_v48 }
 0x8dd   :  { %3709 = vmatmul.mubr.bf16.gmra.mrb[168].mxu1 %v9194_v25  ;;  %v9264_v25 = vld [vmem:[#allocation2 + $0x6e0] ss:$8 sps:$4 sm:$0xff]  }
 0x8de   :  { %3718 = vmatprep.mubr.bf16.mxu1 %v12305_v48 }
 0x8e5   :  { %3719 = vmatmul.mubr.bf16.gmra.mrb[172].mxu1 %v9198_v45  ;;  %v12312_v45 = vld [vmem:[#allocation11_spill] sm:$0xff] }
 0x8e6   :  { %3728 = vmatprep.mubr.bf16.mxu1 %v12305_v48 }
 0x8ed   :  { %3729 = vmatmul.mubr.bf16.gmra.mrb[176].mxu1 %v9199_v43  ;;  %v9269_v43 = vld [vmem:[#allocation2 + $0x6f4] ss:$8 sps:$4 sm:$0xff]  }
 0x8ee   :  { %3738 = vmatprep.mubr.bf16.mxu1 %v12305_v48 }
 0x8f5   :  { %3739 = vmatmul.mubr.bf16.gmra.mrb[180].mxu1 %v9203_v34  ;;  %v12313_v34 = vld [vmem:[#allocation14_spill] sm:$0xff] }
 0x8f6   :  { %3748 = vmatprep.mubr.bf16.mxu1 %v12305_v48 }
 0x8fd   :  { %3749 = vmatmul.mubr.bf16.gmra.mrb[184].mxu1 %v9204_v54  ;;  %v9267_v54 = vld [vmem:[#allocation2 + $0x6f0] ss:$8 sps:$4 sm:$0xff]  }
 0x8fe   :  { %3758 = vmatprep.mubr.bf16.mxu1 %v12305_v48 }
 0x905   :  { %3759 = vmatmul.mubr.bf16.gmra.mrb[188].mxu1 %v9208_v21  ;;  %v12314_v21 = vld [vmem:[#allocation13_spill] sm:$0xff] }
 0x906   :  { %3768 = vmatprep.mubr.bf16.mxu1 %v12305_v48 }
 0x90d   :  { %3769 = vmatmul.mubr.bf16.gmra.mrb[192].mxu1 %v9209_v31  ;;  %v12315_v31 = vld [vmem:[#allocation16_spill] sm:$0xff] }
 0x90e   :  { %3778 = vmatprep.mubr.bf16.mxu1 %v12305_v48 }
 0x915   :  { %3779 = vmatmul.mubr.bf16.gmra.mrb[196].mxu1 %v9213_v19  ;;  %v12316_v19 = vld [vmem:[#allocation15_spill] sm:$0xff] }
 0x916   :  { %3788 = vmatprep.mubr.bf16.mxu1 %v12305_v48 }
 0x91d   :  { %3789 = vmatmul.mubr.bf16.gmra.mrb[200].mxu1 %v9214_v28  ;;  %v12317_v28 = vld [vmem:[#allocation18_spill] sm:$0xff] }
 0x91e   :  { %3798 = vmatprep.mubr.bf16.mxu1 %v12305_v48 }
 0x925   :  { %3799 = vmatmul.mubr.bf16.gmra.mrb[204].mxu1 %v9218_v47  ;;  %v12318_v47 = vld [vmem:[#allocation17_spill] sm:$0xff] }
 0x926   :  { %4047 = vmatprep.mubr.bf16.mxu1 %v9860_v46  ;;  %v9225_v46 = vld [vmem:[#allocation2 + $0x610] ss:$8 sps:$4 sm:$0xff]  }
 0x92d   :  { %4048 = vmatmul.mubr.bf16.vlgmr.msra.gmra.mrb[80].mxu1 %v9858_v44  ;;  %v9227_v44 = vld [vmem:[#allocation2 + $0x614] ss:$8 sps:$4 sm:$0xff]  }
 0x92e   :  { %4057 = vmatprep.mubr.bf16.mxu1 %v9879_v63  ;;  %8261 = vmatpush1.bf16.msra.mxu1 %v9222_v49  ;;  %v9228_v63 = vld [vmem:[#allocation2 + $0x620] ss:$8 sps:$4 sm:$0xff]   ;;  %v12319_v49 = vld [vmem:[#allocation20_spill] sm:$0xff] }
 0x92f   :  { %4896 = vmatprep.subr.bf16.mxu0 %v9227_v44  ;;  %8246 = vmatprep.subr.bf16.mxu1 %v9227_v44  ;;  %v12321_v44 = vld [vmem:[#allocation22_spill] sm:$0xff] }
 0x930   :  { %4897 = vmatpush1.bf16.msra.mxu0 %v9225_v46 }
 0x932   :  { %8262 = vmatpush1.bf16.msra.mxu1 %v9225_v46  ;;  %v12322_v46 = vld [vmem:[#allocation21_spill] sm:$0xff] }
 0x935   :  { %4058 = vmatmul.mubr.bf16.gmra.mrb[84].mxu1 %v9877_v61  ;;  %v9230_v61 = vld [vmem:[#allocation2 + $0x624] ss:$8 sps:$4 sm:$0xff]  }
 0x936   :  { %4067 = vmatprep.mubr.bf16.mxu1 %v9895_v15  ;;  %4898 = vmatprep.subr.bf16.mxu0 %v9230_v61  ;;  %v9231_v15 = vld [vmem:[#allocation2 + $0x630] ss:$8 sps:$4 sm:$0xff]  }
 0x937   :  { %8247 = vmatprep.subr.bf16.mxu1 %v9230_v61  ;;  %4899 = vmatpush1.bf16.msra.mxu0 %v9228_v63  ;;  %v12323_v61 = vld [vmem:[#allocation24_spill] sm:$0xff] }
 0x938   :  { %8263 = vmatpush1.bf16.msra.mxu1 %v9228_v63  ;;  %v12324_v63 = vld [vmem:[#allocation23_spill] sm:$0xff] }
 0x93d   :  { %4068 = vmatmul.mubr.bf16.gmra.mrb[88].mxu1 %v9893_v13  ;;  %v9233_v13 = vld [vmem:[#allocation2 + $0x634] ss:$8 sps:$4 sm:$0xff]  }
 0x93e   :  { %4077 = vmatprep.mubr.bf16.mxu1 %v9911_v35  ;;  %4900 = vmatprep.subr.bf16.mxu0 %v9233_v13  ;;  %v9234_v35 = vld [vmem:[#allocation2 + $0x640] ss:$8 sps:$4 sm:$0xff]  }
 0x93f   :  { %8248 = vmatprep.subr.bf16.mxu1 %v9233_v13  ;;  %4901 = vmatpush1.bf16.msra.mxu0 %v9231_v15  ;;  %v12325_v13 = vld [vmem:[#allocation26_spill] sm:$0xff] }
 0x940   :  { %8264 = vmatpush1.bf16.msra.mxu1 %v9231_v15  ;;  %v12326_v15 = vld [vmem:[#allocation25_spill] sm:$0xff] }
 0x945   :  { %4078 = vmatmul.mubr.bf16.gmra.mrb[92].mxu1 %v9909_v33  ;;  %v9236_v33 = vld [vmem:[#allocation2 + $0x644] ss:$8 sps:$4 sm:$0xff]  }
 0x946   :  { %4087 = vmatprep.mubr.bf16.mxu1 %v9924_v52  ;;  %4902 = vmatprep.subr.bf16.mxu0 %v9236_v33  ;;  %v9237_v52 = vld [vmem:[#allocation2 + $0x650] ss:$8 sps:$4 sm:$0xff]  }
 0x947   :  { %8249 = vmatprep.subr.bf16.mxu1 %v9236_v33  ;;  %4903 = vmatpush1.bf16.msra.mxu0 %v9234_v35  ;;  %v12327_v33 = vld [vmem:[#allocation28_spill] sm:$0xff] }
 0x948   :  { %8265 = vmatpush1.bf16.msra.mxu1 %v9234_v35  ;;  %v12328_v35 = vld [vmem:[#allocation27_spill] sm:$0xff] }
 0x94d   :  { %4088 = vmatmul.mubr.bf16.gmra.mrb[96].mxu1 %v9922_v50  ;;  %v9239_v50 = vld [vmem:[#allocation2 + $0x654] ss:$8 sps:$4 sm:$0xff]  }
 0x94e   :  { %4097 = vmatprep.mubr.bf16.mxu1 %v9934_v4  ;;  %4904 = vmatprep.subr.bf16.mxu0 %v9239_v50  ;;  %v9240_v4 = vld [vmem:[#allocation2 + $0x660] ss:$8 sps:$4 sm:$0xff]  }
 0x94f   :  { %8250 = vmatprep.subr.bf16.mxu1 %v9239_v50  ;;  %4905 = vmatpush1.bf16.msra.mxu0 %v9237_v52  ;;  %v12329_v50 = vld [vmem:[#allocation30_spill] sm:$0xff] }
 0x950   :  { %8266 = vmatpush1.bf16.msra.mxu1 %v9237_v52  ;;  %v12330_v52 = vld [vmem:[#allocation29_spill] sm:$0xff] }
 0x955   :  { %4098 = vmatmul.mubr.bf16.gmra.mrb[100].mxu1 %v9932_v2  ;;  %v9242_v2 = vld [vmem:[#allocation2 + $0x664] ss:$8 sps:$4 sm:$0xff]  }
 0x956   :  { %4107 = vmatprep.mubr.bf16.mxu1 %v9944_v20  ;;  %4906 = vmatprep.subr.bf16.mxu0 %v9242_v2  ;;  %v9245_v20 = vld [vmem:[#allocation2 + $0x674] ss:$8 sps:$4 sm:$0xff]  }
 0x957   :  { %8251 = vmatprep.subr.bf16.mxu1 %v9242_v2  ;;  %4907 = vmatpush1.bf16.msra.mxu0 %v9240_v4  ;;  %v12331_v2 = vld [vmem:[#allocation32_spill] sm:$0xff] }
 0x958   :  { %8267 = vmatpush1.bf16.msra.mxu1 %v9240_v4  ;;  %4908 = vmatprep.subr.bf16.mxu0 %v9245_v20  ;;  %v12332_v4 = vld [vmem:[#allocation31_spill] sm:$0xff] }
 0x959   :  { %8252 = vmatprep.subr.bf16.mxu1 %v9245_v20  ;;  %v12333_v20 = vld [vmem:[#allocation34_spill] sm:$0xff] }
 0x95d   :  { %4108 = vmatmul.mubr.bf16.gmra.mrb[104].mxu1 %v9942_v18  ;;  %v9243_v18 = vld [vmem:[#allocation2 + $0x670] ss:$8 sps:$4 sm:$0xff]  }
 0x95e   :  { %4117 = vmatprep.mubr.bf16.mxu1 %v9954_v40  ;;  %4909 = vmatpush1.bf16.msra.mxu0 %v9243_v18  ;;  %v9246_v40 = vld [vmem:[#allocation2 + $0x680] ss:$8 sps:$4 sm:$0xff]  }
 0x95f   :  { %8268 = vmatpush1.bf16.msra.mxu1 %v9243_v18  ;;  %4910 = vmatprep.subr.bf16.mxu0 %v9248_v17  ;;  %v12334_v18 = vld [vmem:[#allocation33_spill] sm:$0xff] }
 0x960   :  { %8253 = vmatprep.subr.bf16.mxu1 %v9248_v17  ;;  %v12335_v17 = vld [vmem:[#allocation36_spill] sm:$0xff] }
 0x962   :  { %4911 = vmatpush1.bf16.msra.mxu0 %v9246_v40 }
 0x963   :  { %8269 = vmatpush1.bf16.msra.mxu1 %v9246_v40  ;;  %4912 = vmatprep.subr.bf16.mxu0 %v9251_v6  ;;  %v12336_v40 = vld [vmem:[#allocation35_spill] sm:$0xff] }
 0x964   :  { %8254 = vmatprep.subr.bf16.mxu1 %v9251_v6  ;;  %v12337_v6 = vld [vmem:[#allocation38_spill] sm:$0xff] }
 0x965   :  { %4118 = vmatmul.mubr.bf16.gmra.mrb[108].mxu1 %v9952_v38  ;;  %v9249_v38 = vld [vmem:[#allocation2 + $0x690] ss:$8 sps:$4 sm:$0xff]  }
 0x966   :  { %4127 = vmatprep.mubr.bf16.mxu1 %v9964_v58  ;;  %4913 = vmatpush1.bf16.msra.mxu0 %v9249_v38  ;;  %v9252_v58 = vld [vmem:[#allocation2 + $0x6a0] ss:$8 sps:$4 sm:$0xff]  }
 0x967   :  { %8270 = vmatpush1.bf16.msra.mxu1 %v9249_v38  ;;  %4914 = vmatprep.subr.bf16.mxu0 %v9254_v22  ;;  %v12338_v38 = vld [vmem:[#allocation37_spill] sm:$0xff] }
 0x968   :  { %8255 = vmatprep.subr.bf16.mxu1 %v9254_v22  ;;  %v12339_v22 = vld [vmem:[#allocation40_spill] sm:$0xff] }
 0x96a   :  { %4915 = vmatpush1.bf16.msra.mxu0 %v9252_v58 }
 0x96b   :  { %8271 = vmatpush1.bf16.msra.mxu1 %v9252_v58  ;;  %4916 = vmatprep.subr.bf16.mxu0 %v9257_v0  ;;  %v12340_v58 = vld [vmem:[#allocation39_spill] sm:$0xff] }
 0x96c   :  { %8256 = vmatprep.subr.bf16.mxu1 %v9257_v0  ;;  %v12341_v0 = vld [vmem:[#allocation42_spill] sm:$0xff] }
 0x96d   :  { %4128 = vmatmul.mubr.bf16.gmra.mrb[112].mxu1 %v9962_v56  ;;  %v9255_v56 = vld [vmem:[#allocation2 + $0x6b0] ss:$8 sps:$4 sm:$0xff]  }
 0x96e   :  { %4137 = vmatprep.mubr.bf16.mxu1 %v9974_v12  ;;  %4917 = vmatpush1.bf16.msra.mxu0 %v9255_v56  ;;  %v9258_v12 = vld [vmem:[#allocation2 + $0x6c0] ss:$8 sps:$4 sm:$0xff]  }
 0x96f   :  { %8272 = vmatpush1.bf16.msra.mxu1 %v9255_v56  ;;  %4918 = vmatprep.subr.bf16.mxu0 %v9260_v11  ;;  %v3843_v56 = vld [vmem:[#allocation4 + $0x6] sm:$0x3] }
 0x970   :  { %8257 = vmatprep.subr.bf16.mxu1 %v9260_v11  ;;  %v12342_v11 = vld [vmem:[#allocation41_spill] sm:$0xff] }
 0x972   :  { %4919 = vmatpush1.bf16.msra.mxu0 %v9258_v12 }
 0x973   :  { %8273 = vmatpush1.bf16.msra.mxu1 %v9258_v12  ;;  %4920 = vmatprep.subr.bf16.mxu0 %v9263_v57  ;;  %v10726_v12 = vrot.slane %v3843_v56, %v9835_v24 }
 0x974   :  { %8258 = vmatprep.subr.bf16.mxu1 %v9263_v57  ;;  %v10730_v57 = vrot.slane %v3843_v56, %v9837_v26 }
 0x975   :  { %4138 = vmatmul.mubr.bf16.gmra.mrb[116].mxu1 %v9972_v10  ;;  %v9261_v10 = vld [vmem:[#allocation2 + $0x6d0] ss:$8 sps:$4 sm:$0xff]  }
 0x976   :  { %4147 = vmatprep.mubr.bf16.mxu1 %v9984_v36  ;;  %4921 = vmatpush1.bf16.msra.mxu0 %v9261_v10  ;;  %v9266_v36 = vld [vmem:[#allocation2 + $0x6e4] ss:$8 sps:$4 sm:$0xff]  }
 0x977   :  { %8274 = vmatpush1.bf16.msra.mxu1 %v9261_v10  ;;  %4922 = vmatprep.subr.bf16.mxu0 %v9266_v36 }
 0x978   :  { %8259 = vmatprep.subr.bf16.mxu1 %v9266_v36 }
 0x97a   :  { %4923 = vmatpush1.bf16.msra.mxu0 %v9264_v25 }
 0x97b   :  { %8275 = vmatpush1.bf16.msra.mxu1 %v9264_v25  ;;  %4924 = vmatprep.subr.bf16.mxu0 %v9269_v43 }
 0x97c   :  { %8260 = vmatprep.subr.bf16.mxu1 %v9269_v43 }
 0x97d   :  { %4148 = vmatmul.mubr.bf16.gmra.mrb[120].mxu1 %v12310_v55  ;;  %v12343_v55 = vld [vmem:[#allocation44_spill] sm:$0xff] }
 0x97e   :  { %4157 = vmatprep.mubr.bf16.mxu1 %v12311_v32  ;;  %4925 = vmatpush1.bf16.msra.mxu0 %v9267_v54 }
 0x97f   :  { %8276 = vmatpush1.bf16.msra.mxu1 %v9267_v54 }
 0x985   :  { %4158 = vmatmul.mubr.bf16.gmra.mrb[124].mxu1 %v12312_v45 }
 0x986   :  { %4167 = vmatprep.mubr.bf16.mxu1 %v12313_v34 }
 0x98d   :  { %4168 = vmatmul.mubr.bf16.gmra.mrb[128].mxu1 %v12314_v21 }
 0x98e   :  { %4177 = vmatprep.mubr.bf16.mxu1 %v12315_v31 }
 0x995   :  { %4178 = vmatmul.mubr.bf16.gmra.mrb[132].mxu1 %v12316_v19  ;;  %v12344_v19 = vld [vmem:[#allocation43_spill] sm:$0xff] }
 0x996   :  { %4187 = vmatprep.mubr.bf16.mxu1 %v12317_v28 }
 0x99d   :  { %4188 = vmatmul.mubr.bf16.gmra.mrb[136].mxu1 %v12318_v47 }
 0x99e   :  { %4197 = vmatprep.mubr.bf16.mxu1 %v12319_v49  ;;  %v12345_v49 = vld [vmem:[#allocation46_spill] sm:$0xff] }
 0x9a5   :  { %4198 = vmatmul.mubr.bf16.gmra.mrb[140].mxu1 %v12320_v27 }
 0x9a6   :  { %4207 = vmatprep.mubr.bf16.mxu1 %v12321_v44 }
 0x9ad   :  { %4208 = vmatmul.mubr.bf16.gmra.mrb[144].mxu1 %v12322_v46 }
 0x9ae   :  { %4217 = vmatprep.mubr.bf16.mxu1 %v12323_v61 }
 0x9b5   :  { %4218 = vmatmul.mubr.bf16.gmra.mrb[148].mxu1 %v12324_v63 }
 0x9b6   :  { %4227 = vmatprep.mubr.bf16.mxu1 %v12325_v13 }
 0x9bd   :  { %4228 = vmatmul.mubr.bf16.gmra.mrb[152].mxu1 %v12326_v15 }
 0x9be   :  { %4237 = vmatprep.mubr.bf16.mxu1 %v12327_v33 }
 0x9c5   :  { %4238 = vmatmul.mubr.bf16.gmra.mrb[156].mxu1 %v12328_v35 }
 0x9c6   :  { %4247 = vmatprep.mubr.bf16.mxu1 %v12329_v50 }
 0x9cd   :  { %4248 = vmatmul.mubr.bf16.gmra.mrb[160].mxu1 %v12330_v52 }
 0x9ce   :  { %4257 = vmatprep.mubr.bf16.mxu1 %v12331_v2 }
 0x9d5   :  { %4258 = vmatmul.mubr.bf16.gmra.mrb[164].mxu1 %v12332_v4  ;;  %v12346_v4 = vld [vmem:[#allocation45_spill] sm:$0xff] }
 0x9d6   :  { %4267 = vmatprep.mubr.bf16.mxu1 %v12333_v20 }
 0x9dd   :  { %4268 = vmatmul.mubr.bf16.gmra.mrb[168].mxu1 %v12334_v18 }
 0x9de   :  { %4277 = vmatprep.mubr.bf16.mxu1 %v12335_v17  ;;  %v12347_v17 = vld [vmem:[#allocation48_spill] sm:$0xff] }
 0x9e5   :  { %4278 = vmatmul.mubr.bf16.gmra.mrb[172].mxu1 %v12336_v40 }
 0x9e6   :  { %4287 = vmatprep.mubr.bf16.mxu1 %v12337_v6 }
 0x9ed   :  { %4288 = vmatmul.mubr.bf16.gmra.mrb[176].mxu1 %v12338_v38 }
 0x9ee   :  { %4297 = vmatprep.mubr.bf16.mxu1 %v12339_v22 }
 0x9f5   :  { %4298 = vmatmul.mubr.bf16.gmra.mrb[180].mxu1 %v12340_v58 }
 0x9f6   :  { %4307 = vmatprep.mubr.bf16.mxu1 %v12341_v0 }
 0x9fd   :  { %4308 = vmatmul.mubr.bf16.gmra.mrb[184].mxu1 %v12342_v11 }
 0x9fe   :  { %4317 = vmatprep.mubr.bf16.mxu1 %v12343_v55 }
 0xa00   :  { %v4049_v32 = vpop.f32.mrb[80].mxu1 }
 0xa01   :  { %v4050_v10 = vadd.f32 %v4049_v32, %v10726_v12  ;;  %v4051_v36 = vpop.f32.mrb[81].mxu1 }
 0xa02   :  { %v4052_v25 = vadd.f32 %v4051_v36, %v10730_v57  ;;  %v4053_v45 = vpop.f32.mrb[82].mxu1 }
 0xa03   :  { %v4054_v43 = vadd.f32 %v4053_v45, %v10726_v12  ;;  %v4055_v34 = vpop.f32.mrb[83].mxu1  ;;  %v4496_v21 = vmax.f32 %v4050_v10, 0.0 }
 0xa04   :  { %v4056_v54 = vadd.f32 %v4055_v34, %v10730_v57  ;;  %v4497_v28 = vmax.f32 %v4052_v25, 0.0  ;;  %v12348_v25 = vld [vmem:[#allocation47_spill] sm:$0xff]  ;;  %v12349_v34 = vld [vmem:[#allocation50_spill] sm:$0xff] }
 0xa05   :  { %v4498_v31 = vmax.f32 %v4054_v43, 0.0  ;;  %4318 = vmatmul.mubr.bf16.gmra.mrb[188].mxu1 %v12344_v19 }
 0xa06   :  { %v4499_v47 = vmax.f32 %v4056_v54, 0.0  ;;  %4327 = vmatprep.mubr.bf16.mxu1 %v12345_v49 }
 0xa07   :  { %v4657_v27 = vpack.c.bf16 %v4498_v31, %v4496_v21 }
 0xa08   :  { %v4658_v44 = vpack.c.bf16 %v4499_v47, %v4497_v28  ;;  %v4059_v46 = vpop.f32.mrb[84].mxu1 }
 0xa09   :  { %v4060_v61 = vadd.f32 %v4059_v46, %v10726_v12  ;;  %v4061_v63 = vpop.f32.mrb[85].mxu1 }
 0xa0a   :  { %v4062_v13 = vadd.f32 %v4061_v63, %v10730_v57  ;;  %v4063_v15 = vpop.f32.mrb[86].mxu1  ;;  %4926 = vmatprep.mubr.bf16.mxu0 %v4658_v44 }
 0xa0b   :  { %v4064_v33 = vadd.f32 %v4063_v15, %v10726_v12  ;;  %v4065_v35 = vpop.f32.mrb[87].mxu1  ;;  %4927 = vmatmul.mubr.bf16.vlgmr.msra.gmra.mrb[168].mxu0 %v4657_v27  ;;  %v4500_v52 = vmax.f32 %v4060_v61, 0.0 }
 0xa0c   :  { %v4066_v50 = vadd.f32 %v4065_v35, %v10730_v57  ;;  %v4501_v20 = vmax.f32 %v4062_v13, 0.0  ;;  %v12350_v13 = vld [vmem:[#allocation49_spill] sm:$0xff]  ;;  %v12351_v35 = vld [vmem:[#allocation52_spill] sm:$0xff] }
 0xa0d   :  { %v4502_v2 = vmax.f32 %v4064_v33, 0.0  ;;  %4328 = vmatmul.mubr.bf16.gmra.mrb[192].mxu1 %v12346_v4 }
 0xa0e   :  { %v4503_v18 = vmax.f32 %v4066_v50, 0.0  ;;  %4337 = vmatprep.mubr.bf16.mxu1 %v12347_v17 }
 0xa0f   :  { %v4659_v40 = vpack.c.bf16 %v4502_v2, %v4500_v52 }
 0xa10   :  { %v4660_v6 = vpack.c.bf16 %v4503_v18, %v4501_v20  ;;  %v4069_v38 = vpop.f32.mrb[88].mxu1 }
 0xa11   :  { %v4070_v22 = vadd.f32 %v4069_v38, %v10726_v12  ;;  %v4071_v58 = vpop.f32.mrb[89].mxu1 }
 0xa12   :  { %v4072_v0 = vadd.f32 %v4071_v58, %v10730_v57  ;;  %v4073_v56 = vpop.f32.mrb[90].mxu1  ;;  %4936 = vmatprep.mubr.bf16.mxu0 %v4660_v6 }
 0xa13   :  { %v4074_v11 = vadd.f32 %v4073_v56, %v10726_v12  ;;  %v4075_v55 = vpop.f32.mrb[91].mxu1  ;;  %4937 = vmatmul.mubr.bf16.gmra.mrb[172].mxu0 %v4659_v40  ;;  %v4504_v10 = vmax.f32 %v4070_v22, 0.0 }
 0xa14   :  { %v4076_v32 = vadd.f32 %v4075_v55, %v10730_v57  ;;  %v4505_v45 = vmax.f32 %v4072_v0, 0.0  ;;  %v12352_v0 = vld [vmem:[#allocation51_spill] sm:$0xff] }
 0xa15   :  { %v4506_v36 = vmax.f32 %v4074_v11, 0.0  ;;  %4338 = vmatmul.mubr.bf16.gmra.mrb[196].mxu1 %v12348_v25 }
 0xa16   :  { %v4507_v43 = vmax.f32 %v4076_v32, 0.0  ;;  %4347 = vmatprep.mubr.bf16.mxu1 %v12349_v34 }
 0xa17   :  { %v4661_v54 = vpack.c.bf16 %v4506_v36, %v4504_v10 }
 0xa18   :  { %v4662_v21 = vpack.c.bf16 %v4507_v43, %v4505_v45  ;;  %v4079_v31 = vpop.f32.mrb[92].mxu1 }
 0xa19   :  { %v4080_v19 = vadd.f32 %v4079_v31, %v10726_v12  ;;  %v4081_v28 = vpop.f32.mrb[93].mxu1 }
 0xa1a   :  { %v4082_v47 = vadd.f32 %v4081_v28, %v10730_v57  ;;  %v4083_v49 = vpop.f32.mrb[94].mxu1  ;;  %4946 = vmatprep.mubr.bf16.mxu0 %v4662_v21 }
 0xa1b   :  { %v4084_v27 = vadd.f32 %v4083_v49, %v10726_v12  ;;  %v4085_v44 = vpop.f32.mrb[95].mxu1  ;;  %4947 = vmatmul.mubr.bf16.gmra.mrb[176].mxu0 %v4661_v54  ;;  %v4508_v61 = vmax.f32 %v4080_v19, 0.0 }
 0xa1c   :  { %v4086_v46 = vadd.f32 %v4085_v44, %v10730_v57  ;;  %v4509_v15 = vmax.f32 %v4082_v47, 0.0 }
 0xa1d   :  { %v4510_v63 = vmax.f32 %v4084_v27, 0.0  ;;  %4348 = vmatmul.mubr.bf16.gmra.mrb[200].mxu1 %v12350_v13 }
 0xa1e   :  { %v4511_v33 = vmax.f32 %v4086_v46, 0.0  ;;  %4357 = vmatprep.mubr.bf16.mxu1 %v12351_v35 }
 0xa1f   :  { %v4663_v50 = vpack.c.bf16 %v4510_v63, %v4508_v61 }
 0xa20   :  { %v4664_v52 = vpack.c.bf16 %v4511_v33, %v4509_v15  ;;  %v4089_v2 = vpop.f32.mrb[96].mxu1 }
 0xa21   :  { %v4090_v4 = vadd.f32 %v4089_v2, %v10726_v12  ;;  %v4091_v20 = vpop.f32.mrb[97].mxu1 }
 0xa22   :  { %v4092_v18 = vadd.f32 %v4091_v20, %v10730_v57  ;;  %v4093_v17 = vpop.f32.mrb[98].mxu1  ;;  %4956 = vmatprep.mubr.bf16.mxu0 %v4664_v52 }
 0xa23   :  { %v4094_v40 = vadd.f32 %v4093_v17, %v10726_v12  ;;  %v4095_v6 = vpop.f32.mrb[99].mxu1  ;;  %4957 = vmatmul.mubr.bf16.gmra.mrb[180].mxu0 %v4663_v50  ;;  %v4512_v22 = vmax.f32 %v4090_v4, 0.0 }
 0xa24   :  { %v4096_v38 = vadd.f32 %v4095_v6, %v10730_v57  ;;  %v4513_v56 = vmax.f32 %v4092_v18, 0.0 }
 0xa25   :  { %v4514_v58 = vmax.f32 %v4094_v40, 0.0  ;;  %4358 = vmatmul.mubr.bf16.gmra.mrb[204].mxu1 %v12352_v0 }
 0xa26   :  { %v4515_v11 = vmax.f32 %v4096_v38, 0.0 }
 0xa27   :  { %v4665_v55 = vpack.c.bf16 %v4514_v58, %v4512_v22 }
 0xa28   :  { %v4666_v32 = vpack.c.bf16 %v4515_v11, %v4513_v56  ;;  %v4099_v10 = vpop.f32.mrb[100].mxu1 }
 0xa29   :  { %v4100_v36 = vadd.f32 %v4099_v10, %v10726_v12  ;;  %v4101_v25 = vpop.f32.mrb[101].mxu1 }
 0xa2a   :  { %v4102_v45 = vadd.f32 %v4101_v25, %v10730_v57  ;;  %v4103_v43 = vpop.f32.mrb[102].mxu1  ;;  %4966 = vmatprep.mubr.bf16.mxu0 %v4666_v32 }
 0xa2b   :  { %v4104_v34 = vadd.f32 %v4103_v43, %v10726_v12  ;;  %v4105_v54 = vpop.f32.mrb[103].mxu1  ;;  %4967 = vmatmul.mubr.bf16.gmra.mrb[184].mxu0 %v4665_v55  ;;  %v4516_v31 = vmax.f32 %v4100_v36, 0.0 }
 0xa2c   :  { %v4106_v21 = vadd.f32 %v4105_v54, %v10730_v57  ;;  %v4517_v28 = vmax.f32 %v4102_v45, 0.0 }
 0xa2d   :  { %v4518_v19 = vmax.f32 %v4104_v34, 0.0 }
 0xa2e   :  { %v4519_v47 = vmax.f32 %v4106_v21, 0.0 }
 0xa2f   :  { %v4667_v49 = vpack.c.bf16 %v4518_v19, %v4516_v31 }
 0xa30   :  { %v4668_v27 = vpack.c.bf16 %v4519_v47, %v4517_v28  ;;  %v4109_v44 = vpop.f32.mrb[104].mxu1 }
 0xa31   :  { %v4110_v46 = vadd.f32 %v4109_v44, %v10726_v12  ;;  %v4111_v61 = vpop.f32.mrb[105].mxu1 }
 0xa32   :  { %v4112_v63 = vadd.f32 %v4111_v61, %v10730_v57  ;;  %v4113_v13 = vpop.f32.mrb[106].mxu1  ;;  %4976 = vmatprep.mubr.bf16.mxu0 %v4668_v27 }
 0xa33   :  { %v4114_v15 = vadd.f32 %v4113_v13, %v10726_v12  ;;  %v4115_v33 = vpop.f32.mrb[107].mxu1  ;;  %4977 = vmatmul.mubr.bf16.gmra.mrb[188].mxu0 %v4667_v49  ;;  %v4520_v50 = vmax.f32 %v4110_v46, 0.0 }
 0xa34   :  { %v4116_v35 = vadd.f32 %v4115_v33, %v10730_v57  ;;  %v4521_v2 = vmax.f32 %v4112_v63, 0.0 }
 0xa35   :  { %v4522_v52 = vmax.f32 %v4114_v15, 0.0 }
 0xa36   :  { %v4523_v4 = vmax.f32 %v4116_v35, 0.0 }
 0xa37   :  { %v4669_v20 = vpack.c.bf16 %v4522_v52, %v4520_v50 }
 0xa38   :  { %v4670_v18 = vpack.c.bf16 %v4523_v4, %v4521_v2  ;;  %v4119_v17 = vpop.f32.mrb[108].mxu1 }
 0xa39   :  { %v4120_v40 = vadd.f32 %v4119_v17, %v10726_v12  ;;  %v4121_v6 = vpop.f32.mrb[109].mxu1 }
 0xa3a   :  { %v4122_v38 = vadd.f32 %v4121_v6, %v10730_v57  ;;  %v4123_v22 = vpop.f32.mrb[110].mxu1  ;;  %4986 = vmatprep.mubr.bf16.mxu0 %v4670_v18 }
 0xa3b   :  { %v4124_v58 = vadd.f32 %v4123_v22, %v10726_v12  ;;  %v4125_v0 = vpop.f32.mrb[111].mxu1  ;;  %4987 = vmatmul.mubr.bf16.gmra.mrb[192].mxu0 %v4669_v20  ;;  %v4524_v11 = vmax.f32 %v4120_v40, 0.0 }
 0xa3c   :  { %v4126_v56 = vadd.f32 %v4125_v0, %v10730_v57  ;;  %v4525_v32 = vmax.f32 %v4122_v38, 0.0 }
 0xa3d   :  { %v4526_v55 = vmax.f32 %v4124_v58, 0.0 }
 0xa3e   :  { %v4527_v10 = vmax.f32 %v4126_v56, 0.0 }
 0xa3f   :  { %v4671_v36 = vpack.c.bf16 %v4526_v55, %v4524_v11 }
 0xa40   :  { %v4672_v25 = vpack.c.bf16 %v4527_v10, %v4525_v32  ;;  %v4129_v45 = vpop.f32.mrb[112].mxu1 }
 0xa41   :  { %v4130_v43 = vadd.f32 %v4129_v45, %v10726_v12  ;;  %v4131_v34 = vpop.f32.mrb[113].mxu1 }
 0xa42   :  { %v4132_v54 = vadd.f32 %v4131_v34, %v10730_v57  ;;  %v4133_v21 = vpop.f32.mrb[114].mxu1  ;;  %4996 = vmatprep.mubr.bf16.mxu0 %v4672_v25 }
 0xa43   :  { %v4134_v31 = vadd.f32 %v4133_v21, %v10726_v12  ;;  %v4135_v19 = vpop.f32.mrb[115].mxu1  ;;  %4997 = vmatmul.mubr.bf16.gmra.mrb[196].mxu0 %v4671_v36  ;;  %v4528_v47 = vmax.f32 %v4130_v43, 0.0 }
 0xa44   :  { %v4136_v28 = vadd.f32 %v4135_v19, %v10730_v57  ;;  %v4529_v27 = vmax.f32 %v4132_v54, 0.0 }
 0xa45   :  { %v4530_v49 = vmax.f32 %v4134_v31, 0.0 }
 0xa46   :  { %v4531_v44 = vmax.f32 %v4136_v28, 0.0 }
 0xa47   :  { %v4673_v46 = vpack.c.bf16 %v4530_v49, %v4528_v47 }
 0xa48   :  { %v4674_v61 = vpack.c.bf16 %v4531_v44, %v4529_v27  ;;  %v4139_v63 = vpop.f32.mrb[116].mxu1 }
 0xa49   :  { %v4140_v13 = vadd.f32 %v4139_v63, %v10726_v12  ;;  %v4141_v15 = vpop.f32.mrb[117].mxu1 }
 0xa4a   :  { %v4142_v33 = vadd.f32 %v4141_v15, %v10730_v57  ;;  %v4143_v35 = vpop.f32.mrb[118].mxu1  ;;  %5006 = vmatprep.mubr.bf16.mxu0 %v4674_v61 }
 0xa4b   :  { %v4144_v50 = vadd.f32 %v4143_v35, %v10726_v12  ;;  %v4145_v52 = vpop.f32.mrb[119].mxu1  ;;  %5007 = vmatmul.mubr.bf16.gmra.mrb[200].mxu0 %v4673_v46  ;;  %v4532_v4 = vmax.f32 %v4140_v13, 0.0 }
 0xa4c   :  { %v4146_v2 = vadd.f32 %v4145_v52, %v10730_v57  ;;  %v4533_v18 = vmax.f32 %v4142_v33, 0.0 }
 0xa4d   :  { %v4534_v20 = vmax.f32 %v4144_v50, 0.0 }
 0xa4e   :  { %v4535_v17 = vmax.f32 %v4146_v2, 0.0 }
 0xa4f   :  { %v4675_v40 = vpack.c.bf16 %v4534_v20, %v4532_v4 }
 0xa50   :  { %v4676_v6 = vpack.c.bf16 %v4535_v17, %v4533_v18  ;;  %v4149_v38 = vpop.f32.mrb[120].mxu1 }
 0xa51   :  { %v4150_v22 = vadd.f32 %v4149_v38, %v10726_v12  ;;  %v4151_v58 = vpop.f32.mrb[121].mxu1 }
 0xa52   :  { %v4152_v0 = vadd.f32 %v4151_v58, %v10730_v57  ;;  %v4153_v56 = vpop.f32.mrb[122].mxu1  ;;  %5016 = vmatprep.mubr.bf16.mxu0 %v4676_v6 }
 0xa53   :  { %v4154_v11 = vadd.f32 %v4153_v56, %v10726_v12  ;;  %v4155_v55 = vpop.f32.mrb[123].mxu1  ;;  %5017 = vmatmul.mubr.bf16.gmra.mrb[204].mxu0 %v4675_v40  ;;  %v4536_v10 = vmax.f32 %v4150_v22, 0.0 }
 0xa54   :  { %v4156_v32 = vadd.f32 %v4155_v55, %v10730_v57  ;;  %v4537_v25 = vmax.f32 %v4152_v0, 0.0 }
 0xa55   :  { %v4538_v36 = vmax.f32 %v4154_v11, 0.0 }
 0xa56   :  { %v4539_v45 = vmax.f32 %v4156_v32, 0.0 }
 0xa57   :  { %v4677_v43 = vpack.c.bf16 %v4538_v36, %v4536_v10 }
 0xa58   :  { %v4678_v34 = vpack.c.bf16 %v4539_v45, %v4537_v25  ;;  %v4159_v54 = vpop.f32.mrb[124].mxu1 }
 0xa59   :  { %v4160_v21 = vadd.f32 %v4159_v54, %v10726_v12  ;;  %v4161_v31 = vpop.f32.mrb[125].mxu1 }
 0xa5a   :  { %v4162_v19 = vadd.f32 %v4161_v31, %v10730_v57  ;;  %v4163_v28 = vpop.f32.mrb[126].mxu1  ;;  %5026 = vmatprep.mubr.bf16.mxu0 %v4678_v34 }
 0xa5b   :  { %v4164_v47 = vadd.f32 %v4163_v28, %v10726_v12  ;;  %v4165_v49 = vpop.f32.mrb[127].mxu1  ;;  %5027 = vmatmul.mubr.bf16.gmra.mrb[208].mxu0 %v4677_v43  ;;  %v4540_v44 = vmax.f32 %v4160_v21, 0.0 }
 0xa5c   :  { %v4166_v27 = vadd.f32 %v4165_v49, %v10730_v57  ;;  %v4541_v61 = vmax.f32 %v4162_v19, 0.0 }
 0xa5d   :  { %v4542_v46 = vmax.f32 %v4164_v47, 0.0 }
 0xa5e   :  { %v4543_v63 = vmax.f32 %v4166_v27, 0.0 }
 0xa5f   :  { %v4679_v13 = vpack.c.bf16 %v4542_v46, %v4540_v44 }
 0xa60   :  { %v4680_v15 = vpack.c.bf16 %v4543_v63, %v4541_v61  ;;  %v4169_v33 = vpop.f32.mrb[128].mxu1 }
 0xa61   :  { %v4170_v35 = vadd.f32 %v4169_v33, %v10726_v12  ;;  %v4171_v50 = vpop.f32.mrb[129].mxu1 }
 0xa62   :  { %v4172_v52 = vadd.f32 %v4171_v50, %v10730_v57  ;;  %v4173_v2 = vpop.f32.mrb[130].mxu1  ;;  %5036 = vmatprep.mubr.bf16.mxu0 %v4680_v15 }
 0xa63   :  { %v4174_v4 = vadd.f32 %v4173_v2, %v10726_v12  ;;  %v4175_v20 = vpop.f32.mrb[131].mxu1  ;;  %5037 = vmatmul.mubr.bf16.gmra.mrb[212].mxu0 %v4679_v13  ;;  %v4544_v17 = vmax.f32 %v4170_v35, 0.0 }
 0xa64   :  { %v4176_v18 = vadd.f32 %v4175_v20, %v10730_v57  ;;  %v4545_v6 = vmax.f32 %v4172_v52, 0.0 }
 0xa65   :  { %v4546_v40 = vmax.f32 %v4174_v4, 0.0 }
 0xa66   :  { %v4547_v38 = vmax.f32 %v4176_v18, 0.0 }
 0xa67   :  { %v4681_v22 = vpack.c.bf16 %v4546_v40, %v4544_v17 }
 0xa68   :  { %v4682_v58 = vpack.c.bf16 %v4547_v38, %v4545_v6  ;;  %v4179_v0 = vpop.f32.mrb[132].mxu1 }
 0xa69   :  { %v4180_v56 = vadd.f32 %v4179_v0, %v10726_v12  ;;  %v4181_v11 = vpop.f32.mrb[133].mxu1 }
 0xa6a   :  { %v4182_v55 = vadd.f32 %v4181_v11, %v10730_v57  ;;  %v4183_v32 = vpop.f32.mrb[134].mxu1  ;;  %5046 = vmatprep.mubr.bf16.mxu0 %v4682_v58 }
 0xa6b   :  { %v4184_v10 = vadd.f32 %v4183_v32, %v10726_v12  ;;  %v4185_v36 = vpop.f32.mrb[135].mxu1  ;;  %5047 = vmatmul.mubr.bf16.gmra.mrb[216].mxu0 %v4681_v22  ;;  %v4548_v45 = vmax.f32 %v4180_v56, 0.0 }
 0xa6c   :  { %v4186_v25 = vadd.f32 %v4185_v36, %v10730_v57  ;;  %v4549_v34 = vmax.f32 %v4182_v55, 0.0 }
 0xa6d   :  { %v4550_v43 = vmax.f32 %v4184_v10, 0.0 }
 0xa6e   :  { %v4551_v54 = vmax.f32 %v4186_v25, 0.0 }
 0xa6f   :  { %v4683_v21 = vpack.c.bf16 %v4550_v43, %v4548_v45 }
 0xa70   :  { %v4684_v31 = vpack.c.bf16 %v4551_v54, %v4549_v34  ;;  %v4189_v19 = vpop.f32.mrb[136].mxu1 }
 0xa71   :  { %v4190_v28 = vadd.f32 %v4189_v19, %v10726_v12  ;;  %v4191_v47 = vpop.f32.mrb[137].mxu1 }
 0xa72   :  { %v4192_v49 = vadd.f32 %v4191_v47, %v10730_v57  ;;  %v4193_v27 = vpop.f32.mrb[138].mxu1  ;;  %5056 = vmatprep.mubr.bf16.mxu0 %v4684_v31 }
 0xa73   :  { %v4194_v44 = vadd.f32 %v4193_v27, %v10726_v12  ;;  %v4195_v46 = vpop.f32.mrb[139].mxu1  ;;  %5057 = vmatmul.mubr.bf16.gmra.mrb[220].mxu0 %v4683_v21  ;;  %v4552_v63 = vmax.f32 %v4190_v28, 0.0 }
 0xa74   :  { %v4196_v61 = vadd.f32 %v4195_v46, %v10730_v57  ;;  %v4553_v15 = vmax.f32 %v4192_v49, 0.0 }
 0xa75   :  { %v4554_v13 = vmax.f32 %v4194_v44, 0.0 }
 0xa76   :  { %v4555_v33 = vmax.f32 %v4196_v61, 0.0 }
 0xa77   :  { %v4685_v35 = vpack.c.bf16 %v4554_v13, %v4552_v63 }
 0xa78   :  { %v4686_v50 = vpack.c.bf16 %v4555_v33, %v4553_v15  ;;  %v4199_v52 = vpop.f32.mrb[140].mxu1 }
 0xa79   :  { %v4200_v2 = vadd.f32 %v4199_v52, %v10726_v12  ;;  %v4201_v4 = vpop.f32.mrb[141].mxu1 }
 0xa7a   :  { %v4202_v20 = vadd.f32 %v4201_v4, %v10730_v57  ;;  %v4203_v18 = vpop.f32.mrb[142].mxu1  ;;  %5066 = vmatprep.mubr.bf16.mxu0 %v4686_v50 }
 0xa7b   :  { %v4204_v17 = vadd.f32 %v4203_v18, %v10726_v12  ;;  %v4205_v40 = vpop.f32.mrb[143].mxu1  ;;  %5067 = vmatmul.mubr.bf16.gmra.mrb[224].mxu0 %v4685_v35  ;;  %v4556_v38 = vmax.f32 %v4200_v2, 0.0 }
 0xa7c   :  { %v4206_v6 = vadd.f32 %v4205_v40, %v10730_v57  ;;  %v4557_v58 = vmax.f32 %v4202_v20, 0.0 }
 0xa7d   :  { %v4558_v22 = vmax.f32 %v4204_v17, 0.0 }
 0xa7e   :  { %v4559_v0 = vmax.f32 %v4206_v6, 0.0 }
 0xa7f   :  { %v4687_v56 = vpack.c.bf16 %v4558_v22, %v4556_v38 }
 0xa80   :  { %v4688_v11 = vpack.c.bf16 %v4559_v0, %v4557_v58  ;;  %v4209_v55 = vpop.f32.mrb[144].mxu1 }
 0xa81   :  { %v4210_v32 = vadd.f32 %v4209_v55, %v10726_v12  ;;  %v4211_v10 = vpop.f32.mrb[145].mxu1 }
 0xa82   :  { %v4212_v36 = vadd.f32 %v4211_v10, %v10730_v57  ;;  %v4213_v25 = vpop.f32.mrb[146].mxu1  ;;  %5076 = vmatprep.mubr.bf16.mxu0 %v4688_v11 }
 0xa83   :  { %v4214_v45 = vadd.f32 %v4213_v25, %v10726_v12  ;;  %v4215_v43 = vpop.f32.mrb[147].mxu1  ;;  %5077 = vmatmul.mubr.bf16.gmra.mrb[228].mxu0 %v4687_v56  ;;  %v4560_v54 = vmax.f32 %v4210_v32, 0.0 }
 0xa84   :  { %v4216_v34 = vadd.f32 %v4215_v43, %v10730_v57  ;;  %v4561_v31 = vmax.f32 %v4212_v36, 0.0 }
 0xa85   :  { %v4562_v21 = vmax.f32 %v4214_v45, 0.0 }
 0xa86   :  { %v4563_v19 = vmax.f32 %v4216_v34, 0.0 }
 0xa87   :  { %v4689_v28 = vpack.c.bf16 %v4562_v21, %v4560_v54 }
 0xa88   :  { %v4690_v47 = vpack.c.bf16 %v4563_v19, %v4561_v31  ;;  %v4219_v49 = vpop.f32.mrb[148].mxu1 }
 0xa89   :  { %v4220_v27 = vadd.f32 %v4219_v49, %v10726_v12  ;;  %v4221_v44 = vpop.f32.mrb[149].mxu1 }
 0xa8a   :  { %v4222_v46 = vadd.f32 %v4221_v44, %v10730_v57  ;;  %v4223_v61 = vpop.f32.mrb[150].mxu1  ;;  %5086 = vmatprep.mubr.bf16.mxu0 %v4690_v47 }
 0xa8b   :  { %v4224_v63 = vadd.f32 %v4223_v61, %v10726_v12  ;;  %v4225_v13 = vpop.f32.mrb[151].mxu1  ;;  %5087 = vmatmul.mubr.bf16.gmra.mrb[232].mxu0 %v4689_v28  ;;  %v4564_v33 = vmax.f32 %v4220_v27, 0.0 }
 0xa8c   :  { %v4226_v15 = vadd.f32 %v4225_v13, %v10730_v57  ;;  %v4565_v50 = vmax.f32 %v4222_v46, 0.0 }
 0xa8d   :  { %v4566_v35 = vmax.f32 %v4224_v63, 0.0 }
 0xa8e   :  { %v4567_v52 = vmax.f32 %v4226_v15, 0.0 }
 0xa8f   :  { %v4691_v2 = vpack.c.bf16 %v4566_v35, %v4564_v33 }
 0xa90   :  { %v4692_v4 = vpack.c.bf16 %v4567_v52, %v4565_v50  ;;  %v4229_v20 = vpop.f32.mrb[152].mxu1 }
 0xa91   :  { %v4230_v18 = vadd.f32 %v4229_v20, %v10726_v12  ;;  %v4231_v17 = vpop.f32.mrb[153].mxu1 }
 0xa92   :  { %v4232_v40 = vadd.f32 %v4231_v17, %v10730_v57  ;;  %v4233_v6 = vpop.f32.mrb[154].mxu1  ;;  %5096 = vmatprep.mubr.bf16.mxu0 %v4692_v4 }
 0xa93   :  { %v4234_v38 = vadd.f32 %v4233_v6, %v10726_v12  ;;  %v4235_v22 = vpop.f32.mrb[155].mxu1  ;;  %5097 = vmatmul.mubr.bf16.gmra.mrb[236].mxu0 %v4691_v2  ;;  %v4568_v0 = vmax.f32 %v4230_v18, 0.0 }
 0xa94   :  { %v4236_v58 = vadd.f32 %v4235_v22, %v10730_v57  ;;  %v4569_v11 = vmax.f32 %v4232_v40, 0.0 }
 0xa95   :  { %v4570_v56 = vmax.f32 %v4234_v38, 0.0 }
 0xa96   :  { %v4571_v55 = vmax.f32 %v4236_v58, 0.0 }
 0xa97   :  { %v4693_v32 = vpack.c.bf16 %v4570_v56, %v4568_v0 }
 0xa98   :  { %v4694_v10 = vpack.c.bf16 %v4571_v55, %v4569_v11  ;;  %v4239_v36 = vpop.f32.mrb[156].mxu1 }
 0xa99   :  { %v4240_v25 = vadd.f32 %v4239_v36, %v10726_v12  ;;  %v4241_v45 = vpop.f32.mrb[157].mxu1 }
 0xa9a   :  { %v4242_v43 = vadd.f32 %v4241_v45, %v10730_v57  ;;  %v4243_v34 = vpop.f32.mrb[158].mxu1  ;;  %5106 = vmatprep.mubr.bf16.mxu0 %v4694_v10 }
 0xa9b   :  { %v4244_v54 = vadd.f32 %v4243_v34, %v10726_v12  ;;  %v4245_v21 = vpop.f32.mrb[159].mxu1  ;;  %5107 = vmatmul.mubr.bf16.gmra.mrb[240].mxu0 %v4693_v32  ;;  %v4572_v19 = vmax.f32 %v4240_v25, 0.0 }
 0xa9c   :  { %v4246_v31 = vadd.f32 %v4245_v21, %v10730_v57  ;;  %v4573_v47 = vmax.f32 %v4242_v43, 0.0 }
 0xa9d   :  { %v4574_v28 = vmax.f32 %v4244_v54, 0.0 }
 0xa9e   :  { %v4575_v49 = vmax.f32 %v4246_v31, 0.0 }
 0xa9f   :  { %v4695_v27 = vpack.c.bf16 %v4574_v28, %v4572_v19 }
 0xaa0   :  { %v4696_v44 = vpack.c.bf16 %v4575_v49, %v4573_v47  ;;  %v4249_v46 = vpop.f32.mrb[160].mxu1 }
 0xaa1   :  { %v4250_v61 = vadd.f32 %v4249_v46, %v10726_v12  ;;  %v4251_v63 = vpop.f32.mrb[161].mxu1 }
 0xaa2   :  { %v4252_v13 = vadd.f32 %v4251_v63, %v10730_v57  ;;  %v4253_v15 = vpop.f32.mrb[162].mxu1  ;;  %5116 = vmatprep.mubr.bf16.mxu0 %v4696_v44 }
 0xaa3   :  { %v4254_v33 = vadd.f32 %v4253_v15, %v10726_v12  ;;  %v4255_v35 = vpop.f32.mrb[163].mxu1  ;;  %5117 = vmatmul.mubr.bf16.gmra.mrb[244].mxu0 %v4695_v27  ;;  %v4576_v52 = vmax.f32 %v4250_v61, 0.0 }
 0xaa4   :  { %v4256_v50 = vadd.f32 %v4255_v35, %v10730_v57  ;;  %v4577_v4 = vmax.f32 %v4252_v13, 0.0 }
 0xaa5   :  { %v4578_v2 = vmax.f32 %v4254_v33, 0.0 }
 0xaa6   :  { %v4579_v20 = vmax.f32 %v4256_v50, 0.0 }
 0xaa7   :  { %v4697_v18 = vpack.c.bf16 %v4578_v2, %v4576_v52 }
 0xaa8   :  { %v4698_v17 = vpack.c.bf16 %v4579_v20, %v4577_v4  ;;  %v4259_v40 = vpop.f32.mrb[164].mxu1 }
 0xaa9   :  { %v4260_v6 = vadd.f32 %v4259_v40, %v10726_v12  ;;  %v4261_v38 = vpop.f32.mrb[165].mxu1 }
 0xaaa   :  { %v4262_v22 = vadd.f32 %v4261_v38, %v10730_v57  ;;  %v4263_v58 = vpop.f32.mrb[166].mxu1  ;;  %5126 = vmatprep.mubr.bf16.mxu0 %v4698_v17 }
 0xaab   :  { %v4264_v0 = vadd.f32 %v4263_v58, %v10726_v12  ;;  %v4265_v56 = vpop.f32.mrb[167].mxu1  ;;  %5127 = vmatmul.mubr.bf16.gmra.mrb[248].mxu0 %v4697_v18  ;;  %v4580_v55 = vmax.f32 %v4260_v6, 0.0 }
 0xaac   :  { %v4266_v11 = vadd.f32 %v4265_v56, %v10730_v57  ;;  %v4581_v10 = vmax.f32 %v4262_v22, 0.0 }
 0xaad   :  { %v4582_v32 = vmax.f32 %v4264_v0, 0.0 }
 0xaae   :  { %v4583_v36 = vmax.f32 %v4266_v11, 0.0 }
 0xaaf   :  { %v4699_v25 = vpack.c.bf16 %v4582_v32, %v4580_v55 }
 0xab0   :  { %v4700_v45 = vpack.c.bf16 %v4583_v36, %v4581_v10  ;;  %v4269_v43 = vpop.f32.mrb[168].mxu1 }
 0xab1   :  { %v4270_v34 = vadd.f32 %v4269_v43, %v10726_v12  ;;  %v4271_v54 = vpop.f32.mrb[169].mxu1 }
 0xab2   :  { %v4272_v21 = vadd.f32 %v4271_v54, %v10730_v57  ;;  %v4273_v31 = vpop.f32.mrb[170].mxu1  ;;  %5136 = vmatprep.mubr.bf16.mxu0 %v4700_v45 }
 0xab3   :  { %v4274_v19 = vadd.f32 %v4273_v31, %v10726_v12  ;;  %v4275_v28 = vpop.f32.mrb[171].mxu1  ;;  %5137 = vmatmul.mubr.bf16.gmra.mrb[252].mxu0 %v4699_v25  ;;  %v4584_v49 = vmax.f32 %v4270_v34, 0.0 }
 0xab4   :  { %v4276_v47 = vadd.f32 %v4275_v28, %v10730_v57  ;;  %v4585_v44 = vmax.f32 %v4272_v21, 0.0 }
 0xab5   :  { %v4586_v27 = vmax.f32 %v4274_v19, 0.0 }
 0xab6   :  { %v4587_v46 = vmax.f32 %v4276_v47, 0.0 }
 0xab7   :  { %v4701_v61 = vpack.c.bf16 %v4586_v27, %v4584_v49 }
 0xab8   :  { %v4702_v63 = vpack.c.bf16 %v4587_v46, %v4585_v44  ;;  %v4279_v13 = vpop.f32.mrb[172].mxu1 }
 0xab9   :  { %v4280_v15 = vadd.f32 %v4279_v13, %v10726_v12  ;;  %v4281_v33 = vpop.f32.mrb[173].mxu1 }
 0xaba   :  { %v4282_v35 = vadd.f32 %v4281_v33, %v10730_v57  ;;  %v4283_v50 = vpop.f32.mrb[174].mxu1  ;;  %5146 = vmatprep.mubr.bf16.mxu0 %v4702_v63 }
 0xabb   :  { %v4284_v52 = vadd.f32 %v4283_v50, %v10726_v12  ;;  %v4285_v2 = vpop.f32.mrb[175].mxu1  ;;  %5147 = vmatmul.mubr.bf16.gmra.mrb[0].mxu0 %v4701_v61  ;;  %v4588_v20 = vmax.f32 %v4280_v15, 0.0 }
 0xabc   :  { %v4286_v4 = vadd.f32 %v4285_v2, %v10730_v57  ;;  %v4589_v17 = vmax.f32 %v4282_v35, 0.0 }
 0xabd   :  { %v4590_v18 = vmax.f32 %v4284_v52, 0.0 }
 0xabe   :  { %v4591_v40 = vmax.f32 %v4286_v4, 0.0 }
 0xabf   :  { %v4703_v6 = vpack.c.bf16 %v4590_v18, %v4588_v20 }
 0xac0   :  { %v4704_v38 = vpack.c.bf16 %v4591_v40, %v4589_v17  ;;  %v4289_v22 = vpop.f32.mrb[176].mxu1  ;;  %v9510_v40 = vld [vmem:[%s12166_s1 + $0x4] ss:$16 sps:$4 sm:$0xff]  }
 0xac1   :  { %v4290_v58 = vadd.f32 %v4289_v22, %v10726_v12  ;;  %v4291_v0 = vpop.f32.mrb[177].mxu1 }
 0xac2   :  { %v4292_v56 = vadd.f32 %v4291_v0, %v10730_v57  ;;  %v4293_v11 = vpop.f32.mrb[178].mxu1  ;;  %5156 = vmatprep.mubr.bf16.mxu0 %v4704_v38 }
 0xac3   :  { %v4294_v55 = vadd.f32 %v4293_v11, %v10726_v12  ;;  %v4295_v32 = vpop.f32.mrb[179].mxu1  ;;  %5157 = vmatmul.mubr.bf16.gmra.mrb[4].mxu0 %v4703_v6  ;;  %v4592_v36 = vmax.f32 %v4290_v58, 0.0 }
 0xac4   :  { %v4296_v10 = vadd.f32 %v4295_v32, %v10730_v57  ;;  %v4593_v45 = vmax.f32 %v4292_v56, 0.0 }
 0xac5   :  { %v4594_v25 = vmax.f32 %v4294_v55, 0.0  ;;  %v4722_v55 = vld [vmem:[#allocation4 + $0xc] sm:$0x3] }
 0xac6   :  { %v4595_v43 = vmax.f32 %v4296_v10, 0.0 }
 0xac7   :  { %v4705_v34 = vpack.c.bf16 %v4594_v25, %v4592_v36 }
 0xac8   :  { %v4706_v54 = vpack.c.bf16 %v4595_v43, %v4593_v45  ;;  %v4299_v21 = vpop.f32.mrb[180].mxu1 }
 0xac9   :  { %v4300_v31 = vadd.f32 %v4299_v21, %v10726_v12  ;;  %v4301_v19 = vpop.f32.mrb[181].mxu1  ;;  %v10860_v21 = vrot.slane %v4722_v55, %v9837_v26 }
 0xaca   :  { %v4302_v28 = vadd.f32 %v4301_v19, %v10730_v57  ;;  %v4303_v47 = vpop.f32.mrb[182].mxu1  ;;  %5166 = vmatprep.mubr.bf16.mxu0 %v4706_v54 }
 0xacb   :  { %v4304_v49 = vadd.f32 %v4303_v47, %v10726_v12  ;;  %v4305_v27 = vpop.f32.mrb[183].mxu1  ;;  %5167 = vmatmul.mubr.bf16.gmra.mrb[8].mxu0 %v4705_v34  ;;  %v4596_v46 = vmax.f32 %v4300_v31, 0.0  ;;  %v10856_v34 = vrot.slane %v4722_v55, %v9835_v24 }
 0xacc   :  { %v4306_v44 = vadd.f32 %v4305_v27, %v10730_v57  ;;  %v4597_v63 = vmax.f32 %v4302_v28, 0.0 }
 0xacd   :  { %v4598_v61 = vmax.f32 %v4304_v49, 0.0 }
 0xace   :  { %v4599_v13 = vmax.f32 %v4306_v44, 0.0 }
 0xacf   :  { %v4707_v15 = vpack.c.bf16 %v4598_v61, %v4596_v46 }
 0xad0   :  { %v4708_v33 = vpack.c.bf16 %v4599_v13, %v4597_v63  ;;  %v4309_v35 = vpop.f32.mrb[184].mxu1 }
 0xad1   :  { %v4310_v50 = vadd.f32 %v4309_v35, %v10726_v12  ;;  %v4311_v52 = vpop.f32.mrb[185].mxu1 }
 0xad2   :  { %v4312_v2 = vadd.f32 %v4311_v52, %v10730_v57  ;;  %v4313_v4 = vpop.f32.mrb[186].mxu1  ;;  %5176 = vmatprep.mubr.bf16.mxu0 %v4708_v33 }
 0xad3   :  { %v4314_v20 = vadd.f32 %v4313_v4, %v10726_v12  ;;  %v4315_v18 = vpop.f32.mrb[187].mxu1  ;;  %5177 = vmatmul.mubr.bf16.gmra.mrb[12].mxu0 %v4707_v15  ;;  %v4600_v6 = vmax.f32 %v4310_v50, 0.0 }
 0xad4   :  { %v4316_v17 = vadd.f32 %v4315_v18, %v10730_v57  ;;  %5471 = vmatprep.mubr.bf16.mxu0 %v9510_v40  ;;  %v4601_v22 = vmax.f32 %v4312_v2, 0.0 }
 0xad5   :  { %v4602_v38 = vmax.f32 %v4314_v20, 0.0 }
 0xad6   :  { %v4603_v58 = vmax.f32 %v4316_v17, 0.0 }
 0xad7   :  { %v4709_v0 = vpack.c.bf16 %v4602_v38, %v4600_v6 }
 0xad8   :  { %v4710_v56 = vpack.c.bf16 %v4603_v58, %v4601_v22  ;;  %v4319_v11 = vpop.f32.mrb[188].mxu1 }
 0xad9   :  { %v4320_v32 = vadd.f32 %v4319_v11, %v10726_v12  ;;  %v4321_v10 = vpop.f32.mrb[189].mxu1 }
 0xada   :  { %v4322_v36 = vadd.f32 %v4321_v10, %v10730_v57  ;;  %v4323_v25 = vpop.f32.mrb[190].mxu1  ;;  %5186 = vmatprep.mubr.bf16.mxu1 %v4710_v56 }
 0xadb   :  { %v4324_v45 = vadd.f32 %v4323_v25, %v10726_v12  ;;  %v4325_v43 = vpop.f32.mrb[191].mxu1  ;;  %5187 = vmatmul.mubr.bf16.vlgmr.msra.gmra.mrb[208].mxu1 %v4709_v0  ;;  %v4604_v31 = vmax.f32 %v4320_v32, 0.0 }
 0xadc   :  { %v4326_v54 = vadd.f32 %v4325_v43, %v10730_v57  ;;  %v4605_v28 = vmax.f32 %v4322_v36, 0.0 }
 0xadd   :  { %v4606_v19 = vmax.f32 %v4324_v45, 0.0 }
 0xade   :  { %v4607_v47 = vmax.f32 %v4326_v54, 0.0  ;;  %v4928_v49 = vpop.f32.mrb[168].mxu0 }
 0xadf   :  { %v4711_v27 = vpack.c.bf16 %v4606_v19, %v4604_v31  ;;  %v4929_v44 = vadd.f32 %v4928_v49, %v10856_v34  ;;  %v4930_v46 = vpop.f32.mrb[169].mxu0 }
 0xae0   :  { %v4712_v61 = vpack.c.bf16 %v4607_v47, %v4605_v28  ;;  %v4931_v63 = vadd.f32 %v4930_v46, %v10860_v21  ;;  %v4329_v13 = vpop.f32.mrb[192].mxu1  ;;  %v4932_v15 = vpop.f32.mrb[170].mxu0 }
 0xae1   :  { %v4330_v33 = vadd.f32 %v4329_v13, %v10726_v12  ;;  %v4933_v35 = vadd.f32 %v4932_v15, %v10856_v34  ;;  %v4331_v50 = vpop.f32.mrb[193].mxu1  ;;  %v4934_v52 = vpop.f32.mrb[171].mxu0  ;;  %v5247_v18 = vmax.f32 %v4929_v44, 0.0 }
 0xae2   :  { %v4332_v2 = vadd.f32 %v4331_v50, %v10730_v57  ;;  %v4935_v4 = vadd.f32 %v4934_v52, %v10860_v21  ;;  %v4333_v20 = vpop.f32.mrb[194].mxu1  ;;  %5196 = vmatprep.mubr.bf16.mxu1 %v4712_v61  ;;  %v5248_v38 = vmax.f32 %v4931_v63, 0.0 }
 0xae3   :  { %v5249_v17 = vmax.f32 %v4933_v35, 0.0  ;;  %v4334_v40 = vadd.f32 %v4333_v20, %v10726_v12  ;;  %v4335_v6 = vpop.f32.mrb[195].mxu1  ;;  %5197 = vmatmul.mubr.bf16.gmra.mrb[212].mxu1 %v4711_v27  ;;  %v4608_v0 = vmax.f32 %v4330_v33, 0.0 }
 0xae4   :  { %v5250_v22 = vmax.f32 %v4935_v4, 0.0  ;;  %v4336_v58 = vadd.f32 %v4335_v6, %v10730_v57  ;;  %v4609_v55 = vmax.f32 %v4332_v2, 0.0 }
 0xae5   :  { %v10870_v56 = vpack.c.bf16 %v5249_v17, %v5247_v18  ;;  %v4610_v11 = vmax.f32 %v4334_v40, 0.0 }
 0xae6   :  { %v4611_v32 = vmax.f32 %v4336_v58, 0.0  ;;  %v4938_v10 = vpop.f32.mrb[172].mxu0  ;;  %v10872_v36 = vpack.c.bf16 %v5250_v22, %v5248_v38 }
 0xae7   :  { %v4713_v25 = vpack.c.bf16 %v4610_v11, %v4608_v0  ;;  %v4939_v45 = vadd.f32 %v4938_v10, %v10856_v34  ;;  %v4940_v43 = vpop.f32.mrb[173].mxu0 }
 0xae8   :  { %v4714_v54 = vpack.c.bf16 %v4611_v32, %v4609_v55  ;;  %v4941_v31 = vadd.f32 %v4940_v43, %v10860_v21  ;;  %v4339_v19 = vpop.f32.mrb[196].mxu1  ;;  %v4942_v28 = vpop.f32.mrb[174].mxu0  ;;  %5439 = vmatprep.subr.bf16.mxu0 %v10872_v36 }
 0xae9   :  { %v4340_v47 = vadd.f32 %v4339_v19, %v10726_v12  ;;  %v4943_v49 = vadd.f32 %v4942_v28, %v10856_v34  ;;  %v4341_v27 = vpop.f32.mrb[197].mxu1  ;;  %v4944_v44 = vpop.f32.mrb[175].mxu0  ;;  %5440 = vmatpush1.bf16.msra.mxu0 %v10870_v56  ;;  %v5251_v13 = vmax.f32 %v4939_v45, 0.0 }
 0xaea   :  { %v4342_v46 = vadd.f32 %v4341_v27, %v10730_v57  ;;  %v4945_v61 = vadd.f32 %v4944_v44, %v10860_v21  ;;  %v4343_v63 = vpop.f32.mrb[198].mxu1  ;;  %5206 = vmatprep.mubr.bf16.mxu1 %v4714_v54  ;;  %v5252_v50 = vmax.f32 %v4941_v31, 0.0 }
 0xaeb   :  { %v5253_v15 = vmax.f32 %v4943_v49, 0.0  ;;  %v4344_v33 = vadd.f32 %v4343_v63, %v10726_v12  ;;  %v4345_v35 = vpop.f32.mrb[199].mxu1  ;;  %5207 = vmatmul.mubr.bf16.gmra.mrb[216].mxu1 %v4713_v25  ;;  %v4612_v4 = vmax.f32 %v4340_v47, 0.0 }
 0xaec   :  { %v5254_v52 = vmax.f32 %v4945_v61, 0.0  ;;  %v4346_v2 = vadd.f32 %v4345_v35, %v10730_v57  ;;  %v4613_v17 = vmax.f32 %v4342_v46, 0.0 }
 0xaed   :  { %v10884_v20 = vpack.c.bf16 %v5253_v15, %v5251_v13  ;;  %v4614_v18 = vmax.f32 %v4344_v33, 0.0 }
 0xaee   :  { %v4615_v40 = vmax.f32 %v4346_v2, 0.0  ;;  %v4948_v6 = vpop.f32.mrb[176].mxu0  ;;  %v10886_v38 = vpack.c.bf16 %v5254_v52, %v5252_v50 }
 0xaef   :  { %v4715_v22 = vpack.c.bf16 %v4614_v18, %v4612_v4  ;;  %v4949_v58 = vadd.f32 %v4948_v6, %v10856_v34  ;;  %v4950_v0 = vpop.f32.mrb[177].mxu0 }
 0xaf0   :  { %v4716_v11 = vpack.c.bf16 %v4615_v40, %v4613_v17  ;;  %v4951_v55 = vadd.f32 %v4950_v0, %v10860_v21  ;;  %v4349_v32 = vpop.f32.mrb[200].mxu1  ;;  %v4952_v10 = vpop.f32.mrb[178].mxu0  ;;  %5441 = vmatprep.subr.bf16.mxu0 %v10886_v38 }
 0xaf1   :  { %v4350_v25 = vadd.f32 %v4349_v32, %v10726_v12  ;;  %v4953_v45 = vadd.f32 %v4952_v10, %v10856_v34  ;;  %v4351_v43 = vpop.f32.mrb[201].mxu1  ;;  %v4954_v54 = vpop.f32.mrb[179].mxu0  ;;  %5442 = vmatpush1.bf16.msra.mxu0 %v10884_v20  ;;  %v5255_v47 = vmax.f32 %v4949_v58, 0.0 }
 0xaf2   :  { %v4352_v31 = vadd.f32 %v4351_v43, %v10730_v57  ;;  %v4955_v19 = vadd.f32 %v4954_v54, %v10860_v21  ;;  %v4353_v28 = vpop.f32.mrb[202].mxu1  ;;  %5216 = vmatprep.mubr.bf16.mxu1 %v4716_v11  ;;  %v5256_v46 = vmax.f32 %v4951_v55, 0.0 }
 0xaf3   :  { %v5257_v49 = vmax.f32 %v4953_v45, 0.0  ;;  %v4354_v27 = vadd.f32 %v4353_v28, %v10726_v12  ;;  %v4355_v44 = vpop.f32.mrb[203].mxu1  ;;  %5217 = vmatmul.mubr.bf16.gmra.mrb[220].mxu1 %v4715_v22  ;;  %v4616_v13 = vmax.f32 %v4350_v25, 0.0 }
 0xaf4   :  { %v5258_v61 = vmax.f32 %v4955_v19, 0.0  ;;  %v4356_v63 = vadd.f32 %v4355_v44, %v10730_v57  ;;  %v4617_v35 = vmax.f32 %v4352_v31, 0.0 }
 0xaf5   :  { %v10898_v15 = vpack.c.bf16 %v5257_v49, %v5255_v47  ;;  %v4618_v33 = vmax.f32 %v4354_v27, 0.0 }
 0xaf6   :  { %v10900_v50 = vpack.c.bf16 %v5258_v61, %v5256_v46  ;;  %v4619_v52 = vmax.f32 %v4356_v63, 0.0  ;;  %v4958_v2 = vpop.f32.mrb[180].mxu0 }
 0xaf7   :  { %v4717_v4 = vpack.c.bf16 %v4618_v33, %v4616_v13  ;;  %v4959_v18 = vadd.f32 %v4958_v2, %v10856_v34  ;;  %v4960_v17 = vpop.f32.mrb[181].mxu0 }
 0xaf8   :  { %v4718_v40 = vpack.c.bf16 %v4619_v52, %v4617_v35  ;;  %v4961_v6 = vadd.f32 %v4960_v17, %v10860_v21  ;;  %v4359_v22 = vpop.f32.mrb[204].mxu1  ;;  %v4962_v58 = vpop.f32.mrb[182].mxu0  ;;  %5443 = vmatprep.subr.bf16.mxu0 %v10900_v50 }
 0xaf9   :  { %v4360_v0 = vadd.f32 %v4359_v22, %v10726_v12  ;;  %v4963_v11 = vadd.f32 %v4962_v58, %v10856_v34  ;;  %v4361_v55 = vpop.f32.mrb[205].mxu1  ;;  %v4964_v32 = vpop.f32.mrb[183].mxu0  ;;  %5444 = vmatpush1.bf16.msra.mxu0 %v10898_v15  ;;  %v5259_v43 = vmax.f32 %v4959_v18, 0.0 }
 0xafa   :  { %v4362_v10 = vadd.f32 %v4361_v55, %v10730_v57  ;;  %v4965_v25 = vadd.f32 %v4964_v32, %v10860_v21  ;;  %v4363_v45 = vpop.f32.mrb[206].mxu1  ;;  %5226 = vmatprep.mubr.bf16.mxu1 %v4718_v40  ;;  %v5260_v28 = vmax.f32 %v4961_v6, 0.0 }
 0xafb   :  { %v5261_v54 = vmax.f32 %v4963_v11, 0.0  ;;  %v4364_v31 = vadd.f32 %v4363_v45, %v10726_v12  ;;  %v4365_v19 = vpop.f32.mrb[207].mxu1  ;;  %5227 = vmatmul.mubr.bf16.gmra.mrb[224].mxu1 %v4717_v4  ;;  %v4620_v27 = vmax.f32 %v4360_v0, 0.0 }
 0xafc   :  { %v5262_v47 = vmax.f32 %v4965_v25, 0.0  ;;  %v4366_v49 = vadd.f32 %v4365_v19, %v10730_v57  ;;  %v4621_v61 = vmax.f32 %v4362_v10, 0.0 }
 0xafd   :  { %v10912_v44 = vpack.c.bf16 %v5261_v54, %v5259_v43  ;;  %v4622_v46 = vmax.f32 %v4364_v31, 0.0 }
 0xafe   :  { %v10914_v63 = vpack.c.bf16 %v5262_v47, %v5260_v28  ;;  %v4623_v13 = vmax.f32 %v4366_v49, 0.0  ;;  %v4968_v33 = vpop.f32.mrb[184].mxu0 }
 0xaff   :  { %v4719_v35 = vpack.c.bf16 %v4622_v46, %v4620_v27  ;;  %v4969_v52 = vadd.f32 %v4968_v33, %v10856_v34  ;;  %v4970_v2 = vpop.f32.mrb[185].mxu0 }
 0xb00   :  { %v4720_v12 = vpack.c.bf16 %v4623_v13, %v4621_v61  ;;  %v4971_v4 = vadd.f32 %v4970_v2, %v10860_v21  ;;  %v4972_v18 = vpop.f32.mrb[186].mxu0  ;;  %5445 = vmatprep.subr.bf16.mxu0 %v10914_v63 }
 0xb01   :  { %v4973_v57 = vadd.f32 %v4972_v18, %v10856_v34  ;;  %v4974_v17 = vpop.f32.mrb[187].mxu0  ;;  %5446 = vmatpush1.bf16.msra.mxu0 %v10912_v44  ;;  %v5263_v6 = vmax.f32 %v4969_v52, 0.0 }
 0xb02   :  { %v4975_v40 = vadd.f32 %v4974_v17, %v10860_v21  ;;  %5236 = vmatprep.mubr.bf16.mxu1 %v4720_v12  ;;  %v5264_v58 = vmax.f32 %v4971_v4, 0.0 }
 0xb03   :  { %v5265_v22 = vmax.f32 %v4973_v57, 0.0  ;;  %5237 = vmatmul.mubr.bf16.gmra.mrb[228].mxu1 %v4719_v35 }
 0xb04   :  { %v5266_v0 = vmax.f32 %v4975_v40, 0.0  ;;  %6096 = vmatprep.mubr.bf16.mxu1 %v12305_v48 }
 0xb05   :  { %v10923_v11 = vpack.c.bf16 %v5265_v22, %v5263_v6 }
 0xb06   :  { %v10925_v55 = vpack.c.bf16 %v5266_v0, %v5264_v58  ;;  %v4978_v32 = vpop.f32.mrb[188].mxu0 }
 0xb07   :  { %v4979_v10 = vadd.f32 %v4978_v32, %v10856_v34  ;;  %v4980_v25 = vpop.f32.mrb[189].mxu0 }
 0xb08   :  { %v4981_v45 = vadd.f32 %v4980_v25, %v10860_v21  ;;  %v4982_v43 = vpop.f32.mrb[190].mxu0  ;;  %5447 = vmatprep.subr.bf16.mxu0 %v10925_v55 }
 0xb09   :  { %v4983_v54 = vadd.f32 %v4982_v43, %v10856_v34  ;;  %v4984_v31 = vpop.f32.mrb[191].mxu0  ;;  %5448 = vmatpush1.bf16.msra.mxu0 %v10923_v11  ;;  %v5267_v28 = vmax.f32 %v4979_v10, 0.0 }
 0xb0a   :  { %v4985_v19 = vadd.f32 %v4984_v31, %v10860_v21  ;;  %v5268_v49 = vmax.f32 %v4981_v45, 0.0 }
 0xb0b   :  { %v5269_v47 = vmax.f32 %v4983_v54, 0.0 }
 0xb0c   :  { %v5270_v27 = vmax.f32 %v4985_v19, 0.0 }
 0xb0d   :  { %v10933_v46 = vpack.c.bf16 %v5269_v47, %v5267_v28 }
 0xb0e   :  { %v10935_v61 = vpack.c.bf16 %v5270_v27, %v5268_v49  ;;  %v4988_v13 = vpop.f32.mrb[192].mxu0 }
 0xb0f   :  { %v4989_v33 = vadd.f32 %v4988_v13, %v10856_v34  ;;  %v4990_v35 = vpop.f32.mrb[193].mxu0 }
 0xb10   :  { %v4991_v52 = vadd.f32 %v4990_v35, %v10860_v21  ;;  %v4992_v2 = vpop.f32.mrb[194].mxu0  ;;  %5449 = vmatprep.subr.bf16.mxu0 %v10935_v61 }
 0xb11   :  { %v4993_v12 = vadd.f32 %v4992_v2, %v10856_v34  ;;  %v4994_v4 = vpop.f32.mrb[195].mxu0  ;;  %5450 = vmatpush1.bf16.msra.mxu0 %v10933_v46  ;;  %v5271_v57 = vmax.f32 %v4989_v33, 0.0 }
 0xb12   :  { %v4995_v18 = vadd.f32 %v4994_v4, %v10860_v21  ;;  %v5272_v40 = vmax.f32 %v4991_v52, 0.0 }
 0xb13   :  { %v5273_v17 = vmax.f32 %v4993_v12, 0.0 }
 0xb14   :  { %v5274_v6 = vmax.f32 %v4995_v18, 0.0 }
 0xb15   :  { %v10943_v22 = vpack.c.bf16 %v5273_v17, %v5271_v57 }
 0xb16   :  { %v10945_v58 = vpack.c.bf16 %v5274_v6, %v5272_v40  ;;  %v4998_v0 = vpop.f32.mrb[196].mxu0 }
 0xb17   :  { %v4999_v32 = vadd.f32 %v4998_v0, %v10856_v34  ;;  %v5000_v10 = vpop.f32.mrb[197].mxu0 }
 0xb18   :  { %v5001_v25 = vadd.f32 %v5000_v10, %v10860_v21  ;;  %v5002_v45 = vpop.f32.mrb[198].mxu0  ;;  %5451 = vmatprep.subr.bf16.mxu0 %v10945_v58 }
 0xb19   :  { %v5003_v43 = vadd.f32 %v5002_v45, %v10856_v34  ;;  %v5004_v54 = vpop.f32.mrb[199].mxu0  ;;  %5452 = vmatpush1.bf16.msra.mxu0 %v10943_v22  ;;  %v5275_v19 = vmax.f32 %v4999_v32, 0.0 }
 0xb1a   :  { %v5005_v31 = vadd.f32 %v5004_v54, %v10860_v21  ;;  %v5276_v47 = vmax.f32 %v5001_v25, 0.0 }
 0xb1b   :  { %v5277_v28 = vmax.f32 %v5003_v43, 0.0 }
 0xb1c   :  { %v5278_v49 = vmax.f32 %v5005_v31, 0.0 }
 0xb1d   :  { %v10953_v27 = vpack.c.bf16 %v5277_v28, %v5275_v19 }
 0xb1e   :  { %v10955_v13 = vpack.c.bf16 %v5278_v49, %v5276_v47  ;;  %v5008_v33 = vpop.f32.mrb[200].mxu0 }
 0xb1f   :  { %v5009_v35 = vadd.f32 %v5008_v33, %v10856_v34  ;;  %v5010_v52 = vpop.f32.mrb[201].mxu0 }
 0xb20   :  { %v5011_v2 = vadd.f32 %v5010_v52, %v10860_v21  ;;  %v5012_v12 = vpop.f32.mrb[202].mxu0  ;;  %5453 = vmatprep.subr.bf16.mxu0 %v10955_v13 }
 0xb21   :  { %v5013_v4 = vadd.f32 %v5012_v12, %v10856_v34  ;;  %v5014_v18 = vpop.f32.mrb[203].mxu0  ;;  %5454 = vmatpush1.bf16.msra.mxu0 %v10953_v27  ;;  %v5279_v17 = vmax.f32 %v5009_v35, 0.0 }
 0xb22   :  { %v5015_v57 = vadd.f32 %v5014_v18, %v10860_v21  ;;  %v5280_v6 = vmax.f32 %v5011_v2, 0.0 }
 0xb23   :  { %v5281_v40 = vmax.f32 %v5013_v4, 0.0 }
 0xb24   :  { %v5282_v0 = vmax.f32 %v5015_v57, 0.0 }
 0xb25   :  { %v10963_v32 = vpack.c.bf16 %v5281_v40, %v5279_v17 }
 0xb26   :  { %v10965_v10 = vpack.c.bf16 %v5282_v0, %v5280_v6  ;;  %v5018_v25 = vpop.f32.mrb[204].mxu0 }
 0xb27   :  { %v5019_v45 = vadd.f32 %v5018_v25, %v10856_v34  ;;  %v5020_v43 = vpop.f32.mrb[205].mxu0 }
 0xb28   :  { %v5021_v54 = vadd.f32 %v5020_v43, %v10860_v21  ;;  %v5022_v31 = vpop.f32.mrb[206].mxu0  ;;  %5455 = vmatprep.subr.bf16.mxu0 %v10965_v10 }
 0xb29   :  { %v5023_v19 = vadd.f32 %v5022_v31, %v10856_v34  ;;  %v5024_v28 = vpop.f32.mrb[207].mxu0  ;;  %5456 = vmatpush1.bf16.msra.mxu0 %v10963_v32  ;;  %v5283_v49 = vmax.f32 %v5019_v45, 0.0 }
 0xb2a   :  { %v5025_v47 = vadd.f32 %v5024_v28, %v10860_v21  ;;  %v5284_v35 = vmax.f32 %v5021_v54, 0.0 }
 0xb2b   :  { %v5285_v33 = vmax.f32 %v5023_v19, 0.0 }
 0xb2c   :  { %v5286_v52 = vmax.f32 %v5025_v47, 0.0 }
 0xb2d   :  { %v10973_v2 = vpack.c.bf16 %v5285_v33, %v5283_v49 }
 0xb2e   :  { %v10975_v12 = vpack.c.bf16 %v5286_v52, %v5284_v35  ;;  %v5028_v4 = vpop.f32.mrb[208].mxu0 }
 0xb2f   :  { %v5029_v18 = vadd.f32 %v5028_v4, %v10856_v34  ;;  %v5030_v57 = vpop.f32.mrb[209].mxu0 }
 0xb30   :  { %v5031_v17 = vadd.f32 %v5030_v57, %v10860_v21  ;;  %v5032_v40 = vpop.f32.mrb[210].mxu0  ;;  %5457 = vmatprep.subr.bf16.mxu0 %v10975_v12 }
 0xb31   :  { %v5033_v6 = vadd.f32 %v5032_v40, %v10856_v34  ;;  %v5034_v0 = vpop.f32.mrb[211].mxu0  ;;  %5458 = vmatpush1.bf16.msra.mxu0 %v10973_v2  ;;  %v5287_v45 = vmax.f32 %v5029_v18, 0.0 }
 0xb32   :  { %v5035_v25 = vadd.f32 %v5034_v0, %v10860_v21  ;;  %v5288_v54 = vmax.f32 %v5031_v17, 0.0 }
 0xb33   :  { %v5289_v43 = vmax.f32 %v5033_v6, 0.0 }
 0xb34   :  { %v5290_v31 = vmax.f32 %v5035_v25, 0.0 }
 0xb35   :  { %v10983_v19 = vpack.c.bf16 %v5289_v43, %v5287_v45 }
 0xb36   :  { %v10985_v28 = vpack.c.bf16 %v5290_v31, %v5288_v54  ;;  %v5038_v47 = vpop.f32.mrb[212].mxu0 }
 0xb37   :  { %v5039_v49 = vadd.f32 %v5038_v47, %v10856_v34  ;;  %v5040_v33 = vpop.f32.mrb[213].mxu0 }
 0xb38   :  { %v5041_v35 = vadd.f32 %v5040_v33, %v10860_v21  ;;  %v5042_v52 = vpop.f32.mrb[214].mxu0  ;;  %5459 = vmatprep.subr.bf16.mxu0 %v10985_v28 }
 0xb39   :  { %v5043_v4 = vadd.f32 %v5042_v52, %v10856_v34  ;;  %v5044_v57 = vpop.f32.mrb[215].mxu0  ;;  %5460 = vmatpush1.bf16.msra.mxu0 %v10983_v19  ;;  %v5291_v17 = vmax.f32 %v5039_v49, 0.0 }
 0xb3a   :  { %v5045_v18 = vadd.f32 %v5044_v57, %v10860_v21  ;;  %v5292_v6 = vmax.f32 %v5041_v35, 0.0 }
 0xb3b   :  { %v5293_v40 = vmax.f32 %v5043_v4, 0.0 }
 0xb3c   :  { %v5294_v0 = vmax.f32 %v5045_v18, 0.0 }
 0xb3d   :  { %v10993_v25 = vpack.c.bf16 %v5293_v40, %v5291_v17 }
 0xb3e   :  { %v10995_v45 = vpack.c.bf16 %v5294_v0, %v5292_v6  ;;  %v5048_v43 = vpop.f32.mrb[216].mxu0 }
 0xb3f   :  { %v5049_v54 = vadd.f32 %v5048_v43, %v10856_v34  ;;  %v5050_v31 = vpop.f32.mrb[217].mxu0 }
 0xb40   :  { %v5051_v47 = vadd.f32 %v5050_v31, %v10860_v21  ;;  %v5052_v33 = vpop.f32.mrb[218].mxu0  ;;  %5461 = vmatprep.subr.bf16.mxu0 %v10995_v45 }
 0xb41   :  { %v5053_v52 = vadd.f32 %v5052_v33, %v10856_v34  ;;  %v5054_v57 = vpop.f32.mrb[219].mxu0  ;;  %5462 = vmatpush1.bf16.msra.mxu0 %v10993_v25  ;;  %v5295_v35 = vmax.f32 %v5049_v54, 0.0 }
 0xb42   :  { %v5055_v49 = vadd.f32 %v5054_v57, %v10860_v21  ;;  %v5296_v18 = vmax.f32 %v5051_v47, 0.0 }
 0xb43   :  { %v5297_v4 = vmax.f32 %v5053_v52, 0.0 }
 0xb44   :  { %v5298_v17 = vmax.f32 %v5055_v49, 0.0 }
 0xb45   :  { %v11003_v40 = vpack.c.bf16 %v5297_v4, %v5295_v35 }
 0xb46   :  { %v11005_v6 = vpack.c.bf16 %v5298_v17, %v5296_v18  ;;  %v5058_v0 = vpop.f32.mrb[220].mxu0 }
 0xb47   :  { %v5059_v43 = vadd.f32 %v5058_v0, %v10856_v34  ;;  %v5060_v31 = vpop.f32.mrb[221].mxu0 }
 0xb48   :  { %v5061_v5 = vadd.f32 %v5060_v31, %v10860_v21  ;;  %v5062_v33 = vpop.f32.mrb[222].mxu0  ;;  %5463 = vmatprep.subr.bf16.mxu0 %v11005_v6 }
 0xb49   :  { %v5063_v42 = vadd.f32 %v5062_v33, %v10856_v34  ;;  %v5064_v57 = vpop.f32.mrb[223].mxu0  ;;  %5464 = vmatpush1.bf16.msra.mxu0 %v11003_v40  ;;  %v5299_v47 = vmax.f32 %v5059_v43, 0.0 }
 0xb4a   :  { %v5065_v54 = vadd.f32 %v5064_v57, %v10860_v21  ;;  %v5300_v49 = vmax.f32 %v5061_v5, 0.0 }
 0xb4b   :  { %v5301_v52 = vmax.f32 %v5063_v42, 0.0 }
 0xb4c   :  { %v5302_v35 = vmax.f32 %v5065_v54, 0.0 }
 0xb4d   :  { %v11013_v4 = vpack.c.bf16 %v5301_v52, %v5299_v47 }
 0xb4e   :  { %v11015_v18 = vpack.c.bf16 %v5302_v35, %v5300_v49  ;;  %v5068_v17 = vpop.f32.mrb[224].mxu0 }
 0xb4f   :  { %v5069_v0 = vadd.f32 %v5068_v17, %v10856_v34  ;;  %v5070_v31 = vpop.f32.mrb[225].mxu0 }
 0xb50   :  { %v5071_v1 = vadd.f32 %v5070_v31, %v10860_v21  ;;  %v5072_v33 = vpop.f32.mrb[226].mxu0  ;;  %5465 = vmatprep.subr.bf16.mxu0 %v11015_v18 }
 0xb51   :  { %v5073_v7 = vadd.f32 %v5072_v33, %v10856_v34  ;;  %v5074_v57 = vpop.f32.mrb[227].mxu0  ;;  %5466 = vmatpush1.bf16.msra.mxu0 %v11013_v4  ;;  %v5303_v42 = vmax.f32 %v5069_v0, 0.0 }
 0xb52   :  { %v5075_v5 = vadd.f32 %v5074_v57, %v10860_v21  ;;  %v5304_v54 = vmax.f32 %v5071_v1, 0.0 }
 0xb53   :  { %v5305_v43 = vmax.f32 %v5073_v7, 0.0 }
 0xb54   :  { %v5306_v47 = vmax.f32 %v5075_v5, 0.0 }
 0xb55   :  { %v11023_v52 = vpack.c.bf16 %v5305_v43, %v5303_v42 }
 0xb56   :  { %v11025_v49 = vpack.c.bf16 %v5306_v47, %v5304_v54  ;;  %v5078_v35 = vpop.f32.mrb[228].mxu0 }
 0xb57   :  { %12353 = vst [vmem:[#allocation10_spill] sm:$0xff] %v11023_v52  ;;  %v5079_v17 = vadd.f32 %v5078_v35, %v10856_v34  ;;  %v5080_v31 = vpop.f32.mrb[229].mxu0 }
 0xb58   :  { %v5081_v48 = vadd.f32 %v5080_v31, %v10860_v21  ;;  %v5082_v33 = vpop.f32.mrb[230].mxu0  ;;  %5467 = vmatprep.subr.bf16.mxu0 %v11025_v49 }
 0xb59   :  { %v5083_v26 = vadd.f32 %v5082_v33, %v10856_v34  ;;  %v5084_v57 = vpop.f32.mrb[231].mxu0  ;;  %5468 = vmatpush1.bf16.msra.mxu0 %v11023_v52  ;;  %v5307_v7 = vmax.f32 %v5079_v17, 0.0 }
 0xb5a   :  { %v5085_v1 = vadd.f32 %v5084_v57, %v10860_v21  ;;  %v5308_v5 = vmax.f32 %v5081_v48, 0.0 }
 0xb5b   :  { %v5309_v0 = vmax.f32 %v5083_v26, 0.0 }
 0xb5c   :  { %v5310_v42 = vmax.f32 %v5085_v1, 0.0 }
 0xb5d   :  { %v11033_v43 = vpack.c.bf16 %v5309_v0, %v5307_v7  ;;  %v9511_v0 = vld [vmem:[%s12166_s1] ss:$16 sps:$4 sm:$0xff]  }
 0xb5e   :  { %v11035_v54 = vpack.c.bf16 %v5310_v42, %v5308_v5  ;;  %v5088_v47 = vpop.f32.mrb[232].mxu0  ;;  %v9512_v42 = vld [vmem:[%s12166_s1 + $0x24] ss:$16 sps:$4 sm:$0xff]  }
 0xb5f   :  { %12354 = vst [vmem:[#allocation12_spill] sm:$0xff] %v11033_v43  ;;  %v5089_v35 = vadd.f32 %v5088_v47, %v10856_v34  ;;  %v5090_v31 = vpop.f32.mrb[233].mxu0 }
 0xb60   :  { %12355 = vst [vmem:[#allocation11_spill] sm:$0xff] %v11035_v54  ;;  %v5091_v24 = vadd.f32 %v5090_v31, %v10860_v21  ;;  %v5092_v33 = vpop.f32.mrb[234].mxu0  ;;  %5469 = vmatprep.subr.bf16.mxu0 %v11035_v54 }
 0xb61   :  { %v5093_v52 = vadd.f32 %v5092_v33, %v10856_v34  ;;  %v5094_v57 = vpop.f32.mrb[235].mxu0  ;;  %5470 = vmatpush1.bf16.msra.mxu0 %v11033_v43  ;;  %v5311_v48 = vmax.f32 %v5089_v35, 0.0 }
 0xb62   :  { %v5095_v26 = vadd.f32 %v5094_v57, %v10860_v21  ;;  %v5312_v1 = vmax.f32 %v5091_v24, 0.0 }
 0xb63   :  { %v5313_v17 = vmax.f32 %v5093_v52, 0.0 }
 0xb64   :  { %v5314_v7 = vmax.f32 %v5095_v26, 0.0  ;;  %5472 = vmatmul.mubr.bf16.vlgmr.msra.gmra.mrb[16].mxu0 %v9511_v0 }
 0xb65   :  { %v11046_v5 = vpack.c.bf16 %v5313_v17, %v5311_v48  ;;  %5481 = vmatprep.mubr.bf16.mxu0 %v9512_v42  ;;  %v9513_v42 = vld [vmem:[%s12166_s1 + $0x20] ss:$16 sps:$4 sm:$0xff]  }
 0xb66   :  { %v11051_v47 = vpack.c.bf16 %v5314_v7, %v5312_v1  ;;  %v5098_v31 = vpop.f32.mrb[236].mxu0 }
 0xb67   :  { %12356 = vst [vmem:[#allocation14_spill] sm:$0xff] %v11046_v5  ;;  %v5099_v35 = vadd.f32 %v5098_v31, %v10856_v34  ;;  %v5100_v52 = vpop.f32.mrb[237].mxu0 }
 0xb68   :  { %12357 = vst [vmem:[#allocation13_spill] sm:$0xff] %v11051_v47  ;;  %v5101_v24 = vadd.f32 %v5100_v52, %v10860_v21  ;;  %v5102_v33 = vpop.f32.mrb[238].mxu0  ;;  %5552 = vmatprep.subr.bf16.mxu0 %v11051_v47  ;;  %v9514_v52 = vld [vmem:[%s12166_s1 + $0x44] ss:$16 sps:$4 sm:$0xff]  }
 0xb69   :  { %v5103_v57 = vadd.f32 %v5102_v33, %v10856_v34  ;;  %v5104_v26 = vpop.f32.mrb[239].mxu0  ;;  %5553 = vmatpush1.bf16.msra.mxu0 %v11046_v5  ;;  %v5315_v17 = vmax.f32 %v5099_v35, 0.0 }
 0xb6a   :  { %v5105_v48 = vadd.f32 %v5104_v26, %v10860_v21  ;;  %v5316_v1 = vmax.f32 %v5101_v24, 0.0 }
 0xb6b   :  { %v5317_v0 = vmax.f32 %v5103_v57, 0.0 }
 0xb6c   :  { %v5318_v7 = vmax.f32 %v5105_v48, 0.0  ;;  %5482 = vmatmul.mubr.bf16.gmra.mrb[20].mxu0 %v9513_v42 }
 0xb6d   :  { %v11062_v31 = vpack.c.bf16 %v5317_v0, %v5315_v17  ;;  %5491 = vmatprep.mubr.bf16.mxu0 %v9514_v52 }
 0xb6e   :  { %v11067_v33 = vpack.c.bf16 %v5318_v7, %v5316_v1  ;;  %v5108_v5 = vpop.f32.mrb[240].mxu0 }
 0xb6f   :  { %12358 = vst [vmem:[#allocation16_spill] sm:$0xff] %v11062_v31  ;;  %v5109_v35 = vadd.f32 %v5108_v5, %v10856_v34  ;;  %v5110_v57 = vpop.f32.mrb[241].mxu0  ;;  %v9515_v5 = vld [vmem:[%s12166_s1 + $0x40] ss:$16 sps:$4 sm:$0xff]  }
 0xb70   :  { %12359 = vst [vmem:[#allocation15_spill] sm:$0xff] %v11067_v33  ;;  %v5111_v24 = vadd.f32 %v5110_v57, %v10860_v21  ;;  %v5112_v26 = vpop.f32.mrb[242].mxu0  ;;  %5554 = vmatprep.subr.bf16.mxu0 %v11067_v33 }
 0xb71   :  { %v5113_v48 = vadd.f32 %v5112_v26, %v10856_v34  ;;  %v5114_v17 = vpop.f32.mrb[243].mxu0  ;;  %5555 = vmatpush1.bf16.msra.mxu0 %v11062_v31  ;;  %v5319_v42 = vmax.f32 %v5109_v35, 0.0  ;;  %v9516_v26 = vld [vmem:[%s12166_s1 + $0x64] ss:$16 sps:$4 sm:$0xff]  }
 0xb72   :  { %v5115_v0 = vadd.f32 %v5114_v17, %v10860_v21  ;;  %v5320_v1 = vmax.f32 %v5111_v24, 0.0 }
 0xb73   :  { %v5321_v52 = vmax.f32 %v5113_v48, 0.0 }
 0xb74   :  { %v5322_v7 = vmax.f32 %v5115_v0, 0.0  ;;  %5492 = vmatmul.mubr.bf16.gmra.mrb[24].mxu0 %v9515_v5 }
 0xb75   :  { %v11078_v57 = vpack.c.bf16 %v5321_v52, %v5319_v42  ;;  %5501 = vmatprep.mubr.bf16.mxu0 %v9516_v26 }
 0xb76   :  { %v11083_v33 = vpack.c.bf16 %v5322_v7, %v5320_v1  ;;  %v5118_v31 = vpop.f32.mrb[244].mxu0 }
 0xb77   :  { %12360 = vst [vmem:[#allocation18_spill] sm:$0xff] %v11078_v57  ;;  %v5119_v35 = vadd.f32 %v5118_v31, %v10856_v34  ;;  %v5120_v48 = vpop.f32.mrb[245].mxu0  ;;  %v9517_v31 = vld [vmem:[%s12166_s1 + $0x60] ss:$16 sps:$4 sm:$0xff]  }
 0xb78   :  { %12361 = vst [vmem:[#allocation17_spill] sm:$0xff] %v11083_v33  ;;  %v5121_v24 = vadd.f32 %v5120_v48, %v10860_v21  ;;  %v5122_v17 = vpop.f32.mrb[246].mxu0  ;;  %5556 = vmatprep.subr.bf16.mxu0 %v11083_v33 }
 0xb79   :  { %v5123_v0 = vadd.f32 %v5122_v17, %v10856_v34  ;;  %v5124_v42 = vpop.f32.mrb[247].mxu0  ;;  %5557 = vmatpush1.bf16.msra.mxu0 %v11078_v57  ;;  %v5323_v5 = vmax.f32 %v5119_v35, 0.0  ;;  %v9518_v17 = vld [vmem:[%s12166_s1 + $0x84] ss:$16 sps:$4 sm:$0xff]  }
 0xb7a   :  { %v5125_v52 = vadd.f32 %v5124_v42, %v10860_v21  ;;  %v5324_v1 = vmax.f32 %v5121_v24, 0.0 }
 0xb7b   :  { %v5325_v26 = vmax.f32 %v5123_v0, 0.0 }
 0xb7c   :  { %v5326_v7 = vmax.f32 %v5125_v52, 0.0  ;;  %5502 = vmatmul.mubr.bf16.gmra.mrb[28].mxu0 %v9517_v31 }
 0xb7d   :  { %v11094_v48 = vpack.c.bf16 %v5325_v26, %v5323_v5  ;;  %5511 = vmatprep.mubr.bf16.mxu0 %v9518_v17 }
 0xb7e   :  { %v11099_v33 = vpack.c.bf16 %v5326_v7, %v5324_v1  ;;  %v5128_v57 = vpop.f32.mrb[248].mxu0 }
 0xb7f   :  { %12362 = vst [vmem:[#allocation20_spill] sm:$0xff] %v11094_v48  ;;  %v5129_v35 = vadd.f32 %v5128_v57, %v10856_v34  ;;  %v5130_v0 = vpop.f32.mrb[249].mxu0  ;;  %v9519_v57 = vld [vmem:[%s12166_s1 + $0x80] ss:$16 sps:$4 sm:$0xff]  }
 0xb80   :  { %12363 = vst [vmem:[#allocation19_spill] sm:$0xff] %v11099_v33  ;;  %v5131_v24 = vadd.f32 %v5130_v0, %v10860_v21  ;;  %v5132_v42 = vpop.f32.mrb[250].mxu0  ;;  %5558 = vmatprep.subr.bf16.mxu0 %v11099_v33 }
 0xb81   :  { %v5133_v52 = vadd.f32 %v5132_v42, %v10856_v34  ;;  %v5134_v5 = vpop.f32.mrb[251].mxu0  ;;  %5559 = vmatpush1.bf16.msra.mxu0 %v11094_v48  ;;  %v5327_v31 = vmax.f32 %v5129_v35, 0.0  ;;  %v9520_v42 = vld [vmem:[%s12166_s1 + $0xa4] ss:$16 sps:$4 sm:$0xff]  }
 0xb82   :  { %v5135_v26 = vadd.f32 %v5134_v5, %v10860_v21  ;;  %v5328_v1 = vmax.f32 %v5131_v24, 0.0 }
 0xb83   :  { %v5329_v17 = vmax.f32 %v5133_v52, 0.0 }
 0xb84   :  { %v5330_v7 = vmax.f32 %v5135_v26, 0.0  ;;  %5512 = vmatmul.mubr.bf16.gmra.mrb[32].mxu0 %v9519_v57 }
 0xb85   :  { %v11110_v0 = vpack.c.bf16 %v5329_v17, %v5327_v31  ;;  %5521 = vmatprep.mubr.bf16.mxu0 %v9520_v42 }
 0xb86   :  { %v11115_v33 = vpack.c.bf16 %v5330_v7, %v5328_v1  ;;  %v5138_v48 = vpop.f32.mrb[252].mxu0 }
 0xb87   :  { %12364 = vst [vmem:[#allocation22_spill] sm:$0xff] %v11110_v0  ;;  %v5139_v35 = vadd.f32 %v5138_v48, %v10856_v34  ;;  %v5140_v52 = vpop.f32.mrb[253].mxu0  ;;  %v9521_v48 = vld [vmem:[%s12166_s1 + $0xa0] ss:$16 sps:$4 sm:$0xff]  }
 0xb88   :  { %12365 = vst [vmem:[#allocation21_spill] sm:$0xff] %v11115_v33  ;;  %v5141_v24 = vadd.f32 %v5140_v52, %v10860_v21  ;;  %v5142_v5 = vpop.f32.mrb[254].mxu0  ;;  %5560 = vmatprep.subr.bf16.mxu0 %v11115_v33 }
 0xb89   :  { %v5143_v26 = vadd.f32 %v5142_v5, %v10856_v34  ;;  %v5144_v31 = vpop.f32.mrb[255].mxu0  ;;  %5561 = vmatpush1.bf16.msra.mxu0 %v11110_v0  ;;  %v5331_v57 = vmax.f32 %v5139_v35, 0.0  ;;  %v9522_v5 = vld [vmem:[%s12166_s1 + $0xc4] ss:$16 sps:$4 sm:$0xff]  }
 0xb8a   :  { %v5145_v17 = vadd.f32 %v5144_v31, %v10860_v21  ;;  %v5332_v1 = vmax.f32 %v5141_v24, 0.0 }
 0xb8b   :  { %v5333_v42 = vmax.f32 %v5143_v26, 0.0 }
 0xb8c   :  { %v5334_v7 = vmax.f32 %v5145_v17, 0.0  ;;  %5522 = vmatmul.mubr.bf16.gmra.mrb[36].mxu0 %v9521_v48 }
 0xb8d   :  { %v11126_v52 = vpack.c.bf16 %v5333_v42, %v5331_v57  ;;  %5531 = vmatprep.mubr.bf16.mxu0 %v9522_v5 }
 0xb8e   :  { %v11131_v33 = vpack.c.bf16 %v5334_v7, %v5332_v1  ;;  %v5148_v0 = vpop.f32.mrb[0].mxu0 }
 0xb8f   :  { %12366 = vst [vmem:[#allocation24_spill] sm:$0xff] %v11126_v52  ;;  %v5149_v35 = vadd.f32 %v5148_v0, %v10856_v34  ;;  %v5150_v26 = vpop.f32.mrb[1].mxu0  ;;  %v9523_v0 = vld [vmem:[%s12166_s1 + $0xc0] ss:$16 sps:$4 sm:$0xff]  }
 0xb90   :  { %12367 = vst [vmem:[#allocation23_spill] sm:$0xff] %v11131_v33  ;;  %v5151_v24 = vadd.f32 %v5150_v26, %v10860_v21  ;;  %v5152_v31 = vpop.f32.mrb[2].mxu0  ;;  %5562 = vmatprep.subr.bf16.mxu0 %v11131_v33 }
 0xb91   :  { %v5153_v17 = vadd.f32 %v5152_v31, %v10856_v34  ;;  %v5154_v57 = vpop.f32.mrb[3].mxu0  ;;  %5563 = vmatpush1.bf16.msra.mxu0 %v11126_v52  ;;  %v5335_v48 = vmax.f32 %v5149_v35, 0.0  ;;  %v9524_v31 = vld [vmem:[%s12166_s1 + $0xe4] ss:$16 sps:$4 sm:$0xff]  }
 0xb92   :  { %v5155_v42 = vadd.f32 %v5154_v57, %v10860_v21  ;;  %v5336_v1 = vmax.f32 %v5151_v24, 0.0 }
 0xb93   :  { %v5337_v5 = vmax.f32 %v5153_v17, 0.0 }
 0xb94   :  { %v5338_v7 = vmax.f32 %v5155_v42, 0.0  ;;  %5532 = vmatmul.mubr.bf16.gmra.mrb[40].mxu0 %v9523_v0 }
 0xb95   :  { %v11142_v26 = vpack.c.bf16 %v5337_v5, %v5335_v48  ;;  %5541 = vmatprep.mubr.bf16.mxu0 %v9524_v31 }
 0xb96   :  { %v11147_v33 = vpack.c.bf16 %v5338_v7, %v5336_v1  ;;  %v5158_v52 = vpop.f32.mrb[4].mxu0 }
 0xb97   :  { %12368 = vst [vmem:[#allocation26_spill] sm:$0xff] %v11142_v26  ;;  %v5159_v35 = vadd.f32 %v5158_v52, %v10856_v34  ;;  %v5160_v17 = vpop.f32.mrb[5].mxu0  ;;  %v9525_v52 = vld [vmem:[%s12166_s1 + $0xe0] ss:$16 sps:$4 sm:$0xff]  }
 0xb98   :  { %12369 = vst [vmem:[#allocation25_spill] sm:$0xff] %v11147_v33  ;;  %v5161_v24 = vadd.f32 %v5160_v17, %v10860_v21  ;;  %v5162_v57 = vpop.f32.mrb[6].mxu0  ;;  %5564 = vmatprep.subr.bf16.mxu0 %v11147_v33 }
 0xb99   :  { %v5163_v42 = vadd.f32 %v5162_v57, %v10856_v34  ;;  %v5164_v48 = vpop.f32.mrb[7].mxu0  ;;  %5565 = vmatpush1.bf16.msra.mxu0 %v11142_v26  ;;  %v5339_v0 = vmax.f32 %v5159_v35, 0.0  ;;  %v9526_v57 = vld [vmem:[%s12166_s1 + $0xc] ss:$16 sps:$4 sm:$0xff]  }
 0xb9a   :  { %v5165_v5 = vadd.f32 %v5164_v48, %v10860_v21  ;;  %v5340_v1 = vmax.f32 %v5161_v24, 0.0 }
 0xb9b   :  { %v5341_v31 = vmax.f32 %v5163_v42, 0.0 }
 0xb9c   :  { %v5342_v7 = vmax.f32 %v5165_v5, 0.0  ;;  %5542 = vmatmul.mubr.bf16.gmra.mrb[44].mxu0 %v9525_v52 }
 0xb9d   :  { %v11158_v17 = vpack.c.bf16 %v5341_v31, %v5339_v0  ;;  %5584 = vmatprep.mubr.bf16.mxu0 %v9526_v57 }
 0xb9e   :  { %v11163_v33 = vpack.c.bf16 %v5342_v7, %v5340_v1  ;;  %v5168_v26 = vpop.f32.mrb[8].mxu0 }
 0xb9f   :  { %12370 = vst [vmem:[#allocation28_spill] sm:$0xff] %v11158_v17  ;;  %v5169_v35 = vadd.f32 %v5168_v26, %v10856_v34  ;;  %v5170_v42 = vpop.f32.mrb[9].mxu0 }
 0xba0   :  { %12371 = vst [vmem:[#allocation27_spill] sm:$0xff] %v11163_v33  ;;  %v5171_v24 = vadd.f32 %v5170_v42, %v10860_v21  ;;  %v5172_v48 = vpop.f32.mrb[10].mxu0  ;;  %5566 = vmatprep.subr.bf16.mxu0 %v11163_v33 }
 0xba1   :  { %v5173_v5 = vadd.f32 %v5172_v48, %v10856_v34  ;;  %v5174_v0 = vpop.f32.mrb[11].mxu0  ;;  %5567 = vmatpush1.bf16.msra.mxu0 %v11158_v17  ;;  %v5343_v52 = vmax.f32 %v5169_v35, 0.0 }
 0xba2   :  { %v5175_v31 = vadd.f32 %v5174_v0, %v10860_v21  ;;  %v5344_v1 = vmax.f32 %v5171_v24, 0.0 }
 0xba3   :  { %v5345_v57 = vmax.f32 %v5173_v5, 0.0 }
 0xba4   :  { %v5346_v7 = vmax.f32 %v5175_v31, 0.0 }
 0xba5   :  { %v11171_v47 = vpack.c.bf16 %v5345_v57, %v5343_v52 }
 0xba6   :  { %v11173_v26 = vpack.c.bf16 %v5346_v7, %v5344_v1  ;;  %v5178_v43 = vpop.f32.mrb[12].mxu0 }
 0xba7   :  { %12372 = vst [vmem:[#allocation30_spill] sm:$0xff] %v11171_v47  ;;  %v5179_v42 = vadd.f32 %v5178_v43, %v10856_v34  ;;  %v5180_v54 = vpop.f32.mrb[13].mxu0 }
 0xba8   :  { %12373 = vst [vmem:[#allocation29_spill] sm:$0xff] %v11173_v26  ;;  %v5181_v33 = vadd.f32 %v5180_v54, %v10860_v21  ;;  %v5182_v48 = vpop.f32.mrb[14].mxu0  ;;  %5568 = vmatprep.subr.bf16.mxu0 %v11173_v26 }
 0xba9   :  { %v5183_v17 = vadd.f32 %v5182_v48, %v10856_v34  ;;  %v5184_v0 = vpop.f32.mrb[15].mxu0  ;;  %5569 = vmatpush1.bf16.msra.mxu0 %v11171_v47  ;;  %v5347_v24 = vmax.f32 %v5179_v42, 0.0 }
 0xbaa   :  { %v5185_v35 = vadd.f32 %v5184_v0, %v10860_v21  ;;  %v5348_v31 = vmax.f32 %v5181_v33, 0.0 }
 0xbab   :  { %v5349_v5 = vmax.f32 %v5183_v17, 0.0 }
 0xbac   :  { %v5350_v52 = vmax.f32 %v5185_v35, 0.0 }
 0xbad   :  { %v11181_v57 = vpack.c.bf16 %v5349_v5, %v5347_v24 }
 0xbae   :  { %v11183_v43 = vpack.c.bf16 %v5350_v52, %v5348_v31  ;;  %v5188_v1 = vpop.f32.mrb[208].mxu1 }
 0xbaf   :  { %12374 = vst [vmem:[#allocation32_spill] sm:$0xff] %v11181_v57  ;;  %v5189_v54 = vadd.f32 %v5188_v1, %v10856_v34  ;;  %v5190_v7 = vpop.f32.mrb[209].mxu1 }
 0xbb0   :  { %12375 = vst [vmem:[#allocation31_spill] sm:$0xff] %v11183_v43  ;;  %v5191_v26 = vadd.f32 %v5190_v7, %v10860_v21  ;;  %v5192_v48 = vpop.f32.mrb[210].mxu1  ;;  %5570 = vmatprep.subr.bf16.mxu0 %v11183_v43 }
 0xbb1   :  { %v5193_v47 = vadd.f32 %v5192_v48, %v10856_v34  ;;  %v5194_v0 = vpop.f32.mrb[211].mxu1  ;;  %5571 = vmatpush1.bf16.msra.mxu0 %v11181_v57  ;;  %v5351_v17 = vmax.f32 %v5189_v54, 0.0 }
 0xbb2   :  { %v5195_v33 = vadd.f32 %v5194_v0, %v10860_v21  ;;  %v5352_v35 = vmax.f32 %v5191_v26, 0.0 }
 0xbb3   :  { %v5353_v42 = vmax.f32 %v5193_v47, 0.0 }
 0xbb4   :  { %v5354_v24 = vmax.f32 %v5195_v33, 0.0 }
 0xbb5   :  { %v11191_v5 = vpack.c.bf16 %v5353_v42, %v5351_v17 }
 0xbb6   :  { %v11193_v31 = vpack.c.bf16 %v5354_v24, %v5352_v35  ;;  %v5198_v52 = vpop.f32.mrb[212].mxu1 }
 0xbb7   :  { %12376 = vst [vmem:[#allocation34_spill] sm:$0xff] %v11191_v5  ;;  %v5199_v1 = vadd.f32 %v5198_v52, %v10856_v34  ;;  %v5200_v7 = vpop.f32.mrb[213].mxu1 }
 0xbb8   :  { %12377 = vst [vmem:[#allocation33_spill] sm:$0xff] %v11193_v31  ;;  %v5201_v43 = vadd.f32 %v5200_v7, %v10860_v21  ;;  %v5202_v48 = vpop.f32.mrb[214].mxu1  ;;  %5572 = vmatprep.subr.bf16.mxu0 %v11193_v31 }
 0xbb9   :  { %v5203_v57 = vadd.f32 %v5202_v48, %v10856_v34  ;;  %v5204_v0 = vpop.f32.mrb[215].mxu1  ;;  %5573 = vmatpush1.bf16.msra.mxu0 %v11191_v5  ;;  %v5355_v26 = vmax.f32 %v5199_v1, 0.0 }
 0xbba   :  { %v5205_v47 = vadd.f32 %v5204_v0, %v10860_v21  ;;  %v5356_v33 = vmax.f32 %v5201_v43, 0.0 }
 0xbbb   :  { %v5357_v54 = vmax.f32 %v5203_v57, 0.0 }
 0xbbc   :  { %v5358_v17 = vmax.f32 %v5205_v47, 0.0 }
 0xbbd   :  { %v11201_v42 = vpack.c.bf16 %v5357_v54, %v5355_v26 }
 0xbbe   :  { %v11203_v35 = vpack.c.bf16 %v5358_v17, %v5356_v33  ;;  %v5208_v24 = vpop.f32.mrb[216].mxu1 }
 0xbbf   :  { %12378 = vst [vmem:[#allocation36_spill] sm:$0xff] %v11201_v42  ;;  %v5209_v52 = vadd.f32 %v5208_v24, %v10856_v34  ;;  %v5210_v7 = vpop.f32.mrb[217].mxu1 }
 0xbc0   :  { %12379 = vst [vmem:[#allocation35_spill] sm:$0xff] %v11203_v35  ;;  %v5211_v31 = vadd.f32 %v5210_v7, %v10860_v21  ;;  %v5212_v48 = vpop.f32.mrb[218].mxu1  ;;  %5574 = vmatprep.subr.bf16.mxu0 %v11203_v35 }
 0xbc1   :  { %v5213_v5 = vadd.f32 %v5212_v48, %v10856_v34  ;;  %v5214_v0 = vpop.f32.mrb[219].mxu1  ;;  %5575 = vmatpush1.bf16.msra.mxu0 %v11201_v42  ;;  %v5359_v43 = vmax.f32 %v5209_v52, 0.0 }
 0xbc2   :  { %v5215_v57 = vadd.f32 %v5214_v0, %v10860_v21  ;;  %v5360_v47 = vmax.f32 %v5211_v31, 0.0 }
 0xbc3   :  { %v5361_v1 = vmax.f32 %v5213_v5, 0.0 }
 0xbc4   :  { %v5362_v26 = vmax.f32 %v5215_v57, 0.0 }
 0xbc5   :  { %v11211_v54 = vpack.c.bf16 %v5361_v1, %v5359_v43 }
 0xbc6   :  { %v11213_v33 = vpack.c.bf16 %v5362_v26, %v5360_v47  ;;  %v5218_v17 = vpop.f32.mrb[220].mxu1 }
 0xbc7   :  { %12380 = vst [vmem:[#allocation38_spill] sm:$0xff] %v11211_v54  ;;  %v5219_v24 = vadd.f32 %v5218_v17, %v10856_v34  ;;  %v5220_v7 = vpop.f32.mrb[221].mxu1 }
 0xbc8   :  { %12381 = vst [vmem:[#allocation37_spill] sm:$0xff] %v11213_v33  ;;  %v5221_v35 = vadd.f32 %v5220_v7, %v10860_v21  ;;  %v5222_v48 = vpop.f32.mrb[222].mxu1  ;;  %5576 = vmatprep.subr.bf16.mxu0 %v11213_v33 }
 0xbc9   :  { %v5223_v42 = vadd.f32 %v5222_v48, %v10856_v34  ;;  %v5224_v0 = vpop.f32.mrb[223].mxu1  ;;  %5577 = vmatpush1.bf16.msra.mxu0 %v11211_v54  ;;  %v5363_v31 = vmax.f32 %v5219_v24, 0.0 }
 0xbca   :  { %v5225_v5 = vadd.f32 %v5224_v0, %v10860_v21  ;;  %v5364_v57 = vmax.f32 %v5221_v35, 0.0 }
 0xbcb   :  { %v5365_v52 = vmax.f32 %v5223_v42, 0.0 }
 0xbcc   :  { %v5366_v43 = vmax.f32 %v5225_v5, 0.0 }
 0xbcd   :  { %v11221_v1 = vpack.c.bf16 %v5365_v52, %v5363_v31 }
 0xbce   :  { %v11223_v47 = vpack.c.bf16 %v5366_v43, %v5364_v57  ;;  %v5228_v26 = vpop.f32.mrb[224].mxu1 }
 0xbcf   :  { %12382 = vst [vmem:[#allocation40_spill] sm:$0xff] %v11221_v1  ;;  %v5229_v17 = vadd.f32 %v5228_v26, %v10856_v34  ;;  %v5230_v7 = vpop.f32.mrb[225].mxu1 }
 0xbd0   :  { %12383 = vst [vmem:[#allocation39_spill] sm:$0xff] %v11223_v47  ;;  %v5231_v33 = vadd.f32 %v5230_v7, %v10860_v21  ;;  %v5232_v48 = vpop.f32.mrb[226].mxu1  ;;  %5578 = vmatprep.subr.bf16.mxu0 %v11223_v47 }
 0xbd1   :  { %v5233_v54 = vadd.f32 %v5232_v48, %v10856_v34  ;;  %v5234_v0 = vpop.f32.mrb[227].mxu1  ;;  %5579 = vmatpush1.bf16.msra.mxu0 %v11221_v1  ;;  %v5367_v35 = vmax.f32 %v5229_v17, 0.0 }
 0xbd2   :  { %v5235_v42 = vadd.f32 %v5234_v0, %v10860_v21  ;;  %v5368_v5 = vmax.f32 %v5231_v33, 0.0 }
 0xbd3   :  { %v5369_v24 = vmax.f32 %v5233_v54, 0.0 }
 0xbd4   :  { %v5370_v31 = vmax.f32 %v5235_v42, 0.0 }
 0xbd5   :  { %v11231_v52 = vpack.c.bf16 %v5369_v24, %v5367_v35 }
 0xbd6   :  { %v11233_v57 = vpack.c.bf16 %v5370_v31, %v5368_v5  ;;  %v5238_v43 = vpop.f32.mrb[228].mxu1  ;;  %v9272_v31 = vld [vmem:[#allocation2 + $0x704] ss:$8 sps:$4 sm:$0xff]  }
 0xbd7   :  { %v5239_v26 = vadd.f32 %v5238_v43, %v10856_v34  ;;  %v5240_v7 = vpop.f32.mrb[229].mxu1  ;;  %v9270_v43 = vld [vmem:[#allocation2 + $0x700] ss:$8 sps:$4 sm:$0xff]  }
 0xbd8   :  { %v5241_v47 = vadd.f32 %v5240_v7, %v10860_v21  ;;  %v5242_v48 = vpop.f32.mrb[230].mxu1  ;;  %5580 = vmatprep.subr.bf16.mxu0 %v11233_v57  ;;  %v9276_v7 = vld [vmem:[#allocation2 + $0x720] ss:$8 sps:$4 sm:$0xff]  }
 0xbd9   :  { %v5243_v1 = vadd.f32 %v5242_v48, %v10856_v34  ;;  %v5244_v0 = vpop.f32.mrb[231].mxu1  ;;  %5581 = vmatpush1.bf16.msra.mxu0 %v11231_v52  ;;  %v5371_v33 = vmax.f32 %v5239_v26, 0.0  ;;  %v9275_v34 = vld [vmem:[#allocation2 + $0x714] ss:$8 sps:$4 sm:$0xff]   ;;  %v9278_v26 = vld [vmem:[#allocation2 + $0x724] ss:$8 sps:$4 sm:$0xff]  }
 0xbda   :  { %v5245_v54 = vadd.f32 %v5244_v0, %v10860_v21  ;;  %v5372_v42 = vmax.f32 %v5241_v47, 0.0  ;;  %v9527_v21 = vld [vmem:[%s12166_s1 + $0x8] ss:$16 sps:$4 sm:$0xff]   ;;  %v9528_v47 = vld [vmem:[%s12166_s1 + $0x2c] ss:$16 sps:$4 sm:$0xff]  }
 0xbdb   :  { %v5373_v17 = vmax.f32 %v5243_v1, 0.0  ;;  %v9273_v1 = vld [vmem:[#allocation2 + $0x710] ss:$8 sps:$4 sm:$0xff]   ;;  %v9281_v48 = vld [vmem:[#allocation2 + $0x734] ss:$8 sps:$4 sm:$0xff]  }
 0xbdc   :  { %v5374_v35 = vmax.f32 %v5245_v54, 0.0  ;;  %v9529_v0 = vld [vmem:[%s12166_s1 + $0x28] ss:$16 sps:$4 sm:$0xff]  }
 0xbdd   :  { %v11241_v24 = vpack.c.bf16 %v5373_v17, %v5371_v33  ;;  %v9279_v54 = vld [vmem:[#allocation2 + $0x730] ss:$8 sps:$4 sm:$0xff]   ;;  %v9530_v33 = vld [vmem:[%s12166_s1 + $0x4c] ss:$16 sps:$4 sm:$0xff]  }
 0xbde   :  { %v11243_v5 = vpack.c.bf16 %v5374_v35, %v5372_v42  ;;  %v9284_v17 = vld [vmem:[#allocation2 + $0x744] ss:$8 sps:$4 sm:$0xff]   ;;  %v9282_v42 = vld [vmem:[#allocation2 + $0x740] ss:$8 sps:$4 sm:$0xff]   ;;  %v9287_v35 = vld [vmem:[#allocation2 + $0x754] ss:$8 sps:$4 sm:$0xff]  }
 0xbe0   :  { %5582 = vmatprep.subr.bf16.mxu0 %v11243_v5 }
 0xbe1   :  { %5583 = vmatpush1.bf16.msra.mxu0 %v11241_v24 }
 0xbe2   :  { %5871 = vmatprep.subr.bf16.mxu0 %v9272_v31  ;;  %v9531_v31 = vld [vmem:[%s12166_s1 + $0x48] ss:$16 sps:$4 sm:$0xff]  }
 0xbe4   :  { %5585 = vmatmul.mubr.bf16.vlgmr.msra.gmra.mrb[16].mxu0 %v9527_v21  ;;  %v9290_v21 = vld [vmem:[#allocation2 + $0x764] ss:$8 sps:$4 sm:$0xff]  }
 0xbe5   :  { %5872 = vmatpush1.bf16.msra.mxu0 %v9270_v43  ;;  %5594 = vmatprep.mubr.bf16.mxu0 %v9528_v47  ;;  %v9285_v43 = vld [vmem:[#allocation2 + $0x750] ss:$8 sps:$4 sm:$0xff]   ;;  %v9293_v47 = vld [vmem:[#allocation2 + $0x774] ss:$8 sps:$4 sm:$0xff]  }
 0xbe6   :  { %5873 = vmatprep.subr.bf16.mxu0 %v9275_v34  ;;  %v9532_v34 = vld [vmem:[%s12166_s1 + $0x6c] ss:$16 sps:$4 sm:$0xff]  }
 0xbe9   :  { %5874 = vmatpush1.bf16.msra.mxu0 %v9273_v1  ;;  %v9288_v1 = vld [vmem:[#allocation2 + $0x760] ss:$8 sps:$4 sm:$0xff]  }
 0xbea   :  { %5875 = vmatprep.subr.bf16.mxu0 %v9278_v26  ;;  %v9533_v26 = vld [vmem:[%s12166_s1 + $0x68] ss:$16 sps:$4 sm:$0xff]  }
 0xbec   :  { %5595 = vmatmul.mubr.bf16.gmra.mrb[20].mxu0 %v9529_v0  ;;  %v9296_v0 = vld [vmem:[#allocation2 + $0x784] ss:$8 sps:$4 sm:$0xff]  }
 0xbed   :  { %5876 = vmatpush1.bf16.msra.mxu0 %v9276_v7  ;;  %5604 = vmatprep.mubr.bf16.mxu0 %v9530_v33  ;;  %v9291_v7 = vld [vmem:[#allocation2 + $0x770] ss:$8 sps:$4 sm:$0xff]   ;;  %v9299_v33 = vld [vmem:[#allocation2 + $0x794] ss:$8 sps:$4 sm:$0xff]  }
 0xbee   :  { %5877 = vmatprep.subr.bf16.mxu0 %v9281_v48  ;;  %v9534_v48 = vld [vmem:[%s12166_s1 + $0x8c] ss:$16 sps:$4 sm:$0xff]  }
 0xbf1   :  { %5878 = vmatpush1.bf16.msra.mxu0 %v9279_v54  ;;  %v9294_v54 = vld [vmem:[#allocation2 + $0x780] ss:$8 sps:$4 sm:$0xff]  }
 0xbf2   :  { %5879 = vmatprep.subr.bf16.mxu0 %v9284_v17  ;;  %v9535_v17 = vld [vmem:[%s12166_s1 + $0x88] ss:$16 sps:$4 sm:$0xff]  }
 0xbf4   :  { %5605 = vmatmul.mubr.bf16.gmra.mrb[24].mxu0 %v9531_v31  ;;  %v9302_v31 = vld [vmem:[#allocation2 + $0x7a4] ss:$8 sps:$4 sm:$0xff]  }
 0xbf5   :  { %5880 = vmatpush1.bf16.msra.mxu0 %v9282_v42  ;;  %5614 = vmatprep.mubr.bf16.mxu0 %v9532_v34  ;;  %v9297_v42 = vld [vmem:[#allocation2 + $0x790] ss:$8 sps:$4 sm:$0xff]   ;;  %v9305_v34 = vld [vmem:[#allocation2 + $0x7b4] ss:$8 sps:$4 sm:$0xff]  }
 0xbf6   :  { %5881 = vmatprep.subr.bf16.mxu0 %v9287_v35  ;;  %v9536_v35 = vld [vmem:[%s12166_s1 + $0xac] ss:$16 sps:$4 sm:$0xff]  }
 0xbf9   :  { %5882 = vmatpush1.bf16.msra.mxu0 %v9285_v43  ;;  %v9300_v43 = vld [vmem:[#allocation2 + $0x7a0] ss:$8 sps:$4 sm:$0xff]  }
 0xbfa   :  { %5883 = vmatprep.subr.bf16.mxu0 %v9290_v21  ;;  %v9537_v21 = vld [vmem:[%s12166_s1 + $0xa8] ss:$16 sps:$4 sm:$0xff]  }
 0xbfc   :  { %5615 = vmatmul.mubr.bf16.gmra.mrb[28].mxu0 %v9533_v26  ;;  %v9308_v26 = vld [vmem:[#allocation2 + $0x7c4] ss:$8 sps:$4 sm:$0xff]  }
 0xbfd   :  { %5884 = vmatpush1.bf16.msra.mxu0 %v9288_v1  ;;  %5624 = vmatprep.mubr.bf16.mxu0 %v9534_v48  ;;  %v9303_v1 = vld [vmem:[#allocation2 + $0x7b0] ss:$8 sps:$4 sm:$0xff]   ;;  %v9311_v48 = vld [vmem:[#allocation2 + $0x7d4] ss:$8 sps:$4 sm:$0xff]  }
 0xbfe   :  { %5885 = vmatprep.subr.bf16.mxu0 %v9293_v47  ;;  %v9538_v47 = vld [vmem:[%s12166_s1 + $0xcc] ss:$16 sps:$4 sm:$0xff]  }
 0xc01   :  { %5886 = vmatpush1.bf16.msra.mxu0 %v9291_v7  ;;  %v9306_v7 = vld [vmem:[#allocation2 + $0x7c0] ss:$8 sps:$4 sm:$0xff]  }
 0xc02   :  { %5887 = vmatprep.subr.bf16.mxu0 %v9296_v0  ;;  %v9539_v0 = vld [vmem:[%s12166_s1 + $0xc8] ss:$16 sps:$4 sm:$0xff]  }
 0xc04   :  { %5625 = vmatmul.mubr.bf16.gmra.mrb[32].mxu0 %v9535_v17  ;;  %v9314_v17 = vld [vmem:[#allocation2 + $0x7e4] ss:$8 sps:$4 sm:$0xff]  }
 0xc05   :  { %5888 = vmatpush1.bf16.msra.mxu0 %v9294_v54  ;;  %5634 = vmatprep.mubr.bf16.mxu0 %v9536_v35  ;;  %v9309_v54 = vld [vmem:[#allocation2 + $0x7d0] ss:$8 sps:$4 sm:$0xff]   ;;  %v9317_v35 = vld [vmem:[#allocation2 + $0x7f4] ss:$8 sps:$4 sm:$0xff]  }
 0xc06   :  { %5889 = vmatprep.subr.bf16.mxu0 %v9299_v33  ;;  %v9540_v33 = vld [vmem:[%s12166_s1 + $0xec] ss:$16 sps:$4 sm:$0xff]  }
 0xc09   :  { %5890 = vmatpush1.bf16.msra.mxu0 %v9297_v42  ;;  %v9312_v42 = vld [vmem:[#allocation2 + $0x7e0] ss:$8 sps:$4 sm:$0xff]  }
 0xc0a   :  { %5891 = vmatprep.subr.bf16.mxu0 %v9302_v31  ;;  %v9541_v31 = vld [vmem:[%s12166_s1 + $0xe8] ss:$16 sps:$4 sm:$0xff]  }
 0xc0c   :  { %5635 = vmatmul.mubr.bf16.gmra.mrb[36].mxu0 %v9537_v21  ;;  %v9318_v21 = vld [vmem:[#allocation2 + $0x900] ss:$8 sps:$4 sm:$0xff]  }
 0xc0d   :  { %5892 = vmatpush1.bf16.msra.mxu0 %v9300_v43  ;;  %5644 = vmatprep.mubr.bf16.mxu0 %v9538_v47  ;;  %v9315_v43 = vld [vmem:[#allocation2 + $0x7f0] ss:$8 sps:$4 sm:$0xff]  }
 0xc0e   :  { %5893 = vmatprep.subr.bf16.mxu0 %v9305_v34  ;;  %v9320_v34 = vld [vmem:[#allocation2 + $0x904] ss:$8 sps:$4 sm:$0xff]   ;;  %v9321_v47 = vld [vmem:[#allocation2 + $0x910] ss:$8 sps:$4 sm:$0xff]  }
 0xc11   :  { %5894 = vmatpush1.bf16.msra.mxu0 %v9303_v1  ;;  %v9323_v1 = vld [vmem:[#allocation2 + $0x914] ss:$8 sps:$4 sm:$0xff]  }
 0xc12   :  { %5895 = vmatprep.subr.bf16.mxu0 %v9308_v26  ;;  %v9326_v26 = vld [vmem:[#allocation2 + $0x924] ss:$8 sps:$4 sm:$0xff]  }
 0xc14   :  { %5645 = vmatmul.mubr.bf16.gmra.mrb[40].mxu0 %v9539_v0  ;;  %v9332_v0 = vld [vmem:[#allocation2 + $0x944] ss:$8 sps:$4 sm:$0xff]  }
 0xc15   :  { %5896 = vmatpush1.bf16.msra.mxu0 %v9306_v7  ;;  %5654 = vmatprep.mubr.bf16.mxu0 %v9540_v33  ;;  %v9324_v7 = vld [vmem:[#allocation2 + $0x920] ss:$8 sps:$4 sm:$0xff]   ;;  %v9338_v33 = vld [vmem:[#allocation2 + $0x964] ss:$8 sps:$4 sm:$0xff]  }
 0xc16   :  { %5897 = vmatprep.subr.bf16.mxu0 %v9311_v48  ;;  %v9329_v48 = vld [vmem:[#allocation2 + $0x934] ss:$8 sps:$4 sm:$0xff]  }
 0xc19   :  { %5898 = vmatpush1.bf16.msra.mxu0 %v9309_v54  ;;  %v9333_v54 = vld [vmem:[#allocation2 + $0x950] ss:$8 sps:$4 sm:$0xff]  }
 0xc1a   :  { %5899 = vmatprep.subr.bf16.mxu0 %v9314_v17  ;;  %v9339_v17 = vld [vmem:[#allocation2 + $0x970] ss:$8 sps:$4 sm:$0xff]  }
 0xc1c   :  { %5655 = vmatmul.mubr.bf16.gmra.mrb[44].mxu0 %v9541_v31  ;;  %v9350_v31 = vld [vmem:[#allocation2 + $0x9a4] ss:$8 sps:$4 sm:$0xff]  }
 0xc1d   :  { %5900 = vmatpush1.bf16.msra.mxu0 %v9312_v42  ;;  %5903 = vmatprep.mubr.bf16.mxu0 %v10470_v16  ;;  %v9327_v16 = vld [vmem:[#allocation2 + $0x930] ss:$8 sps:$4 sm:$0xff]   ;;  %v9344_v42 = vld [vmem:[#allocation2 + $0x984] ss:$8 sps:$4 sm:$0xff]  }
 0xc1e   :  { %5901 = vmatprep.subr.bf16.mxu0 %v9317_v35  ;;  %v9345_v35 = vld [vmem:[#allocation2 + $0x990] ss:$8 sps:$4 sm:$0xff]  }
 0xc21   :  { %5902 = vmatpush1.bf16.msra.mxu0 %v9315_v43  ;;  %v9351_v43 = vld [vmem:[#allocation2 + $0x9b0] ss:$8 sps:$4 sm:$0xff]  }
 0xc22   :  { %6598 = vmatprep.subr.bf16.mxu0 %v9320_v34  ;;  %v9356_v34 = vld [vmem:[#allocation2 + $0x9c4] ss:$8 sps:$4 sm:$0xff]  }
 0xc24   :  { %5904 = vmatmul.mubr.bf16.vlgmr.msra.gmra.mrb[16].mxu0 %v10468_v8  ;;  %v9330_v8 = vld [vmem:[#allocation2 + $0x940] ss:$8 sps:$4 sm:$0xff]  }
 0xc25   :  { %5913 = vmatprep.mubr.bf16.mxu0 %v10480_v3  ;;  %6599 = vmatpush1.bf16.msra.mxu0 %v9318_v21  ;;  %v9335_v3 = vld [vmem:[#allocation2 + $0x954] ss:$8 sps:$4 sm:$0xff]   ;;  %v9357_v21 = vld [vmem:[#allocation2 + $0x9d0] ss:$8 sps:$4 sm:$0xff]  }
 0xc26   :  { %6600 = vmatprep.subr.bf16.mxu0 %v9323_v1  ;;  %v9362_v1 = vld [vmem:[#allocation2 + $0x9e4] ss:$8 sps:$4 sm:$0xff]  }
 0xc29   :  { %6601 = vmatpush1.bf16.msra.mxu0 %v9321_v47  ;;  %v9363_v47 = vld [vmem:[#allocation2 + $0x9f0] ss:$8 sps:$4 sm:$0xff]  }
 0xc2a   :  { %6602 = vmatprep.subr.bf16.mxu0 %v9326_v26 }
 0xc2c   :  { %5914 = vmatmul.mubr.bf16.gmra.mrb[20].mxu0 %v10478_v29  ;;  %v9336_v29 = vld [vmem:[#allocation2 + $0x960] ss:$8 sps:$4 sm:$0xff]  }
 0xc2d   :  { %5923 = vmatprep.mubr.bf16.mxu0 %v10490_v37  ;;  %6603 = vmatpush1.bf16.msra.mxu0 %v9324_v7  ;;  %v9341_v37 = vld [vmem:[#allocation2 + $0x974] ss:$8 sps:$4 sm:$0xff]  }
 0xc2e   :  { %6604 = vmatprep.subr.bf16.mxu0 %v9329_v48 }
 0xc31   :  { %6605 = vmatpush1.bf16.msra.mxu0 %v9327_v16 }
 0xc32   :  { %6606 = vmatprep.subr.bf16.mxu0 %v9332_v0 }
 0xc34   :  { %5924 = vmatmul.mubr.bf16.gmra.mrb[24].mxu0 %v10488_v9  ;;  %v9342_v9 = vld [vmem:[#allocation2 + $0x980] ss:$8 sps:$4 sm:$0xff]  }
 0xc35   :  { %5933 = vmatprep.mubr.bf16.mxu0 %v10500_v30  ;;  %6607 = vmatpush1.bf16.msra.mxu0 %v9330_v8  ;;  %v9347_v30 = vld [vmem:[#allocation2 + $0x994] ss:$8 sps:$4 sm:$0xff]  }
 0xc36   :  { %6608 = vmatprep.subr.bf16.mxu0 %v9335_v3 }
 0xc39   :  { %6609 = vmatpush1.bf16.msra.mxu0 %v9333_v54 }
 0xc3a   :  { %6610 = vmatprep.subr.bf16.mxu0 %v9338_v33 }
 0xc3c   :  { %5934 = vmatmul.mubr.bf16.gmra.mrb[28].mxu0 %v10498_v59  ;;  %v9348_v59 = vld [vmem:[#allocation2 + $0x9a0] ss:$8 sps:$4 sm:$0xff]  }
 0xc3d   :  { %5943 = vmatprep.mubr.bf16.mxu0 %v10510_v62  ;;  %6611 = vmatpush1.bf16.msra.mxu0 %v9336_v29  ;;  %v9353_v62 = vld [vmem:[#allocation2 + $0x9b4] ss:$8 sps:$4 sm:$0xff]   ;;  %v12398_v29 = vld [vmem:[#allocation22_spill] sm:$0xff] }
 0xc3e   :  { %6612 = vmatprep.subr.bf16.mxu0 %v9341_v37 }
 0xc41   :  { %6613 = vmatpush1.bf16.msra.mxu0 %v9339_v17 }
 0xc42   :  { %6614 = vmatprep.subr.bf16.mxu0 %v9344_v42  ;;  %v12399_v42 = vld [vmem:[#allocation23_spill] sm:$0xff] }
 0xc44   :  { %5944 = vmatmul.mubr.bf16.gmra.mrb[32].mxu0 %v10508_v53  ;;  %v9354_v53 = vld [vmem:[#allocation2 + $0x9c0] ss:$8 sps:$4 sm:$0xff]  }
 0xc45   :  { %5953 = vmatprep.mubr.bf16.mxu0 %v10520_v41  ;;  %6615 = vmatpush1.bf16.msra.mxu0 %v9342_v9  ;;  %v9359_v41 = vld [vmem:[#allocation2 + $0x9d4] ss:$8 sps:$4 sm:$0xff]  }
 0xc46   :  { %6616 = vmatprep.subr.bf16.mxu0 %v9347_v30 }
 0xc49   :  { %6617 = vmatpush1.bf16.msra.mxu0 %v9345_v35 }
 0xc4a   :  { %6618 = vmatprep.subr.bf16.mxu0 %v9350_v31 }
 0xc4c   :  { %5954 = vmatmul.mubr.bf16.gmra.mrb[36].mxu0 %v10518_v60  ;;  %v9360_v60 = vld [vmem:[#allocation2 + $0x9e0] ss:$8 sps:$4 sm:$0xff]  }
 0xc4d   :  { %5963 = vmatprep.mubr.bf16.mxu0 %v10530_v14  ;;  %6619 = vmatpush1.bf16.msra.mxu0 %v9348_v59  ;;  %v9365_v14 = vld [vmem:[#allocation2 + $0x9f4] ss:$8 sps:$4 sm:$0xff]  }
 0xc4e   :  { %6620 = vmatprep.subr.bf16.mxu0 %v9353_v62 }
 0xc51   :  { %6621 = vmatpush1.bf16.msra.mxu0 %v9351_v43 }
 0xc52   :  { %6622 = vmatprep.subr.bf16.mxu0 %v9356_v34 }
 0xc54   :  { %5964 = vmatmul.mubr.bf16.gmra.mrb[40].mxu0 %v10528_v51  ;;  %v12384_v51 = vld [vmem:[#allocation10_spill] sm:$0xff] }
 0xc55   :  { %5973 = vmatprep.mubr.bf16.mxu0 %v10540_v23  ;;  %6623 = vmatpush1.bf16.msra.mxu0 %v9354_v53  ;;  %v12386_v23 = vld [vmem:[#allocation12_spill] sm:$0xff] }
 0xc56   :  { %6624 = vmatprep.subr.bf16.mxu0 %v9359_v41 }
 0xc59   :  { %6625 = vmatpush1.bf16.msra.mxu0 %v9357_v21 }
 0xc5a   :  { %6626 = vmatprep.subr.bf16.mxu0 %v9362_v1 }
 0xc5c   :  { %5974 = vmatmul.mubr.bf16.gmra.mrb[44].mxu0 %v10538_v39  ;;  %v12385_v39 = vld [vmem:[#allocation11_spill] sm:$0xff] }
 0xc5d   :  { %6627 = vmatpush1.bf16.msra.mxu0 %v9360_v60  ;;  %6630 = vmatprep.mubr.bf16.mxu0 %v10872_v36  ;;  %v12388_v36 = vld [vmem:[#allocation14_spill] sm:$0xff]  ;;  %v12400_v60 = vld [vmem:[#allocation24_spill] sm:$0xff] }
 0xc5e   :  { %6628 = vmatprep.subr.bf16.mxu0 %v9365_v14 }
 0xc61   :  { %6629 = vmatpush1.bf16.msra.mxu0 %v9363_v47 }
 0xc64   :  { %6631 = vmatmul.mubr.bf16.vlgmr.msra.gmra.mrb[48].mxu0 %v10870_v56  ;;  %v12387_v56 = vld [vmem:[#allocation13_spill] sm:$0xff] }
 0xc65   :  { %6640 = vmatprep.mubr.bf16.mxu0 %v10886_v38  ;;  %v12390_v38 = vld [vmem:[#allocation16_spill] sm:$0xff] }
 0xc6c   :  { %6641 = vmatmul.mubr.bf16.gmra.mrb[52].mxu0 %v10884_v20  ;;  %v12389_v20 = vld [vmem:[#allocation15_spill] sm:$0xff] }
 0xc6d   :  { %6650 = vmatprep.mubr.bf16.mxu0 %v10900_v50  ;;  %v5699_v50 = vld [vmem:[#allocation4 + $0xe] sm:$0x3] }
 0xc74   :  { %6651 = vmatmul.mubr.bf16.gmra.mrb[56].mxu0 %v10898_v15  ;;  %v12391_v15 = vld [vmem:[#allocation17_spill] sm:$0xff] }
 0xc75   :  { %6660 = vmatprep.mubr.bf16.mxu0 %v10914_v63  ;;  %v12393_v63 = vld [vmem:[#allocation8_spill] sm:$0xff] }
 0xc7c   :  { %6661 = vmatmul.mubr.bf16.gmra.mrb[60].mxu0 %v10912_v44  ;;  %v12392_v44 = vld [vmem:[#allocation18_spill] sm:$0xff] }
 0xc7d   :  { %6670 = vmatprep.mubr.bf16.mxu0 %v10925_v55  ;;  %v12394_v55 = vld [vmem:[#allocation19_spill] sm:$0xff] }
 0xc84   :  { %6671 = vmatmul.mubr.bf16.gmra.mrb[64].mxu0 %v10923_v11  ;;  %v11347_v11 = vrot.slane %v5699_v50, %v12393_v63 }
 0xc85   :  { %6680 = vmatprep.mubr.bf16.mxu0 %v10935_v61 }
 0xc8c   :  { %6681 = vmatmul.mubr.bf16.gmra.mrb[68].mxu0 %v10933_v46  ;;  %v12395_v46 = vld [vmem:[#allocation9_spill] sm:$0xff] }
 0xc8d   :  { %6690 = vmatprep.mubr.bf16.mxu0 %v10945_v58  ;;  %v11351_v61 = vrot.slane %v5699_v50, %v12395_v46 }
 0xc94   :  { %6691 = vmatmul.mubr.bf16.gmra.mrb[72].mxu0 %v10943_v22 }
 0xc95   :  { %6700 = vmatprep.mubr.bf16.mxu0 %v10955_v13 }
 0xc9c   :  { %6701 = vmatmul.mubr.bf16.gmra.mrb[76].mxu0 %v10953_v27 }
 0xc9d   :  { %6710 = vmatprep.mubr.bf16.mxu0 %v10965_v10 }
 0xca4   :  { %6711 = vmatmul.mubr.bf16.gmra.mrb[80].mxu0 %v10963_v32 }
 0xca5   :  { %6720 = vmatprep.mubr.bf16.mxu0 %v10975_v12 }
 0xcac   :  { %6721 = vmatmul.mubr.bf16.gmra.mrb[84].mxu0 %v10973_v2 }
 0xcad   :  { %6730 = vmatprep.mubr.bf16.mxu0 %v10985_v28 }
 0xcb4   :  { %6731 = vmatmul.mubr.bf16.gmra.mrb[88].mxu0 %v10983_v19 }
 0xcb5   :  { %6740 = vmatprep.mubr.bf16.mxu0 %v10995_v45 }
 0xcbc   :  { %6741 = vmatmul.mubr.bf16.gmra.mrb[92].mxu0 %v10993_v25  ;;  %v12396_v25 = vld [vmem:[#allocation20_spill] sm:$0xff] }
 0xcbd   :  { %6750 = vmatprep.mubr.bf16.mxu0 %v11005_v6  ;;  %v12397_v6 = vld [vmem:[#allocation21_spill] sm:$0xff] }
 0xcc4   :  { %6751 = vmatmul.mubr.bf16.gmra.mrb[96].mxu0 %v11003_v40 }
 0xcc5   :  { %6760 = vmatprep.mubr.bf16.mxu0 %v11015_v18 }
 0xccc   :  { %6761 = vmatmul.mubr.bf16.gmra.mrb[100].mxu0 %v11013_v4 }
 0xccd   :  { %6770 = vmatprep.mubr.bf16.mxu0 %v11025_v49 }
 0xcd4   :  { %6771 = vmatmul.mubr.bf16.gmra.mrb[104].mxu0 %v12384_v51  ;;  %v12401_v51 = vld [vmem:[#allocation25_spill] sm:$0xff] }
 0xcd5   :  { %6780 = vmatprep.mubr.bf16.mxu0 %v12385_v39 }
 0xcdc   :  { %6781 = vmatmul.mubr.bf16.gmra.mrb[108].mxu0 %v12386_v23 }
 0xcdd   :  { %6790 = vmatprep.mubr.bf16.mxu0 %v12387_v56 }
 0xce4   :  { %6791 = vmatmul.mubr.bf16.gmra.mrb[112].mxu0 %v12388_v36 }
 0xce5   :  { %6800 = vmatprep.mubr.bf16.mxu0 %v12389_v20 }
 0xcec   :  { %6801 = vmatmul.mubr.bf16.gmra.mrb[116].mxu0 %v12390_v38 }
 0xced   :  { %6810 = vmatprep.mubr.bf16.mxu0 %v12391_v15 }
 0xcf4   :  { %6811 = vmatmul.mubr.bf16.gmra.mrb[120].mxu0 %v12392_v44 }
 0xcf5   :  { %6820 = vmatprep.mubr.bf16.mxu0 %v12394_v55 }
 0xcf7   :  { %v5905_v22 = vpop.f32.mrb[16].mxu0 }
 0xcf8   :  { %v5906_v58 = vadd.f32 %v5905_v22, %v11347_v11  ;;  %v5907_v27 = vpop.f32.mrb[17].mxu0 }
 0xcf9   :  { %v5908_v13 = vadd.f32 %v5907_v27, %v11351_v61  ;;  %v5909_v32 = vpop.f32.mrb[18].mxu0  ;;  %v12402_v27 = vld [vmem:[#allocation26_spill] sm:$0xff] }
 0xcfa   :  { %v5910_v10 = vadd.f32 %v5909_v32, %v11347_v11  ;;  %v5911_v2 = vpop.f32.mrb[19].mxu0  ;;  %v6016_v19 = vmax.f32 %v5906_v58, 0.0 }
 0xcfb   :  { %v5912_v12 = vadd.f32 %v5911_v2, %v11351_v61  ;;  %v6017_v45 = vmax.f32 %v5908_v13, 0.0 }
 0xcfc   :  { %v6018_v28 = vmax.f32 %v5910_v10, 0.0  ;;  %6821 = vmatmul.mubr.bf16.gmra.mrb[124].mxu0 %v12396_v25  ;;  %v12403_v10 = vld [vmem:[#allocation27_spill] sm:$0xff] }
 0xcfd   :  { %v6019_v40 = vmax.f32 %v5912_v12, 0.0  ;;  %6830 = vmatprep.mubr.bf16.mxu0 %v12397_v6 }
 0xcfe   :  { %v11359_v4 = vpack.c.bf16 %v6018_v28, %v6016_v19 }
 0xcff   :  { %v11361_v18 = vpack.c.bf16 %v6019_v40, %v6017_v45  ;;  %v5915_v49 = vpop.f32.mrb[20].mxu0 }
 0xd00   :  { %v5916_v26 = vadd.f32 %v5915_v49, %v11347_v11  ;;  %v5917_v7 = vpop.f32.mrb[21].mxu0 }
 0xd01   :  { %v5918_v48 = vadd.f32 %v5917_v7, %v11351_v61  ;;  %v5919_v16 = vpop.f32.mrb[22].mxu0  ;;  %6064 = vmatprep.subr.bf16.mxu1 %v11361_v18 }
 0xd02   :  { %v5920_v0 = vadd.f32 %v5919_v16, %v11347_v11  ;;  %v5921_v8 = vpop.f32.mrb[23].mxu0  ;;  %6065 = vmatpush1.bf16.msra.mxu1 %v11359_v4  ;;  %v6020_v54 = vmax.f32 %v5916_v26, 0.0  ;;  %v12404_v16 = vld [vmem:[#allocation28_spill] sm:$0xff] }
 0xd03   :  { %v5922_v3 = vadd.f32 %v5921_v8, %v11351_v61  ;;  %v6021_v37 = vmax.f32 %v5918_v48, 0.0 }
 0xd04   :  { %v6022_v33 = vmax.f32 %v5920_v0, 0.0  ;;  %6831 = vmatmul.mubr.bf16.gmra.mrb[128].mxu0 %v12398_v29 }
 0xd05   :  { %v6023_v17 = vmax.f32 %v5922_v3, 0.0  ;;  %6840 = vmatprep.mubr.bf16.mxu0 %v12399_v42  ;;  %v12405_v3 = vld [vmem:[#allocation29_spill] sm:$0xff] }
 0xd06   :  { %v11371_v9 = vpack.c.bf16 %v6022_v33, %v6020_v54 }
 0xd07   :  { %v11373_v30 = vpack.c.bf16 %v6023_v17, %v6021_v37  ;;  %v5925_v35 = vpop.f32.mrb[24].mxu0 }
 0xd08   :  { %v5926_v31 = vadd.f32 %v5925_v35, %v11347_v11  ;;  %v5927_v59 = vpop.f32.mrb[25].mxu0 }
 0xd09   :  { %v5928_v62 = vadd.f32 %v5927_v59, %v11351_v61  ;;  %v5929_v43 = vpop.f32.mrb[26].mxu0  ;;  %6066 = vmatprep.subr.bf16.mxu1 %v11373_v30 }
 0xd0a   :  { %v5930_v34 = vadd.f32 %v5929_v43, %v11347_v11  ;;  %v5931_v53 = vpop.f32.mrb[27].mxu0  ;;  %6067 = vmatpush1.bf16.msra.mxu1 %v11371_v9  ;;  %v6024_v21 = vmax.f32 %v5926_v31, 0.0 }
 0xd0b   :  { %v5932_v41 = vadd.f32 %v5931_v53, %v11351_v61  ;;  %v6025_v14 = vmax.f32 %v5928_v62, 0.0  ;;  %v12406_v53 = vld [vmem:[#allocation30_spill] sm:$0xff] }
 0xd0c   :  { %v6026_v1 = vmax.f32 %v5930_v34, 0.0  ;;  %6841 = vmatmul.mubr.bf16.gmra.mrb[132].mxu0 %v12400_v60 }
 0xd0d   :  { %v6027_v47 = vmax.f32 %v5932_v41, 0.0  ;;  %6850 = vmatprep.mubr.bf16.mxu0 %v12401_v51 }
 0xd0e   :  { %v11383_v39 = vpack.c.bf16 %v6026_v1, %v6024_v21  ;;  %v12407_v1 = vld [vmem:[#allocation31_spill] sm:$0xff] }
 0xd0f   :  { %v11385_v23 = vpack.c.bf16 %v6027_v47, %v6025_v14  ;;  %v5935_v56 = vpop.f32.mrb[28].mxu0 }
 0xd10   :  { %v5936_v36 = vadd.f32 %v5935_v56, %v11347_v11  ;;  %v5937_v20 = vpop.f32.mrb[29].mxu0 }
 0xd11   :  { %v5938_v38 = vadd.f32 %v5937_v20, %v11351_v61  ;;  %v5939_v15 = vpop.f32.mrb[30].mxu0  ;;  %6068 = vmatprep.subr.bf16.mxu1 %v11385_v23 }
 0xd12   :  { %v5940_v50 = vadd.f32 %v5939_v15, %v11347_v11  ;;  %v5941_v44 = vpop.f32.mrb[31].mxu0  ;;  %6069 = vmatpush1.bf16.msra.mxu1 %v11383_v39  ;;  %v6028_v22 = vmax.f32 %v5936_v36, 0.0 }
 0xd13   :  { %v5942_v55 = vadd.f32 %v5941_v44, %v11351_v61  ;;  %v6029_v13 = vmax.f32 %v5938_v38, 0.0 }
 0xd14   :  { %v6030_v58 = vmax.f32 %v5940_v50, 0.0  ;;  %6851 = vmatmul.mubr.bf16.gmra.mrb[136].mxu0 %v12402_v27 }
 0xd15   :  { %v6031_v32 = vmax.f32 %v5942_v55, 0.0  ;;  %6860 = vmatprep.mubr.bf16.mxu0 %v12403_v10 }
 0xd16   :  { %v11395_v2 = vpack.c.bf16 %v6030_v58, %v6028_v22  ;;  %v12408_v22 = vld [vmem:[#allocation32_spill] sm:$0xff] }
 0xd17   :  { %v11397_v12 = vpack.c.bf16 %v6031_v32, %v6029_v13  ;;  %v5945_v19 = vpop.f32.mrb[32].mxu0  ;;  %v12409_v13 = vld [vmem:[#allocation33_spill] sm:$0xff] }
 0xd18   :  { %v5946_v28 = vadd.f32 %v5945_v19, %v11347_v11  ;;  %v5947_v25 = vpop.f32.mrb[33].mxu0 }
 0xd19   :  { %v5948_v45 = vadd.f32 %v5947_v25, %v11351_v61  ;;  %v5949_v40 = vpop.f32.mrb[34].mxu0  ;;  %6070 = vmatprep.subr.bf16.mxu1 %v11397_v12 }
 0xd1a   :  { %v5950_v6 = vadd.f32 %v5949_v40, %v11347_v11  ;;  %v5951_v49 = vpop.f32.mrb[35].mxu0  ;;  %6071 = vmatpush1.bf16.msra.mxu1 %v11395_v2  ;;  %v6032_v7 = vmax.f32 %v5946_v28, 0.0 }
 0xd1b   :  { %v5952_v26 = vadd.f32 %v5951_v49, %v11351_v61  ;;  %v6033_v0 = vmax.f32 %v5948_v45, 0.0 }
 0xd1c   :  { %v6034_v48 = vmax.f32 %v5950_v6, 0.0  ;;  %6861 = vmatmul.mubr.bf16.gmra.mrb[140].mxu0 %v12404_v16  ;;  %v6426_v6 = vld [vmem:[#allocation4 + $0x12] sm:$0x3] }
 0xd1d   :  { %v6035_v8 = vmax.f32 %v5952_v26, 0.0  ;;  %6870 = vmatprep.mubr.bf16.mxu0 %v12405_v3 }
 0xd1e   :  { %v11407_v54 = vpack.c.bf16 %v6034_v48, %v6032_v7 }
 0xd1f   :  { %v11409_v33 = vpack.c.bf16 %v6035_v8, %v6033_v0  ;;  %v5955_v29 = vpop.f32.mrb[36].mxu0  ;;  %v12410_v0 = vld [vmem:[#allocation34_spill] sm:$0xff]  ;;  %v11443_v8 = vrot.slane %v6426_v6, %v12393_v63 }
 0xd20   :  { %v5956_v37 = vadd.f32 %v5955_v29, %v11347_v11  ;;  %v5957_v17 = vpop.f32.mrb[37].mxu0 }
 0xd21   :  { %v5958_v42 = vadd.f32 %v5957_v17, %v11351_v61  ;;  %v5959_v35 = vpop.f32.mrb[38].mxu0  ;;  %6072 = vmatprep.subr.bf16.mxu1 %v11409_v33  ;;  %v11447_v17 = vrot.slane %v6426_v6, %v12395_v46  ;;  %v12417_v6 = vld [vmem:[#allocation54_spill] sm:$0xff] }
 0xd22   :  { %v5960_v31 = vadd.f32 %v5959_v35, %v11347_v11  ;;  %v5961_v59 = vpop.f32.mrb[39].mxu0  ;;  %6073 = vmatpush1.bf16.msra.mxu1 %v11407_v54  ;;  %v6036_v43 = vmax.f32 %v5956_v37, 0.0  ;;  %v12411_v37 = vld [vmem:[#allocation35_spill] sm:$0xff] }
 0xd23   :  { %v5962_v62 = vadd.f32 %v5961_v59, %v11351_v61  ;;  %v6037_v41 = vmax.f32 %v5958_v42, 0.0 }
 0xd24   :  { %v6038_v34 = vmax.f32 %v5960_v31, 0.0  ;;  %6871 = vmatmul.mubr.bf16.gmra.mrb[144].mxu0 %v12406_v53 }
 0xd25   :  { %v6039_v21 = vmax.f32 %v5962_v62, 0.0  ;;  %6880 = vmatprep.mubr.bf16.mxu0 %v12407_v1  ;;  %v9371_v1 = vld [vmem:[#allocation2 + $0x814] ss:$8 sps:$4 sm:$0xff]  }
 0xd26   :  { %v11419_v60 = vpack.c.bf16 %v6038_v34, %v6036_v43 }
 0xd27   :  { %v11421_v14 = vpack.c.bf16 %v6039_v21, %v6037_v41  ;;  %v5965_v47 = vpop.f32.mrb[40].mxu0  ;;  %v9366_v41 = vld [vmem:[#allocation2 + $0x800] ss:$8 sps:$4 sm:$0xff]  }
 0xd28   :  { %v5966_v51 = vadd.f32 %v5965_v47, %v11347_v11  ;;  %v5967_v56 = vpop.f32.mrb[41].mxu0  ;;  %v12412_v47 = vld [vmem:[#allocation36_spill] sm:$0xff] }
 0xd29   :  { %v5968_v36 = vadd.f32 %v5967_v56, %v11351_v61  ;;  %v5969_v20 = vpop.f32.mrb[42].mxu0  ;;  %6074 = vmatprep.subr.bf16.mxu1 %v11421_v14  ;;  %v12413_v56 = vld [vmem:[#allocation37_spill] sm:$0xff] }
 0xd2a   :  { %v5970_v38 = vadd.f32 %v5969_v20, %v11347_v11  ;;  %v5971_v15 = vpop.f32.mrb[43].mxu0  ;;  %6075 = vmatpush1.bf16.msra.mxu1 %v11419_v60  ;;  %v6040_v44 = vmax.f32 %v5966_v51, 0.0  ;;  %v9542_v51 = vld [vmem:[%s12167_s2] sm:$0xff]   ;;  %v12414_v20 = vmov 0  }
 0xd2b   :  { %v5972_v50 = vadd.f32 %v5971_v15, %v11351_v61  ;;  %v6041_v58 = vmax.f32 %v5968_v36, 0.0  ;;  %v9369_v36 = vld [vmem:[#allocation2 + $0x810] ss:$8 sps:$4 sm:$0xff]   ;;  %v9374_v15 = vld [vmem:[#allocation2 + $0x824] ss:$8 sps:$4 sm:$0xff]  }
 0xd2c   :  { %v6042_v55 = vmax.f32 %v5970_v38, 0.0  ;;  %6881 = vmatmul.mubr.bf16.gmra.mrb[148].mxu0 %v12408_v22 }
 0xd2d   :  { %v6043_v27 = vmax.f32 %v5972_v50, 0.0  ;;  %6890 = vmatprep.mubr.bf16.mxu0 %v12409_v13  ;;  %v9372_v13 = vld [vmem:[#allocation2 + $0x820] ss:$8 sps:$4 sm:$0xff]  }
 0xd2e   :  { %v11431_v32 = vpack.c.bf16 %v6042_v55, %v6040_v44 }
 0xd2f   :  { %v11433_v10 = vpack.c.bf16 %v6043_v27, %v6041_v58  ;;  %v5975_v19 = vpop.f32.mrb[44].mxu0 }
 0xd30   :  { %v5976_v28 = vadd.f32 %v5975_v19, %v11347_v11  ;;  %v5977_v25 = vpop.f32.mrb[45].mxu0 }
 0xd31   :  { %v5978_v45 = vadd.f32 %v5977_v25, %v11351_v61  ;;  %v5979_v40 = vpop.f32.mrb[46].mxu0  ;;  %6076 = vmatprep.subr.bf16.mxu1 %v11433_v10  ;;  %v12415_v25 = vld [vmem:[#allocation38_spill] sm:$0xff] }
 0xd32   :  { %v5980_v49 = vadd.f32 %v5979_v40, %v11347_v11  ;;  %v5981_v26 = vpop.f32.mrb[47].mxu0  ;;  %6077 = vmatpush1.bf16.msra.mxu1 %v11431_v32  ;;  %v6044_v48 = vmax.f32 %v5976_v28, 0.0  ;;  %v9377_v28 = vld [vmem:[#allocation2 + $0x834] ss:$8 sps:$4 sm:$0xff]  }
 0xd33   :  { %v5982_v7 = vadd.f32 %v5981_v26, %v11351_v61  ;;  %v6045_v3 = vmax.f32 %v5978_v45, 0.0  ;;  %v9368_v61 = vld [vmem:[#allocation2 + $0x804] ss:$8 sps:$4 sm:$0xff]   ;;  %v12416_v40 = vld [vmem:[#allocation39_spill] sm:$0xff] }
 0xd34   :  { %v6046_v16 = vmax.f32 %v5980_v49, 0.0  ;;  %6891 = vmatmul.mubr.bf16.gmra.mrb[152].mxu0 %v12410_v0  ;;  %v9543_v45 = vld [vmem:[%s12167_s2 + $0x8] sm:$0xff]   ;;  %v9375_v49 = vld [vmem:[#allocation2 + $0x830] ss:$8 sps:$4 sm:$0xff]  }
 0xd35   :  { %v6047_v29 = vmax.f32 %v5982_v7, 0.0  ;;  %6900 = vmatprep.mubr.bf16.mxu0 %v12411_v37  ;;  %v9380_v7 = vld [vmem:[#allocation2 + $0x844] ss:$8 sps:$4 sm:$0xff]  }
 0xd36   :  { %v11449_v11 = vpack.c.bf16 %v6046_v16, %v6044_v48 }
 0xd37   :  { %v11451_v42 = vpack.c.bf16 %v6047_v29, %v6045_v3  ;;  %v6632_v35 = vpop.f32.mrb[48].mxu0 }
 0xd38   :  { %v6633_v31 = vadd.f32 %v6632_v35, %v11443_v8  ;;  %v6634_v59 = vpop.f32.mrb[49].mxu0  ;;  %v9378_v35 = vld [vmem:[#allocation2 + $0x840] ss:$8 sps:$4 sm:$0xff]  }
 0xd39   :  { %v6635_v62 = vadd.f32 %v6634_v59, %v11447_v17  ;;  %6078 = vmatprep.subr.bf16.mxu1 %v11451_v42  ;;  %v6636_v43 = vpop.f32.mrb[50].mxu0  ;;  %v12418_v59 = vld [vmem:[#allocation40_spill] sm:$0xff] }
 0xd3a   :  { %6951 = vst [vmem:[%s12172_s7] sm:$0xff] %v6633_v31  ;;  %v6637_v34 = vadd.f32 %v6636_v43, %v11443_v8  ;;  %6079 = vmatpush1.bf16.msra.mxu1 %v11449_v11  ;;  %v6638_v53 = vpop.f32.mrb[51].mxu0  ;;  %v9383_v31 = vld [vmem:[#allocation2 + $0x854] ss:$8 sps:$4 sm:$0xff]  }
 0xd3b   :  { %6952 = vst [vmem:[%s12172_s7 + $0x8] sm:$0xff] %v6635_v62  ;;  %v6639_v21 = vadd.f32 %v6638_v53, %v11447_v17  ;;  %6323 = vmatprep.subr.bf16.mxu1 %v9368_v61  ;;  %v9381_v62 = vld [vmem:[#allocation2 + $0x850] ss:$8 sps:$4 sm:$0xff]  }
 0xd3c   :  { %6953 = vst [vmem:[%s12172_s7 + $0x10] sm:$0xff] %v6637_v34  ;;  %6901 = vmatmul.mubr.bf16.gmra.mrb[156].mxu0 %v12412_v47  ;;  %v9386_v34 = vld [vmem:[#allocation2 + $0x864] ss:$8 sps:$4 sm:$0xff]  }
 0xd3d   :  { %6954 = vst [vmem:[%s12172_s7 + $0x18] sm:$0xff] %v6639_v21  ;;  %6097 = vmatmul.mubr.bf16.vlgmr.msra.gmra.mrb[232].mxu1 %v9542_v51  ;;  %6910 = vmatprep.mubr.bf16.mxu0 %v12413_v56 }
 0xd3e   :  { %6324 = vmatpush1.bf16.msra.mxu1 %v9366_v41  ;;  %6106 = vmatprep.mubr.bf16.mxu1 %v12414_v20  ;;  %v9387_v20 = vld [vmem:[#allocation2 + $0x870] ss:$8 sps:$4 sm:$0xff]  }
 0xd3f   :  { %v6642_v38 = vpop.f32.mrb[52].mxu0  ;;  %6325 = vmatprep.subr.bf16.mxu1 %v9371_v1 }
 0xd40   :  { %v6643_v50 = vadd.f32 %v6642_v38, %v11443_v8  ;;  %v6644_v44 = vpop.f32.mrb[53].mxu0 }
 0xd41   :  { %v6645_v55 = vadd.f32 %v6644_v44, %v11447_v17  ;;  %v6646_v22 = vpop.f32.mrb[54].mxu0 }
 0xd42   :  { %6955 = vst [vmem:[%s12172_s7 + $0x20] sm:$0xff] %v6643_v50  ;;  %v6647_v58 = vadd.f32 %v6646_v22, %v11443_v8  ;;  %6326 = vmatpush1.bf16.msra.mxu1 %v9369_v36  ;;  %v6648_v27 = vpop.f32.mrb[55].mxu0  ;;  %v9389_v36 = vld [vmem:[#allocation2 + $0x874] ss:$8 sps:$4 sm:$0xff]  }
 0xd43   :  { %6956 = vst [vmem:[%s12172_s7 + $0x28] sm:$0xff] %v6645_v55  ;;  %v6649_v19 = vadd.f32 %v6648_v27, %v11447_v17  ;;  %6327 = vmatprep.subr.bf16.mxu1 %v9374_v15  ;;  %v9392_v15 = vld [vmem:[#allocation2 + $0x884] ss:$8 sps:$4 sm:$0xff]  }
 0xd44   :  { %6957 = vst [vmem:[%s12172_s7 + $0x30] sm:$0xff] %v6647_v58  ;;  %6911 = vmatmul.mubr.bf16.gmra.mrb[160].mxu0 %v12415_v25  ;;  %v9398_v25 = vld [vmem:[#allocation2 + $0x8a4] ss:$8 sps:$4 sm:$0xff]  }
 0xd45   :  { %6958 = vst [vmem:[%s12172_s7 + $0x38] sm:$0xff] %v6649_v19  ;;  %6107 = vmatmul.mubr.bf16.gmra.mrb[236].mxu1 %v9543_v45  ;;  %6920 = vmatprep.mubr.bf16.mxu0 %v12416_v40  ;;  %v9393_v19 = vld [vmem:[#allocation2 + $0x890] ss:$8 sps:$4 sm:$0xff]  }
 0xd46   :  { %6328 = vmatpush1.bf16.msra.mxu1 %v9372_v13  ;;  %6355 = vmatprep.mubr.bf16.mxu1 %v12417_v6  ;;  %v9395_v13 = vld [vmem:[#allocation2 + $0x894] ss:$8 sps:$4 sm:$0xff]  }
 0xd47   :  { %v6652_v26 = vpop.f32.mrb[56].mxu0  ;;  %6329 = vmatprep.subr.bf16.mxu1 %v9377_v28 }
 0xd48   :  { %v6653_v48 = vadd.f32 %v6652_v26, %v11443_v8  ;;  %v6654_v16 = vpop.f32.mrb[57].mxu0 }
 0xd49   :  { %v6655_v0 = vadd.f32 %v6654_v16, %v11447_v17  ;;  %v6656_v3 = vpop.f32.mrb[58].mxu0  ;;  %v9401_v16 = vld [vmem:[#allocation2 + $0x8b4] ss:$8 sps:$4 sm:$0xff]  }
 0xd4a   :  { %6959 = vst [vmem:[%s12172_s7 + $0x40] sm:$0xff] %v6653_v48  ;;  %v6657_v29 = vadd.f32 %v6656_v3, %v11443_v8  ;;  %6330 = vmatpush1.bf16.msra.mxu1 %v9375_v49  ;;  %v6658_v37 = vpop.f32.mrb[59].mxu0 }
 0xd4b   :  { %6960 = vst [vmem:[%s12172_s7 + $0x48] sm:$0xff] %v6655_v0  ;;  %v6659_v61 = vadd.f32 %v6658_v37, %v11447_v17  ;;  %6331 = vmatprep.subr.bf16.mxu1 %v9380_v7  ;;  %v9396_v7 = vld [vmem:[#allocation2 + $0x8a0] ss:$8 sps:$4 sm:$0xff]   ;;  %v9399_v0 = vld [vmem:[#allocation2 + $0x8b0] ss:$8 sps:$4 sm:$0xff]  }
 0xd4c   :  { %6961 = vst [vmem:[%s12172_s7 + $0x50] sm:$0xff] %v6657_v29  ;;  %6921 = vmatmul.mubr.bf16.gmra.mrb[164].mxu0 %v12418_v59  ;;  %v9404_v29 = vld [vmem:[#allocation2 + $0x8c4] ss:$8 sps:$4 sm:$0xff]  }
 0xd4d   :  { %6962 = vst [vmem:[%s12172_s7 + $0x58] sm:$0xff] %v6659_v61  ;;  %6930 = vmatprep.mubr.bf16.mxu0 %v11233_v57  ;;  %v9384_v57 = vld [vmem:[#allocation2 + $0x860] ss:$8 sps:$4 sm:$0xff]  }
 0xd4e   :  { %6332 = vmatpush1.bf16.msra.mxu1 %v9378_v35 }
 0xd4f   :  { %v6662_v43 = vpop.f32.mrb[60].mxu0  ;;  %6333 = vmatprep.subr.bf16.mxu1 %v9383_v31 }
 0xd50   :  { %v6663_v53 = vadd.f32 %v6662_v43, %v11443_v8  ;;  %v6664_v41 = vpop.f32.mrb[61].mxu0  ;;  %v9402_v43 = vld [vmem:[#allocation2 + $0x8c0] ss:$8 sps:$4 sm:$0xff]  }
 0xd51   :  { %v6665_v21 = vadd.f32 %v6664_v41, %v11447_v17  ;;  %v6666_v1 = vpop.f32.mrb[62].mxu0  ;;  %v9405_v41 = vld [vmem:[#allocation2 + $0x8d0] ss:$8 sps:$4 sm:$0xff]  }
 0xd52   :  { %6963 = vst [vmem:[%s12172_s7 + $0x60] sm:$0xff] %v6663_v53  ;;  %v6667_v47 = vadd.f32 %v6666_v1, %v11443_v8  ;;  %6334 = vmatpush1.bf16.msra.mxu1 %v9381_v62  ;;  %v6668_v51 = vpop.f32.mrb[63].mxu0  ;;  %v9407_v53 = vld [vmem:[#allocation2 + $0x8d4] ss:$8 sps:$4 sm:$0xff]   ;;  %v9410_v1 = vld [vmem:[#allocation2 + $0x8e4] ss:$8 sps:$4 sm:$0xff]  }
 0xd53   :  { %6964 = vst [vmem:[%s12172_s7 + $0x68] sm:$0xff] %v6665_v21  ;;  %v6669_v56 = vadd.f32 %v6668_v51, %v11447_v17  ;;  %6335 = vmatprep.subr.bf16.mxu1 %v9386_v34 }
 0xd54   :  { %6965 = vst [vmem:[%s12172_s7 + $0x70] sm:$0xff] %v6667_v47  ;;  %6931 = vmatmul.mubr.bf16.gmra.mrb[168].mxu0 %v11231_v52 }
 0xd55   :  { %6966 = vst [vmem:[%s12172_s7 + $0x78] sm:$0xff] %v6669_v56  ;;  %6940 = vmatprep.mubr.bf16.mxu0 %v11243_v5  ;;  %v9390_v5 = vld [vmem:[#allocation2 + $0x880] ss:$8 sps:$4 sm:$0xff]  }
 0xd56   :  { %6336 = vmatpush1.bf16.msra.mxu1 %v9384_v57 }
 0xd57   :  { %v6672_v38 = vpop.f32.mrb[64].mxu0  ;;  %6337 = vmatprep.subr.bf16.mxu1 %v9389_v36 }
 0xd58   :  { %v6673_v50 = vadd.f32 %v6672_v38, %v11443_v8  ;;  %v6674_v44 = vpop.f32.mrb[65].mxu0  ;;  %v9408_v38 = vld [vmem:[#allocation2 + $0x8e0] ss:$8 sps:$4 sm:$0xff]  }
 0xd59   :  { %v6675_v55 = vadd.f32 %v6674_v44, %v11447_v17  ;;  %v6676_v22 = vpop.f32.mrb[66].mxu0  ;;  %v9411_v44 = vld [vmem:[#allocation2 + $0x8f0] ss:$8 sps:$4 sm:$0xff]  }
 0xd5a   :  { %6967 = vst [vmem:[%s12172_s7 + $0x80] sm:$0xff] %v6673_v50  ;;  %v6677_v52 = vadd.f32 %v6676_v22, %v11443_v8  ;;  %6338 = vmatpush1.bf16.msra.mxu1 %v9387_v20  ;;  %v6678_v58 = vpop.f32.mrb[67].mxu0  ;;  %v9413_v50 = vld [vmem:[#allocation2 + $0x8f4] ss:$8 sps:$4 sm:$0xff]   ;;  %v9416_v22 = vld [vmem:[#allocation2 + $0xa04] ss:$8 sps:$4 sm:$0xff]  }
 0xd5b   :  { %6968 = vst [vmem:[%s12172_s7 + $0x88] sm:$0xff] %v6675_v55  ;;  %v6679_v27 = vadd.f32 %v6678_v58, %v11447_v17  ;;  %6339 = vmatprep.subr.bf16.mxu1 %v9392_v15 }
 0xd5c   :  { %6969 = vst [vmem:[%s12172_s7 + $0x90] sm:$0xff] %v6677_v52  ;;  %6941 = vmatmul.mubr.bf16.gmra.mrb[172].mxu0 %v11241_v24 }
 0xd5d   :  { %6970 = vst [vmem:[%s12172_s7 + $0x98] sm:$0xff] %v6679_v27 }
 0xd5e   :  { %6340 = vmatpush1.bf16.msra.mxu1 %v9390_v5 }
 0xd5f   :  { %v6682_v28 = vpop.f32.mrb[68].mxu0  ;;  %6341 = vmatprep.subr.bf16.mxu1 %v9395_v13 }
 0xd60   :  { %v6683_v45 = vadd.f32 %v6682_v28, %v11443_v8  ;;  %v6684_v40 = vpop.f32.mrb[69].mxu0  ;;  %v9414_v28 = vld [vmem:[#allocation2 + $0xa00] ss:$8 sps:$4 sm:$0xff]  }
 0xd61   :  { %v6685_v6 = vadd.f32 %v6684_v40, %v11447_v17  ;;  %v6686_v49 = vpop.f32.mrb[70].mxu0  ;;  %v12419_v40 = vld [vmem:[#allocation53_spill] sm:$0xff] }
 0xd62   :  { %6971 = vst [vmem:[%s12172_s7 + $0xa0] sm:$0xff] %v6683_v45  ;;  %v6687_v24 = vadd.f32 %v6686_v49, %v11443_v8  ;;  %6342 = vmatpush1.bf16.msra.mxu1 %v9393_v19  ;;  %v6688_v26 = vpop.f32.mrb[71].mxu0  ;;  %v9419_v45 = vld [vmem:[#allocation2 + $0xa14] ss:$8 sps:$4 sm:$0xff]   ;;  %v9417_v49 = vld [vmem:[#allocation2 + $0xa10] ss:$8 sps:$4 sm:$0xff]  }
 0xd63   :  { %6972 = vst [vmem:[%s12172_s7 + $0xa8] sm:$0xff] %v6685_v6  ;;  %v6689_v48 = vadd.f32 %v6688_v26, %v11447_v17  ;;  %6343 = vmatprep.subr.bf16.mxu1 %v9398_v25  ;;  %v12420_v6 = vld [vmem:[#allocation56_spill] sm:$0xff]  ;;  %v9422_v26 = vld [vmem:[#allocation2 + $0xa24] ss:$8 sps:$4 sm:$0xff]  }
 0xd64   :  { %6973 = vst [vmem:[%s12172_s7 + $0xb0] sm:$0xff] %v6687_v24 }
 0xd65   :  { %6974 = vst [vmem:[%s12172_s7 + $0xb8] sm:$0xff] %v6689_v48 }
 0xd66   :  { %6344 = vmatpush1.bf16.msra.mxu1 %v9396_v7 }
 0xd67   :  { %v6692_v3 = vpop.f32.mrb[72].mxu0  ;;  %6345 = vmatprep.subr.bf16.mxu1 %v9401_v16 }
 0xd68   :  { %v6693_v37 = vadd.f32 %v6692_v3, %v11443_v8  ;;  %v6694_v35 = vpop.f32.mrb[73].mxu0 }
 0xd69   :  { %v6695_v61 = vadd.f32 %v6694_v35, %v11447_v17  ;;  %v6696_v31 = vpop.f32.mrb[74].mxu0 }
 0xd6a   :  { %6975 = vst [vmem:[%s12172_s7 + $0xc0] sm:$0xff] %v6693_v37  ;;  %v6697_v59 = vadd.f32 %v6696_v31, %v11443_v8  ;;  %6346 = vmatpush1.bf16.msra.mxu1 %v9399_v0  ;;  %v6698_v62 = vpop.f32.mrb[75].mxu0  ;;  %v9420_v37 = vld [vmem:[#allocation2 + $0xa20] ss:$8 sps:$4 sm:$0xff]   ;;  %v12421_v31 = vld [vmem:[#allocation55_spill] sm:$0xff] }
 0xd6b   :  { %6976 = vst [vmem:[%s12172_s7 + $0xc8] sm:$0xff] %v6695_v61  ;;  %v6699_v34 = vadd.f32 %v6698_v62, %v11447_v17  ;;  %6347 = vmatprep.subr.bf16.mxu1 %v9404_v29  ;;  %v9425_v61 = vld [vmem:[#allocation2 + $0xa34] ss:$8 sps:$4 sm:$0xff]  }
 0xd6c   :  { %6977 = vst [vmem:[%s12172_s7 + $0xd0] sm:$0xff] %v6697_v59  ;;  %v9423_v59 = vld [vmem:[#allocation2 + $0xa30] ss:$8 sps:$4 sm:$0xff]  }
 0xd6d   :  { %6978 = vst [vmem:[%s12172_s7 + $0xd8] sm:$0xff] %v6699_v34 }
 0xd6e   :  { %6348 = vmatpush1.bf16.msra.mxu1 %v9402_v43  ;;  %v9428_v43 = vld [vmem:[#allocation2 + $0xa44] ss:$8 sps:$4 sm:$0xff]  }
 0xd6f   :  { %v6702_v21 = vpop.f32.mrb[76].mxu0  ;;  %6349 = vmatprep.subr.bf16.mxu1 %v9407_v53 }
 0xd70   :  { %v6703_v47 = vadd.f32 %v6702_v21, %v11443_v8  ;;  %v6704_v51 = vpop.f32.mrb[77].mxu0 }
 0xd71   :  { %v6705_v57 = vadd.f32 %v6704_v51, %v11447_v17  ;;  %v6706_v56 = vpop.f32.mrb[78].mxu0  ;;  %v9426_v51 = vld [vmem:[#allocation2 + $0xa40] ss:$8 sps:$4 sm:$0xff]  }
 0xd72   :  { %6979 = vst [vmem:[%s12172_s7 + $0xe0] sm:$0xff] %v6703_v47  ;;  %v6707_v36 = vadd.f32 %v6706_v56, %v11443_v8  ;;  %6350 = vmatpush1.bf16.msra.mxu1 %v9405_v41  ;;  %v6708_v20 = vpop.f32.mrb[79].mxu0  ;;  %v9429_v56 = vld [vmem:[#allocation2 + $0xa50] ss:$8 sps:$4 sm:$0xff]  }
 0xd73   :  { %6980 = vst [vmem:[%s12172_s7 + $0xe8] sm:$0xff] %v6705_v57  ;;  %v6709_v15 = vadd.f32 %v6708_v20, %v11447_v17  ;;  %6351 = vmatprep.subr.bf16.mxu1 %v9410_v1  ;;  %v9431_v57 = vld [vmem:[#allocation2 + $0xa54] ss:$8 sps:$4 sm:$0xff]   ;;  %v9434_v20 = vld [vmem:[#allocation2 + $0xa64] ss:$8 sps:$4 sm:$0xff]  }
 0xd74   :  { %6981 = vst [vmem:[%s12172_s7 + $0xf0] sm:$0xff] %v6707_v36 }
 0xd75   :  { %6982 = vst [vmem:[%s12172_s7 + $0xf8] sm:$0xff] %v6709_v15 }
 0xd76   :  { %6352 = vmatpush1.bf16.msra.mxu1 %v9408_v38 }
 0xd77   :  { %v6712_v55 = vpop.f32.mrb[80].mxu0  ;;  %6353 = vmatprep.subr.bf16.mxu1 %v9413_v50 }
 0xd78   :  { %v6713_v52 = vadd.f32 %v6712_v55, %v11443_v8  ;;  %v6714_v58 = vpop.f32.mrb[81].mxu0 }
 0xd79   :  { %v6715_v5 = vadd.f32 %v6714_v58, %v11447_v17  ;;  %v6716_v27 = vpop.f32.mrb[82].mxu0 }
 0xd7a   :  { %6983 = vst [vmem:[%s12172_s7 + $0x100] sm:$0xff] %v6713_v52  ;;  %v6717_v13 = vadd.f32 %v6716_v27, %v11443_v8  ;;  %6354 = vmatpush1.bf16.msra.mxu1 %v9411_v44  ;;  %v6718_v19 = vpop.f32.mrb[83].mxu0  ;;  %v9432_v52 = vld [vmem:[#allocation2 + $0xa60] ss:$8 sps:$4 sm:$0xff]   ;;  %v9435_v27 = vld [vmem:[#allocation2 + $0xa70] ss:$8 sps:$4 sm:$0xff]  }
 0xd7b   :  { %6984 = vst [vmem:[%s12172_s7 + $0x108] sm:$0xff] %v6715_v5  ;;  %v6719_v25 = vadd.f32 %v6718_v19, %v11447_v17  ;;  %7285 = vmatprep.subr.bf16.mxu1 %v9416_v22  ;;  %v9437_v5 = vld [vmem:[#allocation2 + $0xa74] ss:$8 sps:$4 sm:$0xff]   ;;  %v9440_v19 = vld [vmem:[#allocation2 + $0xa84] ss:$8 sps:$4 sm:$0xff]  }
 0xd7c   :  { %6985 = vst [vmem:[%s12172_s7 + $0x110] sm:$0xff] %v6717_v13 }
 0xd7d   :  { %6986 = vst [vmem:[%s12172_s7 + $0x118] sm:$0xff] %v6719_v25  ;;  %6356 = vmatmul.mubr.bf16.vlgmr.msra.gmra.mrb[232].mxu1 %v12419_v40 }
 0xd7e   :  { %6365 = vmatprep.mubr.bf16.mxu1 %v12420_v6  ;;  %7286 = vmatpush1.bf16.msra.mxu1 %v9414_v28 }
 0xd7f   :  { %v6722_v24 = vpop.f32.mrb[84].mxu0  ;;  %7287 = vmatprep.subr.bf16.mxu1 %v9419_v45 }
 0xd80   :  { %v6723_v7 = vadd.f32 %v6722_v24, %v11443_v8  ;;  %v6724_v48 = vpop.f32.mrb[85].mxu0  ;;  %v9438_v24 = vld [vmem:[#allocation2 + $0xa80] ss:$8 sps:$4 sm:$0xff]  }
 0xd81   :  { %v6725_v16 = vadd.f32 %v6724_v48, %v11447_v17  ;;  %v6726_v0 = vpop.f32.mrb[86].mxu0  ;;  %v9441_v48 = vld [vmem:[#allocation2 + $0xa90] ss:$8 sps:$4 sm:$0xff]  }
 0xd82   :  { %6987 = vst [vmem:[%s12172_s7 + $0x120] sm:$0xff] %v6723_v7  ;;  %v6727_v3 = vadd.f32 %v6726_v0, %v11443_v8  ;;  %v6728_v29 = vpop.f32.mrb[87].mxu0  ;;  %7288 = vmatpush1.bf16.msra.mxu1 %v9417_v49  ;;  %v9443_v7 = vld [vmem:[#allocation2 + $0xa94] ss:$8 sps:$4 sm:$0xff]   ;;  %v9446_v0 = vld [vmem:[#allocation2 + $0xaa4] ss:$8 sps:$4 sm:$0xff]  }
 0xd83   :  { %6988 = vst [vmem:[%s12172_s7 + $0x128] sm:$0xff] %v6725_v16  ;;  %v6729_v35 = vadd.f32 %v6728_v29, %v11447_v17  ;;  %7289 = vmatprep.subr.bf16.mxu1 %v9422_v26 }
 0xd84   :  { %6989 = vst [vmem:[%s12172_s7 + $0x130] sm:$0xff] %v6727_v3 }
 0xd85   :  { %6990 = vst [vmem:[%s12172_s7 + $0x138] sm:$0xff] %v6729_v35  ;;  %6366 = vmatmul.mubr.bf16.gmra.mrb[236].mxu1 %v12421_v31 }
 0xd86   :  { %7290 = vmatpush1.bf16.msra.mxu1 %v9420_v37  ;;  %7317 = vmatprep.mubr.bf16.mxu1 %v11361_v18 }
 0xd87   :  { %v6732_v62 = vpop.f32.mrb[88].mxu0  ;;  %7291 = vmatprep.subr.bf16.mxu1 %v9425_v61 }
 0xd88   :  { %v6733_v34 = vadd.f32 %v6732_v62, %v11443_v8  ;;  %v6734_v53 = vpop.f32.mrb[89].mxu0 }
 0xd89   :  { %v6735_v41 = vadd.f32 %v6734_v53, %v11447_v17  ;;  %v6736_v21 = vpop.f32.mrb[90].mxu0 }
 0xd8a   :  { %6991 = vst [vmem:[%s12172_s7 + $0x140] sm:$0xff] %v6733_v34  ;;  %v6737_v1 = vadd.f32 %v6736_v21, %v11443_v8  ;;  %v6738_v47 = vpop.f32.mrb[91].mxu0  ;;  %7292 = vmatpush1.bf16.msra.mxu1 %v9423_v59  ;;  %v9444_v59 = vld [vmem:[#allocation2 + $0xaa0] ss:$8 sps:$4 sm:$0xff]   ;;  %v9447_v34 = vld [vmem:[#allocation2 + $0xab0] ss:$8 sps:$4 sm:$0xff]  }
 0xd8b   :  { %6992 = vst [vmem:[%s12172_s7 + $0x148] sm:$0xff] %v6735_v41  ;;  %v6739_v18 = vadd.f32 %v6738_v47, %v11447_v17  ;;  %7293 = vmatprep.subr.bf16.mxu1 %v9428_v43  ;;  %v9449_v43 = vld [vmem:[#allocation2 + $0xab4] ss:$8 sps:$4 sm:$0xff]   ;;  %v9452_v41 = vld [vmem:[#allocation2 + $0xac4] ss:$8 sps:$4 sm:$0xff]  }
 0xd8c   :  { %6993 = vst [vmem:[%s12172_s7 + $0x150] sm:$0xff] %v6737_v1 }
 0xd8d   :  { %6994 = vst [vmem:[%s12172_s7 + $0x158] sm:$0xff] %v6739_v18 }
 0xd8e   :  { %7294 = vmatpush1.bf16.msra.mxu1 %v9426_v51 }
 0xd8f   :  { %v6742_v36 = vpop.f32.mrb[92].mxu0  ;;  %7295 = vmatprep.subr.bf16.mxu1 %v9431_v57 }
 0xd90   :  { %v6743_v38 = vadd.f32 %v6742_v36, %v11443_v8  ;;  %v6744_v15 = vpop.f32.mrb[93].mxu0 }
 0xd91   :  { %v6745_v50 = vadd.f32 %v6744_v15, %v11447_v17  ;;  %v6746_v44 = vpop.f32.mrb[94].mxu0 }
 0xd92   :  { %6995 = vst [vmem:[%s12172_s7 + $0x160] sm:$0xff] %v6743_v38  ;;  %v6747_v55 = vadd.f32 %v6746_v44, %v11443_v8  ;;  %v6748_v22 = vpop.f32.mrb[95].mxu0  ;;  %7296 = vmatpush1.bf16.msra.mxu1 %v9429_v56  ;;  %v9450_v56 = vld [vmem:[#allocation2 + $0xac0] ss:$8 sps:$4 sm:$0xff]   ;;  %v9453_v38 = vld [vmem:[#allocation2 + $0xad0] ss:$8 sps:$4 sm:$0xff]  }
 0xd93   :  { %6996 = vst [vmem:[%s12172_s7 + $0x168] sm:$0xff] %v6745_v50  ;;  %v6749_v58 = vadd.f32 %v6748_v22, %v11447_v17  ;;  %7297 = vmatprep.subr.bf16.mxu1 %v9434_v20  ;;  %v9455_v20 = vld [vmem:[#allocation2 + $0xad4] ss:$8 sps:$4 sm:$0xff]   ;;  %v9458_v50 = vld [vmem:[#allocation2 + $0xae4] ss:$8 sps:$4 sm:$0xff]  }
 0xd94   :  { %6997 = vst [vmem:[%s12172_s7 + $0x170] sm:$0xff] %v6747_v55 }
 0xd95   :  { %6998 = vst [vmem:[%s12172_s7 + $0x178] sm:$0xff] %v6749_v58 }
 0xd96   :  { %7298 = vmatpush1.bf16.msra.mxu1 %v9432_v52 }
 0xd97   :  { %v6752_v13 = vpop.f32.mrb[96].mxu0  ;;  %7299 = vmatprep.subr.bf16.mxu1 %v9437_v5 }
 0xd98   :  { %v6753_v28 = vadd.f32 %v6752_v13, %v11443_v8  ;;  %v6754_v25 = vpop.f32.mrb[97].mxu0 }
 0xd99   :  { %v6755_v45 = vadd.f32 %v6754_v25, %v11447_v17  ;;  %v6756_v40 = vpop.f32.mrb[98].mxu0 }
 0xd9a   :  { %6999 = vst [vmem:[%s12172_s7 + $0x180] sm:$0xff] %v6753_v28  ;;  %v6757_v6 = vadd.f32 %v6756_v40, %v11443_v8  ;;  %v6758_v49 = vpop.f32.mrb[99].mxu0  ;;  %7300 = vmatpush1.bf16.msra.mxu1 %v9435_v27  ;;  %v9456_v27 = vld [vmem:[#allocation2 + $0xae0] ss:$8 sps:$4 sm:$0xff]   ;;  %v9459_v28 = vld [vmem:[#allocation2 + $0xaf0] ss:$8 sps:$4 sm:$0xff]  }
 0xd9b   :  { %7000 = vst [vmem:[%s12172_s7 + $0x188] sm:$0xff] %v6755_v45  ;;  %v6759_v26 = vadd.f32 %v6758_v49, %v11447_v17  ;;  %7301 = vmatprep.subr.bf16.mxu1 %v9440_v19  ;;  %v9461_v19 = vld [vmem:[#allocation2 + $0xaf4] ss:$8 sps:$4 sm:$0xff]   ;;  %v9464_v45 = vld [vmem:[#allocation2 + $0xb04] ss:$8 sps:$4 sm:$0xff]  }
 0xd9c   :  { %7001 = vst [vmem:[%s12172_s7 + $0x190] sm:$0xff] %v6757_v6 }
 0xd9d   :  { %7002 = vst [vmem:[%s12172_s7 + $0x198] sm:$0xff] %v6759_v26 }
 0xd9e   :  { %7302 = vmatpush1.bf16.msra.mxu1 %v9438_v24 }
 0xd9f   :  { %v6762_v16 = vpop.f32.mrb[100].mxu0  ;;  %7303 = vmatprep.subr.bf16.mxu1 %v9443_v7 }
 0xda0   :  { %v6763_v3 = vadd.f32 %v6762_v16, %v11443_v8  ;;  %v6764_v29 = vpop.f32.mrb[101].mxu0 }
 0xda1   :  { %v6765_v37 = vadd.f32 %v6764_v29, %v11447_v17  ;;  %v6766_v35 = vpop.f32.mrb[102].mxu0 }
 0xda2   :  { %7003 = vst [vmem:[%s12172_s7 + $0x1a0] sm:$0xff] %v6763_v3  ;;  %v6767_v61 = vadd.f32 %v6766_v35, %v11443_v8  ;;  %v6768_v31 = vpop.f32.mrb[103].mxu0  ;;  %7304 = vmatpush1.bf16.msra.mxu1 %v9441_v48  ;;  %v9462_v48 = vld [vmem:[#allocation2 + $0xb00] ss:$8 sps:$4 sm:$0xff]   ;;  %v9465_v3 = vld [vmem:[#allocation2 + $0xb10] ss:$8 sps:$4 sm:$0xff]  }
 0xda3   :  { %7004 = vst [vmem:[%s12172_s7 + $0x1a8] sm:$0xff] %v6765_v37  ;;  %v6769_v62 = vadd.f32 %v6768_v31, %v11447_v17  ;;  %7305 = vmatprep.subr.bf16.mxu1 %v9446_v0  ;;  %v9467_v0 = vld [vmem:[#allocation2 + $0xb14] ss:$8 sps:$4 sm:$0xff]   ;;  %v9470_v37 = vld [vmem:[#allocation2 + $0xb24] ss:$8 sps:$4 sm:$0xff]  }
 0xda4   :  { %7005 = vst [vmem:[%s12172_s7 + $0x1b0] sm:$0xff] %v6767_v61 }
 0xda5   :  { %7006 = vst [vmem:[%s12172_s7 + $0x1b8] sm:$0xff] %v6769_v62 }
 0xda6   :  { %7306 = vmatpush1.bf16.msra.mxu1 %v9444_v59 }
 0xda7   :  { %v6772_v53 = vpop.f32.mrb[104].mxu0  ;;  %7307 = vmatprep.subr.bf16.mxu1 %v9449_v43 }
 0xda8   :  { %v6773_v21 = vadd.f32 %v6772_v53, %v11443_v8  ;;  %v6774_v1 = vpop.f32.mrb[105].mxu0  ;;  %v9471_v53 = vld [vmem:[#allocation2 + $0xb30] ss:$8 sps:$4 sm:$0xff]  }
 0xda9   :  { %v6775_v47 = vadd.f32 %v6774_v1, %v11447_v17  ;;  %v6776_v51 = vpop.f32.mrb[106].mxu0 }
 0xdaa   :  { %7007 = vst [vmem:[%s12172_s7 + $0x1c0] sm:$0xff] %v6773_v21  ;;  %v6777_v18 = vadd.f32 %v6776_v51, %v11443_v8  ;;  %v6778_v57 = vpop.f32.mrb[107].mxu0  ;;  %7308 = vmatpush1.bf16.msra.mxu1 %v9447_v34  ;;  %v9473_v34 = vld [vmem:[#allocation2 + $0xb34] ss:$8 sps:$4 sm:$0xff]   ;;  %v9476_v21 = vld [vmem:[#allocation2 + $0xb44] ss:$8 sps:$4 sm:$0xff]  }
 0xdab   :  { %7008 = vst [vmem:[%s12172_s7 + $0x1c8] sm:$0xff] %v6775_v47  ;;  %v6779_v36 = vadd.f32 %v6778_v57, %v11447_v17  ;;  %7309 = vmatprep.subr.bf16.mxu1 %v9452_v41 }
 0xdac   :  { %7009 = vst [vmem:[%s12172_s7 + $0x1d0] sm:$0xff] %v6777_v18 }
 0xdad   :  { %7010 = vst [vmem:[%s12172_s7 + $0x1d8] sm:$0xff] %v6779_v36  ;;  %v9479_v36 = vld [vmem:[#allocation2 + $0xb54] ss:$8 sps:$4 sm:$0xff]  }
 0xdae   :  { %7310 = vmatpush1.bf16.msra.mxu1 %v9450_v56 }
 0xdaf   :  { %v6782_v15 = vpop.f32.mrb[108].mxu0  ;;  %7311 = vmatprep.subr.bf16.mxu1 %v9455_v20  ;;  %v9477_v20 = vld [vmem:[#allocation2 + $0xb50] ss:$8 sps:$4 sm:$0xff]  }
 0xdb0   :  { %v6783_v44 = vadd.f32 %v6782_v15, %v11443_v8  ;;  %v6784_v55 = vpop.f32.mrb[109].mxu0  ;;  %v9482_v15 = vld [vmem:[#allocation2 + $0xb64] ss:$8 sps:$4 sm:$0xff]  }
 0xdb1   :  { %v6785_v22 = vadd.f32 %v6784_v55, %v11447_v17  ;;  %v6786_v52 = vpop.f32.mrb[110].mxu0 }
 0xdb2   :  { %7011 = vst [vmem:[%s12172_s7 + $0x1e0] sm:$0xff] %v6783_v44  ;;  %v6787_v58 = vadd.f32 %v6786_v52, %v11443_v8  ;;  %v6788_v5 = vpop.f32.mrb[111].mxu0  ;;  %7312 = vmatpush1.bf16.msra.mxu1 %v9453_v38 }
 0xdb3   :  { %7012 = vst [vmem:[%s12172_s7 + $0x1e8] sm:$0xff] %v6785_v22  ;;  %v6789_v13 = vadd.f32 %v6788_v5, %v11447_v17  ;;  %7313 = vmatprep.subr.bf16.mxu1 %v9458_v50  ;;  %v9485_v5 = vld [vmem:[#allocation2 + $0xb74] ss:$8 sps:$4 sm:$0xff]  }
 0xdb4   :  { %7013 = vst [vmem:[%s12172_s7 + $0x1f0] sm:$0xff] %v6787_v58 }
 0xdb5   :  { %7014 = vst [vmem:[%s12172_s7 + $0x1f8] sm:$0xff] %v6789_v13 }
 0xdb6   :  { %7314 = vmatpush1.bf16.msra.mxu1 %v9456_v27  ;;  %v9483_v27 = vld [vmem:[#allocation2 + $0xb70] ss:$8 sps:$4 sm:$0xff]  }
 0xdb7   :  { %v6792_v25 = vpop.f32.mrb[112].mxu0  ;;  %7315 = vmatprep.subr.bf16.mxu1 %v9461_v19  ;;  %v9488_v19 = vld [vmem:[#allocation2 + $0xb84] ss:$8 sps:$4 sm:$0xff]  }
 0xdb8   :  { %v6793_v40 = vadd.f32 %v6792_v25, %v11443_v8  ;;  %v6794_v6 = vpop.f32.mrb[113].mxu0 }
 0xdb9   :  { %v6795_v49 = vadd.f32 %v6794_v6, %v11447_v17  ;;  %v6796_v24 = vpop.f32.mrb[114].mxu0 }
 0xdba   :  { %7015 = vst [vmem:[%s12172_s7 + $0x200] sm:$0xff] %v6793_v40  ;;  %v6797_v26 = vadd.f32 %v6796_v24, %v11443_v8  ;;  %v6798_v7 = vpop.f32.mrb[115].mxu0  ;;  %7316 = vmatpush1.bf16.msra.mxu1 %v9459_v28  ;;  %v9491_v24 = vld [vmem:[#allocation2 + $0xb94] ss:$8 sps:$4 sm:$0xff]  }
 0xdbb   :  { %7016 = vst [vmem:[%s12172_s7 + $0x208] sm:$0xff] %v6795_v49  ;;  %v6799_v16 = vadd.f32 %v6798_v7, %v11447_v17  ;;  %7640 = vmatprep.subr.bf16.mxu1 %v9464_v45 }
 0xdbc   :  { %7017 = vst [vmem:[%s12172_s7 + $0x210] sm:$0xff] %v6797_v26  ;;  %v9489_v26 = vld [vmem:[#allocation2 + $0xb90] ss:$8 sps:$4 sm:$0xff]  }
 0xdbd   :  { %7018 = vst [vmem:[%s12172_s7 + $0x218] sm:$0xff] %v6799_v16  ;;  %7318 = vmatmul.mubr.bf16.vlgmr.msra.gmra.mrb[240].mxu1 %v11359_v4 }
 0xdbe   :  { %7327 = vmatprep.mubr.bf16.mxu1 %v11373_v30  ;;  %7641 = vmatpush1.bf16.msra.mxu1 %v9462_v48  ;;  %v9468_v30 = vld [vmem:[#allocation2 + $0xb20] ss:$8 sps:$4 sm:$0xff]   ;;  %v9494_v48 = vld [vmem:[#allocation2 + $0xba4] ss:$8 sps:$4 sm:$0xff]  }
 0xdbf   :  { %v6802_v29 = vpop.f32.mrb[116].mxu0  ;;  %7642 = vmatprep.subr.bf16.mxu1 %v9467_v0 }
 0xdc0   :  { %v6803_v35 = vadd.f32 %v6802_v29, %v11443_v8  ;;  %v6804_v61 = vpop.f32.mrb[117].mxu0 }
 0xdc1   :  { %v6805_v31 = vadd.f32 %v6804_v61, %v11447_v17  ;;  %v6806_v59 = vpop.f32.mrb[118].mxu0  ;;  %v9497_v61 = vld [vmem:[#allocation2 + $0xbb4] ss:$8 sps:$4 sm:$0xff]  }
 0xdc2   :  { %7019 = vst [vmem:[%s12172_s7 + $0x220] sm:$0xff] %v6803_v35  ;;  %v6807_v62 = vadd.f32 %v6806_v59, %v11443_v8  ;;  %v6808_v4 = vpop.f32.mrb[119].mxu0  ;;  %7643 = vmatpush1.bf16.msra.mxu1 %v9465_v3 }
 0xdc3   :  { %7020 = vst [vmem:[%s12172_s7 + $0x228] sm:$0xff] %v6805_v31  ;;  %v6809_v43 = vadd.f32 %v6808_v4, %v11447_v17  ;;  %7644 = vmatprep.subr.bf16.mxu1 %v9470_v37  ;;  %v9495_v31 = vld [vmem:[#allocation2 + $0xbb0] ss:$8 sps:$4 sm:$0xff]  }
 0xdc4   :  { %7021 = vst [vmem:[%s12172_s7 + $0x230] sm:$0xff] %v6807_v62  ;;  %v9500_v62 = vld [vmem:[#allocation2 + $0xbc4] ss:$8 sps:$4 sm:$0xff]  }
 0xdc5   :  { %7022 = vst [vmem:[%s12172_s7 + $0x238] sm:$0xff] %v6809_v43  ;;  %7328 = vmatmul.mubr.bf16.gmra.mrb[244].mxu1 %v11371_v9 }
 0xdc6   :  { %7337 = vmatprep.mubr.bf16.mxu1 %v11385_v23  ;;  %7645 = vmatpush1.bf16.msra.mxu1 %v9468_v30  ;;  %v9474_v23 = vld [vmem:[#allocation2 + $0xb40] ss:$8 sps:$4 sm:$0xff]  }
 0xdc7   :  { %v6812_v41 = vpop.f32.mrb[120].mxu0  ;;  %7646 = vmatprep.subr.bf16.mxu1 %v9473_v34 }
 0xdc8   :  { %v6813_v1 = vadd.f32 %v6812_v41, %v11443_v8  ;;  %v6814_v47 = vpop.f32.mrb[121].mxu0 }
 0xdc9   :  { %v6815_v51 = vadd.f32 %v6814_v47, %v11447_v17  ;;  %v6816_v18 = vpop.f32.mrb[122].mxu0 }
 0xdca   :  { %7023 = vst [vmem:[%s12172_s7 + $0x240] sm:$0xff] %v6813_v1  ;;  %v6817_v57 = vadd.f32 %v6816_v18, %v11443_v8  ;;  %v6818_v9 = vpop.f32.mrb[123].mxu0  ;;  %7647 = vmatpush1.bf16.msra.mxu1 %v9471_v53  ;;  %v9501_v1 = vld [vmem:[#allocation2 + $0xbd0] ss:$8 sps:$4 sm:$0xff]  }
 0xdcb   :  { %7024 = vst [vmem:[%s12172_s7 + $0x248] sm:$0xff] %v6815_v51  ;;  %v6819_v56 = vadd.f32 %v6818_v9, %v11447_v17  ;;  %7648 = vmatprep.subr.bf16.mxu1 %v9476_v21  ;;  %v9503_v21 = vld [vmem:[#allocation2 + $0xbd4] ss:$8 sps:$4 sm:$0xff]   ;;  %v9506_v51 = vld [vmem:[#allocation2 + $0xbe4] ss:$8 sps:$4 sm:$0xff]  }
 0xdcc   :  { %7025 = vst [vmem:[%s12172_s7 + $0x250] sm:$0xff] %v6817_v57 }
 0xdcd   :  { %7026 = vst [vmem:[%s12172_s7 + $0x258] sm:$0xff] %v6819_v56  ;;  %7338 = vmatmul.mubr.bf16.gmra.mrb[248].mxu1 %v11383_v39 }
 0xdce   :  { %7347 = vmatprep.mubr.bf16.mxu1 %v11397_v12  ;;  %7649 = vmatpush1.bf16.msra.mxu1 %v9474_v23  ;;  %v9480_v12 = vld [vmem:[#allocation2 + $0xb60] ss:$8 sps:$4 sm:$0xff]  }
 0xdcf   :  { %v6822_v38 = vpop.f32.mrb[124].mxu0  ;;  %7650 = vmatprep.subr.bf16.mxu1 %v9479_v36 }
 0xdd0   :  { %v6823_v50 = vadd.f32 %v6822_v38, %v11443_v8  ;;  %v6824_v44 = vpop.f32.mrb[125].mxu0  ;;  %v9507_v38 = vld [vmem:[#allocation2 + $0xbf0] ss:$8 sps:$4 sm:$0xff]  }
 0xdd1   :  { %v6825_v55 = vadd.f32 %v6824_v44, %v11447_v17  ;;  %v6826_v22 = vpop.f32.mrb[126].mxu0 }
 0xdd2   :  { %7027 = vst [vmem:[%s12172_s7 + $0x260] sm:$0xff] %v6823_v50  ;;  %v6827_v52 = vadd.f32 %v6826_v22, %v11443_v8  ;;  %v6828_v39 = vpop.f32.mrb[127].mxu0  ;;  %7651 = vmatpush1.bf16.msra.mxu1 %v9477_v20  ;;  %v9509_v20 = vld [vmem:[#allocation2 + $0xbf4] ss:$8 sps:$4 sm:$0xff]  }
 0xdd3   :  { %7028 = vst [vmem:[%s12172_s7 + $0x268] sm:$0xff] %v6825_v55  ;;  %v6829_v58 = vadd.f32 %v6828_v39, %v11447_v17  ;;  %7652 = vmatprep.subr.bf16.mxu1 %v9482_v15 }
 0xdd4   :  { %7029 = vst [vmem:[%s12172_s7 + $0x270] sm:$0xff] %v6827_v52 }
 0xdd5   :  { %7030 = vst [vmem:[%s12172_s7 + $0x278] sm:$0xff] %v6829_v58  ;;  %7348 = vmatmul.mubr.bf16.gmra.mrb[252].mxu1 %v11395_v2 }
 0xdd6   :  { %7357 = vmatprep.mubr.bf16.mxu1 %v11409_v33  ;;  %7653 = vmatpush1.bf16.msra.mxu1 %v9480_v12  ;;  %v9486_v33 = vld [vmem:[#allocation2 + $0xb80] ss:$8 sps:$4 sm:$0xff]  }
 0xdd7   :  { %v6832_v13 = vpop.f32.mrb[128].mxu0  ;;  %7654 = vmatprep.subr.bf16.mxu1 %v9485_v5 }
 0xdd8   :  { %v6833_v28 = vadd.f32 %v6832_v13, %v11443_v8  ;;  %v6834_v25 = vpop.f32.mrb[129].mxu0 }
 0xdd9   :  { %v6835_v45 = vadd.f32 %v6834_v25, %v11447_v17  ;;  %v6836_v40 = vpop.f32.mrb[130].mxu0 }
 0xdda   :  { %7031 = vst [vmem:[%s12172_s7 + $0x280] sm:$0xff] %v6833_v28  ;;  %v6837_v6 = vadd.f32 %v6836_v40, %v11443_v8  ;;  %v6838_v2 = vpop.f32.mrb[131].mxu0  ;;  %7655 = vmatpush1.bf16.msra.mxu1 %v9483_v27 }
 0xddb   :  { %7032 = vst [vmem:[%s12172_s7 + $0x288] sm:$0xff] %v6835_v45  ;;  %v6839_v49 = vadd.f32 %v6838_v2, %v11447_v17  ;;  %7656 = vmatprep.subr.bf16.mxu1 %v9488_v19 }
 0xddc   :  { %7033 = vst [vmem:[%s12172_s7 + $0x290] sm:$0xff] %v6837_v6 }
 0xddd   :  { %7034 = vst [vmem:[%s12172_s7 + $0x298] sm:$0xff] %v6839_v49  ;;  %7358 = vmatmul.mubr.bf16.gmra.mrb[0].mxu1 %v11407_v54 }
 0xdde   :  { %7367 = vmatprep.mubr.bf16.mxu1 %v11421_v14  ;;  %7657 = vmatpush1.bf16.msra.mxu1 %v9486_v33  ;;  %v9492_v14 = vld [vmem:[#allocation2 + $0xba0] ss:$8 sps:$4 sm:$0xff]  }
 0xddf   :  { %v6842_v7 = vpop.f32.mrb[132].mxu0  ;;  %7658 = vmatprep.subr.bf16.mxu1 %v9491_v24 }
 0xde0   :  { %v6843_v16 = vadd.f32 %v6842_v7, %v11443_v8  ;;  %v6844_v0 = vpop.f32.mrb[133].mxu0 }
 0xde1   :  { %v6845_v3 = vadd.f32 %v6844_v0, %v11447_v17  ;;  %v6846_v29 = vpop.f32.mrb[134].mxu0 }
 0xde2   :  { %7035 = vst [vmem:[%s12172_s7 + $0x2a0] sm:$0xff] %v6843_v16  ;;  %v6847_v37 = vadd.f32 %v6846_v29, %v11443_v8  ;;  %v6848_v54 = vpop.f32.mrb[135].mxu0  ;;  %7659 = vmatpush1.bf16.msra.mxu1 %v9489_v26 }
 0xde3   :  { %7036 = vst [vmem:[%s12172_s7 + $0x2a8] sm:$0xff] %v6845_v3  ;;  %v6849_v35 = vadd.f32 %v6848_v54, %v11447_v17  ;;  %7660 = vmatprep.subr.bf16.mxu1 %v9494_v48 }
 0xde4   :  { %7037 = vst [vmem:[%s12172_s7 + $0x2b0] sm:$0xff] %v6847_v37 }
 0xde5   :  { %7038 = vst [vmem:[%s12172_s7 + $0x2b8] sm:$0xff] %v6849_v35  ;;  %7368 = vmatmul.mubr.bf16.gmra.mrb[4].mxu1 %v11419_v60 }
 0xde6   :  { %7377 = vmatprep.mubr.bf16.mxu1 %v11433_v10  ;;  %7661 = vmatpush1.bf16.msra.mxu1 %v9492_v14  ;;  %v9498_v10 = vld [vmem:[#allocation2 + $0xbc0] ss:$8 sps:$4 sm:$0xff]  }
 0xde7   :  { %v6852_v59 = vpop.f32.mrb[136].mxu0  ;;  %7662 = vmatprep.subr.bf16.mxu1 %v9497_v61 }
 0xde8   :  { %v6853_v4 = vadd.f32 %v6852_v59, %v11443_v8  ;;  %v6854_v30 = vpop.f32.mrb[137].mxu0 }
 0xde9   :  { %v6855_v43 = vadd.f32 %v6854_v30, %v11447_v17  ;;  %v6856_v34 = vpop.f32.mrb[138].mxu0 }
 0xdea   :  { %7039 = vst [vmem:[%s12172_s7 + $0x2c0] sm:$0xff] %v6853_v4  ;;  %v6857_v53 = vadd.f32 %v6856_v34, %v11443_v8  ;;  %v6858_v60 = vpop.f32.mrb[139].mxu0  ;;  %7663 = vmatpush1.bf16.msra.mxu1 %v9495_v31 }
 0xdeb   :  { %7040 = vst [vmem:[%s12172_s7 + $0x2c8] sm:$0xff] %v6855_v43  ;;  %v6859_v41 = vadd.f32 %v6858_v60, %v11447_v17  ;;  %7664 = vmatprep.subr.bf16.mxu1 %v9500_v62 }
 0xdec   :  { %7041 = vst [vmem:[%s12172_s7 + $0x2d0] sm:$0xff] %v6857_v53 }
 0xded   :  { %7042 = vst [vmem:[%s12172_s7 + $0x2d8] sm:$0xff] %v6859_v41  ;;  %7378 = vmatmul.mubr.bf16.gmra.mrb[8].mxu1 %v11431_v32 }
 0xdee   :  { %7387 = vmatprep.mubr.bf16.mxu1 %v11451_v42  ;;  %7665 = vmatpush1.bf16.msra.mxu1 %v9498_v10  ;;  %v9504_v42 = vld [vmem:[#allocation2 + $0xbe0] ss:$8 sps:$4 sm:$0xff]  }
 0xdef   :  { %v6862_v47 = vpop.f32.mrb[140].mxu0  ;;  %7666 = vmatprep.subr.bf16.mxu1 %v9503_v21 }
 0xdf0   :  { %v6863_v18 = vadd.f32 %v6862_v47, %v11443_v8  ;;  %v6864_v57 = vpop.f32.mrb[141].mxu0 }
 0xdf1   :  { %v6865_v9 = vadd.f32 %v6864_v57, %v11447_v17  ;;  %v6866_v23 = vpop.f32.mrb[142].mxu0 }
 0xdf2   :  { %7043 = vst [vmem:[%s12172_s7 + $0x2e0] sm:$0xff] %v6863_v18  ;;  %v6867_v56 = vadd.f32 %v6866_v23, %v11443_v8  ;;  %v6868_v32 = vpop.f32.mrb[143].mxu0  ;;  %7667 = vmatpush1.bf16.msra.mxu1 %v9501_v1 }
 0xdf3   :  { %7044 = vst [vmem:[%s12172_s7 + $0x2e8] sm:$0xff] %v6865_v9  ;;  %v6869_v36 = vadd.f32 %v6868_v32, %v11447_v17  ;;  %7668 = vmatprep.subr.bf16.mxu1 %v9506_v51 }
 0xdf4   :  { %7045 = vst [vmem:[%s12172_s7 + $0x2f0] sm:$0xff] %v6867_v56 }
 0xdf5   :  { %7046 = vst [vmem:[%s12172_s7 + $0x2f8] sm:$0xff] %v6869_v36  ;;  %7388 = vmatmul.mubr.bf16.gmra.mrb[12].mxu1 %v11449_v11 }
 0xdf6   :  { %7669 = vmatpush1.bf16.msra.mxu1 %v9504_v42 }
 0xdf7   :  { %v6872_v15 = vpop.f32.mrb[144].mxu0  ;;  %7670 = vmatprep.subr.bf16.mxu1 %v9509_v20 }
 0xdf8   :  { %v6873_v50 = vadd.f32 %v6872_v15, %v11443_v8  ;;  %v6874_v44 = vpop.f32.mrb[145].mxu0 }
 0xdf9   :  { %v6875_v55 = vadd.f32 %v6874_v44, %v11447_v17  ;;  %v6876_v22 = vpop.f32.mrb[146].mxu0 }
 0xdfa   :  { %7047 = vst [vmem:[%s12172_s7 + $0x300] sm:$0xff] %v6873_v50  ;;  %v6877_v52 = vadd.f32 %v6876_v22, %v11443_v8  ;;  %v6878_v39 = vpop.f32.mrb[147].mxu0  ;;  %7671 = vmatpush1.bf16.msra.mxu1 %v9507_v38  ;;  %v6151_v22 = vld [vmem:[#allocation4 + $0x10] sm:$0x3] }
 0xdfb   :  { %7048 = vst [vmem:[%s12172_s7 + $0x308] sm:$0xff] %v6875_v55  ;;  %v6879_v11 = vadd.f32 %v6878_v39, %v11447_v17 }
 0xdfc   :  { %7049 = vst [vmem:[%s12172_s7 + $0x310] sm:$0xff] %v6877_v52  ;;  %v6156_v52 = vrot.slane %v6151_v22, %v12393_v63 }
 0xdfd   :  { %7050 = vst [vmem:[%s12172_s7 + $0x318] sm:$0xff] %v6879_v11 }
 0xdff   :  { %v6882_v12 = vpop.f32.mrb[148].mxu0 }
 0xe00   :  { %v6883_v58 = vadd.f32 %v6882_v12, %v11443_v8  ;;  %v6884_v5 = vpop.f32.mrb[149].mxu0 }
 0xe01   :  { %v6885_v27 = vadd.f32 %v6884_v5, %v11447_v17  ;;  %v6886_v13 = vpop.f32.mrb[150].mxu0 }
 0xe02   :  { %7051 = vst [vmem:[%s12172_s7 + $0x320] sm:$0xff] %v6883_v58  ;;  %v6887_v19 = vadd.f32 %v6886_v13, %v11443_v8  ;;  %v6888_v28 = vpop.f32.mrb[151].mxu0 }
 0xe03   :  { %7052 = vst [vmem:[%s12172_s7 + $0x328] sm:$0xff] %v6885_v27  ;;  %v6889_v25 = vadd.f32 %v6888_v28, %v11447_v17 }
 0xe04   :  { %7053 = vst [vmem:[%s12172_s7 + $0x330] sm:$0xff] %v6887_v19 }
 0xe05   :  { %7054 = vst [vmem:[%s12172_s7 + $0x338] sm:$0xff] %v6889_v25 }
 0xe07   :  { %v6892_v45 = vpop.f32.mrb[152].mxu0 }
 0xe08   :  { %v6893_v40 = vadd.f32 %v6892_v45, %v11443_v8  ;;  %v6894_v6 = vpop.f32.mrb[153].mxu0 }
 0xe09   :  { %v6895_v2 = vadd.f32 %v6894_v6, %v11447_v17  ;;  %v6896_v33 = vpop.f32.mrb[154].mxu0 }
 0xe0a   :  { %7055 = vst [vmem:[%s12172_s7 + $0x340] sm:$0xff] %v6893_v40  ;;  %v6897_v49 = vadd.f32 %v6896_v33, %v11443_v8  ;;  %v6898_v24 = vpop.f32.mrb[155].mxu0 }
 0xe0b   :  { %7056 = vst [vmem:[%s12172_s7 + $0x348] sm:$0xff] %v6895_v2  ;;  %v6899_v26 = vadd.f32 %v6898_v24, %v11447_v17 }
 0xe0c   :  { %7057 = vst [vmem:[%s12172_s7 + $0x350] sm:$0xff] %v6897_v49 }
 0xe0d   :  { %7058 = vst [vmem:[%s12172_s7 + $0x358] sm:$0xff] %v6899_v26 }
 0xe0f   :  { %v6902_v7 = vpop.f32.mrb[156].mxu0 }
 0xe10   :  { %v6903_v48 = vadd.f32 %v6902_v7, %v11443_v8  ;;  %v6904_v16 = vpop.f32.mrb[157].mxu0 }
 0xe11   :  { %v6905_v0 = vadd.f32 %v6904_v16, %v11447_v17  ;;  %v6906_v3 = vpop.f32.mrb[158].mxu0 }
 0xe12   :  { %7059 = vst [vmem:[%s12172_s7 + $0x360] sm:$0xff] %v6903_v48  ;;  %v6907_v29 = vadd.f32 %v6906_v3, %v11443_v8  ;;  %v6908_v37 = vpop.f32.mrb[159].mxu0 }
 0xe13   :  { %7060 = vst [vmem:[%s12172_s7 + $0x368] sm:$0xff] %v6905_v0  ;;  %v6909_v54 = vadd.f32 %v6908_v37, %v11447_v17 }
 0xe14   :  { %7061 = vst [vmem:[%s12172_s7 + $0x370] sm:$0xff] %v6907_v29 }
 0xe15   :  { %7062 = vst [vmem:[%s12172_s7 + $0x378] sm:$0xff] %v6909_v54 }
 0xe17   :  { %v6912_v14 = vpop.f32.mrb[160].mxu0 }
 0xe18   :  { %v6913_v35 = vadd.f32 %v6912_v14, %v11443_v8  ;;  %v6914_v61 = vpop.f32.mrb[161].mxu0 }
 0xe19   :  { %v6915_v31 = vadd.f32 %v6914_v61, %v11447_v17  ;;  %v6916_v59 = vpop.f32.mrb[162].mxu0 }
 0xe1a   :  { %7063 = vst [vmem:[%s12172_s7 + $0x380] sm:$0xff] %v6913_v35  ;;  %v6917_v62 = vadd.f32 %v6916_v59, %v11443_v8  ;;  %v6918_v4 = vpop.f32.mrb[163].mxu0  ;;  %v7113_v35 = vld [vmem:[#allocation4 + $0x14] sm:$0x3] }
 0xe1b   :  { %7064 = vst [vmem:[%s12172_s7 + $0x388] sm:$0xff] %v6915_v31  ;;  %v6919_v30 = vadd.f32 %v6918_v4, %v11447_v17  ;;  %v12006_v61 = vrot.slane %v7113_v35, %v12393_v63  ;;  %v12009_v31 = vrot.slane %v7113_v35, %v12395_v46 }
 0xe1c   :  { %7065 = vst [vmem:[%s12172_s7 + $0x390] sm:$0xff] %v6917_v62 }
 0xe1d   :  { %7066 = vst [vmem:[%s12172_s7 + $0x398] sm:$0xff] %v6919_v30 }
 0xe1f   :  { %v6922_v43 = vpop.f32.mrb[164].mxu0 }
 0xe20   :  { %v6923_v34 = vadd.f32 %v6922_v43, %v11443_v8  ;;  %v6924_v53 = vpop.f32.mrb[165].mxu0 }
 0xe21   :  { %v6925_v60 = vadd.f32 %v6924_v53, %v11447_v17  ;;  %v6926_v10 = vpop.f32.mrb[166].mxu0 }
 0xe22   :  { %7067 = vst [vmem:[%s12172_s7 + $0x3a0] sm:$0xff] %v6923_v34  ;;  %v6927_v41 = vadd.f32 %v6926_v10, %v11443_v8  ;;  %v6928_v21 = vpop.f32.mrb[167].mxu0 }
 0xe23   :  { %7068 = vst [vmem:[%s12172_s7 + $0x3a8] sm:$0xff] %v6925_v60  ;;  %v6929_v1 = vadd.f32 %v6928_v21, %v11447_v17 }
 0xe24   :  { %7069 = vst [vmem:[%s12172_s7 + $0x3b0] sm:$0xff] %v6927_v41 }
 0xe25   :  { %7070 = vst [vmem:[%s12172_s7 + $0x3b8] sm:$0xff] %v6929_v1 }
 0xe27   :  { %v6932_v47 = vpop.f32.mrb[168].mxu0 }
 0xe28   :  { %v6933_v51 = vadd.f32 %v6932_v47, %v11443_v8  ;;  %v6934_v18 = vpop.f32.mrb[169].mxu0 }
 0xe29   :  { %v6935_v57 = vadd.f32 %v6934_v18, %v11447_v17  ;;  %v6936_v9 = vpop.f32.mrb[170].mxu0 }
 0xe2a   :  { %7071 = vst [vmem:[%s12172_s7 + $0x3c0] sm:$0xff] %v6933_v51  ;;  %v6937_v23 = vadd.f32 %v6936_v9, %v11443_v8  ;;  %v6938_v56 = vpop.f32.mrb[171].mxu0 }
 0xe2b   :  { %7072 = vst [vmem:[%s12172_s7 + $0x3c8] sm:$0xff] %v6935_v57  ;;  %v6939_v32 = vadd.f32 %v6938_v56, %v11447_v17 }
 0xe2c   :  { %7073 = vst [vmem:[%s12172_s7 + $0x3d0] sm:$0xff] %v6937_v23 }
 0xe2d   :  { %7074 = vst [vmem:[%s12172_s7 + $0x3d8] sm:$0xff] %v6939_v32 }
 0xe2f   :  { %v6942_v42 = vpop.f32.mrb[172].mxu0 }
 0xe30   :  { %v6943_v36 = vadd.f32 %v6942_v42, %v11443_v8  ;;  %v6944_v20 = vpop.f32.mrb[173].mxu0 }
 0xe31   :  { %v6945_v38 = vadd.f32 %v6944_v20, %v11447_v17  ;;  %v6946_v15 = vpop.f32.mrb[174].mxu0 }
 0xe32   :  { %7075 = vst [vmem:[%s12172_s7 + $0x3e0] sm:$0xff] %v6943_v36  ;;  %v6947_v50 = vadd.f32 %v6946_v15, %v11443_v8  ;;  %v6948_v44 = vpop.f32.mrb[175].mxu0  ;;  %v6160_v8 = vrot.slane %v6151_v22, %v12395_v46 }
 0xe33   :  { %7076 = vst [vmem:[%s12172_s7 + $0x3e8] sm:$0xff] %v6945_v38  ;;  %v6949_v55 = vadd.f32 %v6948_v44, %v11447_v17 }
 0xe34   :  { %7077 = vst [vmem:[%s12172_s7 + $0x3f0] sm:$0xff] %v6947_v50 }
 0xe35   :  { %7078 = vst [vmem:[%s12172_s7 + $0x3f8] sm:$0xff] %v6949_v55 }
 0xe50   :  { %v6357_v39 = vpop.f32.mrb[232].mxu1 }
 0xe51   :  { %v6358_v11 = vadd.f32 %v6357_v39, %v6156_v52  ;;  %v6359_v12 = vpop.f32.mrb[233].mxu1 }
 0xe52   :  { %v6360_v58 = vadd.f32 %v6359_v12, %v6160_v8  ;;  %v6361_v5 = vpop.f32.mrb[234].mxu1 }
 0xe53   :  { %v6362_v27 = vadd.f32 %v6361_v5, %v6156_v52  ;;  %v6363_v17 = vpop.f32.mrb[235].mxu1  ;;  %v6384_v19 = vmax.f32 %v6358_v11, 0.0 }
 0xe54   :  { %v6364_v13 = vadd.f32 %v6363_v17, %v6160_v8  ;;  %v6385_v25 = vmax.f32 %v6360_v58, 0.0 }
 0xe55   :  { %v6386_v28 = vmax.f32 %v6362_v27, 0.0 }
 0xe56   :  { %v6387_v45 = vmax.f32 %v6364_v13, 0.0 }
 0xe57   :  { %v7463_v40 = vpack.c.bf16 %v6386_v28, %v6384_v19 }
 0xe58   :  { %v7464_v6 = vpack.c.bf16 %v6387_v45, %v6385_v25  ;;  %v6367_v2 = vpop.f32.mrb[236].mxu1 }
 0xe59   :  { %v6368_v33 = vadd.f32 %v6367_v2, %v6156_v52  ;;  %v6369_v49 = vpop.f32.mrb[237].mxu1 }
 0xe5a   :  { %v6370_v24 = vadd.f32 %v6369_v49, %v6160_v8  ;;  %v6371_v26 = vpop.f32.mrb[238].mxu1  ;;  %7672 = vmatprep.mubr.bf16.mxu1 %v7464_v6 }
 0xe5b   :  { %v6372_v7 = vadd.f32 %v6371_v26, %v6156_v52  ;;  %v6373_v48 = vpop.f32.mrb[239].mxu1  ;;  %7673 = vmatmul.mubr.bf16.vlgmr.msra.gmra.mrb[16].mxu1 %v7463_v40  ;;  %v6388_v0 = vmax.f32 %v6368_v33, 0.0 }
 0xe5c   :  { %v6374_v16 = vadd.f32 %v6373_v48, %v6160_v8  ;;  %v6389_v29 = vmax.f32 %v6370_v24, 0.0 }
 0xe5d   :  { %v6390_v3 = vmax.f32 %v6372_v7, 0.0 }
 0xe5e   :  { %v6391_v37 = vmax.f32 %v6374_v16, 0.0 }
 0xe5f   :  { %v7465_v54 = vpack.c.bf16 %v6390_v3, %v6388_v0 }
 0xe60   :  { %v7466_v14 = vpack.c.bf16 %v6391_v37, %v6389_v29 }
 0xe62   :  { %7682 = vmatprep.mubr.bf16.mxu1 %v7466_v14 }
 0xe63   :  { %7683 = vmatmul.mubr.bf16.gmra.mrb[20].mxu1 %v7465_v54 }
 0xe90   :  { %v7319_v59 = vpop.f32.mrb[240].mxu1 }
 0xe91   :  { %v7320_v62 = vadd.f32 %v7319_v59, %v12006_v61  ;;  %v7321_v4 = vpop.f32.mrb[241].mxu1 }
 0xe92   :  { %v7322_v30 = vadd.f32 %v7321_v4, %v12009_v31  ;;  %v7323_v43 = vpop.f32.mrb[242].mxu1 }
 0xe93   :  { %7398 = vst [vmem:[%s12173_s8] sm:$0xff] %v7320_v62  ;;  %v7324_v34 = vadd.f32 %v7323_v43, %v12006_v61  ;;  %v7325_v53 = vpop.f32.mrb[243].mxu1  ;;  %v7468_v43 = vld [vmem:[#allocation4 + $0x16] sm:$0x3] }
 0xe94   :  { %7399 = vst [vmem:[%s12173_s8 + $0x8] sm:$0xff] %v7322_v30  ;;  %v7326_v60 = vadd.f32 %v7325_v53, %v12009_v31 }
 0xe95   :  { %7400 = vst [vmem:[%s12173_s8 + $0x10] sm:$0xff] %v7324_v34  ;;  %v7473_v34 = vrot.slane %v7468_v43, %v12393_v63 }
 0xe96   :  { %7401 = vst [vmem:[%s12173_s8 + $0x18] sm:$0xff] %v7326_v60 }
 0xe98   :  { %v7329_v10 = vpop.f32.mrb[244].mxu1 }
 0xe99   :  { %v7330_v41 = vadd.f32 %v7329_v10, %v12006_v61  ;;  %v7331_v21 = vpop.f32.mrb[245].mxu1 }
 0xe9a   :  { %v7332_v1 = vadd.f32 %v7331_v21, %v12009_v31  ;;  %v7333_v47 = vpop.f32.mrb[246].mxu1 }
 0xe9b   :  { %7402 = vst [vmem:[%s12173_s8 + $0x20] sm:$0xff] %v7330_v41  ;;  %v7334_v51 = vadd.f32 %v7333_v47, %v12006_v61  ;;  %v7335_v18 = vpop.f32.mrb[247].mxu1 }
 0xe9c   :  { %7403 = vst [vmem:[%s12173_s8 + $0x28] sm:$0xff] %v7332_v1  ;;  %v7336_v57 = vadd.f32 %v7335_v18, %v12009_v31 }
 0xe9d   :  { %7404 = vst [vmem:[%s12173_s8 + $0x30] sm:$0xff] %v7334_v51 }
 0xe9e   :  { %7405 = vst [vmem:[%s12173_s8 + $0x38] sm:$0xff] %v7336_v57 }
 0xea0   :  { %v7339_v9 = vpop.f32.mrb[248].mxu1 }
 0xea1   :  { %v7340_v23 = vadd.f32 %v7339_v9, %v12006_v61  ;;  %v7341_v56 = vpop.f32.mrb[249].mxu1 }
 0xea2   :  { %v7342_v32 = vadd.f32 %v7341_v56, %v12009_v31  ;;  %v7343_v42 = vpop.f32.mrb[250].mxu1 }
 0xea3   :  { %7406 = vst [vmem:[%s12173_s8 + $0x40] sm:$0xff] %v7340_v23  ;;  %v7344_v36 = vadd.f32 %v7343_v42, %v12006_v61  ;;  %v7345_v20 = vpop.f32.mrb[251].mxu1 }
 0xea4   :  { %7407 = vst [vmem:[%s12173_s8 + $0x48] sm:$0xff] %v7342_v32  ;;  %v7346_v38 = vadd.f32 %v7345_v20, %v12009_v31 }
 0xea5   :  { %7408 = vst [vmem:[%s12173_s8 + $0x50] sm:$0xff] %v7344_v36 }
 0xea6   :  { %7409 = vst [vmem:[%s12173_s8 + $0x58] sm:$0xff] %v7346_v38 }
 0xea8   :  { %v7349_v15 = vpop.f32.mrb[252].mxu1 }
 0xea9   :  { %v7350_v50 = vadd.f32 %v7349_v15, %v12006_v61  ;;  %v7351_v44 = vpop.f32.mrb[253].mxu1 }
 0xeaa   :  { %v7352_v55 = vadd.f32 %v7351_v44, %v12009_v31  ;;  %v7353_v22 = vpop.f32.mrb[254].mxu1 }
 0xeab   :  { %7410 = vst [vmem:[%s12173_s8 + $0x60] sm:$0xff] %v7350_v50  ;;  %v7354_v52 = vadd.f32 %v7353_v22, %v12006_v61  ;;  %v7355_v8 = vpop.f32.mrb[255].mxu1 }
 0xeac   :  { %7411 = vst [vmem:[%s12173_s8 + $0x68] sm:$0xff] %v7352_v55  ;;  %v7356_v39 = vadd.f32 %v7355_v8, %v12009_v31 }
 0xead   :  { %7412 = vst [vmem:[%s12173_s8 + $0x70] sm:$0xff] %v7354_v52 }
 0xeae   :  { %7413 = vst [vmem:[%s12173_s8 + $0x78] sm:$0xff] %v7356_v39 }
 0xeb0   :  { %v7359_v11 = vpop.f32.mrb[0].mxu1 }
 0xeb1   :  { %v7360_v12 = vadd.f32 %v7359_v11, %v12006_v61  ;;  %v7361_v58 = vpop.f32.mrb[1].mxu1 }
 0xeb2   :  { %v7362_v5 = vadd.f32 %v7361_v58, %v12009_v31  ;;  %v7363_v27 = vpop.f32.mrb[2].mxu1 }
 0xeb3   :  { %7414 = vst [vmem:[%s12173_s8 + $0x80] sm:$0xff] %v7360_v12  ;;  %v7364_v17 = vadd.f32 %v7363_v27, %v12006_v61  ;;  %v7365_v13 = vpop.f32.mrb[3].mxu1 }
 0xeb4   :  { %7415 = vst [vmem:[%s12173_s8 + $0x88] sm:$0xff] %v7362_v5  ;;  %v7366_v19 = vadd.f32 %v7365_v13, %v12009_v31 }
 0xeb5   :  { %7416 = vst [vmem:[%s12173_s8 + $0x90] sm:$0xff] %v7364_v17 }
 0xeb6   :  { %7417 = vst [vmem:[%s12173_s8 + $0x98] sm:$0xff] %v7366_v19 }
 0xeb8   :  { %v7369_v28 = vpop.f32.mrb[4].mxu1 }
 0xeb9   :  { %v7370_v25 = vadd.f32 %v7369_v28, %v12006_v61  ;;  %v7371_v45 = vpop.f32.mrb[5].mxu1 }
 0xeba   :  { %v7372_v40 = vadd.f32 %v7371_v45, %v12009_v31  ;;  %v7373_v6 = vpop.f32.mrb[6].mxu1 }
 0xebb   :  { %7418 = vst [vmem:[%s12173_s8 + $0xa0] sm:$0xff] %v7370_v25  ;;  %v7374_v2 = vadd.f32 %v7373_v6, %v12006_v61  ;;  %v7375_v33 = vpop.f32.mrb[7].mxu1 }
 0xebc   :  { %7419 = vst [vmem:[%s12173_s8 + $0xa8] sm:$0xff] %v7372_v40  ;;  %v7376_v49 = vadd.f32 %v7375_v33, %v12009_v31 }
 0xebd   :  { %7420 = vst [vmem:[%s12173_s8 + $0xb0] sm:$0xff] %v7374_v2 }
 0xebe   :  { %7421 = vst [vmem:[%s12173_s8 + $0xb8] sm:$0xff] %v7376_v49 }
 0xec0   :  { %v7379_v24 = vpop.f32.mrb[8].mxu1 }
 0xec1   :  { %v7380_v26 = vadd.f32 %v7379_v24, %v12006_v61  ;;  %v7381_v7 = vpop.f32.mrb[9].mxu1 }
 0xec2   :  { %v7382_v48 = vadd.f32 %v7381_v7, %v12009_v31  ;;  %v7383_v16 = vpop.f32.mrb[10].mxu1 }
 0xec3   :  { %7422 = vst [vmem:[%s12173_s8 + $0xc0] sm:$0xff] %v7380_v26  ;;  %v7384_v0 = vadd.f32 %v7383_v16, %v12006_v61  ;;  %v7385_v3 = vpop.f32.mrb[11].mxu1 }
 0xec4   :  { %7423 = vst [vmem:[%s12173_s8 + $0xc8] sm:$0xff] %v7382_v48  ;;  %v7386_v29 = vadd.f32 %v7385_v3, %v12009_v31 }
 0xec5   :  { %7424 = vst [vmem:[%s12173_s8 + $0xd0] sm:$0xff] %v7384_v0 }
 0xec6   :  { %7425 = vst [vmem:[%s12173_s8 + $0xd8] sm:$0xff] %v7386_v29 }
 0xec8   :  { %v7389_v37 = vpop.f32.mrb[12].mxu1 }
 0xec9   :  { %v7390_v54 = vadd.f32 %v7389_v37, %v12006_v61  ;;  %v7391_v14 = vpop.f32.mrb[13].mxu1 }
 0xeca   :  { %v7392_v35 = vadd.f32 %v7391_v14, %v12009_v31  ;;  %v7393_v59 = vpop.f32.mrb[14].mxu1 }
 0xecb   :  { %7426 = vst [vmem:[%s12173_s8 + $0xe0] sm:$0xff] %v7390_v54  ;;  %v7394_v62 = vadd.f32 %v7393_v59, %v12006_v61  ;;  %v7395_v4 = vpop.f32.mrb[15].mxu1  ;;  %v7477_v61 = vrot.slane %v7468_v43, %v12395_v46 }
 0xecc   :  { %7427 = vst [vmem:[%s12173_s8 + $0xe8] sm:$0xff] %v7392_v35  ;;  %v7396_v30 = vadd.f32 %v7395_v4, %v12009_v31 }
 0xecd   :  { %7428 = vst [vmem:[%s12173_s8 + $0xf0] sm:$0xff] %v7394_v62 }
 0xece   :  { %7429 = vst [vmem:[%s12173_s8 + $0xf8] sm:$0xff] %v7396_v30 }
 0xf2e   :  { %v7674_v53 = vpop.f32.mrb[16].mxu1 }
 0xf2f   :  { %v7675_v60 = vadd.f32 %v7674_v53, %v7473_v34  ;;  %v7676_v10 = vpop.f32.mrb[17].mxu1 }
 0xf30   :  { %v7677_v41 = vadd.f32 %v7676_v10, %v7477_v61  ;;  %v7678_v21 = vpop.f32.mrb[18].mxu1 }
 0xf31   :  { %7693 = vst [vmem:[%s12174_s9] sm:$0xff] %v7675_v60  ;;  %v7679_v31 = vadd.f32 %v7678_v21, %v7473_v34  ;;  %v7680_v1 = vpop.f32.mrb[19].mxu1 }
 0xf32   :  { %7694 = vst [vmem:[%s12174_s9 + $0x8] sm:$0xff] %v7677_v41  ;;  %v7681_v47 = vadd.f32 %v7680_v1, %v7477_v61 }
 0xf33   :  { %7695 = vst [vmem:[%s12174_s9 + $0x10] sm:$0xff] %v7679_v31 }
 0xf34   :  { %7696 = vst [vmem:[%s12174_s9 + $0x18] sm:$0xff] %v7681_v47 }
 0xf36   :  { %v7684_v63 = vpop.f32.mrb[20].mxu1 }
 0xf37   :  { %v7685_v46 = vadd.f32 %v7684_v63, %v7473_v34  ;;  %v7686_v51 = vpop.f32.mrb[21].mxu1 }
 0xf38   :  { %v7687_v18 = vadd.f32 %v7686_v51, %v7477_v61  ;;  %v7688_v57 = vpop.f32.mrb[22].mxu1 }
 0xf39   :  { %7697 = vst [vmem:[%s12174_s9 + $0x20] sm:$0xff] %v7685_v46  ;;  %v7689_v9 = vadd.f32 %v7688_v57, %v7473_v34  ;;  %v7690_v23 = vpop.f32.mrb[23].mxu1 }
 0xf3a   :  { %7698 = vst [vmem:[%s12174_s9 + $0x28] sm:$0xff] %v7687_v18  ;;  %v7691_v56 = vadd.f32 %v7690_v23, %v7477_v61 }
 0xf3b   :  { %7699 = vst [vmem:[%s12174_s9 + $0x30] sm:$0xff] %v7689_v9 }
 0xf3c   :  { %7700 = vst [vmem:[%s12174_s9 + $0x38] sm:$0xff] %v7691_v56 }
 0xf3d   :  { %7713 = vsyncpa [#allocation3], 1 }
 0xf3e   :  { %7714 = vsyncpa [#allocation5], 1 }

</bundles_post_ra>
